<compile_context>
chip_gen: v7x
topology: tpu7x:2x2x1
jax: 0.10.0
libtpu: 0.0.40
codegen_flags: <defaults>
</compile_context>

<pallas_src>
import jax
import jax.numpy as jnp
from jax.experimental import pallas as pl
from jax.experimental.pallas import tpu as pltpu

# conv1 output (20x20) is phase-decomposed into 4 stride-2 phases, each stored
# as a flat (12 x 10) raster (rows 10,11 are zero padding) so every conv2
# offset window is ONE contiguous 100-row slice.
_PH_R, _PH_S = 12, 10
_P1_ROWS = 4 * _PH_R * _PH_S          # 480 rows of conv1-im2col per image
_K1 = 8 * 8 * 8                       # 512 conv1 patch features


# ----------------------------------------------------------------------------
# Kernel A: conv1 + conv2 + conv3 fused (one grid step per image)
# ----------------------------------------------------------------------------
def _convs_kernel(p1_ref, w1_ref, b1_ref, w2_ref, b2_ref, w3_ref, b3_ref,
                  o_ref, a1_ref, a2_ref):
    # conv1: (480, 512) @ (512, 32) ; rows are phase-ordered spatial positions
    h1 = jnp.dot(p1_ref[0], w1_ref[...], preferred_element_type=jnp.float32)
    a1_ref[...] = jnp.maximum(h1 + b1_ref[...], 0.0).astype(jnp.bfloat16)

    # conv2 (4x4, stride 2): offset-sum over the phase-decomposed conv1 output.
    # Each of the 16 kernel offsets is one contiguous 100-row slice -> matmul.
    # acc2 rows = 10*oh2 + ow2p on a padded 10x10 grid (col 9 / row 9 garbage).
    acc2 = jnp.zeros((100, 64), jnp.float32)
    for i in range(4):
        for j in range(4):
            ib, ir = i // 2, i % 2
            jb, jr = j // 2, j % 2
            ph = 2 * ir + jr
            start = ph * (_PH_R * _PH_S) + 10 * ib + jb
            acc2 = acc2 + jnp.dot(a1_ref[start:start + 100, :],
                                  w2_ref[4 * i + j],
                                  preferred_element_type=jnp.float32)
    a2_ref[...] = jnp.maximum(acc2 + b2_ref[...], 0.0).astype(jnp.bfloat16)

    # conv3 (3x3, stride 1) on the padded 9x10 grid held in a2.
    # acc3 rows = 10*oh3 + ow3p, oh3 in [0,7), ow3p in [0,10) (cols 7..9 garbage,
    # they are zeroed out by the padded fc1 weight downstream).
    acc3 = jnp.zeros((70, 64), jnp.float32)
    for i in range(3):
        for j in range(3):
            start = 10 * i + j
            acc3 = acc3 + jnp.dot(a2_ref[start:start + 70, :],
                                  w3_ref[3 * i + j],
                                  preferred_element_type=jnp.float32)
    o_ref[0] = jnp.maximum(acc3 + b3_ref[...], 0.0).astype(o_ref.dtype)


def conv_stack(prep, p1):
    n = p1.shape[0]
    return pl.pallas_call(
        _convs_kernel,
        out_shape=jax.ShapeDtypeStruct((n, 70, 64), jnp.bfloat16),
        grid=(n,),
        in_specs=[
            pl.BlockSpec((1, _P1_ROWS, _K1), lambda b: (b, 0, 0)),   # im2col(x)
            pl.BlockSpec((_K1, 32), lambda b: (0, 0)),               # w1
            pl.BlockSpec((1, 32), lambda b: (0, 0)),                 # b1
            pl.BlockSpec((16, 32, 64), lambda b: (0, 0, 0)),         # w2 per offset
            pl.BlockSpec((1, 64), lambda b: (0, 0)),                 # b2
            pl.BlockSpec((9, 64, 64), lambda b: (0, 0, 0)),          # w3 per offset
            pl.BlockSpec((1, 64), lambda b: (0, 0)),                 # b3
        ],
        out_specs=pl.BlockSpec((1, 70, 64), lambda b: (b, 0, 0)),
        scratch_shapes=[
            pltpu.VMEM((_P1_ROWS, 32), jnp.bfloat16),   # conv1 activations
            pltpu.VMEM((100, 64), jnp.bfloat16),        # conv2 activations
        ],
        compiler_params=pltpu.CompilerParams(dimension_semantics=("parallel",)),
    )(p1, prep["w1"], prep["b1"], prep["w2"], prep["b2"], prep["w3"], prep["b3"])


# ----------------------------------------------------------------------------
# Kernel B: fc1 + head fused, K-tiled with f32 accumulator
# ----------------------------------------------------------------------------
def _fc_head_kernel(x_ref, w1_ref, b1_ref, wh_ref, bh_ref, o_ref, acc_ref):
    k = pl.program_id(0)

    @pl.when(k == 0)
    def _():
        acc_ref[...] = jnp.zeros_like(acc_ref)

    acc_ref[...] += jnp.dot(x_ref[...], w1_ref[...],
                            preferred_element_type=jnp.float32)

    @pl.when(k == pl.num_programs(0) - 1)
    def _():
        h = jnp.maximum(acc_ref[...] + b1_ref[...], 0.0).astype(jnp.bfloat16)
        out = jnp.dot(h, wh_ref[...], preferred_element_type=jnp.float32)
        o_ref[...] = (out + bh_ref[...]).astype(o_ref.dtype)


def fc_head(prep, x2, *, k_tiles=5):
    n, k_total = x2.shape
    assert k_total % k_tiles == 0
    tk = k_total // k_tiles                      # 4480 / 5 = 896 (multiple of 128)
    return pl.pallas_call(
        _fc_head_kernel,
        out_shape=jax.ShapeDtypeStruct((n, 128), jnp.float32),
        grid=(k_tiles,),
        in_specs=[
            pl.BlockSpec((n, tk), lambda k: (0, k)),        # activation K-tile
            pl.BlockSpec((tk, 512), lambda k: (k, 0)),      # fc1 weight K-tile
            pl.BlockSpec((1, 512), lambda k: (0, 0)),       # fc1 bias
            pl.BlockSpec((512, 128), lambda k: (0, 0)),     # head weight (padded)
            pl.BlockSpec((1, 128), lambda k: (0, 0)),       # head bias (padded)
        ],
        out_specs=pl.BlockSpec((n, 128), lambda k: (0, 0)),
        scratch_shapes=[pltpu.VMEM((n, 512), jnp.float32)],
        compiler_params=pltpu.CompilerParams(dimension_semantics=("arbitrary",)),
    )(x2, prep["wfc1"], prep["bfc1"], prep["whead"], prep["bhead"])


# ----------------------------------------------------------------------------
# XLA glue: phase-ordered im2col of the raw input (conv1 only)
# ----------------------------------------------------------------------------
def _conv1_patches(x):
    """(N,8,84,84) f32 -> (N, 480, 512) bf16, rows = (phase, r, s) per image."""
    n = x.shape[0]
    cols = []
    for ki in range(8):
        for kj in range(8):
            cols.append(x[:, :, ki:ki + 77:4, kj:kj + 77:4])   # (n, 8, 20, 20)
    col = jnp.stack(cols, axis=2)                  # (n, ci, ki*8+kj, oh, ow)
    col = col.reshape(n, _K1, 20, 20)              # feature = ci*64 + ki*8 + kj
    col = col.reshape(n, _K1, 10, 2, 10, 2)        # oh=(r,ir), ow=(s,jr)
    col = col.transpose(0, 3, 5, 2, 4, 1)          # (n, ir, jr, r, s, f)
    col = jnp.pad(col, ((0, 0), (0, 0), (0, 0), (0, _PH_R - 10), (0, 0), (0, 0)))
    return col.reshape(n, _P1_ROWS, _K1).astype(jnp.bfloat16)


def self_prediction_forward(prep, x, num_actions):
    """x: (N, 8, 84, 84) float32 NCHW -> logits (N, num_actions) float32."""
    n = x.shape[0]
    p1 = _conv1_patches(x)                 # XLA im2col of raw input only
    a3 = conv_stack(prep, p1)              # (n, 70, 64) bf16, conv3 output
    x2 = a3.reshape(n, 70 * 64)            # free reshape; flatten perm folded
    out = fc_head(prep, x2)                #   into the padded fc1 weight
    return out[:, :num_actions]
    # TODO(synk): get_loss (nn.CrossEntropyLoss) is not part of forward(); not implemented.


# ----------------------------------------------------------------------------
# Parameter preparation (PyTorch layouts -> kernel layouts, done once)
# ----------------------------------------------------------------------------
def prepare_params(params):
    prep = {}
    prep["w1"] = params["c1_w"].reshape(32, _K1).T.astype(jnp.bfloat16)      # (512, 32)
    prep["b1"] = params["c1_b"].reshape(1, 32).astype(jnp.float32)
    prep["w2"] = params["c2_w"].transpose(2, 3, 1, 0).reshape(16, 32, 64).astype(jnp.bfloat16)
    prep["b2"] = params["c2_b"].reshape(1, 64).astype(jnp.float32)
    prep["w3"] = params["c3_w"].transpose(2, 3, 1, 0).reshape(9, 64, 64).astype(jnp.bfloat16)
    prep["b3"] = params["c3_b"].reshape(1, 64).astype(jnp.float32)
    # fc1 weight: (512, 3136) -> (oh3, padded ow3p, c, o) = (7,10,64,512) -> (4480, 512)
    w = params["fc1_w"].reshape(512, 64, 7, 7)          # (o, c, oh3, ow3)
    w = jnp.pad(w, ((0, 0), (0, 0), (0, 0), (0, 3)))    # ow3 -> 10 (pad cols = 0)
    w = w.transpose(2, 3, 1, 0).reshape(70 * 64, 512)
    prep["wfc1"] = w.astype(jnp.bfloat16)
    prep["bfc1"] = params["fc1_b"].reshape(1, 512).astype(jnp.float32)
    # head: pad output lanes to 128 for an unmasked store; sliced back in XLA
    a = params["head_w"].shape[0]
    wh = jnp.zeros((512, 128), jnp.float32).at[:, :a].set(params["head_w"].T)
    prep["whead"] = wh.astype(jnp.bfloat16)
    prep["bhead"] = jnp.zeros((1, 128), jnp.float32).at[0, :a].set(params["head_b"])
    return prep


def init_params(key, motor_action_space_size=6):
    """Deterministic synthetic init matching the PyTorch module's shapes."""
    keys = jax.random.split(key, 10)

    def u(k, shape, fan_in):
        bound = 1.0 / float(fan_in) ** 0.5
        return jax.random.uniform(k, shape, jnp.float32, -bound, bound)

    p = {}
    p["c1_w"] = u(keys[0], (32, 8, 8, 8), 8 * 8 * 8)
    p["c1_b"] = u(keys[1], (32,), 8 * 8 * 8)
    p["c2_w"] = u(keys[2], (64, 32, 4, 4), 32 * 4 * 4)
    p["c2_b"] = u(keys[3], (64,), 32 * 4 * 4)
    p["c3_w"] = u(keys[4], (64, 64, 3, 3), 64 * 3 * 3)
    p["c3_b"] = u(keys[5], (64,), 64 * 3 * 3)
    p["fc1_w"] = u(keys[6], (512, 3136), 3136)          # PyTorch Linear: (out, in)
    p["fc1_b"] = u(keys[7], (512,), 3136)
    p["head_w"] = u(keys[8], (motor_action_space_size, 512), 512)
    p["head_b"] = u(keys[9], (motor_action_space_size,), 512)
    return p


if __name__ == "__main__":
    key = jax.random.PRNGKey(0)
    pkey, xkey = jax.random.split(key)
    motor_actions = 6                                   # e.g. Discrete(6) Atari actions
    params = init_params(pkey, motor_actions)
    prep = prepare_params(params)                       # one-time weight re-layout

    # Linear(3136, 512) in the module implies 8x84x84 inputs; batch kept small.
    x = jax.random.uniform(xkey, (2, 8, 84, 84), jnp.float32)   # NCHW like PyTorch

    fwd = jax.jit(self_prediction_forward, static_argnums=2)
    out = fwd(prep, x, motor_actions)
    jax.block_until_ready(out)
    assert out.shape == (2, motor_actions), out.shape
    assert out.dtype == jnp.float32
    assert bool(jnp.all(jnp.isfinite(out)))
    print("KERNEL_OK")
</pallas_src>

<mosaic_0001>
module attributes {stable_mosaic.version = 11 : i64} {
  func.func @_convs_kernel(%arg0: i32, %arg1: memref<1x480x512xbf16, #tpu.memory_space<vmem>>, %arg2: memref<512x32xbf16, #tpu.memory_space<vmem>>, %arg3: memref<1x32xf32, #tpu.memory_space<vmem>>, %arg4: memref<16x32x64xbf16, #tpu.memory_space<vmem>>, %arg5: memref<1x64xf32, #tpu.memory_space<vmem>>, %arg6: memref<9x64x64xbf16, #tpu.memory_space<vmem>>, %arg7: memref<1x64xf32, #tpu.memory_space<vmem>>, %arg8: memref<1x70x64xbf16, #tpu.memory_space<vmem>>, %arg9: memref<480x32xbf16, #tpu.memory_space<vmem>>, %arg10: memref<100x64xbf16, #tpu.memory_space<vmem>>) attributes {dimension_semantics = [#tpu.dimension_semantics<parallel>], iteration_bounds = array<i64: 2>, scalar_prefetch = 0 : i64, scratch_operands = 2 : i64, tpu.core_type = #tpu.core_type<tc>, window_params = [{transform_indices = @transform_0, window_bounds = array<i64: 1, 480, 512>}, {pipeline_mode = #tpu.pipeline_mode<synchronous>, transform_indices = @transform_1, window_bounds = array<i64: 512, 32>}, {pipeline_mode = #tpu.pipeline_mode<synchronous>, transform_indices = @transform_2, window_bounds = array<i64: 1, 32>}, {pipeline_mode = #tpu.pipeline_mode<synchronous>, transform_indices = @transform_3, window_bounds = array<i64: 16, 32, 64>}, {pipeline_mode = #tpu.pipeline_mode<synchronous>, transform_indices = @transform_4, window_bounds = array<i64: 1, 64>}, {pipeline_mode = #tpu.pipeline_mode<synchronous>, transform_indices = @transform_5, window_bounds = array<i64: 9, 64, 64>}, {pipeline_mode = #tpu.pipeline_mode<synchronous>, transform_indices = @transform_6, window_bounds = array<i64: 1, 64>}, {transform_indices = @transform_7, window_bounds = array<i64: 1, 70, 64>}]} {
    %c0 = arith.constant 0 : index
    %c0_0 = arith.constant 0 : index
    %c0_1 = arith.constant 0 : index
    %0 = vector.load %arg1[%c0, %c0_0, %c0_1] : memref<1x480x512xbf16, #tpu.memory_space<vmem>>, vector<1x480x512xbf16>
    %1 = vector.shape_cast %0 : vector<1x480x512xbf16> to vector<480x512xbf16>
    %c0_2 = arith.constant 0 : index
    %c0_3 = arith.constant 0 : index
    %2 = vector.load %arg2[%c0_2, %c0_3] : memref<512x32xbf16, #tpu.memory_space<vmem>>, vector<512x32xbf16>
    %cst = arith.constant dense<0.000000e+00> : vector<480x32xf32>
    %3 = tpu.matmul %1, %2, %cst {dimension_numbers = #tpu.dot_dimension_numbers<[1], [0], [0], [1], [0, 0, 1, 1], [], []>} : vector<480x512xbf16>, vector<512x32xbf16>, vector<480x32xf32> -> vector<480x32xf32>
    %c0_4 = arith.constant 0 : index
    %c0_5 = arith.constant 0 : index
    %4 = vector.load %arg3[%c0_4, %c0_5] : memref<1x32xf32, #tpu.memory_space<vmem>>, vector<1x32xf32>
    %5 = vector.broadcast %4 : vector<1x32xf32> to vector<480x32xf32>
    %6 = arith.addf %3, %5 : vector<480x32xf32>
    %cst_6 = arith.constant 0.000000e+00 : f32
    %7 = vector.broadcast %cst_6 : f32 to vector<480x32xf32>
    %8 = arith.maximumf %6, %7 : vector<480x32xf32>
    %9 = arith.truncf %8 : vector<480x32xf32> to vector<480x32xbf16>
    %c0_7 = arith.constant 0 : index
    %c0_8 = arith.constant 0 : index
    %10 = vector.load %arg9[%c0_7, %c0_8] : memref<480x32xbf16, #tpu.memory_space<vmem>>, vector<480x32xbf16>
    tpu.vector_store %arg9[%c0_7, %c0_8], %9 {strides = array<i32>} : memref<480x32xbf16, #tpu.memory_space<vmem>>, vector<480x32xbf16>,
    %cst_9 = arith.constant 0.000000e+00 : f32
    %11 = vector.broadcast %cst_9 : f32 to vector<100x64xf32>
    %c0_10 = arith.constant 0 : index
    %c0_11 = arith.constant 0 : index
    %12 = vector.load %arg9[%c0_10, %c0_11] : memref<480x32xbf16, #tpu.memory_space<vmem>>, vector<100x32xbf16>
    %c0_12 = arith.constant 0 : index
    %c0_13 = arith.constant 0 : index
    %c0_14 = arith.constant 0 : index
    %13 = vector.load %arg4[%c0_12, %c0_13, %c0_14] : memref<16x32x64xbf16, #tpu.memory_space<vmem>>, vector<1x32x64xbf16>
    %14 = vector.shape_cast %13 : vector<1x32x64xbf16> to vector<32x64xbf16>
    %cst_15 = arith.constant dense<0.000000e+00> : vector<100x64xf32>
    %15 = tpu.matmul %12, %14, %cst_15 {dimension_numbers = #tpu.dot_dimension_numbers<[1], [0], [0], [1], [0, 0, 1, 1], [], []>} : vector<100x32xbf16>, vector<32x64xbf16>, vector<100x64xf32> -> vector<100x64xf32>
    %16 = arith.addf %11, %15 : vector<100x64xf32>
    %c120 = arith.constant 120 : index
    %c0_16 = arith.constant 0 : index
    %17 = vector.load %arg9[%c120, %c0_16] : memref<480x32xbf16, #tpu.memory_space<vmem>>, vector<100x32xbf16>
    %c1 = arith.constant 1 : index
    %c0_17 = arith.constant 0 : index
    %c0_18 = arith.constant 0 : index
    %18 = vector.load %arg4[%c1, %c0_17, %c0_18] : memref<16x32x64xbf16, #tpu.memory_space<vmem>>, vector<1x32x64xbf16>
    %19 = vector.shape_cast %18 : vector<1x32x64xbf16> to vector<32x64xbf16>
    %cst_19 = arith.constant dense<0.000000e+00> : vector<100x64xf32>
    %20 = tpu.matmul %17, %19, %cst_19 {dimension_numbers = #tpu.dot_dimension_numbers<[1], [0], [0], [1], [0, 0, 1, 1], [], []>} : vector<100x32xbf16>, vector<32x64xbf16>, vector<100x64xf32> -> vector<100x64xf32>
    %21 = arith.addf %16, %20 : vector<100x64xf32>
    %c1_20 = arith.constant 1 : index
    %c0_21 = arith.constant 0 : index
    %22 = vector.load %arg9[%c1_20, %c0_21] : memref<480x32xbf16, #tpu.memory_space<vmem>>, vector<100x32xbf16>
    %c2 = arith.constant 2 : index
    %c0_22 = arith.constant 0 : index
    %c0_23 = arith.constant 0 : index
    %23 = vector.load %arg4[%c2, %c0_22, %c0_23] : memref<16x32x64xbf16, #tpu.memory_space<vmem>>, vector<1x32x64xbf16>
    %24 = vector.shape_cast %23 : vector<1x32x64xbf16> to vector<32x64xbf16>
    %cst_24 = arith.constant dense<0.000000e+00> : vector<100x64xf32>
    %25 = tpu.matmul %22, %24, %cst_24 {dimension_numbers = #tpu.dot_dimension_numbers<[1], [0], [0], [1], [0, 0, 1, 1], [], []>} : vector<100x32xbf16>, vector<32x64xbf16>, vector<100x64xf32> -> vector<100x64xf32>
    %26 = arith.addf %21, %25 : vector<100x64xf32>
    %c121 = arith.constant 121 : index
    %c0_25 = arith.constant 0 : index
    %27 = vector.load %arg9[%c121, %c0_25] : memref<480x32xbf16, #tpu.memory_space<vmem>>, vector<100x32xbf16>
    %c3 = arith.constant 3 : index
    %c0_26 = arith.constant 0 : index
    %c0_27 = arith.constant 0 : index
    %28 = vector.load %arg4[%c3, %c0_26, %c0_27] : memref<16x32x64xbf16, #tpu.memory_space<vmem>>, vector<1x32x64xbf16>
    %29 = vector.shape_cast %28 : vector<1x32x64xbf16> to vector<32x64xbf16>
    %cst_28 = arith.constant dense<0.000000e+00> : vector<100x64xf32>
    %30 = tpu.matmul %27, %29, %cst_28 {dimension_numbers = #tpu.dot_dimension_numbers<[1], [0], [0], [1], [0, 0, 1, 1], [], []>} : vector<100x32xbf16>, vector<32x64xbf16>, vector<100x64xf32> -> vector<100x64xf32>
    %31 = arith.addf %26, %30 : vector<100x64xf32>
    %c240 = arith.constant 240 : index
    %c0_29 = arith.constant 0 : index
    %32 = vector.load %arg9[%c240, %c0_29] : memref<480x32xbf16, #tpu.memory_space<vmem>>, vector<100x32xbf16>
    %c4 = arith.constant 4 : index
    %c0_30 = arith.constant 0 : index
    %c0_31 = arith.constant 0 : index
    %33 = vector.load %arg4[%c4, %c0_30, %c0_31] : memref<16x32x64xbf16, #tpu.memory_space<vmem>>, vector<1x32x64xbf16>
    %34 = vector.shape_cast %33 : vector<1x32x64xbf16> to vector<32x64xbf16>
    %cst_32 = arith.constant dense<0.000000e+00> : vector<100x64xf32>
    %35 = tpu.matmul %32, %34, %cst_32 {dimension_numbers = #tpu.dot_dimension_numbers<[1], [0], [0], [1], [0, 0, 1, 1], [], []>} : vector<100x32xbf16>, vector<32x64xbf16>, vector<100x64xf32> -> vector<100x64xf32>
    %36 = arith.addf %31, %35 : vector<100x64xf32>
    %c360 = arith.constant 360 : index
    %c0_33 = arith.constant 0 : index
    %37 = vector.load %arg9[%c360, %c0_33] : memref<480x32xbf16, #tpu.memory_space<vmem>>, vector<100x32xbf16>
    %c5 = arith.constant 5 : index
    %c0_34 = arith.constant 0 : index
    %c0_35 = arith.constant 0 : index
    %38 = vector.load %arg4[%c5, %c0_34, %c0_35] : memref<16x32x64xbf16, #tpu.memory_space<vmem>>, vector<1x32x64xbf16>
    %39 = vector.shape_cast %38 : vector<1x32x64xbf16> to vector<32x64xbf16>
    %cst_36 = arith.constant dense<0.000000e+00> : vector<100x64xf32>
    %40 = tpu.matmul %37, %39, %cst_36 {dimension_numbers = #tpu.dot_dimension_numbers<[1], [0], [0], [1], [0, 0, 1, 1], [], []>} : vector<100x32xbf16>, vector<32x64xbf16>, vector<100x64xf32> -> vector<100x64xf32>
    %41 = arith.addf %36, %40 : vector<100x64xf32>
    %c241 = arith.constant 241 : index
    %c0_37 = arith.constant 0 : index
    %42 = vector.load %arg9[%c241, %c0_37] : memref<480x32xbf16, #tpu.memory_space<vmem>>, vector<100x32xbf16>
    %c6 = arith.constant 6 : index
    %c0_38 = arith.constant 0 : index
    %c0_39 = arith.constant 0 : index
    %43 = vector.load %arg4[%c6, %c0_38, %c0_39] : memref<16x32x64xbf16, #tpu.memory_space<vmem>>, vector<1x32x64xbf16>
    %44 = vector.shape_cast %43 : vector<1x32x64xbf16> to vector<32x64xbf16>
    %cst_40 = arith.constant dense<0.000000e+00> : vector<100x64xf32>
    %45 = tpu.matmul %42, %44, %cst_40 {dimension_numbers = #tpu.dot_dimension_numbers<[1], [0], [0], [1], [0, 0, 1, 1], [], []>} : vector<100x32xbf16>, vector<32x64xbf16>, vector<100x64xf32> -> vector<100x64xf32>
    %46 = arith.addf %41, %45 : vector<100x64xf32>
    %c361 = arith.constant 361 : index
    %c0_41 = arith.constant 0 : index
    %47 = vector.load %arg9[%c361, %c0_41] : memref<480x32xbf16, #tpu.memory_space<vmem>>, vector<100x32xbf16>
    %c7 = arith.constant 7 : index
    %c0_42 = arith.constant 0 : index
    %c0_43 = arith.constant 0 : index
    %48 = vector.load %arg4[%c7, %c0_42, %c0_43] : memref<16x32x64xbf16, #tpu.memory_space<vmem>>, vector<1x32x64xbf16>
    %49 = vector.shape_cast %48 : vector<1x32x64xbf16> to vector<32x64xbf16>
    %cst_44 = arith.constant dense<0.000000e+00> : vector<100x64xf32>
    %50 = tpu.matmul %47, %49, %cst_44 {dimension_numbers = #tpu.dot_dimension_numbers<[1], [0], [0], [1], [0, 0, 1, 1], [], []>} : vector<100x32xbf16>, vector<32x64xbf16>, vector<100x64xf32> -> vector<100x64xf32>
    %51 = arith.addf %46, %50 : vector<100x64xf32>
    %c10 = arith.constant 10 : index
    %c0_45 = arith.constant 0 : index
    %52 = vector.load %arg9[%c10, %c0_45] : memref<480x32xbf16, #tpu.memory_space<vmem>>, vector<100x32xbf16>
    %c8 = arith.constant 8 : index
    %c0_46 = arith.constant 0 : index
    %c0_47 = arith.constant 0 : index
    %53 = vector.load %arg4[%c8, %c0_46, %c0_47] : memref<16x32x64xbf16, #tpu.memory_space<vmem>>, vector<1x32x64xbf16>
    %54 = vector.shape_cast %53 : vector<1x32x64xbf16> to vector<32x64xbf16>
    %cst_48 = arith.constant dense<0.000000e+00> : vector<100x64xf32>
    %55 = tpu.matmul %52, %54, %cst_48 {dimension_numbers = #tpu.dot_dimension_numbers<[1], [0], [0], [1], [0, 0, 1, 1], [], []>} : vector<100x32xbf16>, vector<32x64xbf16>, vector<100x64xf32> -> vector<100x64xf32>
    %56 = arith.addf %51, %55 : vector<100x64xf32>
    %c130 = arith.constant 130 : index
    %c0_49 = arith.constant 0 : index
    %57 = vector.load %arg9[%c130, %c0_49] : memref<480x32xbf16, #tpu.memory_space<vmem>>, vector<100x32xbf16>
    %c9 = arith.constant 9 : index
    %c0_50 = arith.constant 0 : index
    %c0_51 = arith.constant 0 : index
    %58 = vector.load %arg4[%c9, %c0_50, %c0_51] : memref<16x32x64xbf16, #tpu.memory_space<vmem>>, vector<1x32x64xbf16>
    %59 = vector.shape_cast %58 : vector<1x32x64xbf16> to vector<32x64xbf16>
    %cst_52 = arith.constant dense<0.000000e+00> : vector<100x64xf32>
    %60 = tpu.matmul %57, %59, %cst_52 {dimension_numbers = #tpu.dot_dimension_numbers<[1], [0], [0], [1], [0, 0, 1, 1], [], []>} : vector<100x32xbf16>, vector<32x64xbf16>, vector<100x64xf32> -> vector<100x64xf32>
    %61 = arith.addf %56, %60 : vector<100x64xf32>
    %c11 = arith.constant 11 : index
    %c0_53 = arith.constant 0 : index
    %62 = vector.load %arg9[%c11, %c0_53] : memref<480x32xbf16, #tpu.memory_space<vmem>>, vector<100x32xbf16>
    %c10_54 = arith.constant 10 : index
    %c0_55 = arith.constant 0 : index
    %c0_56 = arith.constant 0 : index
    %63 = vector.load %arg4[%c10_54, %c0_55, %c0_56] : memref<16x32x64xbf16, #tpu.memory_space<vmem>>, vector<1x32x64xbf16>
    %64 = vector.shape_cast %63 : vector<1x32x64xbf16> to vector<32x64xbf16>
    %cst_57 = arith.constant dense<0.000000e+00> : vector<100x64xf32>
    %65 = tpu.matmul %62, %64, %cst_57 {dimension_numbers = #tpu.dot_dimension_numbers<[1], [0], [0], [1], [0, 0, 1, 1], [], []>} : vector<100x32xbf16>, vector<32x64xbf16>, vector<100x64xf32> -> vector<100x64xf32>
    %66 = arith.addf %61, %65 : vector<100x64xf32>
    %c131 = arith.constant 131 : index
    %c0_58 = arith.constant 0 : index
    %67 = vector.load %arg9[%c131, %c0_58] : memref<480x32xbf16, #tpu.memory_space<vmem>>, vector<100x32xbf16>
    %c11_59 = arith.constant 11 : index
    %c0_60 = arith.constant 0 : index
    %c0_61 = arith.constant 0 : index
    %68 = vector.load %arg4[%c11_59, %c0_60, %c0_61] : memref<16x32x64xbf16, #tpu.memory_space<vmem>>, vector<1x32x64xbf16>
    %69 = vector.shape_cast %68 : vector<1x32x64xbf16> to vector<32x64xbf16>
    %cst_62 = arith.constant dense<0.000000e+00> : vector<100x64xf32>
    %70 = tpu.matmul %67, %69, %cst_62 {dimension_numbers = #tpu.dot_dimension_numbers<[1], [0], [0], [1], [0, 0, 1, 1], [], []>} : vector<100x32xbf16>, vector<32x64xbf16>, vector<100x64xf32> -> vector<100x64xf32>
    %71 = arith.addf %66, %70 : vector<100x64xf32>
    %c250 = arith.constant 250 : index
    %c0_63 = arith.constant 0 : index
    %72 = vector.load %arg9[%c250, %c0_63] : memref<480x32xbf16, #tpu.memory_space<vmem>>, vector<100x32xbf16>
    %c12 = arith.constant 12 : index
    %c0_64 = arith.constant 0 : index
    %c0_65 = arith.constant 0 : index
    %73 = vector.load %arg4[%c12, %c0_64, %c0_65] : memref<16x32x64xbf16, #tpu.memory_space<vmem>>, vector<1x32x64xbf16>
    %74 = vector.shape_cast %73 : vector<1x32x64xbf16> to vector<32x64xbf16>
    %cst_66 = arith.constant dense<0.000000e+00> : vector<100x64xf32>
    %75 = tpu.matmul %72, %74, %cst_66 {dimension_numbers = #tpu.dot_dimension_numbers<[1], [0], [0], [1], [0, 0, 1, 1], [], []>} : vector<100x32xbf16>, vector<32x64xbf16>, vector<100x64xf32> -> vector<100x64xf32>
    %76 = arith.addf %71, %75 : vector<100x64xf32>
    %c370 = arith.constant 370 : index
    %c0_67 = arith.constant 0 : index
    %77 = vector.load %arg9[%c370, %c0_67] : memref<480x32xbf16, #tpu.memory_space<vmem>>, vector<100x32xbf16>
    %c13 = arith.constant 13 : index
    %c0_68 = arith.constant 0 : index
    %c0_69 = arith.constant 0 : index
    %78 = vector.load %arg4[%c13, %c0_68, %c0_69] : memref<16x32x64xbf16, #tpu.memory_space<vmem>>, vector<1x32x64xbf16>
    %79 = vector.shape_cast %78 : vector<1x32x64xbf16> to vector<32x64xbf16>
    %cst_70 = arith.constant dense<0.000000e+00> : vector<100x64xf32>
    %80 = tpu.matmul %77, %79, %cst_70 {dimension_numbers = #tpu.dot_dimension_numbers<[1], [0], [0], [1], [0, 0, 1, 1], [], []>} : vector<100x32xbf16>, vector<32x64xbf16>, vector<100x64xf32> -> vector<100x64xf32>
    %81 = arith.addf %76, %80 : vector<100x64xf32>
    %c251 = arith.constant 251 : index
    %c0_71 = arith.constant 0 : index
    %82 = vector.load %arg9[%c251, %c0_71] : memref<480x32xbf16, #tpu.memory_space<vmem>>, vector<100x32xbf16>
    %c14 = arith.constant 14 : index
    %c0_72 = arith.constant 0 : index
    %c0_73 = arith.constant 0 : index
    %83 = vector.load %arg4[%c14, %c0_72, %c0_73] : memref<16x32x64xbf16, #tpu.memory_space<vmem>>, vector<1x32x64xbf16>
    %84 = vector.shape_cast %83 : vector<1x32x64xbf16> to vector<32x64xbf16>
    %cst_74 = arith.constant dense<0.000000e+00> : vector<100x64xf32>
    %85 = tpu.matmul %82, %84, %cst_74 {dimension_numbers = #tpu.dot_dimension_numbers<[1], [0], [0], [1], [0, 0, 1, 1], [], []>} : vector<100x32xbf16>, vector<32x64xbf16>, vector<100x64xf32> -> vector<100x64xf32>
    %86 = arith.addf %81, %85 : vector<100x64xf32>
    %c371 = arith.constant 371 : index
    %c0_75 = arith.constant 0 : index
    %87 = vector.load %arg9[%c371, %c0_75] : memref<480x32xbf16, #tpu.memory_space<vmem>>, vector<100x32xbf16>
    %c15 = arith.constant 15 : index
    %c0_76 = arith.constant 0 : index
    %c0_77 = arith.constant 0 : index
    %88 = vector.load %arg4[%c15, %c0_76, %c0_77] : memref<16x32x64xbf16, #tpu.memory_space<vmem>>, vector<1x32x64xbf16>
    %89 = vector.shape_cast %88 : vector<1x32x64xbf16> to vector<32x64xbf16>
    %cst_78 = arith.constant dense<0.000000e+00> : vector<100x64xf32>
    %90 = tpu.matmul %87, %89, %cst_78 {dimension_numbers = #tpu.dot_dimension_numbers<[1], [0], [0], [1], [0, 0, 1, 1], [], []>} : vector<100x32xbf16>, vector<32x64xbf16>, vector<100x64xf32> -> vector<100x64xf32>
    %91 = arith.addf %86, %90 : vector<100x64xf32>
    %c0_79 = arith.constant 0 : index
    %c0_80 = arith.constant 0 : index
    %92 = vector.load %arg5[%c0_79, %c0_80] : memref<1x64xf32, #tpu.memory_space<vmem>>, vector<1x64xf32>
    %93 = vector.broadcast %92 : vector<1x64xf32> to vector<100x64xf32>
    %94 = arith.addf %91, %93 : vector<100x64xf32>
    %cst_81 = arith.constant 0.000000e+00 : f32
    %95 = vector.broadcast %cst_81 : f32 to vector<100x64xf32>
    %96 = arith.maximumf %94, %95 : vector<100x64xf32>
    %97 = arith.truncf %96 : vector<100x64xf32> to vector<100x64xbf16>
    %c0_82 = arith.constant 0 : index
    %c0_83 = arith.constant 0 : index
    %98 = vector.load %arg10[%c0_82, %c0_83] : memref<100x64xbf16, #tpu.memory_space<vmem>>, vector<100x64xbf16>
    tpu.vector_store %arg10[%c0_82, %c0_83], %97 {strides = array<i32>} : memref<100x64xbf16, #tpu.memory_space<vmem>>, vector<100x64xbf16>,
    %cst_84 = arith.constant 0.000000e+00 : f32
    %99 = vector.broadcast %cst_84 : f32 to vector<70x64xf32>
    %c0_85 = arith.constant 0 : index
    %c0_86 = arith.constant 0 : index
    %100 = vector.load %arg10[%c0_85, %c0_86] : memref<100x64xbf16, #tpu.memory_space<vmem>>, vector<70x64xbf16>
    %c0_87 = arith.constant 0 : index
    %c0_88 = arith.constant 0 : index
    %c0_89 = arith.constant 0 : index
    %101 = vector.load %arg6[%c0_87, %c0_88, %c0_89] : memref<9x64x64xbf16, #tpu.memory_space<vmem>>, vector<1x64x64xbf16>
    %102 = vector.shape_cast %101 : vector<1x64x64xbf16> to vector<64x64xbf16>
    %cst_90 = arith.constant dense<0.000000e+00> : vector<70x64xf32>
    %103 = tpu.matmul %100, %102, %cst_90 {dimension_numbers = #tpu.dot_dimension_numbers<[1], [0], [0], [1], [0, 0, 1, 1], [], []>} : vector<70x64xbf16>, vector<64x64xbf16>, vector<70x64xf32> -> vector<70x64xf32>
    %104 = arith.addf %99, %103 : vector<70x64xf32>
    %c1_91 = arith.constant 1 : index
    %c0_92 = arith.constant 0 : index
    %105 = vector.load %arg10[%c1_91, %c0_92] : memref<100x64xbf16, #tpu.memory_space<vmem>>, vector<70x64xbf16>
    %c1_93 = arith.constant 1 : index
    %c0_94 = arith.constant 0 : index
    %c0_95 = arith.constant 0 : index
    %106 = vector.load %arg6[%c1_93, %c0_94, %c0_95] : memref<9x64x64xbf16, #tpu.memory_space<vmem>>, vector<1x64x64xbf16>
    %107 = vector.shape_cast %106 : vector<1x64x64xbf16> to vector<64x64xbf16>
    %cst_96 = arith.constant dense<0.000000e+00> : vector<70x64xf32>
    %108 = tpu.matmul %105, %107, %cst_96 {dimension_numbers = #tpu.dot_dimension_numbers<[1], [0], [0], [1], [0, 0, 1, 1], [], []>} : vector<70x64xbf16>, vector<64x64xbf16>, vector<70x64xf32> -> vector<70x64xf32>
    %109 = arith.addf %104, %108 : vector<70x64xf32>
    %c2_97 = arith.constant 2 : index
    %c0_98 = arith.constant 0 : index
    %110 = vector.load %arg10[%c2_97, %c0_98] : memref<100x64xbf16, #tpu.memory_space<vmem>>, vector<70x64xbf16>
    %c2_99 = arith.constant 2 : index
    %c0_100 = arith.constant 0 : index
    %c0_101 = arith.constant 0 : index
    %111 = vector.load %arg6[%c2_99, %c0_100, %c0_101] : memref<9x64x64xbf16, #tpu.memory_space<vmem>>, vector<1x64x64xbf16>
    %112 = vector.shape_cast %111 : vector<1x64x64xbf16> to vector<64x64xbf16>
    %cst_102 = arith.constant dense<0.000000e+00> : vector<70x64xf32>
    %113 = tpu.matmul %110, %112, %cst_102 {dimension_numbers = #tpu.dot_dimension_numbers<[1], [0], [0], [1], [0, 0, 1, 1], [], []>} : vector<70x64xbf16>, vector<64x64xbf16>, vector<70x64xf32> -> vector<70x64xf32>
    %114 = arith.addf %109, %113 : vector<70x64xf32>
    %c10_103 = arith.constant 10 : index
    %c0_104 = arith.constant 0 : index
    %115 = vector.load %arg10[%c10_103, %c0_104] : memref<100x64xbf16, #tpu.memory_space<vmem>>, vector<70x64xbf16>
    %c3_105 = arith.constant 3 : index
    %c0_106 = arith.constant 0 : index
    %c0_107 = arith.constant 0 : index
    %116 = vector.load %arg6[%c3_105, %c0_106, %c0_107] : memref<9x64x64xbf16, #tpu.memory_space<vmem>>, vector<1x64x64xbf16>
    %117 = vector.shape_cast %116 : vector<1x64x64xbf16> to vector<64x64xbf16>
    %cst_108 = arith.constant dense<0.000000e+00> : vector<70x64xf32>
    %118 = tpu.matmul %115, %117, %cst_108 {dimension_numbers = #tpu.dot_dimension_numbers<[1], [0], [0], [1], [0, 0, 1, 1], [], []>} : vector<70x64xbf16>, vector<64x64xbf16>, vector<70x64xf32> -> vector<70x64xf32>
    %119 = arith.addf %114, %118 : vector<70x64xf32>
    %c11_109 = arith.constant 11 : index
    %c0_110 = arith.constant 0 : index
    %120 = vector.load %arg10[%c11_109, %c0_110] : memref<100x64xbf16, #tpu.memory_space<vmem>>, vector<70x64xbf16>
    %c4_111 = arith.constant 4 : index
    %c0_112 = arith.constant 0 : index
    %c0_113 = arith.constant 0 : index
    %121 = vector.load %arg6[%c4_111, %c0_112, %c0_113] : memref<9x64x64xbf16, #tpu.memory_space<vmem>>, vector<1x64x64xbf16>
    %122 = vector.shape_cast %121 : vector<1x64x64xbf16> to vector<64x64xbf16>
    %cst_114 = arith.constant dense<0.000000e+00> : vector<70x64xf32>
    %123 = tpu.matmul %120, %122, %cst_114 {dimension_numbers = #tpu.dot_dimension_numbers<[1], [0], [0], [1], [0, 0, 1, 1], [], []>} : vector<70x64xbf16>, vector<64x64xbf16>, vector<70x64xf32> -> vector<70x64xf32>
    %124 = arith.addf %119, %123 : vector<70x64xf32>
    %c12_115 = arith.constant 12 : index
    %c0_116 = arith.constant 0 : index
    %125 = vector.load %arg10[%c12_115, %c0_116] : memref<100x64xbf16, #tpu.memory_space<vmem>>, vector<70x64xbf16>
    %c5_117 = arith.constant 5 : index
    %c0_118 = arith.constant 0 : index
    %c0_119 = arith.constant 0 : index
    %126 = vector.load %arg6[%c5_117, %c0_118, %c0_119] : memref<9x64x64xbf16, #tpu.memory_space<vmem>>, vector<1x64x64xbf16>
    %127 = vector.shape_cast %126 : vector<1x64x64xbf16> to vector<64x64xbf16>
    %cst_120 = arith.constant dense<0.000000e+00> : vector<70x64xf32>
    %128 = tpu.matmul %125, %127, %cst_120 {dimension_numbers = #tpu.dot_dimension_numbers<[1], [0], [0], [1], [0, 0, 1, 1], [], []>} : vector<70x64xbf16>, vector<64x64xbf16>, vector<70x64xf32> -> vector<70x64xf32>
    %129 = arith.addf %124, %128 : vector<70x64xf32>
    %c20 = arith.constant 20 : index
    %c0_121 = arith.constant 0 : index
    %130 = vector.load %arg10[%c20, %c0_121] : memref<100x64xbf16, #tpu.memory_space<vmem>>, vector<70x64xbf16>
    %c6_122 = arith.constant 6 : index
    %c0_123 = arith.constant 0 : index
    %c0_124 = arith.constant 0 : index
    %131 = vector.load %arg6[%c6_122, %c0_123, %c0_124] : memref<9x64x64xbf16, #tpu.memory_space<vmem>>, vector<1x64x64xbf16>
    %132 = vector.shape_cast %131 : vector<1x64x64xbf16> to vector<64x64xbf16>
    %cst_125 = arith.constant dense<0.000000e+00> : vector<70x64xf32>
    %133 = tpu.matmul %130, %132, %cst_125 {dimension_numbers = #tpu.dot_dimension_numbers<[1], [0], [0], [1], [0, 0, 1, 1], [], []>} : vector<70x64xbf16>, vector<64x64xbf16>, vector<70x64xf32> -> vector<70x64xf32>
    %134 = arith.addf %129, %133 : vector<70x64xf32>
    %c21 = arith.constant 21 : index
    %c0_126 = arith.constant 0 : index
    %135 = vector.load %arg10[%c21, %c0_126] : memref<100x64xbf16, #tpu.memory_space<vmem>>, vector<70x64xbf16>
    %c7_127 = arith.constant 7 : index
    %c0_128 = arith.constant 0 : index
    %c0_129 = arith.constant 0 : index
    %136 = vector.load %arg6[%c7_127, %c0_128, %c0_129] : memref<9x64x64xbf16, #tpu.memory_space<vmem>>, vector<1x64x64xbf16>
    %137 = vector.shape_cast %136 : vector<1x64x64xbf16> to vector<64x64xbf16>
    %cst_130 = arith.constant dense<0.000000e+00> : vector<70x64xf32>
    %138 = tpu.matmul %135, %137, %cst_130 {dimension_numbers = #tpu.dot_dimension_numbers<[1], [0], [0], [1], [0, 0, 1, 1], [], []>} : vector<70x64xbf16>, vector<64x64xbf16>, vector<70x64xf32> -> vector<70x64xf32>
    %139 = arith.addf %134, %138 : vector<70x64xf32>
    %c22 = arith.constant 22 : index
    %c0_131 = arith.constant 0 : index
    %140 = vector.load %arg10[%c22, %c0_131] : memref<100x64xbf16, #tpu.memory_space<vmem>>, vector<70x64xbf16>
    %c8_132 = arith.constant 8 : index
    %c0_133 = arith.constant 0 : index
    %c0_134 = arith.constant 0 : index
    %141 = vector.load %arg6[%c8_132, %c0_133, %c0_134] : memref<9x64x64xbf16, #tpu.memory_space<vmem>>, vector<1x64x64xbf16>
    %142 = vector.shape_cast %141 : vector<1x64x64xbf16> to vector<64x64xbf16>
    %cst_135 = arith.constant dense<0.000000e+00> : vector<70x64xf32>
    %143 = tpu.matmul %140, %142, %cst_135 {dimension_numbers = #tpu.dot_dimension_numbers<[1], [0], [0], [1], [0, 0, 1, 1], [], []>} : vector<70x64xbf16>, vector<64x64xbf16>, vector<70x64xf32> -> vector<70x64xf32>
    %144 = arith.addf %139, %143 : vector<70x64xf32>
    %c0_136 = arith.constant 0 : index
    %c0_137 = arith.constant 0 : index
    %145 = vector.load %arg7[%c0_136, %c0_137] : memref<1x64xf32, #tpu.memory_space<vmem>>, vector<1x64xf32>
    %146 = vector.broadcast %145 : vector<1x64xf32> to vector<70x64xf32>
    %147 = arith.addf %144, %146 : vector<70x64xf32>
    %cst_138 = arith.constant 0.000000e+00 : f32
    %148 = vector.broadcast %cst_138 : f32 to vector<70x64xf32>
    %149 = arith.maximumf %147, %148 : vector<70x64xf32>
    %150 = arith.truncf %149 : vector<70x64xf32> to vector<70x64xbf16>
    %c0_139 = arith.constant 0 : index
    %c0_140 = arith.constant 0 : index
    %c0_141 = arith.constant 0 : index
    %151 = vector.load %arg8[%c0_139, %c0_140, %c0_141] : memref<1x70x64xbf16, #tpu.memory_space<vmem>>, vector<1x70x64xbf16>
    %152 = vector.shape_cast %151 : vector<1x70x64xbf16> to vector<70x64xbf16>
    %153 = vector.shape_cast %150 : vector<70x64xbf16> to vector<1x70x64xbf16>
    tpu.vector_store %arg8[%c0_139, %c0_140, %c0_141], %153 {strides = array<i32>} : memref<1x70x64xbf16, #tpu.memory_space<vmem>>, vector<1x70x64xbf16>,
    return
  }
  func.func @transform_0(%arg0: i32) -> (i32, i32, i32) {
    %c0_i32 = arith.constant 0 : i32
    %c0_i32_0 = arith.constant 0 : i32
    %c0_i32_1 = arith.constant 0 : i32
    return %arg0, %c0_i32, %c0_i32_0 : i32, i32, i32
  }
  func.func @transform_1(%arg0: i32) -> (i32, i32) {
    %c0_i32 = arith.constant 0 : i32
    %c0_i32_0 = arith.constant 0 : i32
    %c0_i32_1 = arith.constant 0 : i32
    return %c0_i32, %c0_i32_0 : i32, i32
  }
  func.func @transform_2(%arg0: i32) -> (i32, i32) {
    %c0_i32 = arith.constant 0 : i32
    %c0_i32_0 = arith.constant 0 : i32
    %c0_i32_1 = arith.constant 0 : i32
    return %c0_i32, %c0_i32_0 : i32, i32
  }
  func.func @transform_3(%arg0: i32) -> (i32, i32, i32) {
    %c0_i32 = arith.constant 0 : i32
    %c0_i32_0 = arith.constant 0 : i32
    %c0_i32_1 = arith.constant 0 : i32
    %c0_i32_2 = arith.constant 0 : i32
    return %c0_i32, %c0_i32_0, %c0_i32_1 : i32, i32, i32
  }
  func.func @transform_4(%arg0: i32) -> (i32, i32) {
    %c0_i32 = arith.constant 0 : i32
    %c0_i32_0 = arith.constant 0 : i32
    %c0_i32_1 = arith.constant 0 : i32
    return %c0_i32, %c0_i32_0 : i32, i32
  }
  func.func @transform_5(%arg0: i32) -> (i32, i32, i32) {
    %c0_i32 = arith.constant 0 : i32
    %c0_i32_0 = arith.constant 0 : i32
    %c0_i32_1 = arith.constant 0 : i32
    %c0_i32_2 = arith.constant 0 : i32
    return %c0_i32, %c0_i32_0, %c0_i32_1 : i32, i32, i32
  }
  func.func @transform_6(%arg0: i32) -> (i32, i32) {
    %c0_i32 = arith.constant 0 : i32
    %c0_i32_0 = arith.constant 0 : i32
    %c0_i32_1 = arith.constant 0 : i32
    return %c0_i32, %c0_i32_0 : i32, i32
  }
  func.func @transform_7(%arg0: i32) -> (i32, i32, i32) {
    %c0_i32 = arith.constant 0 : i32
    %c0_i32_0 = arith.constant 0 : i32
    %c0_i32_1 = arith.constant 0 : i32
    return %arg0, %c0_i32, %c0_i32_0 : i32, i32, i32
  }
}

module attributes {stable_mosaic.version = 11 : i64} {
  func.func @_fc_head_kernel(%arg0: i32, %arg1: memref<2x896xbf16, #tpu.memory_space<vmem>>, %arg2: memref<896x512xbf16, #tpu.memory_space<vmem>>, %arg3: memref<1x512xf32, #tpu.memory_space<vmem>>, %arg4: memref<512x128xbf16, #tpu.memory_space<vmem>>, %arg5: memref<1x128xf32, #tpu.memory_space<vmem>>, %arg6: memref<2x128xf32, #tpu.memory_space<vmem>>, %arg7: memref<2x512xf32, #tpu.memory_space<vmem>>) attributes {dimension_semantics = [#tpu.dimension_semantics<arbitrary>], iteration_bounds = array<i64: 5>, scalar_prefetch = 0 : i64, scratch_operands = 1 : i64, tpu.core_type = #tpu.core_type<tc>, window_params = [{transform_indices = @transform_0, window_bounds = array<i64: 2, 896>}, {transform_indices = @transform_1, window_bounds = array<i64: 896, 512>}, {pipeline_mode = #tpu.pipeline_mode<synchronous>, transform_indices = @transform_2, window_bounds = array<i64: 1, 512>}, {pipeline_mode = #tpu.pipeline_mode<synchronous>, transform_indices = @transform_3, window_bounds = array<i64: 512, 128>}, {pipeline_mode = #tpu.pipeline_mode<synchronous>, transform_indices = @transform_4, window_bounds = array<i64: 1, 128>}, {pipeline_mode = #tpu.pipeline_mode<synchronous>, transform_indices = @transform_5, window_bounds = array<i64: 2, 128>}]} {
    %c0_i32 = arith.constant 0 : i32
    %0 = arith.cmpi eq, %arg0, %c0_i32 : i32
    %1 = arith.extui %0 : i1 to i32
    %c0_i32_0 = arith.constant 0 : i32
    %2 = arith.cmpi ne, %1, %c0_i32_0 : i32
    scf.if %2 {
      %cst_9 = arith.constant 0.000000e+00 : f32
      %12 = vector.broadcast %cst_9 : f32 to vector<2x512xf32>
      %c0_10 = arith.constant 0 : index
      %c0_11 = arith.constant 0 : index
      %13 = vector.load %arg7[%c0_10, %c0_11] : memref<2x512xf32, #tpu.memory_space<vmem>>, vector<2x512xf32>
      tpu.vector_store %arg7[%c0_10, %c0_11], %12 {strides = array<i32>} : memref<2x512xf32, #tpu.memory_space<vmem>>, vector<2x512xf32>,
    } else {
    }
    %c0 = arith.constant 0 : index
    %c0_1 = arith.constant 0 : index
    %3 = vector.load %arg7[%c0, %c0_1] : memref<2x512xf32, #tpu.memory_space<vmem>>, vector<2x512xf32>
    %c0_2 = arith.constant 0 : index
    %c0_3 = arith.constant 0 : index
    %4 = vector.load %arg1[%c0_2, %c0_3] : memref<2x896xbf16, #tpu.memory_space<vmem>>, vector<2x896xbf16>
    %c0_4 = arith.constant 0 : index
    %c0_5 = arith.constant 0 : index
    %5 = vector.load %arg2[%c0_4, %c0_5] : memref<896x512xbf16, #tpu.memory_space<vmem>>, vector<896x512xbf16>
    %cst = arith.constant dense<0.000000e+00> : vector<2x512xf32>
    %6 = tpu.matmul %4, %5, %cst {dimension_numbers = #tpu.dot_dimension_numbers<[1], [0], [0], [1], [0, 0, 1, 1], [], []>} : vector<2x896xbf16>, vector<896x512xbf16>, vector<2x512xf32> -> vector<2x512xf32>
    %7 = arith.addf %3, %6 : vector<2x512xf32>
    %c0_6 = arith.constant 0 : index
    %c0_7 = arith.constant 0 : index
    %8 = vector.load %arg7[%c0_6, %c0_7] : memref<2x512xf32, #tpu.memory_space<vmem>>, vector<2x512xf32>
    tpu.vector_store %arg7[%c0_6, %c0_7], %7 {strides = array<i32>} : memref<2x512xf32, #tpu.memory_space<vmem>>, vector<2x512xf32>,
    %c4_i32 = arith.constant 4 : i32
    %9 = arith.cmpi eq, %arg0, %c4_i32 : i32
    %10 = arith.extui %9 : i1 to i32
    %c0_i32_8 = arith.constant 0 : i32
    %11 = arith.cmpi ne, %10, %c0_i32_8 : i32
    scf.if %11 {
      %c0_9 = arith.constant 0 : index
      %c0_10 = arith.constant 0 : index
      %12 = vector.load %arg7[%c0_9, %c0_10] : memref<2x512xf32, #tpu.memory_space<vmem>>, vector<2x512xf32>
      %c0_11 = arith.constant 0 : index
      %c0_12 = arith.constant 0 : index
      %13 = vector.load %arg3[%c0_11, %c0_12] : memref<1x512xf32, #tpu.memory_space<vmem>>, vector<1x512xf32>
      %14 = vector.broadcast %13 : vector<1x512xf32> to vector<2x512xf32>
      %15 = arith.addf %12, %14 : vector<2x512xf32>
      %cst_13 = arith.constant 0.000000e+00 : f32
      %16 = vector.broadcast %cst_13 : f32 to vector<2x512xf32>
      %17 = arith.maximumf %15, %16 : vector<2x512xf32>
      %18 = arith.truncf %17 : vector<2x512xf32> to vector<2x512xbf16>
      %c0_14 = arith.constant 0 : index
      %c0_15 = arith.constant 0 : index
      %19 = vector.load %arg4[%c0_14, %c0_15] : memref<512x128xbf16, #tpu.memory_space<vmem>>, vector<512x128xbf16>
      %cst_16 = arith.constant dense<0.000000e+00> : vector<2x128xf32>
      %20 = tpu.matmul %18, %19, %cst_16 {dimension_numbers = #tpu.dot_dimension_numbers<[1], [0], [0], [1], [0, 0, 1, 1], [], []>} : vector<2x512xbf16>, vector<512x128xbf16>, vector<2x128xf32> -> vector<2x128xf32>
      %c0_17 = arith.constant 0 : index
      %c0_18 = arith.constant 0 : index
      %21 = vector.load %arg5[%c0_17, %c0_18] : memref<1x128xf32, #tpu.memory_space<vmem>>, vector<1x128xf32>
      %22 = vector.broadcast %21 : vector<1x128xf32> to vector<2x128xf32>
      %23 = arith.addf %20, %22 : vector<2x128xf32>
      %c0_19 = arith.constant 0 : index
      %c0_20 = arith.constant 0 : index
      %24 = vector.load %arg6[%c0_19, %c0_20] : memref<2x128xf32, #tpu.memory_space<vmem>>, vector<2x128xf32>
      tpu.vector_store %arg6[%c0_19, %c0_20], %23 {strides = array<i32>} : memref<2x128xf32, #tpu.memory_space<vmem>>, vector<2x128xf32>,
    } else {
    }
    return
  }
  func.func @transform_0(%arg0: i32) -> (i32, i32) {
    %c0_i32 = arith.constant 0 : i32
    %c0_i32_0 = arith.constant 0 : i32
    return %c0_i32, %arg0 : i32, i32
  }
  func.func @transform_1(%arg0: i32) -> (i32, i32) {
    %c0_i32 = arith.constant 0 : i32
    %c0_i32_0 = arith.constant 0 : i32
    return %arg0, %c0_i32 : i32, i32
  }
  func.func @transform_2(%arg0: i32) -> (i32, i32) {
    %c0_i32 = arith.constant 0 : i32
    %c0_i32_0 = arith.constant 0 : i32
    %c0_i32_1 = arith.constant 0 : i32
    return %c0_i32, %c0_i32_0 : i32, i32
  }
  func.func @transform_3(%arg0: i32) -> (i32, i32) {
    %c0_i32 = arith.constant 0 : i32
    %c0_i32_0 = arith.constant 0 : i32
    %c0_i32_1 = arith.constant 0 : i32
    return %c0_i32, %c0_i32_0 : i32, i32
  }
  func.func @transform_4(%arg0: i32) -> (i32, i32) {
    %c0_i32 = arith.constant 0 : i32
    %c0_i32_0 = arith.constant 0 : i32
    %c0_i32_1 = arith.constant 0 : i32
    return %c0_i32, %c0_i32_0 : i32, i32
  }
  func.func @transform_5(%arg0: i32) -> (i32, i32) {
    %c0_i32 = arith.constant 0 : i32
    %c0_i32_0 = arith.constant 0 : i32
    %c0_i32_1 = arith.constant 0 : i32
    return %c0_i32, %c0_i32_0 : i32, i32
  }
}

</mosaic_0001>

<bundles_post_ra>
// kernel: self_prediction_forward.3
= control target key start
LH: loop header
LB: loop body
LE: loop exit
PB: predicated region body
PF: predicated region fallthrough
CT: control target
= control target key end

     0   :  { %10 = vsyncpa [#allocation4], 0  ;;  %s3896_s0 = inlined_call_operand.vmem [shape: bf16[2,4480], index: 0, kind: input, shape index: {}]   ;;  %s3897_s1 = inlined_call_operand.hbm [shape: bf16[4480,512], index: 1, kind: input, shape index: {}]   ;;  %s3898_s2 = inlined_call_operand.vmem [shape: f32[1,512], index: 2, kind: input, shape index: {}]   ;;  %s3899_s3 = inlined_call_operand.vmem [shape: bf16[512,128], index: 3, kind: input, shape index: {}]   ;;  %s3900_s4 = inlined_call_operand.vmem [shape: f32[1,128], index: 4, kind: input, shape index: {}]   ;;  %s3901_s5 = inlined_call_operand.hbm [shape: f32[2,128], index: 5, kind: output, shape index: {}]  }
   0x1   :  { %12 = vsyncpa [#allocation4 + $0x1], 0 }
   0x2   :  { %13 = vsyncpa [#allocation5], 0  ;;  %s3388_s18 = smov 0   ;;  %s3390_s19 = smov 0  }
   0x3   :  { %s3392_s20 = smov 0   ;;  %s3394_s21 = smov 0  }
   0x4 LB: > { %s3407_s22 = sadd.s32 4294967295, %s3348_s21   ;;  %s3410_s23 = sadd.s32 1, %s3348_s21   ;;  %s3348_s21 = sphi %s3394_s21, %s3908_s21   ;;  %s3344_s20 = sphi %s3392_s20, %s3907_s20   ;;  %s3340_s19 = sphi %s3390_s19, %s3906_s19   ;;  %s3336_s18 = sphi %s3388_s18, %s3905_s18  }
   0x5   : > { %s49_s24 = ssub.s32 %s3348_s21, %s3410_s23  ;;  %s52_s25 = sadd.s32 1, %s3344_s20 }
   0x6   : > { %p50_p0 = scmp.eq.s32.totalorder %s49_s24, 0  ;;  %p59_p1 = scmp.ne.s32.totalorder %s3344_s20, %s3340_s19 }
   0x7   : > { %p60_p2 = scmp.eq.s32.totalorder %s3348_s21, 0  ;;  %p65_p3 = scmp.ne.s32.totalorder %s3340_s19, %s3336_s18 }
   0x8   : > { %s3420_s26 = scalar_select %p50_p0, %s3344_s20, %s52_s25  }
   0x9   : > { %p61_p4 = por %p60_p2, %p59_p1  ;;  %p66_p5 = scmp.eq.s32.totalorder %s3407_s22, 0 }
   0xa   : > { %p2843_p6 = scmp.lt.s32.totalorder %s3348_s21, 5  ;;  %s190_s28 = sand.u32 1, %s3344_s20  }
   0xb   : > { %p3424_p7 = por %p66_p5, %p65_p3  ;;  %s2831_s29 = smul.u32 1792, %s190_s28 }
   0xc   : > { %s2762_s30 = smul.u32 28672, %s3348_s21  ;;  %p3430_p8 = pnand %p2843_p6, %p61_p4 }
   0xd   : > { %s194_s10 = scalar_lea.vmem [#allocation3], %s2831_s29  ;;  %s3442_s12 = scalar_lea.sflag [#allocation4], %s190_s28 }
   0xe   : > { %s3437_s9 = scalar_lea.hbm %s3897_s1, %s2762_s30  ;;  %s202_s11 = sshll.u32 %s194_s10, 4  ;;  %s3439_s11 = int_to_ptr.vmem [resolvable:$true] %s202_s11 }
   0xf   : > { %s3254_s13 = scalar_lea.hbm %s3437_s9, 28672  ;;  %p3256_p11 = pneg %p3430_p8 }
  0x10   : > { %p3255_p10 = scmp.ne.s32.totalorder %s3437_s9, %s3254_s13  ;;  %s3259_s16 = scalar_lea.hbm %s3897_s1, 143360 }
  0x11   : > { %p3260_p0 = scmp.lt.u32.totalorder %s3437_s9, %s3897_s1  ;;  %p3261_p1 = scmp.lt.u32.totalorder %s3259_s16, %s3254_s13 }
  0x12   : > { %p3257_p12 = pnand %p3256_p11, %p3255_p10  ;;  %p3263_p3 = scmp.lt.u32.totalorder %s3254_s13, %s3437_s9 }
  0x13   : > { %p3262_p2 = por %p3261_p1, %p3260_p0 }
  0x14   : > { %p3258_p13 = pneg %p3257_p12 }
  0x15   : > { %p3264_p4 = por %p3263_p3, %p3262_p2 }
  0x17   : > { %p3265_p5 = pnand %p3264_p4, %p3258_p13 }
  0x19   : > { %3268 = shalt.err (!%p3265_p5)
}
  0x1a   : > { %s3269_s24 = scalar_lea.vmem %s3439_s11, 28672  ;;  %s3350_s25 = smov [#allocation3]  }
  0x1b   : > { %p3270_p6 = scmp.ne.s32.totalorder %s3439_s11, %s3269_s24  ;;  %s3274_s28 = sshll.u32 %s3350_s25, 4  ;;  %s3275_s28 = int_to_ptr.vmem [resolvable:$false] %s3274_s28 }
  0x1c   : > { %s3276_s29 = scalar_lea.vmem %s3275_s28, 57344  ;;  %p3277_p9 = scmp.lt.s32.totalorder %s3439_s11, %s3275_s28 }
  0x1d   : > { %p3272_p10 = pnand %p3270_p6, %p3256_p11  ;;  %p3278_p0 = scmp.lt.s32.totalorder %s3276_s29, %s3269_s24 }
  0x1f   : > { %p3273_p12 = pneg %p3272_p10  ;;  %p3279_p1 = por %p3278_p0, %p3277_p9 }
  0x21   : > { %p3280_p2 = pnand %p3279_p1, %p3273_p12 }
  0x23   : > { %3283 = shalt.err (!%p3280_p2)
}
  0x24   : > { %s3351_s30 = smov 256   ;;  %s3352_s7 = smov 16  }
  0x25   : > { %2842 = dma.hbm_to_vmem [thread:$0]  (!%p3430_p8), %s3437_s9, 28672, %s3439_s11, %s3442_s12, %s3351_s30, %s3351_s30, %s3352_s7  }
  0x26   : > { %p210_p11 = scmp.lt.s32.totalorder %s3348_s21, 6  ;;  %p3904_p13 = scmp.ge.s32.totalorder %s3348_s21, 1 }
  0x28   : > { %p211_p3 = pnand %p3904_p13, %p210_p11 }
  0x29   : > { %s216_s8 = sand.u32 (!%p211_p3), 1, %s3340_s19  }
  0x2a   : > { %214 = sbr.rel (%p211_p3) target bundleno = 769 (0x301), region = 40  ;;  %s217_s13 = scalar_lea.sflag (!%p211_p3), [#allocation4], %s216_s8 }
  0x2b   : > { %s2832_s10 = smul.u32 (!%p211_p3), 1792, %s216_s8 }
  0x2d   : > { %s3474_s14 = scalar_lea.vmem (!%p211_p3), [#allocation3], %s2832_s10 }
  0x31   : > { %3327 = dma.done.wait (%p3424_p7), %s217_s13, 28672  }
  0x32   : > { %3329 = vsyncadd (%p3424_p7), %s217_s13, 4294938624  ;;  %s246_s15 = smul.u32 7, %s3407_s22  ;;  %p2497_p8 = scmp.ne.s32.totalorder %s3407_s22, 0 }
  0x33   : > { %v3353_v0 = vmov (!%p2497_p8), 0.0  }
  0x34   : > { %p247_p9 = scmp.lt.s32.totalorder %s246_s15, 34  ;;  %256 = sbr.rel (%p2497_p8) target bundleno = 59 (0x3b), region = 48  ;;  %257 = vst [vmem:[#allocation2] sm:$0xff] (!%p2497_p8), %v3353_v0 }
  0x36   : > { %s3910_s15 = smov (!%p247_p9, %s246_s15), 34 }
  0x37   : > { %s249_s9 = scalar_lea.vmem %s3896_s0, %s3910_s15 }
  0x3b PF: > { %v2885_v1 = vld [vmem:[%s3474_s14 + $0x4] ss:$16 sps:$4 sm:$0xff]   ;;  %v2887_v2 = vld [vmem:[%s3474_s14 + $0xc] ss:$16 sps:$4 sm:$0xff]   ;;  %v2889_v3 = vld [vmem:[%s3474_s14] ss:$16 sps:$4 sm:$0xff]   ;;  %v489_v39 = vlaneseq }
  0x3c   : > { %1660 = vmatprep.subr.bf16.mxu0 %v2885_v1  ;;  %v2890_v4 = vld [vmem:[%s3474_s14 + $0x8] ss:$16 sps:$4 sm:$0xff]   ;;  %1824 = vmatprep.subr.bf16.mxu1 %v2887_v2  ;;  %v2891_v5 = vld [vmem:[%s3474_s14 + $0x24] ss:$16 sps:$4 sm:$0xff]   ;;  %v2893_v6 = vld [vmem:[%s3474_s14 + $0x2c] ss:$16 sps:$4 sm:$0xff]  }
  0x3d   : > { %1661 = vmatpush1.bf16.msra.mxu0 %v2889_v3  ;;  %1825 = vmatpush1.bf16.msra.mxu1 %v2890_v4  ;;  %v2895_v7 = vld [vmem:[%s3474_s14 + $0x20] ss:$16 sps:$4 sm:$0xff]   ;;  %v2896_v8 = vld [vmem:[%s3474_s14 + $0x28] ss:$16 sps:$4 sm:$0xff]   ;;  %v2897_v9 = vld [vmem:[%s3474_s14 + $0x44] ss:$16 sps:$4 sm:$0xff]  }
  0x3e   : > { %1662 = vmatprep.subr.bf16.mxu0 %v2891_v5  ;;  %1826 = vmatprep.subr.bf16.mxu1 %v2893_v6  ;;  %v2899_v10 = vld [vmem:[%s3474_s14 + $0x4c] ss:$16 sps:$4 sm:$0xff]   ;;  %v2901_v11 = vld [vmem:[%s3474_s14 + $0x40] ss:$16 sps:$4 sm:$0xff]   ;;  %v2902_v12 = vld [vmem:[%s3474_s14 + $0x48] ss:$16 sps:$4 sm:$0xff]  }
  0x3f   : > { %v2903_v13 = vld [vmem:[%s3474_s14 + $0x64] ss:$16 sps:$4 sm:$0xff]   ;;  %v2905_v14 = vld [vmem:[%s3474_s14 + $0x6c] ss:$16 sps:$4 sm:$0xff]   ;;  %v2907_v15 = vld [vmem:[%s3474_s14 + $0x60] ss:$16 sps:$4 sm:$0xff]  }
  0x40   : > { %v2908_v16 = vld [vmem:[%s3474_s14 + $0x68] ss:$16 sps:$4 sm:$0xff]   ;;  %v2909_v17 = vld [vmem:[%s3474_s14 + $0x84] ss:$16 sps:$4 sm:$0xff]   ;;  %v2911_v18 = vld [vmem:[%s3474_s14 + $0x8c] ss:$16 sps:$4 sm:$0xff]  }
  0x41   : > { %1663 = vmatpush1.bf16.msra.mxu0 %v2895_v7  ;;  %1827 = vmatpush1.bf16.msra.mxu1 %v2896_v8  ;;  %v2913_v19 = vld [vmem:[%s3474_s14 + $0x80] ss:$16 sps:$4 sm:$0xff]   ;;  %v2914_v20 = vld [vmem:[%s3474_s14 + $0x88] ss:$16 sps:$4 sm:$0xff]   ;;  %v2915_v21 = vld [vmem:[%s3474_s14 + $0xa4] ss:$16 sps:$4 sm:$0xff]  }
  0x42   : > { %1664 = vmatprep.subr.bf16.mxu0 %v2897_v9  ;;  %1828 = vmatprep.subr.bf16.mxu1 %v2899_v10  ;;  %v2917_v22 = vld [vmem:[%s3474_s14 + $0xac] ss:$16 sps:$4 sm:$0xff]   ;;  %v2919_v23 = vld [vmem:[%s3474_s14 + $0xa0] ss:$16 sps:$4 sm:$0xff]   ;;  %v2920_v24 = vld [vmem:[%s3474_s14 + $0xa8] ss:$16 sps:$4 sm:$0xff]  }
  0x43   : > { %v2921_v25 = vld [vmem:[%s3474_s14 + $0xc4] ss:$16 sps:$4 sm:$0xff]   ;;  %v2923_v26 = vld [vmem:[%s3474_s14 + $0xcc] ss:$16 sps:$4 sm:$0xff]   ;;  %v2925_v27 = vld [vmem:[%s3474_s14 + $0xc0] ss:$16 sps:$4 sm:$0xff]  }
  0x44   : > { %v2926_v28 = vld [vmem:[%s3474_s14 + $0xc8] ss:$16 sps:$4 sm:$0xff]   ;;  %v2927_v29 = vld [vmem:[%s3474_s14 + $0xe4] ss:$16 sps:$4 sm:$0xff]   ;;  %v2929_v30 = vld [vmem:[%s3474_s14 + $0xec] ss:$16 sps:$4 sm:$0xff]  }
  0x45   : > { %1665 = vmatpush1.bf16.msra.mxu0 %v2901_v11  ;;  %1829 = vmatpush1.bf16.msra.mxu1 %v2902_v12  ;;  %v2931_v31 = vld [vmem:[%s3474_s14 + $0xe0] ss:$16 sps:$4 sm:$0xff]   ;;  %v2932_v32 = vld [vmem:[%s3474_s14 + $0xe8] ss:$16 sps:$4 sm:$0xff]   ;;  %v2933_v33 = vld [vmem:[%s3474_s14 + $0x104] ss:$16 sps:$4 sm:$0xff]  }
  0x46   : > { %1666 = vmatprep.subr.bf16.mxu0 %v2903_v13  ;;  %1830 = vmatprep.subr.bf16.mxu1 %v2905_v14  ;;  %v2935_v34 = vld [vmem:[%s3474_s14 + $0x10c] ss:$16 sps:$4 sm:$0xff]   ;;  %v2937_v35 = vld [vmem:[%s3474_s14 + $0x100] ss:$16 sps:$4 sm:$0xff]   ;;  %v2938_v36 = vld [vmem:[%s3474_s14 + $0x108] ss:$16 sps:$4 sm:$0xff]  }
  0x47   : > { %v3354_v37 = vmov 1966171168   ;;  %v2939_v40 = vld [vmem:[%s3474_s14 + $0x124] ss:$16 sps:$4 sm:$0xff]   ;;  %v2941_v41 = vld [vmem:[%s3474_s14 + $0x12c] ss:$16 sps:$4 sm:$0xff]  }
  0x48   : > { %v487_v38 = vunpack.c.l.s4 %v3354_v37  ;;  %v2943_v42 = vld [vmem:[%s3474_s14 + $0x120] ss:$16 sps:$4 sm:$0xff]   ;;  %v3527_v44 = vshrl.u32 %v489_v39, 7  ;;  %v2944_v45 = vld [vmem:[%s3474_s14 + $0x128] ss:$16 sps:$4 sm:$0xff]   ;;  %p2722_p7 = scmp.ne.s32.totalorder %s3407_s22, 4 }
  0x49   : > { %1667 = vmatpush1.bf16.msra.mxu0 %v2907_v15  ;;  %1831 = vmatpush1.bf16.msra.mxu1 %v2908_v16  ;;  %v2945_v46 = vld [vmem:[%s3474_s14 + $0x144] ss:$16 sps:$4 sm:$0xff]   ;;  %v2947_v47 = vld [vmem:[%s3474_s14 + $0x14c] ss:$16 sps:$4 sm:$0xff]   ;;  %v2949_v48 = vld [vmem:[%s3474_s14 + $0x140] ss:$16 sps:$4 sm:$0xff]  }
  0x4a   : > { %1668 = vmatprep.subr.bf16.mxu0 %v2909_v17  ;;  %1832 = vmatprep.subr.bf16.mxu1 %v2911_v18  ;;  %v488_v43 = vunpack.c.0.s8 %v487_v38  ;;  %v2950_v49 = vld [vmem:[%s3474_s14 + $0x148] ss:$16 sps:$4 sm:$0xff]   ;;  %v2951_v51 = vld [vmem:[%s3474_s14 + $0x164] ss:$16 sps:$4 sm:$0xff]   ;;  %v2953_v52 = vld [vmem:[%s3474_s14 + $0x16c] ss:$16 sps:$4 sm:$0xff]  }
  0x4b   : > { %v259_v53 = vld [vmem:[%s249_s9] sm:$0x7f]  ;;  %v2955_v54 = vld [vmem:[%s3474_s14 + $0x160] ss:$16 sps:$4 sm:$0xff]   ;;  %v2957_v57 = vld [vmem:[%s3474_s14 + $0x184] ss:$16 sps:$4 sm:$0xff]  }
  0x4c   : > { %v3535_v50 = vsub.s32 %v488_v43, %v3527_v44  ;;  %v2956_v56 = vld [vmem:[%s3474_s14 + $0x168] ss:$16 sps:$4 sm:$0xff]   ;;  %v2959_v58 = vld [vmem:[%s3474_s14 + $0x18c] ss:$16 sps:$4 sm:$0xff]   ;;  %v2961_v60 = vld [vmem:[%s3474_s14 + $0x180] ss:$16 sps:$4 sm:$0xff]   ;;  %v485_v10 = vcombine.high %v259_v53, %v259_v53 }
  0x4d   : > { %1669 = vmatpush1.bf16.msra.mxu0 %v2913_v19  ;;  %1833 = vmatpush1.bf16.msra.mxu1 %v2914_v20  ;;  %v2962_v62 = vld [vmem:[%s3474_s14 + $0x188] ss:$16 sps:$4 sm:$0xff]   ;;  %v2963_v63 = vld [vmem:[%s3474_s14 + $0x1a4] ss:$16 sps:$4 sm:$0xff]   ;;  %v2965_v0 = vld [vmem:[%s3474_s14 + $0x1ac] ss:$16 sps:$4 sm:$0xff]  }
  0x4e   : > { %1670 = vmatprep.subr.bf16.mxu0 %v2915_v21  ;;  %1834 = vmatprep.subr.bf16.mxu1 %v2917_v22  ;;  %v492_v55 = vrot.slane %v259_v53, %v3535_v50  ;;  %v2967_v1 = vld [vmem:[%s3474_s14 + $0x1a0] ss:$16 sps:$4 sm:$0xff]   ;;  %v2968_v2 = vld [vmem:[%s3474_s14 + $0x1a8] ss:$16 sps:$4 sm:$0xff]   ;;  %v2969_v3 = vld [vmem:[%s3474_s14 + $0x1c4] ss:$16 sps:$4 sm:$0xff]   ;;  %v499_v14 = vrot.slane %v485_v10, %v3535_v50 }
  0x4f   : > { %v2971_v4 = vld [vmem:[%s3474_s14 + $0x1cc] ss:$16 sps:$4 sm:$0xff]   ;;  %v2973_v5 = vld [vmem:[%s3474_s14 + $0x1c0] ss:$16 sps:$4 sm:$0xff]   ;;  %v2974_v6 = vld [vmem:[%s3474_s14 + $0x1c8] ss:$16 sps:$4 sm:$0xff]  }
  0x50   : > { %v500_v59 = vcombine.high %v492_v55, %v492_v55  ;;  %v2975_v7 = vld [vmem:[%s3474_s14 + $0x1e4] ss:$16 sps:$4 sm:$0xff]   ;;  %v2977_v8 = vld [vmem:[%s3474_s14 + $0x1ec] ss:$16 sps:$4 sm:$0xff]   ;;  %v2979_v9 = vld [vmem:[%s3474_s14 + $0x1e0] ss:$16 sps:$4 sm:$0xff]   ;;  %v3569_v16 = vrot.slane %v492_v55, %v3535_v50  ;;  %v501_v17 = vcombine.high %v499_v14, %v499_v14  ;;  %v3578_v22 = vrot.slane %v499_v14, %v3535_v50 }
  0x51   : > { %1671 = vmatpush1.bf16.msra.mxu0 %v2919_v23  ;;  %1835 = vmatpush1.bf16.msra.mxu1 %v2920_v24  ;;  %v2980_v11 = vld [vmem:[%s3474_s14 + $0x1e8] ss:$16 sps:$4 sm:$0xff]   ;;  %v2983_v12 = vld [vmem:[%s3474_s14 + $0x204] ss:$16 sps:$4 sm:$0xff]   ;;  %v2986_v13 = vld [vmem:[%s3474_s14 + $0x20c] ss:$16 sps:$4 sm:$0xff]  }
  0x52   : > { %1672 = vmatprep.subr.bf16.mxu0 %v2921_v25  ;;  %1836 = vmatprep.subr.bf16.mxu1 %v2923_v26  ;;  %v522_v61 = vrot.slane %v500_v59, %v3535_v50  ;;  %v2981_v15 = vld [vmem:[%s3474_s14 + $0x200] ss:$16 sps:$4 sm:$0xff]   ;;  %v2984_v18 = vld [vmem:[%s3474_s14 + $0x208] ss:$16 sps:$4 sm:$0xff]   ;;  %v2989_v19 = vld [vmem:[%s3474_s14 + $0x224] ss:$16 sps:$4 sm:$0xff]   ;;  %v3575_v21 = vrot.slane %v501_v17, %v3535_v50 }
  0x53   : > { %v2992_v20 = vld [vmem:[%s3474_s14 + $0x22c] ss:$16 sps:$4 sm:$0xff]   ;;  %v2987_v24 = vld [vmem:[%s3474_s14 + $0x220] ss:$16 sps:$4 sm:$0xff]   ;;  %v2990_v25 = vld [vmem:[%s3474_s14 + $0x228] ss:$16 sps:$4 sm:$0xff]  }
  0x54   : > { %1692 = vmatprep.mubr.bf16.mxu0 %v522_v61  ;;  %1856 = vmatprep.mubr.bf16.mxu1 %v522_v61  ;;  %v532_v23 = vcombine.high %v522_v61, %v522_v61  ;;  %v2995_v26 = vld [vmem:[%s3474_s14 + $0x244] ss:$16 sps:$4 sm:$0xff]   ;;  %v3008_v37 = vld [vmem:[%s3474_s14 + $0x288] ss:$16 sps:$4 sm:$0xff]   ;;  %v3016_v39 = vld [vmem:[%s3474_s14 + $0x2ac] ss:$16 sps:$4 sm:$0xff]  }
  0x55   : > { %1673 = vmatpush1.bf16.msra.mxu0 %v2925_v27  ;;  %1837 = vmatpush1.bf16.msra.mxu1 %v2926_v28  ;;  %v2998_v27 = vld [vmem:[%s3474_s14 + $0x24c] ss:$16 sps:$4 sm:$0xff]   ;;  %v2993_v28 = vld [vmem:[%s3474_s14 + $0x240] ss:$16 sps:$4 sm:$0xff]   ;;  %v3013_v38 = vld [vmem:[%s3474_s14 + $0x2a4] ss:$16 sps:$4 sm:$0xff]  }
  0x56   : > { %1674 = vmatprep.subr.bf16.mxu0 %v2927_v29  ;;  %1838 = vmatprep.subr.bf16.mxu1 %v2929_v30  ;;  %v2996_v29 = vld [vmem:[%s3474_s14 + $0x248] ss:$16 sps:$4 sm:$0xff]   ;;  %v3001_v30 = vld [vmem:[%s3474_s14 + $0x264] ss:$16 sps:$4 sm:$0xff]   ;;  %v3022_v43 = vld [vmem:[%s3474_s14 + $0x2cc] ss:$16 sps:$4 sm:$0xff]  }
  0x57   : > { %v3026_v50 = vld [vmem:[%s3474_s14 + $0x2e8] ss:$16 sps:$4 sm:$0xff]   ;;  %v3029_v53 = vld [vmem:[%s3474_s14 + $0x300] ss:$16 sps:$4 sm:$0xff]   ;;  %v3037_v55 = vld [vmem:[%s3474_s14 + $0x324] ss:$16 sps:$4 sm:$0xff]  }
  0x58   : > { %v3043_v59 = vld [vmem:[%s3474_s14 + $0x344] ss:$16 sps:$4 sm:$0xff]   ;;  %v3041_v61 = vld [vmem:[%s3474_s14 + $0x340] ss:$16 sps:$4 sm:$0xff]   ;;  %v3062_v10 = vld [vmem:[%s3474_s14 + $0x3a8] ss:$16 sps:$4 sm:$0xff]  }
  0x59   : > { %1675 = vmatpush1.bf16.msra.mxu0 %v2931_v31  ;;  %1839 = vmatpush1.bf16.msra.mxu1 %v2932_v32  ;;  %v3004_v31 = vld [vmem:[%s3474_s14 + $0x26c] ss:$16 sps:$4 sm:$0xff]   ;;  %v2999_v32 = vld [vmem:[%s3474_s14 + $0x260] ss:$16 sps:$4 sm:$0xff]   ;;  %v3068_v14 = vld [vmem:[%s3474_s14 + $0x3c8] ss:$16 sps:$4 sm:$0xff]  }
  0x5a   : > { %1676 = vmatprep.subr.bf16.mxu0 %v2933_v33  ;;  %1840 = vmatprep.subr.bf16.mxu1 %v2935_v34  ;;  %v3002_v33 = vld [vmem:[%s3474_s14 + $0x268] ss:$16 sps:$4 sm:$0xff]   ;;  %v3007_v34 = vld [vmem:[%s3474_s14 + $0x284] ss:$16 sps:$4 sm:$0xff]   ;;  %v3076_v17 = vld [vmem:[%s3474_s14 + $0x3ec] ss:$16 sps:$4 sm:$0xff]  }
  0x5d   : > { %1677 = vmatpush1.bf16.msra.mxu0 %v2937_v35  ;;  %1841 = vmatpush1.bf16.msra.mxu1 %v2938_v36  ;;  %v3010_v35 = vld [vmem:[%s3474_s14 + $0x28c] ss:$16 sps:$4 sm:$0xff]   ;;  %v3005_v36 = vld [vmem:[%s3474_s14 + $0x280] ss:$16 sps:$4 sm:$0xff]  }
  0x5e   : > { %1678 = vmatprep.subr.bf16.mxu0 %v2939_v40  ;;  %1842 = vmatprep.subr.bf16.mxu1 %v2941_v41  ;;  %v3011_v40 = vld [vmem:[%s3474_s14 + $0x2a0] ss:$16 sps:$4 sm:$0xff]   ;;  %v3014_v41 = vld [vmem:[%s3474_s14 + $0x2a8] ss:$16 sps:$4 sm:$0xff]  }
  0x61   : > { %1679 = vmatpush1.bf16.msra.mxu0 %v2943_v42  ;;  %1843 = vmatpush1.bf16.msra.mxu1 %v2944_v45  ;;  %v3019_v42 = vld [vmem:[%s3474_s14 + $0x2c4] ss:$16 sps:$4 sm:$0xff]   ;;  %v3017_v45 = vld [vmem:[%s3474_s14 + $0x2c0] ss:$16 sps:$4 sm:$0xff]  }
  0x62   : > { %1680 = vmatprep.subr.bf16.mxu0 %v2945_v46  ;;  %1844 = vmatprep.subr.bf16.mxu1 %v2947_v47  ;;  %v3020_v46 = vld [vmem:[%s3474_s14 + $0x2c8] ss:$16 sps:$4 sm:$0xff]   ;;  %v3025_v47 = vld [vmem:[%s3474_s14 + $0x2e4] ss:$16 sps:$4 sm:$0xff]  }
  0x65   : > { %1681 = vmatpush1.bf16.msra.mxu0 %v2949_v48  ;;  %1845 = vmatpush1.bf16.msra.mxu1 %v2950_v49  ;;  %v3028_v48 = vld [vmem:[%s3474_s14 + $0x2ec] ss:$16 sps:$4 sm:$0xff]   ;;  %v3023_v49 = vld [vmem:[%s3474_s14 + $0x2e0] ss:$16 sps:$4 sm:$0xff]  }
  0x66   : > { %1682 = vmatprep.subr.bf16.mxu0 %v2951_v51  ;;  %1846 = vmatprep.subr.bf16.mxu1 %v2953_v52  ;;  %v3031_v51 = vld [vmem:[%s3474_s14 + $0x304] ss:$16 sps:$4 sm:$0xff]   ;;  %v3034_v52 = vld [vmem:[%s3474_s14 + $0x30c] ss:$16 sps:$4 sm:$0xff]  }
  0x69   : > { %1683 = vmatpush1.bf16.msra.mxu0 %v2955_v54  ;;  %1847 = vmatpush1.bf16.msra.mxu1 %v2956_v56  ;;  %v3032_v54 = vld [vmem:[%s3474_s14 + $0x308] ss:$16 sps:$4 sm:$0xff]   ;;  %v3040_v56 = vld [vmem:[%s3474_s14 + $0x32c] ss:$16 sps:$4 sm:$0xff]  }
  0x6a   : > { %1684 = vmatprep.subr.bf16.mxu0 %v2957_v57  ;;  %1848 = vmatprep.subr.bf16.mxu1 %v2959_v58  ;;  %v3035_v57 = vld [vmem:[%s3474_s14 + $0x320] ss:$16 sps:$4 sm:$0xff]   ;;  %v3038_v58 = vld [vmem:[%s3474_s14 + $0x328] ss:$16 sps:$4 sm:$0xff]  }
  0x6d   : > { %1685 = vmatpush1.bf16.msra.mxu0 %v2961_v60  ;;  %1849 = vmatpush1.bf16.msra.mxu1 %v2962_v62  ;;  %v3046_v60 = vld [vmem:[%s3474_s14 + $0x34c] ss:$16 sps:$4 sm:$0xff]   ;;  %v3044_v62 = vld [vmem:[%s3474_s14 + $0x348] ss:$16 sps:$4 sm:$0xff]  }
  0x6e   : > { %1686 = vmatprep.subr.bf16.mxu0 %v2963_v63  ;;  %1850 = vmatprep.subr.bf16.mxu1 %v2965_v0  ;;  %v3049_v63 = vld [vmem:[%s3474_s14 + $0x364] ss:$16 sps:$4 sm:$0xff]   ;;  %v3052_v0 = vld [vmem:[%s3474_s14 + $0x36c] ss:$16 sps:$4 sm:$0xff]  }
  0x71   : > { %1687 = vmatpush1.bf16.msra.mxu0 %v2967_v1  ;;  %1851 = vmatpush1.bf16.msra.mxu1 %v2968_v2  ;;  %v3047_v1 = vld [vmem:[%s3474_s14 + $0x360] ss:$16 sps:$4 sm:$0xff]   ;;  %v3050_v2 = vld [vmem:[%s3474_s14 + $0x368] ss:$16 sps:$4 sm:$0xff]  }
  0x72   : > { %1688 = vmatprep.subr.bf16.mxu0 %v2969_v3  ;;  %1852 = vmatprep.subr.bf16.mxu1 %v2971_v4  ;;  %v3055_v3 = vld [vmem:[%s3474_s14 + $0x384] ss:$16 sps:$4 sm:$0xff]   ;;  %v3058_v4 = vld [vmem:[%s3474_s14 + $0x38c] ss:$16 sps:$4 sm:$0xff]  }
  0x75   : > { %1689 = vmatpush1.bf16.msra.mxu0 %v2973_v5  ;;  %1853 = vmatpush1.bf16.msra.mxu1 %v2974_v6  ;;  %v3053_v5 = vld [vmem:[%s3474_s14 + $0x380] ss:$16 sps:$4 sm:$0xff]   ;;  %v3056_v6 = vld [vmem:[%s3474_s14 + $0x388] ss:$16 sps:$4 sm:$0xff]  }
  0x76   : > { %1690 = vmatprep.subr.bf16.mxu0 %v2975_v7  ;;  %1854 = vmatprep.subr.bf16.mxu1 %v2977_v8  ;;  %v3061_v7 = vld [vmem:[%s3474_s14 + $0x3a4] ss:$16 sps:$4 sm:$0xff]   ;;  %v3064_v8 = vld [vmem:[%s3474_s14 + $0x3ac] ss:$16 sps:$4 sm:$0xff]  }
  0x79   : > { %1691 = vmatpush1.bf16.msra.mxu0 %v2979_v9  ;;  %1855 = vmatpush1.bf16.msra.mxu1 %v2980_v11  ;;  %v3059_v9 = vld [vmem:[%s3474_s14 + $0x3a0] ss:$16 sps:$4 sm:$0xff]   ;;  %v3067_v11 = vld [vmem:[%s3474_s14 + $0x3c4] ss:$16 sps:$4 sm:$0xff]  }
  0x7a   : > { %1701 = vmatprep.subr.bf16.mxu0 %v2983_v12  ;;  %1865 = vmatprep.subr.bf16.mxu1 %v2986_v13  ;;  %v3070_v12 = vld [vmem:[%s3474_s14 + $0x3cc] ss:$16 sps:$4 sm:$0xff]   ;;  %v3065_v13 = vld [vmem:[%s3474_s14 + $0x3c0] ss:$16 sps:$4 sm:$0xff]  }
  0x7c   : > { %1693 = vmatmul.mubr.bf16.vlgmr.msra.gmra.mrb[0].mxu0 %v3569_v16  ;;  %1857 = vmatmul.mubr.bf16.vlgmr.msra.gmra.mrb[0].mxu1 %v3569_v16 }
  0x7d   : > { %1702 = vmatpush1.bf16.msra.mxu0 %v2981_v15  ;;  %1866 = vmatpush1.bf16.msra.mxu1 %v2984_v18  ;;  %v3073_v15 = vld [vmem:[%s3474_s14 + $0x3e4] ss:$16 sps:$4 sm:$0xff]   ;;  %v3071_v18 = vld [vmem:[%s3474_s14 + $0x3e0] ss:$16 sps:$4 sm:$0xff]  }
  0x7e   : > { %1703 = vmatprep.subr.bf16.mxu0 %v2989_v19  ;;  %1867 = vmatprep.subr.bf16.mxu1 %v2992_v20  ;;  %v3074_v19 = vld [vmem:[%s3474_s14 + $0x3e8] ss:$16 sps:$4 sm:$0xff]   ;;  %v3079_v20 = vld [vmem:[%s3474_s14 + $0x404] ss:$16 sps:$4 sm:$0xff]  }
  0x7f   : > { %1733 = vmatprep.mubr.bf16.mxu0 %v532_v23  ;;  %1897 = vmatprep.mubr.bf16.mxu1 %v532_v23  ;;  %v3082_v23 = vld [vmem:[%s3474_s14 + $0x40c] ss:$16 sps:$4 sm:$0xff]  }
  0x81   : > { %1704 = vmatpush1.bf16.msra.mxu0 %v2987_v24  ;;  %1868 = vmatpush1.bf16.msra.mxu1 %v2990_v25  ;;  %v3077_v24 = vld [vmem:[%s3474_s14 + $0x400] ss:$16 sps:$4 sm:$0xff]   ;;  %v530_v25 = vcombine.high %v3569_v16, %v3569_v16  ;;  %v3086_v16 = vld [vmem:[%s3474_s14 + $0x428] ss:$16 sps:$4 sm:$0xff]  }
  0x82   : > { %1705 = vmatprep.subr.bf16.mxu0 %v2995_v26  ;;  %1869 = vmatprep.subr.bf16.mxu1 %v2998_v27  ;;  %v3080_v26 = vld [vmem:[%s3474_s14 + $0x408] ss:$16 sps:$4 sm:$0xff]   ;;  %v3085_v27 = vld [vmem:[%s3474_s14 + $0x424] ss:$16 sps:$4 sm:$0xff]  }
  0x85   : > { %1706 = vmatpush1.bf16.msra.mxu0 %v2993_v28  ;;  %1870 = vmatpush1.bf16.msra.mxu1 %v2996_v29  ;;  %v3088_v28 = vld [vmem:[%s3474_s14 + $0x42c] ss:$16 sps:$4 sm:$0xff]   ;;  %v3083_v29 = vld [vmem:[%s3474_s14 + $0x420] ss:$16 sps:$4 sm:$0xff]  }
  0x86   : > { %1707 = vmatprep.subr.bf16.mxu0 %v3001_v30  ;;  %1871 = vmatprep.subr.bf16.mxu1 %v3004_v31  ;;  %v3091_v30 = vld [vmem:[%s3474_s14 + $0x444] ss:$16 sps:$4 sm:$0xff]   ;;  %v3094_v31 = vld [vmem:[%s3474_s14 + $0x44c] ss:$16 sps:$4 sm:$0xff]  }
  0x89   : > { %1708 = vmatpush1.bf16.msra.mxu0 %v2999_v32  ;;  %1872 = vmatpush1.bf16.msra.mxu1 %v3002_v33  ;;  %v3089_v32 = vld [vmem:[%s3474_s14 + $0x440] ss:$16 sps:$4 sm:$0xff]   ;;  %v3092_v33 = vld [vmem:[%s3474_s14 + $0x448] ss:$16 sps:$4 sm:$0xff]  }
  0x8a   : > { %1709 = vmatprep.subr.bf16.mxu0 %v3007_v34  ;;  %1873 = vmatprep.subr.bf16.mxu1 %v3010_v35  ;;  %v3097_v34 = vld [vmem:[%s3474_s14 + $0x464] ss:$16 sps:$4 sm:$0xff]   ;;  %v3100_v35 = vld [vmem:[%s3474_s14 + $0x46c] ss:$16 sps:$4 sm:$0xff]  }
  0x8d   : > { %1710 = vmatpush1.bf16.msra.mxu0 %v3005_v36  ;;  %1874 = vmatpush1.bf16.msra.mxu1 %v3008_v37  ;;  %v3095_v36 = vld [vmem:[%s3474_s14 + $0x460] ss:$16 sps:$4 sm:$0xff]   ;;  %v3098_v37 = vld [vmem:[%s3474_s14 + $0x468] ss:$16 sps:$4 sm:$0xff]  }
  0x8e   : > { %1711 = vmatprep.subr.bf16.mxu0 %v3013_v38  ;;  %1875 = vmatprep.subr.bf16.mxu1 %v3016_v39  ;;  %v3106_v38 = vld [vmem:[%s3474_s14 + $0x48c] ss:$16 sps:$4 sm:$0xff]   ;;  %v3101_v39 = vld [vmem:[%s3474_s14 + $0x480] ss:$16 sps:$4 sm:$0xff]  }
  0x91   : > { %1712 = vmatpush1.bf16.msra.mxu0 %v3011_v40  ;;  %1876 = vmatpush1.bf16.msra.mxu1 %v3014_v41  ;;  %v3104_v40 = vld [vmem:[%s3474_s14 + $0x488] ss:$16 sps:$4 sm:$0xff]   ;;  %v3109_v41 = vld [vmem:[%s3474_s14 + $0x4a4] ss:$16 sps:$4 sm:$0xff]  }
  0x92   : > { %1713 = vmatprep.subr.bf16.mxu0 %v3019_v42  ;;  %1877 = vmatprep.subr.bf16.mxu1 %v3022_v43  ;;  %v3112_v42 = vld [vmem:[%s3474_s14 + $0x4ac] ss:$16 sps:$4 sm:$0xff]   ;;  %v3107_v43 = vld [vmem:[%s3474_s14 + $0x4a0] ss:$16 sps:$4 sm:$0xff]  }
  0x95   : > { %1714 = vmatpush1.bf16.msra.mxu0 %v3017_v45  ;;  %1878 = vmatpush1.bf16.msra.mxu1 %v3020_v46  ;;  %v3110_v45 = vld [vmem:[%s3474_s14 + $0x4a8] ss:$16 sps:$4 sm:$0xff]   ;;  %v3115_v46 = vld [vmem:[%s3474_s14 + $0x4c4] ss:$16 sps:$4 sm:$0xff]  }
  0x96   : > { %1715 = vmatprep.subr.bf16.mxu0 %v3025_v47  ;;  %1879 = vmatprep.subr.bf16.mxu1 %v3028_v48  ;;  %v3118_v47 = vld [vmem:[%s3474_s14 + $0x4cc] ss:$16 sps:$4 sm:$0xff]   ;;  %v3113_v48 = vld [vmem:[%s3474_s14 + $0x4c0] ss:$16 sps:$4 sm:$0xff]  }
  0x99   : > { %1716 = vmatpush1.bf16.msra.mxu0 %v3023_v49  ;;  %1880 = vmatpush1.bf16.msra.mxu1 %v3026_v50  ;;  %v3116_v49 = vld [vmem:[%s3474_s14 + $0x4c8] ss:$16 sps:$4 sm:$0xff]   ;;  %v3121_v50 = vld [vmem:[%s3474_s14 + $0x4e4] ss:$16 sps:$4 sm:$0xff]  }
  0x9a   : > { %1717 = vmatprep.subr.bf16.mxu0 %v3031_v51  ;;  %1881 = vmatprep.subr.bf16.mxu1 %v3034_v52  ;;  %v3124_v51 = vld [vmem:[%s3474_s14 + $0x4ec] ss:$16 sps:$4 sm:$0xff]   ;;  %v3119_v52 = vld [vmem:[%s3474_s14 + $0x4e0] ss:$16 sps:$4 sm:$0xff]  }
  0x9d   : > { %1718 = vmatpush1.bf16.msra.mxu0 %v3029_v53  ;;  %1882 = vmatpush1.bf16.msra.mxu1 %v3032_v54  ;;  %v3122_v53 = vld [vmem:[%s3474_s14 + $0x4e8] ss:$16 sps:$4 sm:$0xff]   ;;  %v3127_v54 = vld [vmem:[%s3474_s14 + $0x504] ss:$16 sps:$4 sm:$0xff]  }
  0x9e   : > { %1719 = vmatprep.subr.bf16.mxu0 %v3037_v55  ;;  %1883 = vmatprep.subr.bf16.mxu1 %v3040_v56  ;;  %v3130_v55 = vld [vmem:[%s3474_s14 + $0x50c] ss:$16 sps:$4 sm:$0xff]   ;;  %v3125_v56 = vld [vmem:[%s3474_s14 + $0x500] ss:$16 sps:$4 sm:$0xff]  }
  0xa1   : > { %1720 = vmatpush1.bf16.msra.mxu0 %v3035_v57  ;;  %1884 = vmatpush1.bf16.msra.mxu1 %v3038_v58  ;;  %v3128_v57 = vld [vmem:[%s3474_s14 + $0x508] ss:$16 sps:$4 sm:$0xff]   ;;  %v3133_v58 = vld [vmem:[%s3474_s14 + $0x524] ss:$16 sps:$4 sm:$0xff]  }
  0xa2   : > { %1721 = vmatprep.subr.bf16.mxu0 %v3043_v59  ;;  %1885 = vmatprep.subr.bf16.mxu1 %v3046_v60  ;;  %v3136_v59 = vld [vmem:[%s3474_s14 + $0x52c] ss:$16 sps:$4 sm:$0xff]   ;;  %v3131_v60 = vld [vmem:[%s3474_s14 + $0x520] ss:$16 sps:$4 sm:$0xff]  }
  0xa5   : > { %1722 = vmatpush1.bf16.msra.mxu0 %v3041_v61  ;;  %1886 = vmatpush1.bf16.msra.mxu1 %v3044_v62  ;;  %v3134_v61 = vld [vmem:[%s3474_s14 + $0x528] ss:$16 sps:$4 sm:$0xff]   ;;  %v3139_v62 = vld [vmem:[%s3474_s14 + $0x544] ss:$16 sps:$4 sm:$0xff]  }
  0xa6   : > { %1723 = vmatprep.subr.bf16.mxu0 %v3049_v63  ;;  %1887 = vmatprep.subr.bf16.mxu1 %v3052_v0  ;;  %v3142_v63 = vld [vmem:[%s3474_s14 + $0x54c] ss:$16 sps:$4 sm:$0xff]   ;;  %v3137_v0 = vld [vmem:[%s3474_s14 + $0x540] ss:$16 sps:$4 sm:$0xff]  }
  0xa9   : > { %1724 = vmatpush1.bf16.msra.mxu0 %v3047_v1  ;;  %1888 = vmatpush1.bf16.msra.mxu1 %v3050_v2  ;;  %v3140_v1 = vld [vmem:[%s3474_s14 + $0x548] ss:$16 sps:$4 sm:$0xff]   ;;  %v3145_v2 = vld [vmem:[%s3474_s14 + $0x564] ss:$16 sps:$4 sm:$0xff]  }
  0xaa   : > { %1725 = vmatprep.subr.bf16.mxu0 %v3055_v3  ;;  %1889 = vmatprep.subr.bf16.mxu1 %v3058_v4  ;;  %v3148_v3 = vld [vmem:[%s3474_s14 + $0x56c] ss:$16 sps:$4 sm:$0xff]   ;;  %v3143_v4 = vld [vmem:[%s3474_s14 + $0x560] ss:$16 sps:$4 sm:$0xff]  }
  0xad   : > { %1726 = vmatpush1.bf16.msra.mxu0 %v3053_v5  ;;  %1890 = vmatpush1.bf16.msra.mxu1 %v3056_v6  ;;  %v3146_v5 = vld [vmem:[%s3474_s14 + $0x568] ss:$16 sps:$4 sm:$0xff]   ;;  %v3151_v6 = vld [vmem:[%s3474_s14 + $0x584] ss:$16 sps:$4 sm:$0xff]  }
  0xae   : > { %1727 = vmatprep.subr.bf16.mxu0 %v3061_v7  ;;  %1891 = vmatprep.subr.bf16.mxu1 %v3064_v8  ;;  %v3154_v7 = vld [vmem:[%s3474_s14 + $0x58c] ss:$16 sps:$4 sm:$0xff]   ;;  %v3149_v8 = vld [vmem:[%s3474_s14 + $0x580] ss:$16 sps:$4 sm:$0xff]  }
  0xb1   : > { %1728 = vmatpush1.bf16.msra.mxu0 %v3059_v9  ;;  %1892 = vmatpush1.bf16.msra.mxu1 %v3062_v10  ;;  %v3152_v9 = vld [vmem:[%s3474_s14 + $0x588] ss:$16 sps:$4 sm:$0xff]   ;;  %v3157_v10 = vld [vmem:[%s3474_s14 + $0x5a4] ss:$16 sps:$4 sm:$0xff]  }
  0xb2   : > { %1729 = vmatprep.subr.bf16.mxu0 %v3067_v11  ;;  %1893 = vmatprep.subr.bf16.mxu1 %v3070_v12  ;;  %v3160_v11 = vld [vmem:[%s3474_s14 + $0x5ac] ss:$16 sps:$4 sm:$0xff]   ;;  %v3155_v12 = vld [vmem:[%s3474_s14 + $0x5a0] ss:$16 sps:$4 sm:$0xff]  }
  0xb5   : > { %1730 = vmatpush1.bf16.msra.mxu0 %v3065_v13  ;;  %1894 = vmatpush1.bf16.msra.mxu1 %v3068_v14  ;;  %v3158_v13 = vld [vmem:[%s3474_s14 + $0x5a8] ss:$16 sps:$4 sm:$0xff]   ;;  %v3163_v14 = vld [vmem:[%s3474_s14 + $0x5c4] ss:$16 sps:$4 sm:$0xff]  }
  0xb6   : > { %1731 = vmatprep.subr.bf16.mxu0 %v3073_v15  ;;  %1895 = vmatprep.subr.bf16.mxu1 %v3076_v17  ;;  %v3166_v15 = vld [vmem:[%s3474_s14 + $0x5cc] ss:$16 sps:$4 sm:$0xff]   ;;  %v3161_v17 = vld [vmem:[%s3474_s14 + $0x5c0] ss:$16 sps:$4 sm:$0xff]  }
  0xb9   : > { %1732 = vmatpush1.bf16.msra.mxu0 %v3071_v18  ;;  %1896 = vmatpush1.bf16.msra.mxu1 %v3074_v19  ;;  %v3164_v18 = vld [vmem:[%s3474_s14 + $0x5c8] ss:$16 sps:$4 sm:$0xff]   ;;  %v3169_v19 = vld [vmem:[%s3474_s14 + $0x5e4] ss:$16 sps:$4 sm:$0xff]  }
  0xba   : > { %1742 = vmatprep.subr.bf16.mxu0 %v3079_v20  ;;  %1906 = vmatprep.subr.bf16.mxu1 %v3082_v23  ;;  %v3172_v20 = vld [vmem:[%s3474_s14 + $0x5ec] ss:$16 sps:$4 sm:$0xff]   ;;  %v3167_v23 = vld [vmem:[%s3474_s14 + $0x5e0] ss:$16 sps:$4 sm:$0xff]  }
  0xbc   : > { %1734 = vmatmul.mubr.bf16.vlgmr.msra.gmra.mrb[0].mxu0 %v530_v25  ;;  %1898 = vmatmul.mubr.bf16.vlgmr.msra.gmra.mrb[0].mxu1 %v530_v25  ;;  %v3176_v25 = vld [vmem:[%s3474_s14 + $0x604] ss:$16 sps:$4 sm:$0xff]  }
  0xbd   : > { %1743 = vmatpush1.bf16.msra.mxu0 %v3077_v24  ;;  %1907 = vmatpush1.bf16.msra.mxu1 %v3080_v26  ;;  %v3170_v24 = vld [vmem:[%s3474_s14 + $0x5e8] ss:$16 sps:$4 sm:$0xff]   ;;  %v3179_v26 = vld [vmem:[%s3474_s14 + $0x60c] ss:$16 sps:$4 sm:$0xff]  }
  0xbe   : > { %1744 = vmatprep.subr.bf16.mxu0 %v3085_v27  ;;  %1908 = vmatprep.subr.bf16.mxu1 %v3088_v28  ;;  %v3174_v27 = vld [vmem:[%s3474_s14 + $0x600] ss:$16 sps:$4 sm:$0xff]   ;;  %v3177_v28 = vld [vmem:[%s3474_s14 + $0x608] ss:$16 sps:$4 sm:$0xff]  }
  0xbf   : > { %1774 = vmatprep.mubr.bf16.mxu0 %v3575_v21  ;;  %1938 = vmatprep.mubr.bf16.mxu1 %v3575_v21  ;;  %v3103_v21 = vld [vmem:[%s3474_s14 + $0x484] ss:$16 sps:$4 sm:$0xff]  }
  0xc1   : > { %1745 = vmatpush1.bf16.msra.mxu0 %v3083_v29  ;;  %1909 = vmatpush1.bf16.msra.mxu1 %v3086_v16  ;;  %v3182_v29 = vld [vmem:[%s3474_s14 + $0x624] ss:$16 sps:$4 sm:$0xff]   ;;  %v3185_v16 = vld [vmem:[%s3474_s14 + $0x62c] ss:$16 sps:$4 sm:$0xff]  }
  0xc2   : > { %1746 = vmatprep.subr.bf16.mxu0 %v3091_v30  ;;  %1910 = vmatprep.subr.bf16.mxu1 %v3094_v31  ;;  %v3180_v30 = vld [vmem:[%s3474_s14 + $0x620] ss:$16 sps:$4 sm:$0xff]   ;;  %v3183_v31 = vld [vmem:[%s3474_s14 + $0x628] ss:$16 sps:$4 sm:$0xff]  }
  0xc5   : > { %1747 = vmatpush1.bf16.msra.mxu0 %v3089_v32  ;;  %1911 = vmatpush1.bf16.msra.mxu1 %v3092_v33  ;;  %v3188_v32 = vld [vmem:[%s3474_s14 + $0x644] ss:$16 sps:$4 sm:$0xff]   ;;  %v3191_v33 = vld [vmem:[%s3474_s14 + $0x64c] ss:$16 sps:$4 sm:$0xff]  }
  0xc6   : > { %1748 = vmatprep.subr.bf16.mxu0 %v3097_v34  ;;  %1912 = vmatprep.subr.bf16.mxu1 %v3100_v35  ;;  %v3355_v34 = vmov 0   ;;  %v3186_v35 = vld [vmem:[%s3474_s14 + $0x640] ss:$16 sps:$4 sm:$0xff]  }
  0xc9   : > { %1749 = vmatpush1.bf16.msra.mxu0 %v3095_v36  ;;  %1913 = vmatpush1.bf16.msra.mxu1 %v3098_v37  ;;  %v3189_v36 = vld [vmem:[%s3474_s14 + $0x648] ss:$16 sps:$4 sm:$0xff]   ;;  %v3194_v37 = vld [vmem:[%s3474_s14 + $0x664] ss:$16 sps:$4 sm:$0xff]  }
  0xca   : > { %1750 = vmatprep.subr.bf16.mxu0 %v3103_v21  ;;  %1914 = vmatprep.subr.bf16.mxu1 %v3106_v38  ;;  %v3197_v21 = vld [vmem:[%s3474_s14 + $0x66c] ss:$16 sps:$4 sm:$0xff]   ;;  %v3192_v38 = vld [vmem:[%s3474_s14 + $0x660] ss:$16 sps:$4 sm:$0xff]  }
  0xcd   : > { %1751 = vmatpush1.bf16.msra.mxu0 %v3101_v39  ;;  %1915 = vmatpush1.bf16.msra.mxu1 %v3104_v40  ;;  %v3195_v39 = vld [vmem:[%s3474_s14 + $0x668] ss:$16 sps:$4 sm:$0xff]   ;;  %v3200_v40 = vld [vmem:[%s3474_s14 + $0x684] ss:$16 sps:$4 sm:$0xff]  }
  0xce   : > { %1752 = vmatprep.subr.bf16.mxu0 %v3109_v41  ;;  %1916 = vmatprep.subr.bf16.mxu1 %v3112_v42  ;;  %v3203_v41 = vld [vmem:[%s3474_s14 + $0x68c] ss:$16 sps:$4 sm:$0xff]   ;;  %v3198_v42 = vld [vmem:[%s3474_s14 + $0x680] ss:$16 sps:$4 sm:$0xff]  }
  0xd1   : > { %1753 = vmatpush1.bf16.msra.mxu0 %v3107_v43  ;;  %1917 = vmatpush1.bf16.msra.mxu1 %v3110_v45  ;;  %v3201_v43 = vld [vmem:[%s3474_s14 + $0x688] ss:$16 sps:$4 sm:$0xff]   ;;  %v3206_v45 = vld [vmem:[%s3474_s14 + $0x6a4] ss:$16 sps:$4 sm:$0xff]  }
  0xd2   : > { %1754 = vmatprep.subr.bf16.mxu0 %v3115_v46  ;;  %1918 = vmatprep.subr.bf16.mxu1 %v3118_v47  ;;  %v3209_v46 = vld [vmem:[%s3474_s14 + $0x6ac] ss:$16 sps:$4 sm:$0xff]   ;;  %v3204_v47 = vld [vmem:[%s3474_s14 + $0x6a0] ss:$16 sps:$4 sm:$0xff]  }
  0xd5   : > { %1755 = vmatpush1.bf16.msra.mxu0 %v3113_v48  ;;  %1919 = vmatpush1.bf16.msra.mxu1 %v3116_v49  ;;  %v3207_v48 = vld [vmem:[%s3474_s14 + $0x6a8] ss:$16 sps:$4 sm:$0xff]   ;;  %v3212_v49 = vld [vmem:[%s3474_s14 + $0x6c4] ss:$16 sps:$4 sm:$0xff]  }
  0xd6   : > { %1756 = vmatprep.subr.bf16.mxu0 %v3121_v50  ;;  %1920 = vmatprep.subr.bf16.mxu1 %v3124_v51  ;;  %v3215_v50 = vld [vmem:[%s3474_s14 + $0x6cc] ss:$16 sps:$4 sm:$0xff]   ;;  %v3210_v51 = vld [vmem:[%s3474_s14 + $0x6c0] ss:$16 sps:$4 sm:$0xff]  }
  0xd9   : > { %1757 = vmatpush1.bf16.msra.mxu0 %v3119_v52  ;;  %1921 = vmatpush1.bf16.msra.mxu1 %v3122_v53  ;;  %v3213_v52 = vld [vmem:[%s3474_s14 + $0x6c8] ss:$16 sps:$4 sm:$0xff]   ;;  %v3218_v53 = vld [vmem:[%s3474_s14 + $0x6e4] ss:$16 sps:$4 sm:$0xff]  }
  0xda   : > { %1758 = vmatprep.subr.bf16.mxu0 %v3127_v54  ;;  %1922 = vmatprep.subr.bf16.mxu1 %v3130_v55  ;;  %v3221_v54 = vld [vmem:[%s3474_s14 + $0x6ec] ss:$16 sps:$4 sm:$0xff]   ;;  %v3216_v55 = vld [vmem:[%s3474_s14 + $0x6e0] ss:$16 sps:$4 sm:$0xff]  }
  0xdd   : > { %1759 = vmatpush1.bf16.msra.mxu0 %v3125_v56  ;;  %1923 = vmatpush1.bf16.msra.mxu1 %v3128_v57  ;;  %v3219_v56 = vld [vmem:[%s3474_s14 + $0x6e8] ss:$16 sps:$4 sm:$0xff]   ;;  %v531_v57 = vcombine.high %v3578_v22, %v3578_v22 }
  0xde   : > { %1760 = vmatprep.subr.bf16.mxu0 %v3133_v58  ;;  %1924 = vmatprep.subr.bf16.mxu1 %v3136_v59  ;;  %v3356_v58 = vmov 1983009808  }
  0xdf   : > { %v1995_v59 = vunpack.c.l.s4 %v3356_v58 }
  0xe1   : > { %1761 = vmatpush1.bf16.msra.mxu0 %v3131_v60  ;;  %1925 = vmatpush1.bf16.msra.mxu1 %v3134_v61  ;;  %v1996_v60 = vunpack.c.0.s8 %v1995_v59 }
  0xe2   : > { %1762 = vmatprep.subr.bf16.mxu0 %v3139_v62  ;;  %1926 = vmatprep.subr.bf16.mxu1 %v3142_v63 }
  0xe3   : > { %v3745_v63 = vsub.s32 %v1996_v60, %v3527_v44 }
  0xe5   : > { %1763 = vmatpush1.bf16.msra.mxu0 %v3137_v0  ;;  %1927 = vmatpush1.bf16.msra.mxu1 %v3140_v1 }
  0xe6   : > { %1764 = vmatprep.subr.bf16.mxu0 %v3145_v2  ;;  %1928 = vmatprep.subr.bf16.mxu1 %v3148_v3 }
  0xe9   : > { %1765 = vmatpush1.bf16.msra.mxu0 %v3143_v4  ;;  %1929 = vmatpush1.bf16.msra.mxu1 %v3146_v5 }
  0xea   : > { %1766 = vmatprep.subr.bf16.mxu0 %v3151_v6  ;;  %1930 = vmatprep.subr.bf16.mxu1 %v3154_v7 }
  0xed   : > { %1767 = vmatpush1.bf16.msra.mxu0 %v3149_v8  ;;  %1931 = vmatpush1.bf16.msra.mxu1 %v3152_v9  ;;  %v258_v9 = vld [vmem:[#allocation2] sm:$0xff] }
  0xee   : > { %1768 = vmatprep.subr.bf16.mxu0 %v3157_v10  ;;  %1932 = vmatprep.subr.bf16.mxu1 %v3160_v11 }
  0xf1   : > { %1769 = vmatpush1.bf16.msra.mxu0 %v3155_v12  ;;  %1933 = vmatpush1.bf16.msra.mxu1 %v3158_v13  ;;  %v3222_v12 = vld [vmem:[%s3899_s3 + $0x40] sm:$0xff] (!%p2722_p7)  }
  0xf2   : > { %1770 = vmatprep.subr.bf16.mxu0 %v3163_v14  ;;  %1934 = vmatprep.subr.bf16.mxu1 %v3166_v15  ;;  %v3223_v13 = vld [vmem:[%s3899_s3 + $0xc0] sm:$0xff] (!%p2722_p7)  }
  0xf3   : > { %v3224_v14 = vld [vmem:[%s3899_s3] sm:$0xff] (!%p2722_p7)  }
  0xf4   : > { %v3225_v15 = vld [vmem:[%s3899_s3 + $0x80] sm:$0xff] (!%p2722_p7)  }
  0xf5   : > { %1771 = vmatpush1.bf16.msra.mxu0 %v3161_v17  ;;  %1935 = vmatpush1.bf16.msra.mxu1 %v3164_v18  ;;  %v3226_v17 = vld [vmem:[%s3899_s3 + $0x48] sm:$0xff] (!%p2722_p7)  }
  0xf6   : > { %1772 = vmatprep.subr.bf16.mxu0 %v3169_v19  ;;  %1936 = vmatprep.subr.bf16.mxu1 %v3172_v20  ;;  %v3227_v18 = vld [vmem:[%s3899_s3 + $0xc8] sm:$0xff] (!%p2722_p7)  }
  0xf7   : > { %v3228_v19 = vld [vmem:[%s3899_s3 + $0x8] sm:$0xff] (!%p2722_p7)  }
  0xf8   : > { %v3229_v20 = vld [vmem:[%s3899_s3 + $0x88] sm:$0xff] (!%p2722_p7)  }
  0xf9   : > { %1773 = vmatpush1.bf16.msra.mxu0 %v3167_v23  ;;  %1937 = vmatpush1.bf16.msra.mxu1 %v3170_v24  ;;  %v3230_v23 = vld [vmem:[%s3899_s3 + $0x50] sm:$0xff] (!%p2722_p7)  }
  0xfa   : > { %1783 = vmatprep.subr.bf16.mxu0 %v3176_v25  ;;  %1947 = vmatprep.subr.bf16.mxu1 %v3179_v26  ;;  %v3231_v24 = vld [vmem:[%s3899_s3 + $0xd0] sm:$0xff] (!%p2722_p7)  }
  0xfb   : > { %v3232_v25 = vld [vmem:[%s3899_s3 + $0x10] sm:$0xff] (!%p2722_p7)  }
  0xfc   : > { %1775 = vmatmul.mubr.bf16.vlgmr.msra.gmra.mrb[0].mxu0 %v3578_v22  ;;  %1939 = vmatmul.mubr.bf16.vlgmr.msra.gmra.mrb[0].mxu1 %v3578_v22  ;;  %v3233_v26 = vld [vmem:[%s3899_s3 + $0x90] sm:$0xff] (!%p2722_p7)  }
  0xfd   : > { %1784 = vmatpush1.bf16.msra.mxu0 %v3174_v27  ;;  %1948 = vmatpush1.bf16.msra.mxu1 %v3177_v28  ;;  %v3234_v27 = vld [vmem:[%s3899_s3 + $0x58] sm:$0xff] (!%p2722_p7)  }
  0xfe   : > { %1785 = vmatprep.subr.bf16.mxu0 %v3182_v29  ;;  %1949 = vmatprep.subr.bf16.mxu1 %v3185_v16  ;;  %v3235_v28 = vld [vmem:[%s3899_s3 + $0xd8] sm:$0xff] (!%p2722_p7)  }
  0xff   : > { %1815 = vmatprep.mubr.bf16.mxu0 %v3355_v34  ;;  %1979 = vmatprep.mubr.bf16.mxu1 %v3355_v34  ;;  %v3236_v29 = vld [vmem:[%s3899_s3 + $0x18] sm:$0xff] (!%p2722_p7)   ;;  %v3242_v34 = vld [vmem:[%s3899_s3 + $0x68] sm:$0xff] (!%p2722_p7)  }
 0x100   : > { %v3237_v16 = vld [vmem:[%s3899_s3 + $0x98] sm:$0xff] (!%p2722_p7)  }
 0x101   : > { %1786 = vmatpush1.bf16.msra.mxu0 %v3180_v30  ;;  %1950 = vmatpush1.bf16.msra.mxu1 %v3183_v31  ;;  %v3238_v30 = vld [vmem:[%s3899_s3 + $0x60] sm:$0xff] (!%p2722_p7)  }
 0x102   : > { %1787 = vmatprep.subr.bf16.mxu0 %v3188_v32  ;;  %1951 = vmatprep.subr.bf16.mxu1 %v3191_v33  ;;  %v3239_v31 = vld [vmem:[%s3899_s3 + $0xe0] sm:$0xff] (!%p2722_p7)  }
 0x103   : > { %v3240_v32 = vld [vmem:[%s3899_s3 + $0x20] sm:$0xff] (!%p2722_p7)  }
 0x104   : > { %v3241_v33 = vld [vmem:[%s3899_s3 + $0xa0] sm:$0xff] (!%p2722_p7)  }
 0x105   : > { %1788 = vmatpush1.bf16.msra.mxu0 %v3186_v35  ;;  %1952 = vmatpush1.bf16.msra.mxu1 %v3189_v36  ;;  %v3243_v35 = vld [vmem:[%s3899_s3 + $0xe8] sm:$0xff] (!%p2722_p7)  }
 0x106   : > { %1789 = vmatprep.subr.bf16.mxu0 %v3194_v37  ;;  %1953 = vmatprep.subr.bf16.mxu1 %v3197_v21  ;;  %v3244_v36 = vld [vmem:[%s3899_s3 + $0x28] sm:$0xff] (!%p2722_p7)   ;;  %v3246_v21 = vld [vmem:[%s3899_s3 + $0x70] sm:$0xff] (!%p2722_p7)  }
 0x107   : > { %v3245_v37 = vld [vmem:[%s3899_s3 + $0xa8] sm:$0xff] (!%p2722_p7)  }
 0x109   : > { %1790 = vmatpush1.bf16.msra.mxu0 %v3192_v38  ;;  %1954 = vmatpush1.bf16.msra.mxu1 %v3195_v39  ;;  %v3247_v38 = vld [vmem:[%s3899_s3 + $0xf0] sm:$0xff] (!%p2722_p7)  }
 0x10a   : > { %1791 = vmatprep.subr.bf16.mxu0 %v3200_v40  ;;  %1955 = vmatprep.subr.bf16.mxu1 %v3203_v41  ;;  %v3248_v39 = vld [vmem:[%s3899_s3 + $0x30] sm:$0xff] (!%p2722_p7)   ;;  %v2021_v40 = vsub.s32 (!%p2722_p7), 0, %v3527_v44 }
 0x10b   : > { %v3249_v41 = vld [vmem:[%s3899_s3 + $0xb0] sm:$0xff] (!%p2722_p7)  }
 0x10d   : > { %1792 = vmatpush1.bf16.msra.mxu0 %v3198_v42  ;;  %1956 = vmatpush1.bf16.msra.mxu1 %v3201_v43  ;;  %v2025_v42 = vsub.s32 (!%p2722_p7), 1, %v3527_v44  ;;  %v3250_v43 = vld [vmem:[%s3899_s3 + $0x78] sm:$0xff] (!%p2722_p7)  }
 0x10e   : > { %1793 = vmatprep.subr.bf16.mxu0 %v3206_v45  ;;  %1957 = vmatprep.subr.bf16.mxu1 %v3209_v46  ;;  %v2029_v45 = vsub.s32 (!%p2722_p7), 2, %v3527_v44  ;;  %v3251_v46 = vld [vmem:[%s3899_s3 + $0xf8] sm:$0xff] (!%p2722_p7)  }
 0x111   : > { %1794 = vmatpush1.bf16.msra.mxu0 %v3204_v47  ;;  %1958 = vmatpush1.bf16.msra.mxu1 %v3207_v48  ;;  %v2033_v47 = vsub.s32 (!%p2722_p7), 3, %v3527_v44  ;;  %v3252_v48 = vld [vmem:[%s3899_s3 + $0x38] sm:$0xff] (!%p2722_p7)  }
 0x112   : > { %1795 = vmatprep.subr.bf16.mxu0 %v3212_v49  ;;  %1959 = vmatprep.subr.bf16.mxu1 %v3215_v50  ;;  %v3253_v49 = vld [vmem:[%s3899_s3 + $0xb8] sm:$0xff] (!%p2722_p7)   ;;  %v2017_v50 = vld [vmem:[%s3898_s2] sm:$0xf] (!%p2722_p7) }
 0x113   : > { %v2034_v44 = vrot.slane (!%p2722_p7), %v2017_v50, %v2033_v47 }
 0x115   : > { %1796 = vmatpush1.bf16.msra.mxu0 %v3210_v51  ;;  %1960 = vmatpush1.bf16.msra.mxu1 %v3213_v52  ;;  %v2022_v51 = vrot.slane (!%p2722_p7), %v2017_v50, %v2021_v40  ;;  %v2026_v52 = vrot.slane (!%p2722_p7), %v2017_v50, %v2025_v42 }
 0x116   : > { %1797 = vmatprep.subr.bf16.mxu0 %v3218_v53  ;;  %1961 = vmatprep.subr.bf16.mxu1 %v3221_v54  ;;  %v2030_v53 = vrot.slane (!%p2722_p7), %v2017_v50, %v2029_v45 }
 0x117   : > { %v2035_v54 = vcombine.low (!%p2722_p7), %v2022_v51, %v2026_v52 }
 0x119   : > { %1798 = vmatpush1.bf16.msra.mxu0 %v3216_v55  ;;  %1962 = vmatpush1.bf16.msra.mxu1 %v3219_v56  ;;  %v2036_v55 = vcombine.low (!%p2722_p7), %v2030_v53, %v2034_v44  ;;  %v2043_v56 = vrot.slane (!%p2722_p7), %v2035_v54, %v3745_v63 }
 0x11a   : > { %2763 = vmatprep.subr.bf16.mxu0 (!%p2722_p7), %v3222_v12  ;;  %2785 = vmatprep.subr.bf16.mxu1 (!%p2722_p7), %v3223_v13 }
 0x11c   : > { %1816 = vmatmul.mubr.bf16.vlgmr.msra.gmra.mrb[0].mxu0 %v531_v57  ;;  %1980 = vmatmul.mubr.bf16.vlgmr.msra.gmra.mrb[0].mxu1 %v531_v57  ;;  %v2050_v57 = vrot.slane (!%p2722_p7), %v2036_v55, %v3745_v63 }
 0x11d   : > { %2764 = vmatpush3.bf16.msra.mxu0 (!%p2722_p7), %v3224_v14  ;;  %2786 = vmatpush3.bf16.msra.mxu1 (!%p2722_p7), %v3225_v15 }
 0x11e   : > { %2765 = vmatprep.subr.bf16.mxu0 (!%p2722_p7), %v3226_v17  ;;  %2787 = vmatprep.subr.bf16.mxu1 (!%p2722_p7), %v3227_v18  ;;  %v2051_v59 = vcombine.low (!%p2722_p7), %v2043_v56, %v2050_v57 }
 0x121   : > { %2766 = vmatpush3.bf16.msra.mxu0 (!%p2722_p7), %v3228_v19  ;;  %2788 = vmatpush3.bf16.msra.mxu1 (!%p2722_p7), %v3229_v20 }
 0x122   : > { %2767 = vmatprep.subr.bf16.mxu0 (!%p2722_p7), %v3230_v23  ;;  %2789 = vmatprep.subr.bf16.mxu1 (!%p2722_p7), %v3231_v24 }
 0x125   : > { %2768 = vmatpush3.bf16.msra.mxu0 (!%p2722_p7), %v3232_v25  ;;  %2790 = vmatpush3.bf16.msra.mxu1 (!%p2722_p7), %v3233_v26 }
 0x126   : > { %2769 = vmatprep.subr.bf16.mxu0 (!%p2722_p7), %v3234_v27  ;;  %2791 = vmatprep.subr.bf16.mxu1 (!%p2722_p7), %v3235_v28 }
 0x129   : > { %2770 = vmatpush3.bf16.msra.mxu0 (!%p2722_p7), %v3236_v29  ;;  %2792 = vmatpush3.bf16.msra.mxu1 (!%p2722_p7), %v3237_v16 }
 0x12a   : > { %2771 = vmatprep.subr.bf16.mxu0 (!%p2722_p7), %v3238_v30  ;;  %2793 = vmatprep.subr.bf16.mxu1 (!%p2722_p7), %v3239_v31 }
 0x12d   : > { %2772 = vmatpush3.bf16.msra.mxu0 (!%p2722_p7), %v3240_v32  ;;  %2794 = vmatpush3.bf16.msra.mxu1 (!%p2722_p7), %v3241_v33 }
 0x12e   : > { %2773 = vmatprep.subr.bf16.mxu0 (!%p2722_p7), %v3242_v34  ;;  %2795 = vmatprep.subr.bf16.mxu1 (!%p2722_p7), %v3243_v35 }
 0x131   : > { %2774 = vmatpush3.bf16.msra.mxu0 (!%p2722_p7), %v3244_v36  ;;  %2796 = vmatpush3.bf16.msra.mxu1 (!%p2722_p7), %v3245_v37 }
 0x132   : > { %2775 = vmatprep.subr.bf16.mxu0 (!%p2722_p7), %v3246_v21  ;;  %2797 = vmatprep.subr.bf16.mxu1 (!%p2722_p7), %v3247_v38 }
 0x135   : > { %2776 = vmatpush3.bf16.msra.mxu0 (!%p2722_p7), %v3248_v39  ;;  %2798 = vmatpush3.bf16.msra.mxu1 (!%p2722_p7), %v3249_v41 }
 0x136   : > { %2777 = vmatprep.subr.bf16.mxu0 (!%p2722_p7), %v3250_v43  ;;  %2799 = vmatprep.subr.bf16.mxu1 (!%p2722_p7), %v3251_v46 }
 0x139   : > { %2778 = vmatpush3.bf16.msra.mxu0 (!%p2722_p7), %v3252_v48  ;;  %2800 = vmatpush3.bf16.msra.mxu1 (!%p2722_p7), %v3253_v49 }
 0x1ef   : > { %v1817_v61 = vpop.f32.mrb[0].mxu0  ;;  %v1981_v62 = vpop.f32.mrb[0].mxu1 }
 0x1f0   : > { %v1819_v0 = vpop.f32.mrb[1].mxu0  ;;  %v1983_v1 = vpop.f32.mrb[1].mxu1 }
 0x1f1   : > { %v1992_v2 = vcombine.low %v1817_v61, %v1819_v0  ;;  %v1993_v3 = vcombine.low %v1981_v62, %v1983_v1  ;;  %v1821_v4 = vpop.f32.mrb[2].mxu0  ;;  %v1985_v5 = vpop.f32.mrb[2].mxu1 }
 0x1f2   : > { %v1822_v6 = vpop.f32.mrb[3].mxu0  ;;  %v1986_v22 = vpop.f32.mrb[3].mxu1 }
 0x1f3   : > { %v2000_v7 = vrot.slane %v1992_v2, %v3745_v63  ;;  %v2007_v8 = vrot.slane %v1993_v3, %v3745_v63  ;;  %2015 = sbr.rel (%p2722_p7) target bundleno = 744 (0x2e8), region = 52 }
 0x1f5   : > { %v2008_v10 = vcombine.low %v2000_v7, %v2007_v8  ;;  %v2723_v8 = vld [vmem:[%s3900_s4] ss:$0 sm:$0xff] (!%p2722_p7) }
 0x1f7   : > { %v2010_v11 = vadd.f32 %v2008_v10, %v258_v9 }
 0x1f9   : > { %2011 = vst [vmem:[#allocation2] sm:$0xff] %v2010_v11 }
 0x200   : > { %v2016_v58 = vld [vmem:[#allocation2] sm:$0xff] }
 0x201   : > { %v2053_v60 = vadd.f32 %v2051_v59, %v2016_v58 }
 0x203   : > { %v2054_v61 = vmax.f32 %v2053_v60, 0.0 }
 0x205   : > { %v2063_v62 = vrot.slane %v2054_v61, %v3745_v63  ;;  %v2056_v0 = vcombine.high %v2054_v61, %v2054_v61 }
 0x207   : > { %v2071_v1 = vcombine.high %v2063_v62, %v2063_v62  ;;  %v2070_v2 = vrot.slane %v2056_v0, %v3745_v63  ;;  %v2077_v3 = vpack.c.bf16 %v2063_v62, %v2063_v62 }
 0x209   : > { %v2078_v4 = vpack.c.bf16 %v2071_v1, %v2071_v1  ;;  %v2072_v5 = vcombine.high %v2070_v2, %v2070_v2  ;;  %v2079_v6 = vpack.c.bf16 %v2070_v2, %v2070_v2 }
 0x20b   : > { %2376 = vmatprep.mubr.bf16.mxu0 %v2078_v4  ;;  %v2080_v22 = vpack.c.bf16 %v2072_v5, %v2072_v5 }
 0x20c   : > { %2377 = vmatmul.mubr.bf16.vlgmr.msra.gmra.mrb[0].mxu0 %v2077_v3 }
 0x20d   : > { %2416 = vmatprep.mubr.bf16.mxu1 %v2080_v22 }
 0x20e   : > { %2417 = vmatmul.mubr.bf16.vlgmr.msra.gmra.mrb[0].mxu1 %v2079_v6 }
 0x2df   : > { %v2779_v7 = vpop.f32.mrb[0].mxu0 }
 0x2e0   : > { %v2780_v9 = vpop.f32.mrb[1].mxu0 }
 0x2e1   : > { %v2801_v10 = vpop.f32.mrb[0].mxu1  ;;  %v2781_v11 = vadd.f32 %v2780_v9, %v2779_v7  ;;  %v2782_v12 = vpop.f32.mrb[2].mxu0 }
 0x2e2   : > { %v2802_v13 = vpop.f32.mrb[1].mxu1  ;;  %v2783_v63 = vpop.f32.mrb[3].mxu0 }
 0x2e3   : > { %v2379_v14 = vadd.f32 %v2781_v11, %v2723_v8  ;;  %v2803_v15 = vadd.f32 %v2802_v13, %v2801_v10  ;;  %v2804_v17 = vpop.f32.mrb[2].mxu1 }
 0x2e4   : > { %v2805_v18 = vpop.f32.mrb[3].mxu1 }
 0x2e5   : > { %v2419_v19 = vadd.f32 %v2803_v15, %v2379_v14 }
 0x2e7   : > { %2424 = vst [vmem:[#allocation6] sm:$0x3] %v2419_v19 }
 0x2e8 PF: > { %p2844_p4 = scmp.eq.s32.totalorder %s3407_s22, 4  ;;  %s3357_s30 = smov [#allocation6]  }
 0x2e9   : > { %s2432_s7 = sshll.u32 %s3357_s30, 4  ;;  %s2433_s7 = int_to_ptr.vmem [resolvable:$true] %s2432_s7 }
 0x2ea   : > { %s3284_s8 = scalar_lea.vmem %s2433_s7, 32  ;;  %p3291_p12 = scmp.lt.s32.totalorder %s2433_s7, %s2433_s7 }
 0x2eb   : > { %p3285_p5 = scmp.ne.s32.totalorder %s2433_s7, %s3284_s8  ;;  %p3292_p0 = scmp.lt.s32.totalorder %s3284_s8, %s3284_s8 }
 0x2ed   : > { %p3286_p6 = pnand %p3285_p5, %p2844_p4  ;;  %p3293_p1 = por %p3292_p0, %p3291_p12 }
 0x2ef   : > { %p3287_p10 = pneg %p3286_p6 }
 0x2f1   : > { %p3294_p2 = pnand %p3293_p1, %p3287_p10 }
 0x2f3   : > { %3297 = shalt.err (!%p3294_p2)
}
 0x2f4   : > { %s3298_s14 = scalar_lea.hbm %s3901_s5, 32 }
 0x2f5   : > { %p3299_p11 = scmp.ne.s32.totalorder %s3901_s5, %s3298_s14  ;;  %p3304_p9 = scmp.lt.u32.totalorder %s3298_s14, %s3901_s5 }
 0x2f7   : > { %p3300_p13 = pnand %p3299_p11, %p2844_p4 }
 0x2f9   : > { %p3301_p3 = pneg %p3300_p13 }
 0x2fb   : > { %p3306_p8 = pnand %p3304_p9, %p3301_p3 }
 0x2fd   : > { %3309 = shalt.err (!%p3306_p8)
}
 0x2fe   : > { %2836 = dma.vmem_to_hbm [thread:$0]  (%p2844_p4), %s2433_s7, 32, %s3901_s5, [#allocation5]  }
 0x2ff   : > { %3331 = dma.done.wait (%p2844_p4), [#allocation5], 32  }
 0x300   : > { %3333 = vsyncadd (%p2844_p4), [#allocation5], 4294967264 }
 0x301 PF: > { %p16_p7 = scmp.ge.s32.totalorder %s3410_s23, 7   ;;  %s3905_s18 = smov %s3340_s19 }
 0x302   : > { %s3906_s19 = smov %s3344_s20  ;;  %s3907_s20 = smov %s3420_s26 }
 0x303   : > { %s3908_s21 = smov %s3410_s23  ;;  %18 = sbr.rel (!%p16_p7) target bundleno = 4 (0x4), region = 88 }
 0x30a   :  { %2445 = vsyncpa [#allocation4], 1 }
 0x30b   :  { %2447 = vsyncpa [#allocation4 + $0x1], 1 }
 0x30c   :  { %2448 = vsyncpa [#allocation5], 1 }
 0x30d   :  { %2450 = vsyncpa [#allocation5 + $0x1], 1 }

// kernel: self_prediction_forward.2
= control target key start
LH: loop header
LB: loop body
LE: loop exit
PB: predicated region body
PF: predicated region fallthrough
CT: control target
= control target key end

     0   :  { %s8554_s24 = smov 0   ;;  %s10650_s0 = inlined_call_operand.vmem [shape: bf16[2,480,512], index: 0, kind: input, shape index: {}]   ;;  %s10651_s1 = inlined_call_operand.vmem [shape: bf16[512,32], index: 1, kind: input, shape index: {}]   ;;  %s10652_s2 = inlined_call_operand.vmem [shape: f32[1,32], index: 2, kind: input, shape index: {}]   ;;  %s10653_s3 = inlined_call_operand.vmem [shape: bf16[16,32,64], index: 3, kind: input, shape index: {}]   ;;  %s10654_s4 = inlined_call_operand.vmem [shape: f32[1,64], index: 4, kind: input, shape index: {}]   ;;  %s10655_s5 = inlined_call_operand.vmem [shape: bf16[9,64,64], index: 5, kind: input, shape index: {}]   ;;  %s10656_s6 = inlined_call_operand.vmem [shape: f32[1,64], index: 6, kind: input, shape index: {}]   ;;  %s10657_s7 = inlined_call_operand.vmem [shape: bf16[2,70,64], index: 7, kind: output, shape index: {}]  }
   0x1 LB: > { %s6424_s25 = sadd.s32 4294967295, %s8509_s24   ;;  %p6428_p0 = scmp.ge.s32.totalorder %s8509_s24, 1  ;;  %s8509_s24 = sphi %s8554_s24, %s17_s24  }
   0x2   : > { %p237_p1 = scmp.lt.s32.totalorder %s8509_s24, 3 }
   0x4   : > { %p238_p2 = pnand %p6428_p0, %p237_p1 }
   0x6   : > { %241 = sbr.rel (%p238_p2) target bundleno = 1949 (0x79d), region = 48 }
   0xd   : > { %v8192_v0 = vld [vmem:[%s10651_s1] sm:$0xff]   ;;  %v8511_v1 = vmov 0   ;;  %v8193_v2 = vld [vmem:[%s10651_s1 + $0x8] sm:$0xff]   ;;  %p269_p3 = scmp.lt.s32.totalorder %s6424_s25, 1  ;;  %v8194_v3 = vld [vmem:[%s10651_s1 + $0x10] sm:$0xff]   ;;  %vm8513_vm0 = vmmov 0  }
   0xe   : > { %1263 = vmatprep.subr.bf16.mxu0 %v8511_v1  ;;  %v8195_v4 = vld [vmem:[%s10651_s1 + $0x18] sm:$0xff]   ;;  %v8196_v5 = vld [vmem:[%s10651_s1 + $0x20] sm:$0xff]   ;;  %v8197_v7 = vld [vmem:[%s10651_s1 + $0x28] sm:$0xff]   ;;  %vm1899_vm1 = vcmask 261120   ;;  %vm3647_vm2 = vsmask.f32 2304 }
   0xf   : > { %1264 = vmatpush1.bf16.msra.mxu0 %v8192_v0  ;;  %s10676_s25 = smov (!%p269_p3, %s6424_s25), 1  ;;  %v8198_v8 = vld [vmem:[%s10651_s1 + $0x30] sm:$0xff]   ;;  %v8199_v9 = vld [vmem:[%s10651_s1 + $0x38] sm:$0xff]   ;;  %v8200_v10 = vld [vmem:[%s10651_s1 + $0x40] sm:$0xff]   ;;  %vm2222_vm3 = vsmask.f32 7424 }
  0x10   : > { %1265 = vmatprep.subr.bf16.mxu0 %v8511_v1  ;;  %s8179_s11 = smul.u32 960, %s10676_s25  ;;  %v8201_v11 = vld [vmem:[%s10651_s1 + $0x48] sm:$0xff]   ;;  %v8202_v12 = vld [vmem:[%s10651_s1 + $0x50] sm:$0xff]   ;;  %v8203_v13 = vld [vmem:[%s10651_s1 + $0x58] sm:$0xff]   ;;  %vm1960_vm4 = vcmask 1043456   ;;  %vm3326_vm6 = vcmask 1042432  }
  0x11   : > { %v8204_v14 = vld [vmem:[%s10651_s1 + $0x60] sm:$0xff]   ;;  %v8205_v15 = vld [vmem:[%s10651_s1 + $0x68] sm:$0xff]   ;;  %v8206_v16 = vld [vmem:[%s10651_s1 + $0x70] sm:$0xff]   ;;  %vm2412_vm5 = vsmask.f32 3328  ;;  %vm3493_vm7 = vcmask 1046528  }
  0x12   : > { %s8587_s16 = scalar_lea.vmem %s10650_s0, %s8179_s11  ;;  %v8207_v17 = vld [vmem:[%s10651_s1 + $0x78] sm:$0xff]   ;;  %v8211_v19 = vld [vmem:[%s10651_s1 + $0x80] sm:$0xff]   ;;  %v8218_v21 = vld [vmem:[%s10651_s1 + $0x88] sm:$0xff]   ;;  %vm3825_vm8 = vsmask.f32 6400  ;;  %vm4814_vm9 = vcmask 519168  }
  0x13   : > { %1266 = vmatpush1.bf16.msra.mxu0 %v8193_v2  ;;  %v8210_v6 = vld [vmem:[%s8587_s16 + $0x4] ss:$16 sps:$4 sm:$0xff]   ;;  %v8208_v18 = vld [vmem:[%s8587_s16] ss:$16 sps:$4 sm:$0xff]   ;;  %v8229_v25 = vld [vmem:[%s10651_s1 + $0x98] sm:$0xff]   ;;  %vm4942_vm10 = vcmask 523264  }
  0x14   : > { %1267 = vmatprep.subr.bf16.mxu0 %v8511_v1  ;;  %1295 = vmatprep.mubr.bf16.mxu0 %v8210_v6  ;;  %v8212_v20 = vld [vmem:[%s8587_s16 + $0x24] ss:$16 sps:$4 sm:$0xff]   ;;  %v8214_v22 = vld [vmem:[%s8587_s16 + $0x20] ss:$16 sps:$4 sm:$0xff]   ;;  %v8243_v29 = vld [vmem:[%s10651_s1 + $0xa8] sm:$0xff]   ;;  %vm5673_vm11 = vcmask 1045504  }
  0x15   : > { %v8215_v23 = vld [vmem:[%s8587_s16 + $0x44] ss:$16 sps:$4 sm:$0xff]   ;;  %v8217_v26 = vld [vmem:[%s8587_s16 + $0x40] ss:$16 sps:$4 sm:$0xff]   ;;  %v8257_v33 = vld [vmem:[%s10651_s1 + $0xb8] sm:$0xff]   ;;  %vm6167_vm13 = vcmask 1044480  }
  0x16   : > { %v8224_v24 = vld [vmem:[%s10651_s1 + $0x90] sm:$0xff]   ;;  %v8236_v28 = vld [vmem:[%s10651_s1 + $0xa0] sm:$0xff]   ;;  %v8271_v37 = vld [vmem:[%s10651_s1 + $0xc8] sm:$0xff]   ;;  %vm5989_vm12 = vsmask.f32 5376  ;;  %s8180_s11 = smul.u32 36, %s10676_s25 }
  0x17   : > { %1268 = vmatpush1.bf16.msra.mxu0 %v8194_v3  ;;  %v8219_v27 = vld [vmem:[%s8587_s16 + $0x64] ss:$16 sps:$4 sm:$0xff]   ;;  %v8221_v30 = vld [vmem:[%s8587_s16 + $0x60] ss:$16 sps:$4 sm:$0xff]   ;;  %v8282_v41 = vld [vmem:[%s10651_s1 + $0xd8] sm:$0xff]   ;;  %vm6367_vm14 = vcmask 518144  }
  0x18   : > { %1269 = vmatprep.subr.bf16.mxu0 %v8511_v1  ;;  %v8222_v31 = vld [vmem:[%s8587_s16 + $0x84] ss:$16 sps:$4 sm:$0xff]   ;;  %v8225_v34 = vld [vmem:[%s8587_s16 + $0x80] ss:$16 sps:$4 sm:$0xff]   ;;  %v8296_v49 = vld [vmem:[%s10651_s1 + $0xe8] sm:$0xff]   ;;  %s10628_s14 = scalar_lea.vmem %s10657_s7, %s8180_s11 }
  0x19   : > { %v8250_v32 = vld [vmem:[%s10651_s1 + $0xb0] sm:$0xff]   ;;  %v8264_v36 = vld [vmem:[%s10651_s1 + $0xc0] sm:$0xff]   ;;  %v8310_v59 = vld [vmem:[%s10651_s1 + $0xf8] sm:$0xff]  }
  0x1a   : > { %v8226_v35 = vld [vmem:[%s8587_s16 + $0xa4] ss:$16 sps:$4 sm:$0xff]   ;;  %v8228_v38 = vld [vmem:[%s8587_s16 + $0xa0] ss:$16 sps:$4 sm:$0xff]  }
  0x1b   : > { %1270 = vmatpush1.bf16.msra.mxu0 %v8195_v4  ;;  %v8230_v39 = vld [vmem:[%s8587_s16 + $0xc4] ss:$16 sps:$4 sm:$0xff]   ;;  %v8232_v42 = vld [vmem:[%s8587_s16 + $0xc0] ss:$16 sps:$4 sm:$0xff]  }
  0x1c   : > { %1271 = vmatprep.subr.bf16.mxu0 %v8511_v1  ;;  %v8277_v40 = vld [vmem:[%s10651_s1 + $0xd0] sm:$0xff]   ;;  %v8289_v44 = vld [vmem:[%s10651_s1 + $0xe0] sm:$0xff]  }
  0x1d   : > { %v8233_v43 = vld [vmem:[%s8587_s16 + $0xe4] ss:$16 sps:$4 sm:$0xff]   ;;  %v8235_v45 = vld [vmem:[%s8587_s16 + $0xe0] ss:$16 sps:$4 sm:$0xff]  }
  0x1e   : > { %v8237_v46 = vld [vmem:[%s8587_s16 + $0x104] ss:$16 sps:$4 sm:$0xff]   ;;  %v8239_v47 = vld [vmem:[%s8587_s16 + $0x100] ss:$16 sps:$4 sm:$0xff]  }
  0x1f   : > { %1272 = vmatpush1.bf16.msra.mxu0 %v8196_v5  ;;  %v8240_v48 = vld [vmem:[%s8587_s16 + $0x124] ss:$16 sps:$4 sm:$0xff]   ;;  %v8242_v50 = vld [vmem:[%s8587_s16 + $0x120] ss:$16 sps:$4 sm:$0xff]  }
  0x20   : > { %1273 = vmatprep.subr.bf16.mxu0 %v8511_v1  ;;  %v8244_v51 = vld [vmem:[%s8587_s16 + $0x144] ss:$16 sps:$4 sm:$0xff]   ;;  %v8246_v52 = vld [vmem:[%s8587_s16 + $0x140] ss:$16 sps:$4 sm:$0xff]  }
  0x21   : > { %v8247_v53 = vld [vmem:[%s8587_s16 + $0x164] ss:$16 sps:$4 sm:$0xff]   ;;  %v8249_v55 = vld [vmem:[%s8587_s16 + $0x160] ss:$16 sps:$4 sm:$0xff]  }
  0x22   : > { %v8303_v54 = vld [vmem:[%s10651_s1 + $0xf0] sm:$0xff]  }
  0x23   : > { %1274 = vmatpush1.bf16.msra.mxu0 %v8197_v7  ;;  %v8251_v56 = vld [vmem:[%s8587_s16 + $0x184] ss:$16 sps:$4 sm:$0xff]   ;;  %v8253_v57 = vld [vmem:[%s8587_s16 + $0x180] ss:$16 sps:$4 sm:$0xff]  }
  0x24   : > { %1275 = vmatprep.subr.bf16.mxu0 %v8511_v1  ;;  %v8254_v58 = vld [vmem:[%s8587_s16 + $0x1a4] ss:$16 sps:$4 sm:$0xff]   ;;  %v8256_v60 = vld [vmem:[%s8587_s16 + $0x1a0] ss:$16 sps:$4 sm:$0xff]  }
  0x25   : > { %v8258_v61 = vld [vmem:[%s8587_s16 + $0x1c4] ss:$16 sps:$4 sm:$0xff]   ;;  %v8260_v62 = vld [vmem:[%s8587_s16 + $0x1c0] ss:$16 sps:$4 sm:$0xff]  }
  0x26   : > { %v8261_v63 = vld [vmem:[%s8587_s16 + $0x1e4] ss:$16 sps:$4 sm:$0xff]   ;;  %v8263_v0 = vld [vmem:[%s8587_s16 + $0x1e0] ss:$16 sps:$4 sm:$0xff]  }
  0x27   : > { %1276 = vmatpush1.bf16.msra.mxu0 %v8198_v8  ;;  %v8267_v2 = vld [vmem:[%s8587_s16 + $0x200] ss:$16 sps:$4 sm:$0xff]   ;;  %v8268_v3 = vld [vmem:[%s8587_s16 + $0x224] ss:$16 sps:$4 sm:$0xff]  }
  0x28   : > { %1277 = vmatprep.subr.bf16.mxu0 %v8511_v1  ;;  %v8270_v4 = vld [vmem:[%s8587_s16 + $0x220] ss:$16 sps:$4 sm:$0xff]   ;;  %v8272_v5 = vld [vmem:[%s8587_s16 + $0x244] ss:$16 sps:$4 sm:$0xff]  }
  0x29   : > { %v8274_v6 = vld [vmem:[%s8587_s16 + $0x240] ss:$16 sps:$4 sm:$0xff]   ;;  %v8275_v7 = vld [vmem:[%s8587_s16 + $0x264] ss:$16 sps:$4 sm:$0xff]  }
  0x2a   : > { %v8278_v8 = vld [vmem:[%s8587_s16 + $0x260] ss:$16 sps:$4 sm:$0xff]  }
  0x2b   : > { %1278 = vmatpush1.bf16.msra.mxu0 %v8199_v9  ;;  %v8279_v9 = vld [vmem:[%s8587_s16 + $0x284] ss:$16 sps:$4 sm:$0xff]  }
  0x2c   : > { %1279 = vmatprep.subr.bf16.mxu0 %v8511_v1 }
  0x2f   : > { %1280 = vmatpush1.bf16.msra.mxu0 %v8200_v10  ;;  %v8281_v10 = vld [vmem:[%s8587_s16 + $0x280] ss:$16 sps:$4 sm:$0xff]  }
  0x30   : > { %1281 = vmatprep.subr.bf16.mxu0 %v8511_v1 }
  0x33   : > { %1282 = vmatpush1.bf16.msra.mxu0 %v8201_v11  ;;  %v8283_v11 = vld [vmem:[%s8587_s16 + $0x2a4] ss:$16 sps:$4 sm:$0xff]  }
  0x34   : > { %1283 = vmatprep.subr.bf16.mxu0 %v8511_v1 }
  0x37   : > { %1284 = vmatpush1.bf16.msra.mxu0 %v8202_v12  ;;  %v8285_v12 = vld [vmem:[%s8587_s16 + $0x2a0] ss:$16 sps:$4 sm:$0xff]  }
  0x38   : > { %1285 = vmatprep.subr.bf16.mxu0 %v8511_v1 }
  0x3b   : > { %1286 = vmatpush1.bf16.msra.mxu0 %v8203_v13  ;;  %v8286_v13 = vld [vmem:[%s8587_s16 + $0x2c4] ss:$16 sps:$4 sm:$0xff]  }
  0x3c   : > { %1287 = vmatprep.subr.bf16.mxu0 %v8511_v1 }
  0x3f   : > { %1288 = vmatpush1.bf16.msra.mxu0 %v8204_v14  ;;  %v8288_v14 = vld [vmem:[%s8587_s16 + $0x2c0] ss:$16 sps:$4 sm:$0xff]  }
  0x40   : > { %1289 = vmatprep.subr.bf16.mxu0 %v8511_v1 }
  0x43   : > { %1290 = vmatpush1.bf16.msra.mxu0 %v8205_v15  ;;  %v8290_v15 = vld [vmem:[%s8587_s16 + $0x2e4] ss:$16 sps:$4 sm:$0xff]  }
  0x44   : > { %1291 = vmatprep.subr.bf16.mxu0 %v8511_v1 }
  0x47   : > { %1292 = vmatpush1.bf16.msra.mxu0 %v8206_v16  ;;  %v8292_v16 = vld [vmem:[%s8587_s16 + $0x2e0] ss:$16 sps:$4 sm:$0xff]  }
  0x48   : > { %1293 = vmatprep.subr.bf16.mxu0 %v8511_v1 }
  0x4b   : > { %1294 = vmatpush1.bf16.msra.mxu0 %v8207_v17  ;;  %v8293_v17 = vld [vmem:[%s8587_s16 + $0x304] ss:$16 sps:$4 sm:$0xff]  }
  0x4c   : > { %1536 = vmatprep.subr.bf16.mxu0 %v8511_v1 }
  0x4e   : > { %1296 = vmatmul.mubr.bf16.vlgmr.msra.gmra.mrb[0].mxu0 %v8208_v18  ;;  %v8295_v18 = vld [vmem:[%s8587_s16 + $0x300] ss:$16 sps:$4 sm:$0xff]  }
  0x4f   : > { %1537 = vmatpush1.bf16.msra.mxu0 %v8211_v19  ;;  %1303 = vmatprep.mubr.bf16.mxu0 %v8212_v20  ;;  %v8297_v19 = vld [vmem:[%s8587_s16 + $0x324] ss:$16 sps:$4 sm:$0xff]   ;;  %v8299_v20 = vld [vmem:[%s8587_s16 + $0x320] ss:$16 sps:$4 sm:$0xff]  }
  0x50   : > { %1538 = vmatprep.subr.bf16.mxu0 %v8511_v1 }
  0x53   : > { %1539 = vmatpush1.bf16.msra.mxu0 %v8218_v21  ;;  %v8300_v21 = vld [vmem:[%s8587_s16 + $0x344] ss:$16 sps:$4 sm:$0xff]  }
  0x54   : > { %1540 = vmatprep.subr.bf16.mxu0 %v8511_v1 }
  0x56   : > { %1304 = vmatmul.mubr.bf16.gmra.mrb[4].mxu0 %v8214_v22  ;;  %v8302_v22 = vld [vmem:[%s8587_s16 + $0x340] ss:$16 sps:$4 sm:$0xff]  }
  0x57   : > { %1311 = vmatprep.mubr.bf16.mxu0 %v8215_v23  ;;  %1541 = vmatpush1.bf16.msra.mxu0 %v8224_v24  ;;  %v8304_v23 = vld [vmem:[%s8587_s16 + $0x364] ss:$16 sps:$4 sm:$0xff]   ;;  %v8306_v24 = vld [vmem:[%s8587_s16 + $0x360] ss:$16 sps:$4 sm:$0xff]  }
  0x58   : > { %1542 = vmatprep.subr.bf16.mxu0 %v8511_v1 }
  0x5b   : > { %1543 = vmatpush1.bf16.msra.mxu0 %v8229_v25  ;;  %v8307_v25 = vld [vmem:[%s8587_s16 + $0x384] ss:$16 sps:$4 sm:$0xff]  }
  0x5c   : > { %1544 = vmatprep.subr.bf16.mxu0 %v8511_v1 }
  0x5e   : > { %1312 = vmatmul.mubr.bf16.gmra.mrb[8].mxu0 %v8217_v26  ;;  %v8309_v26 = vld [vmem:[%s8587_s16 + $0x380] ss:$16 sps:$4 sm:$0xff]  }
  0x5f   : > { %1319 = vmatprep.mubr.bf16.mxu0 %v8219_v27  ;;  %1545 = vmatpush1.bf16.msra.mxu0 %v8236_v28  ;;  %v8311_v27 = vld [vmem:[%s8587_s16 + $0x3a4] ss:$16 sps:$4 sm:$0xff]   ;;  %v8313_v28 = vld [vmem:[%s8587_s16 + $0x3a0] ss:$16 sps:$4 sm:$0xff]  }
  0x60   : > { %1546 = vmatprep.subr.bf16.mxu0 %v8511_v1 }
  0x63   : > { %1547 = vmatpush1.bf16.msra.mxu0 %v8243_v29  ;;  %v8316_v29 = vld [vmem:[%s8587_s16 + $0xc] ss:$16 sps:$4 sm:$0xff]  }
  0x64   : > { %1548 = vmatprep.subr.bf16.mxu0 %v8511_v1 }
  0x66   : > { %1320 = vmatmul.mubr.bf16.gmra.mrb[12].mxu0 %v8221_v30  ;;  %v8314_v30 = vld [vmem:[%s8587_s16 + $0x8] ss:$16 sps:$4 sm:$0xff]  }
  0x67   : > { %1327 = vmatprep.mubr.bf16.mxu0 %v8222_v31  ;;  %1549 = vmatpush1.bf16.msra.mxu0 %v8250_v32  ;;  %v8317_v31 = vld [vmem:[%s8587_s16 + $0x2c] ss:$16 sps:$4 sm:$0xff]   ;;  %v8319_v32 = vld [vmem:[%s8587_s16 + $0x28] ss:$16 sps:$4 sm:$0xff]  }
  0x68   : > { %1550 = vmatprep.subr.bf16.mxu0 %v8511_v1 }
  0x6b   : > { %1551 = vmatpush1.bf16.msra.mxu0 %v8257_v33  ;;  %v8320_v33 = vld [vmem:[%s8587_s16 + $0x4c] ss:$16 sps:$4 sm:$0xff]  }
  0x6c   : > { %1552 = vmatprep.subr.bf16.mxu0 %v8511_v1 }
  0x6e   : > { %1328 = vmatmul.mubr.bf16.gmra.mrb[16].mxu0 %v8225_v34  ;;  %v8322_v34 = vld [vmem:[%s8587_s16 + $0x48] ss:$16 sps:$4 sm:$0xff]  }
  0x6f   : > { %1335 = vmatprep.mubr.bf16.mxu0 %v8226_v35  ;;  %1553 = vmatpush1.bf16.msra.mxu0 %v8264_v36  ;;  %v8323_v35 = vld [vmem:[%s8587_s16 + $0x6c] ss:$16 sps:$4 sm:$0xff]   ;;  %v8325_v36 = vld [vmem:[%s8587_s16 + $0x68] ss:$16 sps:$4 sm:$0xff]  }
  0x70   : > { %1554 = vmatprep.subr.bf16.mxu0 %v8511_v1 }
  0x73   : > { %1555 = vmatpush1.bf16.msra.mxu0 %v8271_v37  ;;  %v8326_v37 = vld [vmem:[%s8587_s16 + $0x8c] ss:$16 sps:$4 sm:$0xff]  }
  0x74   : > { %1556 = vmatprep.subr.bf16.mxu0 %v8511_v1 }
  0x76   : > { %1336 = vmatmul.mubr.bf16.gmra.mrb[20].mxu0 %v8228_v38  ;;  %v8328_v38 = vld [vmem:[%s8587_s16 + $0x88] ss:$16 sps:$4 sm:$0xff]  }
  0x77   : > { %1343 = vmatprep.mubr.bf16.mxu0 %v8230_v39  ;;  %1557 = vmatpush1.bf16.msra.mxu0 %v8277_v40  ;;  %v8329_v39 = vld [vmem:[%s8587_s16 + $0xac] ss:$16 sps:$4 sm:$0xff]   ;;  %v8331_v40 = vld [vmem:[%s8587_s16 + $0xa8] ss:$16 sps:$4 sm:$0xff]  }
  0x78   : > { %1558 = vmatprep.subr.bf16.mxu0 %v8511_v1 }
  0x7b   : > { %1559 = vmatpush1.bf16.msra.mxu0 %v8282_v41  ;;  %v8332_v41 = vld [vmem:[%s8587_s16 + $0xcc] ss:$16 sps:$4 sm:$0xff]  }
  0x7c   : > { %1560 = vmatprep.subr.bf16.mxu0 %v8511_v1 }
  0x7e   : > { %1344 = vmatmul.mubr.bf16.gmra.mrb[24].mxu0 %v8232_v42  ;;  %v8334_v42 = vld [vmem:[%s8587_s16 + $0xc8] ss:$16 sps:$4 sm:$0xff]  }
  0x7f   : > { %1351 = vmatprep.mubr.bf16.mxu0 %v8233_v43  ;;  %1561 = vmatpush1.bf16.msra.mxu0 %v8289_v44  ;;  %v8335_v43 = vld [vmem:[%s8587_s16 + $0xec] ss:$16 sps:$4 sm:$0xff]   ;;  %v8337_v44 = vld [vmem:[%s8587_s16 + $0xe8] ss:$16 sps:$4 sm:$0xff]  }
  0x80   : > { %1562 = vmatprep.subr.bf16.mxu0 %v8511_v1 }
  0x83   : > { %1563 = vmatpush1.bf16.msra.mxu0 %v8296_v49  ;;  %v8344_v49 = vld [vmem:[%s8587_s16 + $0x14c] ss:$16 sps:$4 sm:$0xff]  }
  0x84   : > { %1564 = vmatprep.subr.bf16.mxu0 %v8511_v1 }
  0x86   : > { %1352 = vmatmul.mubr.bf16.gmra.mrb[28].mxu0 %v8235_v45  ;;  %v8338_v45 = vld [vmem:[%s8587_s16 + $0x10c] ss:$16 sps:$4 sm:$0xff]  }
  0x87   : > { %1359 = vmatprep.mubr.bf16.mxu0 %v8237_v46  ;;  %1565 = vmatpush1.bf16.msra.mxu0 %v8303_v54  ;;  %v8340_v46 = vld [vmem:[%s8587_s16 + $0x108] ss:$16 sps:$4 sm:$0xff]  }
  0x88   : > { %1566 = vmatprep.subr.bf16.mxu0 %v8511_v1  ;;  %v8265_v1 = vld [vmem:[%s8587_s16 + $0x204] ss:$16 sps:$4 sm:$0xff]   ;;  %v8352_v54 = vld [vmem:[%s8587_s16 + $0x188] ss:$16 sps:$4 sm:$0xff]  }
  0x8b   : > { %1567 = vmatpush1.bf16.msra.mxu0 %v8310_v59  ;;  %v10658_v59 = vmov 0.0  }
  0x8c   : > { %7551 = vmatprep.subr.bf16.mxu0 %v10658_v59  ;;  %7231 = vmatprep.subr.bf16.mxu1 %v10658_v59 }
  0x8d   : > { %7235 = vmatprep.mubr.msk.bf16.mxu1 %vm8513_vm0, %v10658_v59 }
  0x8e   : > { %1360 = vmatmul.mubr.bf16.gmra.mrb[32].mxu0 %v8239_v47  ;;  %v8341_v47 = vld [vmem:[%s8587_s16 + $0x12c] ss:$16 sps:$4 sm:$0xff]  }
  0x8f   : > { %1367 = vmatprep.mubr.bf16.mxu0 %v8240_v48  ;;  %v8343_v48 = vld [vmem:[%s8587_s16 + $0x128] ss:$16 sps:$4 sm:$0xff]  }
  0x96   : > { %1368 = vmatmul.mubr.bf16.gmra.mrb[36].mxu0 %v8242_v50  ;;  %v8346_v50 = vld [vmem:[%s8587_s16 + $0x148] ss:$16 sps:$4 sm:$0xff]  }
  0x97   : > { %1375 = vmatprep.mubr.bf16.mxu0 %v8244_v51  ;;  %v8347_v51 = vld [vmem:[%s8587_s16 + $0x16c] ss:$16 sps:$4 sm:$0xff]  }
  0x9e   : > { %1376 = vmatmul.mubr.bf16.gmra.mrb[40].mxu0 %v8246_v52  ;;  %v8349_v52 = vld [vmem:[%s8587_s16 + $0x168] ss:$16 sps:$4 sm:$0xff]  }
  0x9f   : > { %1383 = vmatprep.mubr.bf16.mxu0 %v8247_v53  ;;  %v8350_v53 = vld [vmem:[%s8587_s16 + $0x18c] ss:$16 sps:$4 sm:$0xff]  }
  0xa6   : > { %1384 = vmatmul.mubr.bf16.gmra.mrb[44].mxu0 %v8249_v55  ;;  %v8353_v55 = vld [vmem:[%s8587_s16 + $0x1ac] ss:$16 sps:$4 sm:$0xff]  }
  0xa7   : > { %1391 = vmatprep.mubr.bf16.mxu0 %v8251_v56  ;;  %v8355_v56 = vld [vmem:[%s8587_s16 + $0x1a8] ss:$16 sps:$4 sm:$0xff]  }
  0xae   : > { %1392 = vmatmul.mubr.bf16.gmra.mrb[48].mxu0 %v8253_v57  ;;  %v8356_v57 = vld [vmem:[%s8587_s16 + $0x1cc] ss:$16 sps:$4 sm:$0xff]  }
  0xaf   : > { %1399 = vmatprep.mubr.bf16.mxu0 %v8254_v58  ;;  %v8404_v58 = vld [vmem:[%s10653_s3 + $0xa0] sm:$0xff]  }
  0xb6   : > { %1400 = vmatmul.mubr.bf16.gmra.mrb[52].mxu0 %v8256_v60  ;;  %v8358_v60 = vld [vmem:[%s8587_s16 + $0x1c8] ss:$16 sps:$4 sm:$0xff]  }
  0xb7   : > { %1407 = vmatprep.mubr.bf16.mxu0 %v8258_v61  ;;  %v8359_v61 = vld [vmem:[%s8587_s16 + $0x1ec] ss:$16 sps:$4 sm:$0xff]  }
  0xbe   : > { %1408 = vmatmul.mubr.bf16.gmra.mrb[56].mxu0 %v8260_v62  ;;  %v8405_v62 = vld [vmem:[%s10653_s3 + $0xa8] sm:$0xff]  }
  0xbf   : > { %1415 = vmatprep.mubr.bf16.mxu0 %v8261_v63  ;;  %v8361_v63 = vld [vmem:[%s8587_s16 + $0x1e8] ss:$16 sps:$4 sm:$0xff]  }
  0xc6   : > { %1416 = vmatmul.mubr.bf16.gmra.mrb[60].mxu0 %v8263_v0  ;;  %v8362_v0 = vld [vmem:[%s8587_s16 + $0x20c] ss:$16 sps:$4 sm:$0xff]  }
  0xc7   : > { %1423 = vmatprep.mubr.bf16.mxu0 %v8265_v1  ;;  %v8364_v1 = vld [vmem:[%s8587_s16 + $0x208] ss:$16 sps:$4 sm:$0xff]  }
  0xce   : > { %1424 = vmatmul.mubr.bf16.gmra.mrb[64].mxu0 %v8267_v2  ;;  %v8365_v2 = vld [vmem:[%s8587_s16 + $0x22c] ss:$16 sps:$4 sm:$0xff]  }
  0xcf   : > { %1431 = vmatprep.mubr.bf16.mxu0 %v8268_v3  ;;  %v8367_v3 = vld [vmem:[%s8587_s16 + $0x228] ss:$16 sps:$4 sm:$0xff]  }
  0xd6   : > { %1432 = vmatmul.mubr.bf16.gmra.mrb[68].mxu0 %v8270_v4  ;;  %v8368_v4 = vld [vmem:[%s8587_s16 + $0x24c] ss:$16 sps:$4 sm:$0xff]  }
  0xd7   : > { %1439 = vmatprep.mubr.bf16.mxu0 %v8272_v5  ;;  %v8370_v5 = vld [vmem:[%s8587_s16 + $0x248] ss:$16 sps:$4 sm:$0xff]  }
  0xde   : > { %1440 = vmatmul.mubr.bf16.gmra.mrb[72].mxu0 %v8274_v6  ;;  %v8371_v6 = vld [vmem:[%s8587_s16 + $0x26c] ss:$16 sps:$4 sm:$0xff]  }
  0xdf   : > { %1447 = vmatprep.mubr.bf16.mxu0 %v8275_v7  ;;  %v8373_v7 = vld [vmem:[%s8587_s16 + $0x268] ss:$16 sps:$4 sm:$0xff]  }
  0xe6   : > { %1448 = vmatmul.mubr.bf16.gmra.mrb[76].mxu0 %v8278_v8  ;;  %v8374_v8 = vld [vmem:[%s8587_s16 + $0x28c] ss:$16 sps:$4 sm:$0xff]  }
  0xe7   : > { %1455 = vmatprep.mubr.bf16.mxu0 %v8279_v9  ;;  %v8376_v9 = vld [vmem:[%s8587_s16 + $0x288] ss:$16 sps:$4 sm:$0xff]  }
  0xee   : > { %1456 = vmatmul.mubr.bf16.gmra.mrb[80].mxu0 %v8281_v10  ;;  %v8377_v10 = vld [vmem:[%s8587_s16 + $0x2ac] ss:$16 sps:$4 sm:$0xff]  }
  0xef   : > { %1463 = vmatprep.mubr.bf16.mxu0 %v8283_v11  ;;  %v8406_v11 = vld [vmem:[%s10653_s3 + $0x10] sm:$0xff]  }
  0xf0   : > { %7232 = vmatpush3.bf16.msra.mxu1 %v8406_v11 }
  0xf1   : > { %7233 = vmatprep.subr.bf16.mxu1 %v10658_v59 }
  0xf6   : > { %1464 = vmatmul.mubr.bf16.gmra.mrb[84].mxu0 %v8285_v12  ;;  %v8407_v12 = vld [vmem:[%s10653_s3 + $0x18] sm:$0xff]  }
  0xf7   : > { %1471 = vmatprep.mubr.bf16.mxu0 %v8286_v13  ;;  %v8379_v13 = vld [vmem:[%s8587_s16 + $0x2a8] ss:$16 sps:$4 sm:$0xff]   ;;  %7234 = vmatpush3.bf16.msra.mxu1 %v8407_v12 }
  0xf8   : > { %7263 = vmatprep.subr.bf16.mxu1 %v10658_v59 }
  0xfe   : > { %1472 = vmatmul.mubr.bf16.gmra.mrb[88].mxu0 %v8288_v14  ;;  %v8380_v14 = vld [vmem:[%s8587_s16 + $0x2cc] ss:$16 sps:$4 sm:$0xff]  }
  0xff   : > { %1479 = vmatprep.mubr.bf16.mxu0 %v8290_v15  ;;  %v8382_v15 = vld [vmem:[%s8587_s16 + $0x2c8] ss:$16 sps:$4 sm:$0xff]  }
 0x106   : > { %1480 = vmatmul.mubr.bf16.gmra.mrb[92].mxu0 %v8292_v16  ;;  %v8383_v16 = vld [vmem:[%s8587_s16 + $0x2ec] ss:$16 sps:$4 sm:$0xff]  }
 0x107   : > { %1487 = vmatprep.mubr.bf16.mxu0 %v8293_v17  ;;  %v8385_v17 = vld [vmem:[%s8587_s16 + $0x2e8] ss:$16 sps:$4 sm:$0xff]  }
 0x10e   : > { %1488 = vmatmul.mubr.bf16.gmra.mrb[96].mxu0 %v8295_v18  ;;  %v8386_v18 = vld [vmem:[%s8587_s16 + $0x30c] ss:$16 sps:$4 sm:$0xff]  }
 0x10f   : > { %1495 = vmatprep.mubr.bf16.mxu0 %v8297_v19  ;;  %v8388_v19 = vld [vmem:[%s8587_s16 + $0x308] ss:$16 sps:$4 sm:$0xff]  }
 0x116   : > { %1496 = vmatmul.mubr.bf16.gmra.mrb[100].mxu0 %v8299_v20  ;;  %v8389_v20 = vld [vmem:[%s8587_s16 + $0x32c] ss:$16 sps:$4 sm:$0xff]  }
 0x117   : > { %1503 = vmatprep.mubr.bf16.mxu0 %v8300_v21  ;;  %v8391_v21 = vld [vmem:[%s8587_s16 + $0x328] ss:$16 sps:$4 sm:$0xff]  }
 0x11e   : > { %1504 = vmatmul.mubr.bf16.gmra.mrb[104].mxu0 %v8302_v22  ;;  %v8392_v22 = vld [vmem:[%s8587_s16 + $0x34c] ss:$16 sps:$4 sm:$0xff]  }
 0x11f   : > { %1511 = vmatprep.mubr.bf16.mxu0 %v8304_v23  ;;  %v8394_v23 = vld [vmem:[%s8587_s16 + $0x348] ss:$16 sps:$4 sm:$0xff]  }
 0x126   : > { %1512 = vmatmul.mubr.bf16.gmra.mrb[108].mxu0 %v8306_v24  ;;  %v8395_v24 = vld [vmem:[%s8587_s16 + $0x36c] ss:$16 sps:$4 sm:$0xff]  }
 0x127   : > { %1519 = vmatprep.mubr.bf16.mxu0 %v8307_v25  ;;  %v8836_v25 = vld [vmem:[%s10652_s2] ss:$0 sm:$0xff] }
 0x12e   : > { %1520 = vmatmul.mubr.bf16.gmra.mrb[112].mxu0 %v8309_v26 }
 0x12f   : > { %1527 = vmatprep.mubr.bf16.mxu0 %v8311_v27 }
 0x136   : > { %1528 = vmatmul.mubr.bf16.gmra.mrb[116].mxu0 %v8313_v28 }
 0x137   : > { %1568 = vmatprep.mubr.bf16.mxu0 %v8316_v29  ;;  %v8397_v29 = vld [vmem:[%s8587_s16 + $0x368] ss:$16 sps:$4 sm:$0xff]  }
 0x13e   : > { %1569 = vmatmul.mubr.bf16.vlgmr.msra.gmra.mrb[0].mxu0 %v8314_v30 }
 0x13f   : > { %1576 = vmatprep.mubr.bf16.mxu0 %v8317_v31  ;;  %7552 = vmatpush3.bf16.msra.mxu0 %v8404_v58  ;;  %v8398_v31 = vld [vmem:[%s8587_s16 + $0x38c] ss:$16 sps:$4 sm:$0xff]  }
 0x140   : > { %7553 = vmatprep.subr.bf16.mxu0 %v10658_v59 }
 0x143   : > { %7554 = vmatpush3.bf16.msra.mxu0 %v8405_v62 }
 0x144   : > { %7615 = vmatprep.subr.bf16.mxu0 %v10658_v59 }
 0x146   : > { %1577 = vmatmul.mubr.bf16.gmra.mrb[4].mxu0 %v8319_v32 }
 0x147   : > { %1584 = vmatprep.mubr.bf16.mxu0 %v8320_v33 }
 0x14e   : > { %1585 = vmatmul.mubr.bf16.gmra.mrb[8].mxu0 %v8322_v34 }
 0x14f   : > { %1592 = vmatprep.mubr.bf16.mxu0 %v8323_v35 }
 0x156   : > { %1593 = vmatmul.mubr.bf16.gmra.mrb[12].mxu0 %v8325_v36 }
 0x157   : > { %1600 = vmatprep.mubr.bf16.mxu0 %v8326_v37 }
 0x15e   : > { %1601 = vmatmul.mubr.bf16.gmra.mrb[16].mxu0 %v8328_v38 }
 0x15f   : > { %1608 = vmatprep.mubr.bf16.mxu0 %v8329_v39 }
 0x166   : > { %1609 = vmatmul.mubr.bf16.gmra.mrb[20].mxu0 %v8331_v40  ;;  %v8400_v40 = vld [vmem:[%s8587_s16 + $0x388] ss:$16 sps:$4 sm:$0xff]  }
 0x167   : > { %1616 = vmatprep.mubr.bf16.mxu0 %v8332_v41 }
 0x16e   : > { %1617 = vmatmul.mubr.bf16.gmra.mrb[24].mxu0 %v8334_v42  ;;  %v8401_v42 = vld [vmem:[%s8587_s16 + $0x3ac] ss:$16 sps:$4 sm:$0xff]  }
 0x16f   : > { %1624 = vmatprep.mubr.bf16.mxu0 %v8335_v43 }
 0x176   : > { %1625 = vmatmul.mubr.bf16.gmra.mrb[28].mxu0 %v8337_v44 }
 0x177   : > { %1632 = vmatprep.mubr.bf16.mxu0 %v8338_v45 }
 0x17e   : > { %1633 = vmatmul.mubr.bf16.gmra.mrb[32].mxu0 %v8340_v46 }
 0x17f   : > { %1640 = vmatprep.mubr.bf16.mxu0 %v8341_v47 }
 0x186   : > { %1641 = vmatmul.mubr.bf16.gmra.mrb[36].mxu0 %v8343_v48 }
 0x187   : > { %1648 = vmatprep.mubr.bf16.mxu0 %v8344_v49 }
 0x18e   : > { %1649 = vmatmul.mubr.bf16.gmra.mrb[40].mxu0 %v8346_v50 }
 0x18f   : > { %1656 = vmatprep.mubr.bf16.mxu0 %v8347_v51  ;;  %v8403_v51 = vld [vmem:[%s8587_s16 + $0x3a8] ss:$16 sps:$4 sm:$0xff]  }
 0x196   : > { %1657 = vmatmul.mubr.bf16.gmra.mrb[44].mxu0 %v8349_v52 }
 0x197   : > { %1664 = vmatprep.mubr.bf16.mxu0 %v8350_v53 }
 0x19e   : > { %1665 = vmatmul.mubr.bf16.gmra.mrb[48].mxu0 %v8352_v54 }
 0x19f   : > { %1672 = vmatprep.mubr.bf16.mxu0 %v8353_v55 }
 0x1a6   : > { %1673 = vmatmul.mubr.bf16.gmra.mrb[52].mxu0 %v8355_v56 }
 0x1a7   : > { %1680 = vmatprep.mubr.bf16.mxu0 %v8356_v57 }
 0x1ae   : > { %1681 = vmatmul.mubr.bf16.gmra.mrb[56].mxu0 %v8358_v60 }
 0x1af   : > { %1688 = vmatprep.mubr.bf16.mxu0 %v8359_v61 }
 0x1b6   : > { %1689 = vmatmul.mubr.bf16.gmra.mrb[60].mxu0 %v8361_v63 }
 0x1b7   : > { %1696 = vmatprep.mubr.bf16.mxu0 %v8362_v0 }
 0x1be   : > { %1697 = vmatmul.mubr.bf16.gmra.mrb[64].mxu0 %v8364_v1 }
 0x1bf   : > { %1704 = vmatprep.mubr.bf16.mxu0 %v8365_v2 }
 0x1c6   : > { %1705 = vmatmul.mubr.bf16.gmra.mrb[68].mxu0 %v8367_v3 }
 0x1c7   : > { %1712 = vmatprep.mubr.bf16.mxu0 %v8368_v4 }
 0x1ce   : > { %1713 = vmatmul.mubr.bf16.gmra.mrb[72].mxu0 %v8370_v5 }
 0x1cf   : > { %1720 = vmatprep.mubr.bf16.mxu0 %v8371_v6 }
 0x1d6   : > { %1721 = vmatmul.mubr.bf16.gmra.mrb[76].mxu0 %v8373_v7 }
 0x1d7   : > { %1728 = vmatprep.mubr.bf16.mxu0 %v8374_v8 }
 0x1de   : > { %1729 = vmatmul.mubr.bf16.gmra.mrb[80].mxu0 %v8376_v9 }
 0x1df   : > { %1736 = vmatprep.mubr.bf16.mxu0 %v8377_v10 }
 0x1e6   : > { %1737 = vmatmul.mubr.bf16.gmra.mrb[84].mxu0 %v8379_v13 }
 0x1e7   : > { %1744 = vmatprep.mubr.bf16.mxu0 %v8380_v14 }
 0x1ee   : > { %1745 = vmatmul.mubr.bf16.gmra.mrb[88].mxu0 %v8382_v15 }
 0x1ef   : > { %1752 = vmatprep.mubr.bf16.mxu0 %v8383_v16  ;;  %v8411_v16 = vld [vmem:[%s10653_s3 + $0xc0] sm:$0xff]  }
 0x1f6   : > { %1753 = vmatmul.mubr.bf16.gmra.mrb[92].mxu0 %v8385_v17 }
 0x1f7   : > { %1760 = vmatprep.mubr.bf16.mxu0 %v8386_v18 }
 0x1fe   : > { %1761 = vmatmul.mubr.bf16.gmra.mrb[96].mxu0 %v8388_v19 }
 0x1ff   : > { %1768 = vmatprep.mubr.bf16.mxu0 %v8389_v20 }
 0x206   : > { %1769 = vmatmul.mubr.bf16.gmra.mrb[100].mxu0 %v8391_v21 }
 0x207   : > { %1776 = vmatprep.mubr.bf16.mxu0 %v8392_v22 }
 0x20e   : > { %1777 = vmatmul.mubr.bf16.gmra.mrb[104].mxu0 %v8394_v23 }
 0x20f   : > { %1784 = vmatprep.mubr.bf16.mxu0 %v8395_v24 }
 0x211   : > { %v1570_v26 = vpop.f32.mrb[0].mxu0 }
 0x212   : > { %v7999_v27 = vadd.f32 %v8836_v25, %v1570_v26  ;;  %v1572_v28 = vpop.f32.mrb[1].mxu0 }
 0x213   : > { %v1573_v30 = vpop.f32.mrb[2].mxu0 }
 0x214   : > { %v8000_v32 = vadd.f32 %v8836_v25, %v1573_v30  ;;  %v1575_v33 = vpop.f32.mrb[3].mxu0  ;;  %v1809_v34 = vmax.f32 %v7999_v27, 0.0  ;;  %v8412_v27 = vld [vmem:[%s10653_s3 + $0xc8] sm:$0xff]  }
 0x216   : > { %v1810_v35 = vmax.f32 %v8000_v32, 0.0  ;;  %1785 = vmatmul.mubr.bf16.gmra.mrb[108].mxu0 %v8397_v29 }
 0x217   : > { %1792 = vmatprep.mubr.bf16.mxu0 %v8398_v31 }
 0x218   : > { %v1869_v36 = vpack.c.bf16 %v1810_v35, %v1809_v34 }
 0x219   : > { %v1578_v37 = vpop.f32.mrb[4].mxu0 }
 0x21a   : > { %1900 = vst.msk [vmem:[#allocation2] sm:$0xff] %vm1899_vm1, %v1869_v36  ;;  %v8001_v38 = vadd.f32 %v8836_v25, %v1578_v37  ;;  %v1580_v39 = vpop.f32.mrb[5].mxu0 }
 0x21b   : > { %v1581_v41 = vpop.f32.mrb[6].mxu0 }
 0x21c   : > { %v8002_v43 = vadd.f32 %v8836_v25, %v1581_v41  ;;  %v1583_v44 = vpop.f32.mrb[7].mxu0  ;;  %v1811_v45 = vmax.f32 %v8001_v38, 0.0 }
 0x21e   : > { %v1812_v46 = vmax.f32 %v8002_v43, 0.0  ;;  %1793 = vmatmul.mubr.bf16.gmra.mrb[112].mxu0 %v8400_v40 }
 0x21f   : > { %1800 = vmatprep.mubr.bf16.mxu0 %v8401_v42 }
 0x220   : > { %v1870_v47 = vpack.c.bf16 %v1812_v46, %v1811_v45 }
 0x221   : > { %v1586_v48 = vpop.f32.mrb[8].mxu0  ;;  %v3312_v52 = vld [vmem:[#allocation2] sm:$0xe0] }
 0x222   : > { %1901 = vst.msk [vmem:[#allocation2 + $0x8] sm:$0xff] %vm1899_vm1, %v1870_v47  ;;  %v8003_v49 = vadd.f32 %v8836_v25, %v1586_v48  ;;  %v1588_v50 = vpop.f32.mrb[9].mxu0  ;;  %v3649_v56 = vshrl.u32 %v3312_v52, 16  ;;  %v3652_v60 = vshll.u32 %v3312_v52, 16 }
 0x223   : > { %v1589_v53 = vpop.f32.mrb[10].mxu0 }
 0x224   : > { %v8004_v54 = vadd.f32 %v8836_v25, %v1589_v53  ;;  %v1591_v55 = vpop.f32.mrb[11].mxu0  ;;  %v1813_v57 = vmax.f32 %v8003_v49, 0.0  ;;  %v3651_v0 = vrot.slane %v3649_v56, 5  ;;  %v3654_v5 = vrot.slane %v3652_v60, 6 }
 0x226   : > { %v1814_v58 = vmax.f32 %v8004_v54, 0.0  ;;  %1801 = vmatmul.mubr.bf16.gmra.mrb[116].mxu0 %v8403_v51  ;;  %v3655_v14 = vor.u32 %v3654_v5, %v3651_v0 }
 0x227   : > { %7555 = vmatprep.mubr.msk.bf16.mxu0 %vm8513_vm0, %v10658_v59 }
 0x228   : > { %v1871_v61 = vpack.c.bf16 %v1814_v58, %v1813_v57 }
 0x229   : > { %v1594_v62 = vpop.f32.mrb[12].mxu0  ;;  %v8853_v63 = vld [vmem:[#allocation2 + $0x8] sm:$0xff] }
 0x22a   : > { %1902 = vst.msk [vmem:[#allocation2 + $0x10] sm:$0xff] %vm1899_vm1, %v1871_v61  ;;  %v8005_v1 = vadd.f32 %v8836_v25, %v1594_v62  ;;  %v1596_v2 = vpop.f32.mrb[13].mxu0  ;;  %v2229_v3 = vshll.u32 %v8853_v63, 16  ;;  %v2233_v4 = vshrl.u32 %v8853_v63, 16 }
 0x22b   : > { %v1597_v6 = vpop.f32.mrb[14].mxu0 }
 0x22c   : > { %v8006_v7 = vadd.f32 %v8836_v25, %v1597_v6  ;;  %v1599_v8 = vpop.f32.mrb[15].mxu0  ;;  %v3656_v9 = vrot.slane %v2233_v4, 5  ;;  %v3657_v10 = vrot.slane %v2229_v3, 6  ;;  %v8860_v11 = vrot.slane %v2229_v3, 1 }
 0x22d   : > { %v1815_v12 = vmax.f32 %v8005_v1, 0.0 }
 0x22e   : > { %v1816_v13 = vmax.f32 %v8006_v7, 0.0  ;;  %v3658_v15 = vor.u32 %v3657_v10, %v3656_v9  ;;  %v2235_v17 = vor.u32 %v2233_v4, %v8860_v11 }
 0x230   : > { %v1872_v18 = vpack.c.bf16 %v1816_v13, %v1815_v12  ;;  %v3659_v19 = vsel %vm3647_vm2, %v3655_v14, %v3658_v15 }
 0x231   : > { %v1602_v20 = vpop.f32.mrb[16].mxu0  ;;  %7556 = vmatmul.mubr.msk.bf16.vlgmr.msra.gmra.mrb[120].mxu0 %vm1899_vm1, %v3659_v19  ;;  %v8868_v21 = vld [vmem:[#allocation2 + $0x10] sm:$0xff] }
 0x232   : > { %1903 = vst.msk [vmem:[#allocation2 + $0x18] sm:$0xff] %vm1899_vm1, %v1872_v18  ;;  %v8007_v22 = vadd.f32 %v8836_v25, %v1602_v20  ;;  %v1604_v23 = vpop.f32.mrb[17].mxu0  ;;  %7559 = vmatprep.mubr.msk.bf16.mxu0 %vm8513_vm0, %v10658_v59  ;;  %v2236_v24 = vshll.u32 %v8868_v21, 16  ;;  %v2240_v26 = vshrl.u32 %v8868_v21, 16  ;;  %7616 = vmatpush3.bf16.msra.mxu0 %v8411_v16 }
 0x233   : > { %v1605_v28 = vpop.f32.mrb[18].mxu0  ;;  %7617 = vmatprep.subr.bf16.mxu0 %v10658_v59 }
 0x234   : > { %v8008_v29 = vadd.f32 %v8836_v25, %v1605_v28  ;;  %v1607_v30 = vpop.f32.mrb[19].mxu0  ;;  %v3660_v31 = vrot.slane %v2240_v26, 5  ;;  %v3661_v32 = vrot.slane %v2236_v24, 6  ;;  %v2238_v33 = vrot.slane %v2236_v24, 1 }
 0x235   : > { %v1817_v34 = vmax.f32 %v8007_v22, 0.0 }
 0x236   : > { %v1818_v35 = vmax.f32 %v8008_v29, 0.0  ;;  %v3662_v36 = vor.u32 %v3661_v32, %v3660_v31  ;;  %7618 = vmatpush3.bf16.msra.mxu0 %v8412_v27  ;;  %v8883_v37 = vsel %vm2222_vm3, %v2235_v17, %v2238_v33  ;;  %v2242_v38 = vor.u32 %v2240_v26, %v2238_v33 }
 0x237   : > { %7679 = vmatprep.subr.bf16.mxu0 %v10658_v59 }
 0x238   : > { %v1873_v39 = vpack.c.bf16 %v1818_v35, %v1817_v34  ;;  %v3663_v40 = vsel %vm3647_vm2, %v3658_v15, %v3662_v36 }
 0x239   : > { %v1610_v41 = vpop.f32.mrb[20].mxu0  ;;  %7560 = vmatmul.mubr.msk.bf16.gmra.mrb[124].mxu0 %vm1899_vm1, %v3663_v40  ;;  %v8887_v42 = vld [vmem:[#allocation2 + $0x18] sm:$0xff] }
 0x23a   : > { %1904 = vst.msk [vmem:[#allocation2 + $0x20] sm:$0xff] %vm1899_vm1, %v1873_v39  ;;  %v8009_v43 = vadd.f32 %v8836_v25, %v1610_v41  ;;  %v1612_v44 = vpop.f32.mrb[21].mxu0  ;;  %7563 = vmatprep.mubr.msk.bf16.mxu0 %vm8513_vm0, %v10658_v59  ;;  %v2243_v45 = vshll.u32 %v8887_v42, 16  ;;  %v2247_v46 = vshrl.u32 %v8887_v42, 16 }
 0x23b   : > { %v1613_v47 = vpop.f32.mrb[22].mxu0 }
 0x23c   : > { %v8010_v48 = vadd.f32 %v8836_v25, %v1613_v47  ;;  %v1615_v49 = vpop.f32.mrb[23].mxu0  ;;  %v3664_v50 = vrot.slane %v2247_v46, 5  ;;  %v3665_v51 = vrot.slane %v2243_v45, 6  ;;  %v2245_v52 = vrot.slane %v2243_v45, 1 }
 0x23d   : > { %v1819_v53 = vmax.f32 %v8009_v43, 0.0 }
 0x23e   : > { %v1820_v54 = vmax.f32 %v8010_v48, 0.0  ;;  %v3666_v55 = vor.u32 %v3665_v51, %v3664_v50  ;;  %v8897_v56 = vsel %vm2222_vm3, %v2242_v38, %v2245_v52  ;;  %v2249_v57 = vor.u32 %v2247_v46, %v2245_v52 }
 0x240   : > { %v1874_v58 = vpack.c.bf16 %v1820_v54, %v1819_v53  ;;  %v3667_v60 = vsel %vm3647_vm2, %v3662_v36, %v3666_v55 }
 0x241   : > { %v1618_v61 = vpop.f32.mrb[24].mxu0  ;;  %7564 = vmatmul.mubr.msk.bf16.gmra.mrb[128].mxu0 %vm1899_vm1, %v3667_v60  ;;  %v8901_v62 = vld [vmem:[#allocation2 + $0x20] sm:$0xff] }
 0x242   : > { %1905 = vst.msk [vmem:[#allocation2 + $0x28] sm:$0xff] %vm1899_vm1, %v1874_v58  ;;  %v8011_v0 = vadd.f32 %v8836_v25, %v1618_v61  ;;  %v1620_v1 = vpop.f32.mrb[25].mxu0  ;;  %7567 = vmatprep.mubr.msk.bf16.mxu0 %vm8513_vm0, %v10658_v59  ;;  %v2250_v2 = vshll.u32 %v8901_v62, 16  ;;  %v2254_v3 = vshrl.u32 %v8901_v62, 16 }
 0x243   : > { %v1621_v4 = vpop.f32.mrb[26].mxu0 }
 0x244   : > { %v8012_v5 = vadd.f32 %v8836_v25, %v1621_v4  ;;  %v1623_v6 = vpop.f32.mrb[27].mxu0  ;;  %v3668_v7 = vrot.slane %v2254_v3, 5  ;;  %v3669_v8 = vrot.slane %v2250_v2, 6  ;;  %v2252_v9 = vrot.slane %v2250_v2, 1 }
 0x245   : > { %v1821_v10 = vmax.f32 %v8011_v0, 0.0 }
 0x246   : > { %v1822_v12 = vmax.f32 %v8012_v5, 0.0  ;;  %v3670_v13 = vor.u32 %v3669_v8, %v3668_v7  ;;  %v8911_v14 = vsel %vm2222_vm3, %v2249_v57, %v2252_v9  ;;  %v2256_v15 = vor.u32 %v2254_v3, %v2252_v9 }
 0x248   : > { %v1875_v16 = vpack.c.bf16 %v1822_v12, %v1821_v10  ;;  %v3671_v17 = vsel %vm3647_vm2, %v3666_v55, %v3670_v13 }
 0x249   : > { %v1626_v18 = vpop.f32.mrb[28].mxu0  ;;  %7568 = vmatmul.mubr.msk.bf16.gmra.mrb[132].mxu0 %vm1899_vm1, %v3671_v17  ;;  %v8915_v19 = vld [vmem:[#allocation2 + $0x28] sm:$0xff] }
 0x24a   : > { %1906 = vst.msk [vmem:[#allocation2 + $0x30] sm:$0xff] %vm1899_vm1, %v1875_v16  ;;  %v8013_v20 = vadd.f32 %v8836_v25, %v1626_v18  ;;  %v1628_v22 = vpop.f32.mrb[29].mxu0  ;;  %7571 = vmatprep.mubr.msk.bf16.mxu0 %vm8513_vm0, %v10658_v59  ;;  %v2257_v23 = vshll.u32 %v8915_v19, 16  ;;  %v2261_v24 = vshrl.u32 %v8915_v19, 16 }
 0x24b   : > { %v1629_v26 = vpop.f32.mrb[30].mxu0 }
 0x24c   : > { %v8014_v27 = vadd.f32 %v8836_v25, %v1629_v26  ;;  %v1631_v28 = vpop.f32.mrb[31].mxu0  ;;  %v3672_v29 = vrot.slane %v2261_v24, 5  ;;  %v3673_v30 = vrot.slane %v2257_v23, 6  ;;  %v2259_v31 = vrot.slane %v2257_v23, 1 }
 0x24d   : > { %v1823_v32 = vmax.f32 %v8013_v20, 0.0  ;;  %v8408_v20 = vld [vmem:[%s10653_s3] sm:$0xff]  }
 0x24e   : > { %v1824_v33 = vmax.f32 %v8014_v27, 0.0  ;;  %v3674_v34 = vor.u32 %v3673_v30, %v3672_v29  ;;  %v8925_v35 = vsel %vm2222_vm3, %v2256_v15, %v2259_v31  ;;  %v8927_v36 = vor.u32 %v2261_v24, %v2259_v31 }
 0x250   : > { %v1876_v38 = vpack.c.bf16 %v1824_v33, %v1823_v32  ;;  %v3675_v39 = vsel %vm3647_vm2, %v3670_v13, %v3674_v34  ;;  %v8409_v33 = vld [vmem:[%s10653_s3 + $0x8] sm:$0xff]  }
 0x251   : > { %v1634_v40 = vpop.f32.mrb[32].mxu0  ;;  %7572 = vmatmul.mubr.msk.bf16.gmra.mrb[136].mxu0 %vm1899_vm1, %v3675_v39  ;;  %v3641_v41 = vld [vmem:[#allocation2 + $0x30] sm:$0xff] }
 0x252   : > { %1907 = vst.msk [vmem:[#allocation2 + $0x38] sm:$0xff] %vm1899_vm1, %v1876_v38  ;;  %v8015_v43 = vadd.f32 %v8836_v25, %v1634_v40  ;;  %v1636_v44 = vpop.f32.mrb[33].mxu0  ;;  %7575 = vmatprep.mubr.msk.bf16.mxu0 %vm8513_vm0, %v10658_v59  ;;  %v3677_v45 = vshrl.u32 %v3641_v41, 16  ;;  %v3680_v46 = vshll.u32 %v3641_v41, 16 }
 0x253   : > { %v1637_v47 = vpop.f32.mrb[34].mxu0 }
 0x254   : > { %v8016_v48 = vadd.f32 %v8836_v25, %v1637_v47  ;;  %v1639_v49 = vpop.f32.mrb[35].mxu0  ;;  %v3679_v50 = vrot.slane %v3677_v45, 5  ;;  %v3682_v51 = vrot.slane %v3680_v46, 6  ;;  %v1825_v52 = vmax.f32 %v8015_v43, 0.0 }
 0x256   : > { %v1826_v53 = vmax.f32 %v8016_v48, 0.0  ;;  %v8936_v54 = vor.u32 %v3682_v51, %v3679_v50 }
 0x258   : > { %v1877_v55 = vpack.c.bf16 %v1826_v53, %v1825_v52  ;;  %v3684_v57 = vsel %vm3647_vm2, %v3674_v34, %v8936_v54 }
 0x259   : > { %v1642_v58 = vpop.f32.mrb[36].mxu0  ;;  %7576 = vmatmul.mubr.msk.bf16.gmra.mrb[140].mxu0 %vm1899_vm1, %v3684_v57  ;;  %v1941_v3 = vld [vmem:[#allocation2 + $0x38] sm:$0xf0] }
 0x25a   : > { %1908 = vst.msk [vmem:[#allocation2 + $0x40] sm:$0xff] %vm1899_vm1, %v1877_v55  ;;  %v8017_v60 = vadd.f32 %v8836_v25, %v1642_v58  ;;  %v1644_v61 = vpop.f32.mrb[37].mxu0  ;;  %7619 = vmatprep.mubr.msk.bf16.mxu0 %vm8513_vm0, %v10658_v59  ;;  %v2414_v6 = vshrl.u32 %v1941_v3, 16  ;;  %v2417_v7 = vshll.u32 %v1941_v3, 16  ;;  %v1961_v12 = vrot.slane %v1941_v3, 4 }
 0x25b   : > { %v1645_v0 = vpop.f32.mrb[38].mxu0 }
 0x25c   : > { %v8018_v1 = vadd.f32 %v8836_v25, %v1645_v0  ;;  %v1647_v2 = vpop.f32.mrb[39].mxu0  ;;  %v1827_v4 = vmax.f32 %v8017_v60, 0.0  ;;  %v2416_v23 = vrot.slane %v2414_v6, 4  ;;  %v2419_v24 = vrot.slane %v2417_v7, 5 }
 0x25e   : > { %v1828_v5 = vmax.f32 %v8018_v1, 0.0  ;;  %v2420_v34 = vor.u32 %v2419_v24, %v2416_v23 }
 0x260   : > { %v1878_v8 = vpack.c.bf16 %v1828_v5, %v1827_v4 }
 0x261   : > { %v1650_v9 = vpop.f32.mrb[40].mxu0  ;;  %v1942_v10 = vld [vmem:[#allocation2 + $0x40] sm:$0xff] }
 0x262   : > { %1909 = vst.msk [vmem:[#allocation2 + $0x48] sm:$0xff] %vm1899_vm1, %v1878_v8  ;;  %v8019_v13 = vadd.f32 %v8836_v25, %v1650_v9  ;;  %v1652_v15 = vpop.f32.mrb[41].mxu0  ;;  %v1962_v16 = vrot.slane %v1942_v10, 4  ;;  %v2422_v17 = vshrl.u32 %v1942_v10, 16  ;;  %v2425_v18 = vshll.u32 %v1942_v10, 16 }
 0x263   : > { %v1653_v22 = vpop.f32.mrb[42].mxu0 }
 0x264   : > { %v8020_v26 = vadd.f32 %v8836_v25, %v1653_v22  ;;  %v1655_v27 = vpop.f32.mrb[43].mxu0  ;;  %v1963_v28 = vsel %vm1960_vm4, %v1961_v12, %v1962_v16  ;;  %v2424_v29 = vrot.slane %v2422_v17, 4  ;;  %v2427_v30 = vrot.slane %v2425_v18, 5 }
 0x265   : > { %7236 = vmatmul.mubr.msk.bf16.vlgmr.msra.gmra.mrb[0].mxu1 %vm1899_vm1, %v1963_v28  ;;  %v1829_v31 = vmax.f32 %v8019_v13, 0.0 }
 0x266   : > { %v1830_v32 = vmax.f32 %v8020_v26, 0.0  ;;  %7264 = vmatpush3.bf16.msra.mxu1 %v8408_v20  ;;  %7239 = vmatprep.mubr.msk.bf16.mxu1 %vm8513_vm0, %v10658_v59  ;;  %v2428_v38 = vor.u32 %v2427_v30, %v2424_v29 }
 0x267   : > { %7265 = vmatprep.subr.bf16.mxu1 %v10658_v59 }
 0x268   : > { %v1879_v39 = vpack.c.bf16 %v1830_v32, %v1829_v31  ;;  %v8961_v43 = vsel %vm2412_vm5, %v2420_v34, %v2428_v38 }
 0x269   : > { %v1658_v40 = vpop.f32.mrb[44].mxu0  ;;  %v1943_v41 = vld [vmem:[#allocation2 + $0x48] sm:$0xff] }
 0x26a   : > { %1910 = vst.msk [vmem:[#allocation2 + $0x50] sm:$0xff] %vm1899_vm1, %v1879_v39  ;;  %v8021_v44 = vadd.f32 %v8836_v25, %v1658_v40  ;;  %v1660_v45 = vpop.f32.mrb[45].mxu0  ;;  %v1964_v46 = vrot.slane %v1943_v41, 4  ;;  %7266 = vmatpush3.bf16.msra.mxu1 %v8409_v33  ;;  %v2431_v47 = vshrl.u32 %v1943_v41, 16  ;;  %v2434_v48 = vshll.u32 %v1943_v41, 16 }
 0x26b   : > { %v1661_v49 = vpop.f32.mrb[46].mxu0  ;;  %7295 = vmatprep.subr.bf16.mxu1 %v10658_v59 }
 0x26c   : > { %v8022_v50 = vadd.f32 %v8836_v25, %v1661_v49  ;;  %v1663_v51 = vpop.f32.mrb[47].mxu0  ;;  %v1965_v52 = vsel %vm1960_vm4, %v1962_v16, %v1964_v46  ;;  %v2433_v53 = vrot.slane %v2431_v47, 4  ;;  %v2436_v55 = vrot.slane %v2434_v48, 5 }
 0x26d   : > { %7240 = vmatmul.mubr.msk.bf16.gmra.mrb[4].mxu1 %vm1899_vm1, %v1965_v52  ;;  %v1831_v57 = vmax.f32 %v8021_v44, 0.0 }
 0x26e   : > { %v1832_v58 = vmax.f32 %v8022_v50, 0.0  ;;  %7243 = vmatprep.mubr.msk.bf16.mxu1 %vm8513_vm0, %v10658_v59  ;;  %v2437_v60 = vor.u32 %v2436_v55, %v2433_v53 }
 0x270   : > { %v1880_v61 = vpack.c.bf16 %v1832_v58, %v1831_v57  ;;  %v8972_v2 = vsel %vm2412_vm5, %v2428_v38, %v2437_v60 }
 0x271   : > { %v1666_v0 = vpop.f32.mrb[48].mxu0  ;;  %v1944_v1 = vld [vmem:[#allocation2 + $0x50] sm:$0xff] }
 0x272   : > { %1911 = vst.msk [vmem:[#allocation2 + $0x58] sm:$0xff] %vm1899_vm1, %v1880_v61  ;;  %v8023_v3 = vadd.f32 %v8836_v25, %v1666_v0  ;;  %v1668_v4 = vpop.f32.mrb[49].mxu0  ;;  %v1966_v5 = vrot.slane %v1944_v1, 4  ;;  %v2440_v6 = vshrl.u32 %v1944_v1, 16  ;;  %v2443_v7 = vshll.u32 %v1944_v1, 16 }
 0x273   : > { %v1669_v8 = vpop.f32.mrb[50].mxu0 }
 0x274   : > { %v8024_v9 = vadd.f32 %v8836_v25, %v1669_v8  ;;  %v1671_v10 = vpop.f32.mrb[51].mxu0  ;;  %v1967_v12 = vsel %vm1960_vm4, %v1964_v46, %v1966_v5  ;;  %v2442_v13 = vrot.slane %v2440_v6, 4  ;;  %v2445_v15 = vrot.slane %v2443_v7, 5 }
 0x275   : > { %7244 = vmatmul.mubr.msk.bf16.gmra.mrb[8].mxu1 %vm1899_vm1, %v1967_v12  ;;  %v1833_v16 = vmax.f32 %v8023_v3, 0.0 }
 0x276   : > { %v1834_v17 = vmax.f32 %v8024_v9, 0.0  ;;  %7247 = vmatprep.mubr.msk.bf16.mxu1 %vm8513_vm0, %v10658_v59  ;;  %v2446_v18 = vor.u32 %v2445_v15, %v2442_v13 }
 0x278   : > { %v1881_v20 = vpack.c.bf16 %v1834_v17, %v1833_v16  ;;  %v8982_v24 = vsel %vm2412_vm5, %v2437_v60, %v2446_v18 }
 0x279   : > { %v1674_v22 = vpop.f32.mrb[52].mxu0  ;;  %v1945_v23 = vld [vmem:[#allocation2 + $0x58] sm:$0xff] }
 0x27a   : > { %1912 = vst.msk [vmem:[#allocation2 + $0x60] sm:$0xff] %vm1899_vm1, %v1881_v20  ;;  %v8025_v26 = vadd.f32 %v8836_v25, %v1674_v22  ;;  %v1676_v27 = vpop.f32.mrb[53].mxu0  ;;  %v1968_v28 = vrot.slane %v1945_v23, 4  ;;  %v2449_v29 = vshrl.u32 %v1945_v23, 16  ;;  %v2452_v30 = vshll.u32 %v1945_v23, 16 }
 0x27b   : > { %v1677_v31 = vpop.f32.mrb[54].mxu0 }
 0x27c   : > { %v8026_v32 = vadd.f32 %v8836_v25, %v1677_v31  ;;  %v1679_v33 = vpop.f32.mrb[55].mxu0  ;;  %v1969_v34 = vsel %vm1960_vm4, %v1966_v5, %v1968_v28  ;;  %v2451_v38 = vrot.slane %v2449_v29, 4  ;;  %v2454_v39 = vrot.slane %v2452_v30, 5 }
 0x27d   : > { %7248 = vmatmul.mubr.msk.bf16.gmra.mrb[12].mxu1 %vm1899_vm1, %v1969_v34  ;;  %v1835_v40 = vmax.f32 %v8025_v26, 0.0 }
 0x27e   : > { %v1836_v41 = vmax.f32 %v8026_v32, 0.0  ;;  %7251 = vmatprep.mubr.msk.bf16.mxu1 %vm8513_vm0, %v10658_v59  ;;  %v2455_v44 = vor.u32 %v2454_v39, %v2451_v38 }
 0x280   : > { %v1882_v45 = vpack.c.bf16 %v1836_v41, %v1835_v40  ;;  %v8992_v48 = vsel %vm2412_vm5, %v2446_v18, %v2455_v44  ;;  %v8410_v40 = vld [vmem:[%s10653_s3 + $0x20] sm:$0xff]  }
 0x281   : > { %v1682_v46 = vpop.f32.mrb[56].mxu0  ;;  %v1946_v47 = vld [vmem:[#allocation2 + $0x60] sm:$0xff] }
 0x282   : > { %1913 = vst.msk [vmem:[#allocation2 + $0x68] sm:$0xff] %vm1899_vm1, %v1882_v45  ;;  %v8027_v49 = vadd.f32 %v8836_v25, %v1682_v46  ;;  %v1684_v50 = vpop.f32.mrb[57].mxu0  ;;  %v1970_v51 = vrot.slane %v1946_v47, 4  ;;  %v2458_v52 = vshrl.u32 %v1946_v47, 16  ;;  %v2461_v53 = vshll.u32 %v1946_v47, 16  ;;  %v9026_v46 = vld [vmem:[#allocation2] sm:$0xff] }
 0x283   : > { %v1685_v55 = vpop.f32.mrb[58].mxu0  ;;  %v8413_v50 = vld [vmem:[%s10653_s3 + $0x28] sm:$0xff]  }
 0x284   : > { %v8028_v57 = vadd.f32 %v8836_v25, %v1685_v55  ;;  %v1687_v58 = vpop.f32.mrb[59].mxu0  ;;  %v1971_v60 = vsel %vm1960_vm4, %v1968_v28, %v1970_v51  ;;  %v2460_v61 = vrot.slane %v2458_v52, 4  ;;  %v2463_v0 = vrot.slane %v2461_v53, 5 }
 0x285   : > { %7252 = vmatmul.mubr.msk.bf16.gmra.mrb[16].mxu1 %vm1899_vm1, %v1971_v60  ;;  %v1837_v1 = vmax.f32 %v8027_v49, 0.0 }
 0x286   : > { %v1838_v3 = vmax.f32 %v8028_v57, 0.0  ;;  %7255 = vmatprep.mubr.msk.bf16.mxu1 %vm8513_vm0, %v10658_v59  ;;  %v9001_v4 = vor.u32 %v2463_v0, %v2460_v61 }
 0x288   : > { %v1883_v5 = vpack.c.bf16 %v1838_v3, %v1837_v1  ;;  %v9005_v8 = vsel %vm2412_vm5, %v2455_v44, %v9001_v4  ;;  %v8415_v3 = vld [vmem:[%s10653_s3 + $0xe0] sm:$0xff]  }
 0x289   : > { %v1690_v6 = vpop.f32.mrb[60].mxu0  ;;  %v1947_v7 = vld [vmem:[#allocation2 + $0x68] sm:$0x3f] }
 0x28a   : > { %1914 = vst.msk [vmem:[#allocation2 + $0x70] sm:$0xff] %vm1899_vm1, %v1883_v5  ;;  %v8029_v9 = vadd.f32 %v8836_v25, %v1690_v6  ;;  %v1692_v10 = vpop.f32.mrb[61].mxu0  ;;  %v1972_v12 = vrot.slane %v1947_v7, 4 }
 0x28b   : > { %v1693_v13 = vpop.f32.mrb[62].mxu0 }
 0x28c   : > { %v8030_v15 = vadd.f32 %v8836_v25, %v1693_v13  ;;  %v1695_v16 = vpop.f32.mrb[63].mxu0  ;;  %v1973_v17 = vsel %vm1960_vm4, %v1970_v51, %v1972_v12  ;;  %v1839_v18 = vmax.f32 %v8029_v9, 0.0 }
 0x28d   : > { %7256 = vmatmul.mubr.msk.bf16.gmra.mrb[20].mxu1 %vm1899_vm1, %v1973_v17 }
 0x28e   : > { %v1840_v20 = vmax.f32 %v8030_v15, 0.0  ;;  %7259 = vmatprep.mubr.msk.bf16.mxu1 %vm8513_vm0, %v10658_v59 }
 0x290   : > { %v1884_v22 = vpack.c.bf16 %v1840_v20, %v1839_v18 }
 0x291   : > { %v1698_v23 = vpop.f32.mrb[64].mxu0 }
 0x292   : > { %1915 = vst.msk [vmem:[#allocation2 + $0x78] sm:$0xff] %vm1899_vm1, %v1884_v22  ;;  %v8031_v26 = vadd.f32 %v8836_v25, %v1698_v23  ;;  %v1700_v27 = vpop.f32.mrb[65].mxu0 }
 0x293   : > { %v1701_v28 = vpop.f32.mrb[66].mxu0 }
 0x294   : > { %v8032_v29 = vadd.f32 %v8836_v25, %v1701_v28  ;;  %v1703_v30 = vpop.f32.mrb[67].mxu0  ;;  %v1841_v31 = vmax.f32 %v8031_v26, 0.0 }
 0x295   : > { %7260 = vmatmul.mubr.msk.bf16.gmra.mrb[24].mxu1 %vm1899_vm1, %v1972_v12 }
 0x296   : > { %v1842_v32 = vmax.f32 %v8032_v29, 0.0  ;;  %7267 = vmatprep.mubr.msk.bf16.mxu1 %vm8513_vm0, %v10658_v59 }
 0x298   : > { %v1885_v33 = vpack.c.bf16 %v1842_v32, %v1841_v31 }
 0x299   : > { %v1706_v34 = vpop.f32.mrb[68].mxu0  ;;  %v9035_v51 = vld [vmem:[#allocation2 + $0x78] sm:$0xe0] }
 0x29a   : > { %1916 = vst.msk [vmem:[#allocation2 + $0x80] sm:$0xff] %vm1899_vm1, %v1885_v33  ;;  %v8033_v38 = vadd.f32 %v8836_v25, %v1706_v34  ;;  %v1708_v39 = vpop.f32.mrb[69].mxu0  ;;  %v4036_v60 = vrot.slane %v9035_v51, 5 }
 0x29b   : > { %v1709_v41 = vpop.f32.mrb[70].mxu0 }
 0x29c   : > { %v8034_v44 = vadd.f32 %v8836_v25, %v1709_v41  ;;  %v1711_v45 = vpop.f32.mrb[71].mxu0  ;;  %v1843_v47 = vmax.f32 %v8033_v38, 0.0 }
 0x29d   : > { %7268 = vmatmul.mubr.msk.bf16.vlgmr.msra.gmra.mrb[28].mxu1 %vm1899_vm1, %v9026_v46 }
 0x29e   : > { %v1844_v49 = vmax.f32 %v8034_v44, 0.0  ;;  %7296 = vmatpush3.bf16.msra.mxu1 %v8410_v40  ;;  %7271 = vmatprep.mubr.msk.bf16.mxu1 %vm8513_vm0, %v10658_v59 }
 0x29f   : > { %7297 = vmatprep.subr.bf16.mxu1 %v10658_v59 }
 0x2a0   : > { %v1886_v52 = vpack.c.bf16 %v1844_v49, %v1843_v47 }
 0x2a1   : > { %v1714_v53 = vpop.f32.mrb[72].mxu0  ;;  %v9038_v55 = vld [vmem:[#allocation2 + $0x80] sm:$0xff] }
 0x2a2   : > { %1917 = vst.msk [vmem:[#allocation2 + $0x88] sm:$0xff] %vm1899_vm1, %v1886_v52  ;;  %v8035_v57 = vadd.f32 %v8836_v25, %v1714_v53  ;;  %v1716_v58 = vpop.f32.mrb[73].mxu0  ;;  %v4037_v61 = vrot.slane %v9038_v55, 5  ;;  %7298 = vmatpush3.bf16.msra.mxu1 %v8413_v50  ;;  %v2933_v0 = vshll.u32 %v9038_v55, 16  ;;  %v2937_v9 = vshrl.u32 %v9038_v55, 16 }
 0x2a3   : > { %v1717_v1 = vpop.f32.mrb[74].mxu0  ;;  %7327 = vmatprep.subr.bf16.mxu1 %v10658_v59 }
 0x2a4   : > { %v8036_v5 = vadd.f32 %v8836_v25, %v1717_v1  ;;  %v1719_v6 = vpop.f32.mrb[75].mxu0  ;;  %v4038_v7 = vsel %vm3326_vm6, %v4036_v60, %v4037_v61  ;;  %v9057_v10 = vrot.slane %v2933_v0, 1  ;;  %v1845_v12 = vmax.f32 %v8035_v57, 0.0 }
 0x2a5   : > { %7272 = vmatmul.mubr.msk.bf16.gmra.mrb[32].mxu1 %vm1899_vm1, %v8853_v63  ;;  %7620 = vmatmul.mubr.msk.bf16.vlgmr.msra.gmra.mrb[144].mxu0 %vm1899_vm1, %v4038_v7  ;;  %v8416_v63 = vld [vmem:[%s10653_s3 + $0xe8] sm:$0xff]  }
 0x2a6   : > { %v1846_v13 = vmax.f32 %v8036_v5, 0.0  ;;  %7275 = vmatprep.mubr.msk.bf16.mxu1 %vm8513_vm0, %v10658_v59  ;;  %7623 = vmatprep.mubr.msk.bf16.mxu0 %vm8513_vm0, %v10658_v59  ;;  %v2939_v15 = vor.u32 %v2937_v9, %v9057_v10 }
 0x2a7   : > { %7680 = vmatpush3.bf16.msra.mxu0 %v8415_v3 }
 0x2a8   : > { %v1887_v16 = vpack.c.bf16 %v1846_v13, %v1845_v12  ;;  %7681 = vmatprep.subr.bf16.mxu0 %v10658_v59 }
 0x2a9   : > { %v1722_v17 = vpop.f32.mrb[76].mxu0  ;;  %v9070_v18 = vld [vmem:[#allocation2 + $0x88] sm:$0xff] }
 0x2aa   : > { %1918 = vst.msk [vmem:[#allocation2 + $0x90] sm:$0xff] %vm1899_vm1, %v1887_v16  ;;  %v8037_v20 = vadd.f32 %v8836_v25, %v1722_v17  ;;  %v1724_v22 = vpop.f32.mrb[77].mxu0  ;;  %v4039_v23 = vrot.slane %v9070_v18, 5  ;;  %v2940_v26 = vshll.u32 %v9070_v18, 16  ;;  %v2944_v31 = vshrl.u32 %v9070_v18, 16 }
 0x2ab   : > { %v1725_v27 = vpop.f32.mrb[78].mxu0  ;;  %7682 = vmatpush3.bf16.msra.mxu0 %v8416_v63 }
 0x2ac   : > { %v8038_v28 = vadd.f32 %v8836_v25, %v1725_v27  ;;  %v1727_v29 = vpop.f32.mrb[79].mxu0  ;;  %v4040_v30 = vsel %vm3326_vm6, %v4037_v61, %v4039_v23  ;;  %7743 = vmatprep.subr.bf16.mxu0 %v10658_v59  ;;  %v2942_v32 = vrot.slane %v2940_v26, 1  ;;  %v1847_v33 = vmax.f32 %v8037_v20, 0.0 }
 0x2ad   : > { %7276 = vmatmul.mubr.msk.bf16.gmra.mrb[36].mxu1 %vm1899_vm1, %v8868_v21  ;;  %7624 = vmatmul.mubr.msk.bf16.gmra.mrb[148].mxu0 %vm1899_vm1, %v4040_v30 }
 0x2ae   : > { %v1848_v34 = vmax.f32 %v8038_v28, 0.0  ;;  %7279 = vmatprep.mubr.msk.bf16.mxu1 %vm8513_vm0, %v10658_v59  ;;  %7627 = vmatprep.mubr.msk.bf16.mxu0 %vm8513_vm0, %v10658_v59  ;;  %v9090_v38 = vsel %vm2222_vm3, %v2939_v15, %v2942_v32  ;;  %v2946_v21 = vor.u32 %v2944_v31, %v2942_v32 }
 0x2b0   : > { %v1888_v39 = vpack.c.bf16 %v1848_v34, %v1847_v33 }
 0x2b1   : > { %v1730_v40 = vpop.f32.mrb[80].mxu0  ;;  %v9094_v41 = vld [vmem:[#allocation2 + $0x90] sm:$0xff] }
 0x2b2   : > { %1919 = vst.msk [vmem:[#allocation2 + $0x98] sm:$0xff] %vm1899_vm1, %v1888_v39  ;;  %v8039_v44 = vadd.f32 %v8836_v25, %v1730_v40  ;;  %v1732_v45 = vpop.f32.mrb[81].mxu0  ;;  %v4041_v47 = vrot.slane %v9094_v41, 5  ;;  %v2947_v49 = vshll.u32 %v9094_v41, 16  ;;  %v2951_v58 = vshrl.u32 %v9094_v41, 16 }
 0x2b3   : > { %v1733_v50 = vpop.f32.mrb[82].mxu0 }
 0x2b4   : > { %v8040_v52 = vadd.f32 %v8836_v25, %v1733_v50  ;;  %v1735_v53 = vpop.f32.mrb[83].mxu0  ;;  %v4042_v57 = vsel %vm3326_vm6, %v4039_v23, %v4041_v47  ;;  %v2949_v60 = vrot.slane %v2947_v49, 1  ;;  %v1849_v61 = vmax.f32 %v8039_v44, 0.0 }
 0x2b5   : > { %7280 = vmatmul.mubr.msk.bf16.gmra.mrb[40].mxu1 %vm1899_vm1, %v8887_v42  ;;  %7628 = vmatmul.mubr.msk.bf16.gmra.mrb[152].mxu0 %vm1899_vm1, %v4042_v57 }
 0x2b6   : > { %v1850_v1 = vmax.f32 %v8040_v52, 0.0  ;;  %7283 = vmatprep.mubr.msk.bf16.mxu1 %vm8513_vm0, %v10658_v59  ;;  %7631 = vmatprep.mubr.msk.bf16.mxu0 %vm8513_vm0, %v10658_v59  ;;  %v9113_v3 = vsel %vm2222_vm3, %v2946_v21, %v2949_v60  ;;  %v2953_v42 = vor.u32 %v2951_v58, %v2949_v60 }
 0x2b8   : > { %v1889_v5 = vpack.c.bf16 %v1850_v1, %v1849_v61 }
 0x2b9   : > { %v1738_v6 = vpop.f32.mrb[84].mxu0  ;;  %v9117_v7 = vld [vmem:[#allocation2 + $0x98] sm:$0xff] }
 0x2ba   : > { %1920 = vst.msk [vmem:[#allocation2 + $0xa0] sm:$0xff] %vm1899_vm1, %v1889_v5  ;;  %v8041_v12 = vadd.f32 %v8836_v25, %v1738_v6  ;;  %v1740_v13 = vpop.f32.mrb[85].mxu0  ;;  %v4043_v63 = vrot.slane %v9117_v7, 5  ;;  %v2954_v15 = vshll.u32 %v9117_v7, 16  ;;  %v2958_v23 = vshrl.u32 %v9117_v7, 16 }
 0x2bb   : > { %v1741_v16 = vpop.f32.mrb[86].mxu0 }
 0x2bc   : > { %v8042_v17 = vadd.f32 %v8836_v25, %v1741_v16  ;;  %v1743_v20 = vpop.f32.mrb[87].mxu0  ;;  %v4044_v22 = vsel %vm3326_vm6, %v4041_v47, %v4043_v63  ;;  %v2956_v27 = vrot.slane %v2954_v15, 1  ;;  %v1851_v28 = vmax.f32 %v8041_v12, 0.0 }
 0x2bd   : > { %7284 = vmatmul.mubr.msk.bf16.gmra.mrb[44].mxu1 %vm1899_vm1, %v8901_v62  ;;  %7632 = vmatmul.mubr.msk.bf16.gmra.mrb[156].mxu0 %vm1899_vm1, %v4044_v22  ;;  %v2225_v12 = vshll.u32 %v9026_v46, 16 }
 0x2be   : > { %v1852_v29 = vmax.f32 %v8042_v17, 0.0  ;;  %7287 = vmatprep.mubr.msk.bf16.mxu1 %vm8513_vm0, %v10658_v59  ;;  %7635 = vmatprep.mubr.msk.bf16.mxu0 %vm8513_vm0, %v10658_v59  ;;  %v9136_v30 = vsel %vm2222_vm3, %v2953_v42, %v2956_v27  ;;  %v2960_v62 = vor.u32 %v2958_v23, %v2956_v27  ;;  %v1936_v27 = vld [vmem:[#allocation2 + $0x30] sm:$0x3] }
 0x2c0   : > { %v1890_v32 = vpack.c.bf16 %v1852_v29, %v1851_v28  ;;  %v2227_v29 = vrot.slane %v2225_v12, 1 }
 0x2c1   : > { %v1746_v33 = vpop.f32.mrb[88].mxu0  ;;  %v9140_v34 = vld [vmem:[#allocation2 + $0xa0] sm:$0xff] }
 0x2c2   : > { %1921 = vst.msk [vmem:[#allocation2 + $0xa8] sm:$0xff] %vm1899_vm1, %v1890_v32  ;;  %v8043_v21 = vadd.f32 %v8836_v25, %v1746_v33  ;;  %v1748_v39 = vpop.f32.mrb[89].mxu0  ;;  %v4045_v40 = vrot.slane %v9140_v34, 5  ;;  %v2961_v44 = vshll.u32 %v9140_v34, 16  ;;  %v2965_v53 = vshrl.u32 %v9140_v34, 16 }
 0x2c3   : > { %v1749_v45 = vpop.f32.mrb[90].mxu0  ;;  %v2223_v33 = vshrl.u32 %v9026_v46, 16  ;;  %v4363_v46 = vrot.slane %v2937_v9, 5 }
 0x2c4   : > { %v8044_v47 = vadd.f32 %v8836_v25, %v1749_v45  ;;  %v1751_v50 = vpop.f32.mrb[91].mxu0  ;;  %v4046_v52 = vsel %vm3326_vm6, %v4043_v63, %v4045_v40  ;;  %v2963_v57 = vrot.slane %v2961_v44, 1  ;;  %v1853_v60 = vmax.f32 %v8043_v21, 0.0 }
 0x2c5   : > { %7288 = vmatmul.mubr.msk.bf16.gmra.mrb[48].mxu1 %vm1899_vm1, %v8915_v19  ;;  %7636 = vmatmul.mubr.msk.bf16.gmra.mrb[160].mxu0 %vm1899_vm1, %v4046_v52  ;;  %v4356_v45 = vshrl.u32 %v9035_v51, 16 }
 0x2c6   : > { %v1854_v61 = vmax.f32 %v8044_v47, 0.0  ;;  %7291 = vmatprep.mubr.msk.bf16.mxu1 %vm8513_vm0, %v10658_v59  ;;  %7639 = vmatprep.mubr.msk.bf16.mxu0 %vm8513_vm0, %v10658_v59  ;;  %v9159_v1 = vsel %vm2222_vm3, %v2960_v62, %v2963_v57  ;;  %v9163_v19 = vor.u32 %v2965_v53, %v2963_v57  ;;  %v2228_v47 = vor.u32 %v2227_v29, %v2223_v33  ;;  %v8414_v57 = vld [vmem:[%s10653_s3 + $0x30] sm:$0xff]  }
 0x2c7   : > { %v4358_v12 = vrot.slane %v4356_v45, 5 }
 0x2c8   : > { %v1891_v42 = vpack.c.bf16 %v1854_v61, %v1853_v60  ;;  %v4364_v61 = vrot.slane %v2933_v0, 6 }
 0x2c9   : > { %v1754_v5 = vpop.f32.mrb[92].mxu0  ;;  %v4023_v6 = vld [vmem:[#allocation2 + $0xa8] sm:$0x7f] }
 0x2ca   : > { %1922 = vst.msk [vmem:[#allocation2 + $0xb0] sm:$0xff] %vm1899_vm1, %v1891_v42  ;;  %v8045_v13 = vadd.f32 %v8836_v25, %v1754_v5  ;;  %v1756_v63 = vpop.f32.mrb[93].mxu0  ;;  %v4047_v16 = vrot.slane %v4023_v6, 5  ;;  %v2232_v5 = vsel %vm2222_vm3, %v2228_v47, %v8860_v11  ;;  %v4365_v11 = vor.u32 %v4364_v61, %v4363_v46 }
 0x2cb   : > { %v1757_v17 = vpop.f32.mrb[94].mxu0 }
 0x2cc   : > { %v8046_v20 = vadd.f32 %v8836_v25, %v1757_v17  ;;  %v1759_v22 = vpop.f32.mrb[95].mxu0  ;;  %v4048_v28 = vsel %vm3326_vm6, %v4045_v40, %v4047_v16  ;;  %v1855_v62 = vmax.f32 %v8045_v13, 0.0  ;;  %v4359_v40 = vshll.u32 %v9035_v51, 16 }
 0x2cd   : > { %7292 = vmatmul.mubr.msk.bf16.gmra.mrb[52].mxu1 %vm1899_vm1, %v1936_v27  ;;  %7640 = vmatmul.mubr.msk.bf16.gmra.mrb[164].mxu0 %vm1899_vm1, %v4048_v28  ;;  %v9211_v28 = vld [vmem:[%s10652_s2] ss:$0 sm:$0xff] }
 0x2ce   : > { %v1856_v32 = vmax.f32 %v8046_v20, 0.0  ;;  %7299 = vmatprep.mubr.msk.bf16.mxu1 %vm8513_vm0, %v10658_v59  ;;  %7643 = vmatprep.mubr.msk.bf16.mxu0 %vm8513_vm0, %v10658_v59  ;;  %v4361_v13 = vrot.slane %v4359_v40, 6 }
 0x2d0   : > { %v1892_v21 = vpack.c.bf16 %v1856_v32, %v1855_v62  ;;  %v4362_v22 = vor.u32 %v4361_v13, %v4358_v12 }
 0x2d1   : > { %v1762_v39 = vpop.f32.mrb[96].mxu0  ;;  %v9191_v6 = vld [vmem:[#allocation2 + $0xb0] sm:$0xf0] }
 0x2d2   : > { %1923 = vst.msk [vmem:[#allocation2 + $0xb8] sm:$0xff] %vm1899_vm1, %v1892_v21  ;;  %v8047_v50 = vadd.f32 %v8836_v25, %v1762_v39  ;;  %v1764_v52 = vpop.f32.mrb[97].mxu0  ;;  %v3117_v0 = vshrl.u32 %v9191_v6, 16  ;;  %v3120_v9 = vshll.u32 %v9191_v6, 16  ;;  %v4366_v39 = vsel %vm3647_vm2, %v4362_v22, %v4365_v11 }
 0x2d3   : > { %v1765_v60 = vpop.f32.mrb[98].mxu0  ;;  %v4367_v52 = vrot.slane %v2944_v31, 5 }
 0x2d4   : > { %v8048_v42 = vadd.f32 %v8836_v25, %v1765_v60  ;;  %v1767_v51 = vpop.f32.mrb[99].mxu0  ;;  %v1857_v63 = vmax.f32 %v8047_v50, 0.0  ;;  %v8417_v25 = vld [vmem:[%s10653_s3 + $0x38] sm:$0xff]   ;;  %v3119_v45 = vrot.slane %v3117_v0, 4  ;;  %v3122_v40 = vrot.slane %v3120_v9, 5 }
 0x2d5   : > { %7300 = vmatmul.mubr.msk.bf16.vlgmr.msra.gmra.mrb[56].mxu1 %vm1899_vm1, %v2232_v5  ;;  %7644 = vmatmul.mubr.msk.bf16.gmra.mrb[168].mxu0 %vm1899_vm1, %v4047_v16 }
 0x2d6   : > { %v1858_v17 = vmax.f32 %v8048_v42, 0.0  ;;  %7328 = vmatpush3.bf16.msra.mxu1 %v8414_v57  ;;  %7303 = vmatprep.mubr.msk.bf16.mxu1 %vm8513_vm0, %v10658_v59  ;;  %v4368_v57 = vrot.slane %v2940_v26, 6  ;;  %v3123_v51 = vor.u32 %v3122_v40, %v3119_v45 }
 0x2d7   : > { %7683 = vmatprep.mubr.msk.bf16.mxu0 %vm8513_vm0, %v10658_v59  ;;  %7329 = vmatprep.subr.bf16.mxu1 %v10658_v59 }
 0x2d8   : > { %v1893_v16 = vpack.c.bf16 %v1858_v17, %v1857_v63  ;;  %v4369_v12 = vor.u32 %v4368_v57, %v4367_v52 }
 0x2d9   : > { %v1770_v20 = vpop.f32.mrb[100].mxu0  ;;  %v9205_v27 = vld [vmem:[#allocation2 + $0xb8] sm:$0xff] }
 0x2da   : > { %1924 = vst.msk [vmem:[#allocation2 + $0xc0] sm:$0xff] %vm1899_vm1, %v1893_v16  ;;  %v8049_v29 = vadd.f32 %v9211_v28, %v1770_v20  ;;  %v1772_v62 = vpop.f32.mrb[101].mxu0  ;;  %7330 = vmatpush3.bf16.msra.mxu1 %v8417_v25  ;;  %v3125_v32 = vshrl.u32 %v9205_v27, 16  ;;  %v3128_v33 = vshll.u32 %v9205_v27, 16  ;;  %v4371_v16 = vrot.slane %v2951_v58, 5 }
 0x2db   : > { %v1773_v21 = vpop.f32.mrb[102].mxu0  ;;  %7359 = vmatprep.subr.bf16.mxu1 %v10658_v59  ;;  %v4372_v20 = vrot.slane %v2947_v49, 6  ;;  %v4370_v62 = vsel %vm3647_vm2, %v4365_v11, %v4369_v12 }
 0x2dc   : > { %v8050_v47 = vadd.f32 %v9211_v28, %v1773_v21  ;;  %v1775_v50 = vpop.f32.mrb[103].mxu0  ;;  %v3127_v60 = vrot.slane %v3125_v32, 4  ;;  %v3130_v46 = vrot.slane %v3128_v33, 5  ;;  %v1859_v61 = vmax.f32 %v8049_v29, 0.0 }
 0x2dd   : > { %7304 = vmatmul.mubr.msk.bf16.gmra.mrb[60].mxu1 %vm1899_vm1, %v8883_v37  ;;  %7684 = vmatmul.mubr.msk.bf16.vlgmr.msra.gmra.mrb[172].mxu0 %vm1899_vm1, %v4366_v39  ;;  %v4373_v49 = vor.u32 %v4372_v20, %v4371_v16 }
 0x2de   : > { %v1860_v42 = vmax.f32 %v8050_v47, 0.0  ;;  %7307 = vmatprep.mubr.msk.bf16.mxu1 %vm8513_vm0, %v10658_v59  ;;  %7687 = vmatprep.mubr.msk.bf16.mxu0 %vm8513_vm0, %v10658_v59  ;;  %v3131_v31 = vor.u32 %v3130_v46, %v3127_v60 }
 0x2df   : > { %v4374_v46 = vsel %vm3647_vm2, %v4369_v12, %v4373_v49 }
 0x2e0   : > { %v1894_v5 = vpack.c.bf16 %v1860_v42, %v1859_v61  ;;  %v9233_v37 = vsel %vm2412_vm5, %v3123_v51, %v3131_v31  ;;  %v4375_v51 = vrot.slane %v2958_v23, 5 }
 0x2e1   : > { %v1778_v26 = vpop.f32.mrb[104].mxu0  ;;  %v9230_v13 = vld [vmem:[#allocation2 + $0xc0] sm:$0xff] }
 0x2e2   : > { %1925 = vst.msk [vmem:[#allocation2 + $0xc8] sm:$0xff] %vm1899_vm1, %v1894_v5  ;;  %v8051_v63 = vadd.f32 %v9211_v28, %v1778_v26  ;;  %v1780_v17 = vpop.f32.mrb[105].mxu0  ;;  %v3134_v25 = vshrl.u32 %v9230_v13, 16  ;;  %v3137_v0 = vshll.u32 %v9230_v13, 16 }
 0x2e3   : > { %v1781_v9 = vpop.f32.mrb[106].mxu0 }
 0x2e4   : > { %v8052_v22 = vadd.f32 %v9211_v28, %v1781_v9  ;;  %v1783_v29 = vpop.f32.mrb[107].mxu0  ;;  %v3136_v32 = vrot.slane %v3134_v25, 4  ;;  %v3139_v33 = vrot.slane %v3137_v0, 5  ;;  %v1861_v21 = vmax.f32 %v8051_v63, 0.0  ;;  %v2216_v0 = vld [vmem:[#allocation2 + $0x30] sm:$0x7] }
 0x2e5   : > { %7308 = vmatmul.mubr.msk.bf16.gmra.mrb[64].mxu1 %vm1899_vm1, %v8897_v56  ;;  %7688 = vmatmul.mubr.msk.bf16.gmra.mrb[176].mxu0 %vm1899_vm1, %v4370_v62 }
 0x2e6   : > { %v1862_v39 = vmax.f32 %v8052_v22, 0.0  ;;  %7311 = vmatprep.mubr.msk.bf16.mxu1 %vm8513_vm0, %v10658_v59  ;;  %7691 = vmatprep.mubr.msk.bf16.mxu0 %vm8513_vm0, %v10658_v59  ;;  %v3140_v58 = vor.u32 %v3139_v33, %v3136_v32  ;;  %v2265_v32 = vshll.u32 %v2216_v0, 16  ;;  %v4379_v33 = vrot.slane %v2965_v53, 5 }
 0x2e8   : > { %v1895_v45 = vpack.c.bf16 %v1862_v39, %v1861_v21  ;;  %v9255_v47 = vsel %vm2412_vm5, %v3131_v31, %v3140_v58  ;;  %v4376_v31 = vrot.slane %v2954_v15, 6  ;;  %v4380_v21 = vrot.slane %v2961_v44, 6 }
 0x2e9   : > { %v1786_v40 = vpop.f32.mrb[108].mxu0  ;;  %v9252_v11 = vld [vmem:[#allocation2 + $0xc8] sm:$0xff]  ;;  %v2267_v44 = vrot.slane %v2265_v32, 1 }
 0x2ea   : > { %1926 = vst.msk [vmem:[#allocation2 + $0xd0] sm:$0xff] %vm1899_vm1, %v1895_v45  ;;  %v8053_v56 = vadd.f32 %v9211_v28, %v1786_v40  ;;  %v1788_v50 = vpop.f32.mrb[109].mxu0  ;;  %v3143_v52 = vshrl.u32 %v9252_v11, 16  ;;  %v3146_v57 = vshll.u32 %v9252_v11, 16  ;;  %v4377_v25 = vor.u32 %v4376_v31, %v4375_v51 }
 0x2eb   : > { %v1789_v60 = vpop.f32.mrb[110].mxu0  ;;  %v4381_v53 = vor.u32 %v4380_v21, %v4379_v33  ;;  %v2269_v21 = vshrl.u32 %v2216_v0, 16 }
 0x2ec   : > { %v8054_v61 = vadd.f32 %v9211_v28, %v1789_v60  ;;  %v1791_v42 = vpop.f32.mrb[111].mxu0  ;;  %v3145_v5 = vrot.slane %v3143_v52, 4  ;;  %v3148_v26 = vrot.slane %v3146_v57, 5  ;;  %v1863_v63 = vmax.f32 %v8053_v56, 0.0  ;;  %v4349_v56 = vld [vmem:[#allocation2 + $0xa8] sm:$0xff] }
 0x2ed   : > { %7312 = vmatmul.mubr.msk.bf16.gmra.mrb[68].mxu1 %vm1899_vm1, %v8911_v14  ;;  %7692 = vmatmul.mubr.msk.bf16.gmra.mrb[180].mxu0 %vm1899_vm1, %v4374_v46  ;;  %v4378_v45 = vsel %vm3647_vm2, %v4373_v49, %v4377_v25  ;;  %v4384_v46 = vshrl.u32 %v4349_v56, 16 }
 0x2ee   : > { %v1864_v17 = vmax.f32 %v8054_v61, 0.0  ;;  %7315 = vmatprep.mubr.msk.bf16.mxu1 %vm8513_vm0, %v10658_v59  ;;  %7695 = vmatprep.mubr.msk.bf16.mxu0 %vm8513_vm0, %v10658_v59  ;;  %v3149_v12 = vor.u32 %v3148_v26, %v3145_v5  ;;  %v4387_v61 = vshll.u32 %v4349_v56, 16 }
 0x2f0   : > { %v1896_v23 = vpack.c.bf16 %v1864_v17, %v1863_v63  ;;  %v9277_v14 = vsel %vm2412_vm5, %v3140_v58, %v3149_v12 }
 0x2f1   : > { %v1794_v15 = vpop.f32.mrb[112].mxu0  ;;  %v9274_v9 = vld [vmem:[#allocation2 + $0xd0] sm:$0xff] }
 0x2f2   : > { %1927 = vst.msk [vmem:[#allocation2 + $0xd8] sm:$0xff] %vm1899_vm1, %v1896_v23  ;;  %v8055_v16 = vadd.f32 %v9211_v28, %v1794_v15  ;;  %v1796_v20 = vpop.f32.mrb[113].mxu0  ;;  %v3152_v22 = vshrl.u32 %v9274_v9, 16  ;;  %v3155_v29 = vshll.u32 %v9274_v9, 16  ;;  %v2268_v23 = vsel %vm2222_vm3, %v8927_v36, %v2267_v44 }
 0x2f3   : > { %v1797_v62 = vpop.f32.mrb[114].mxu0  ;;  %v4382_v15 = vsel %vm3647_vm2, %v4377_v25, %v4381_v53 }
 0x2f4   : > { %v8056_v39 = vadd.f32 %v9211_v28, %v1797_v62  ;;  %v1799_v58 = vpop.f32.mrb[115].mxu0  ;;  %v3154_v40 = vrot.slane %v3152_v22, 4  ;;  %v3157_v50 = vrot.slane %v3155_v29, 5  ;;  %v1865_v52 = vmax.f32 %v8055_v16, 0.0 }
 0x2f5   : > { %7316 = vmatmul.mubr.msk.bf16.gmra.mrb[72].mxu1 %vm1899_vm1, %v8925_v35  ;;  %7696 = vmatmul.mubr.msk.bf16.gmra.mrb[184].mxu0 %vm1899_vm1, %v4378_v45  ;;  %v4389_v22 = vrot.slane %v4387_v61, 6  ;;  %v2271_v58 = vor.u32 %v2269_v21, %v2267_v44 }
 0x2f6   : > { %v1866_v57 = vmax.f32 %v8056_v39, 0.0  ;;  %7319 = vmatprep.mubr.msk.bf16.mxu1 %vm8513_vm0, %v10658_v59  ;;  %7699 = vmatprep.mubr.msk.bf16.mxu0 %vm8513_vm0, %v10658_v59  ;;  %v3158_v60 = vor.u32 %v3157_v50, %v3154_v40 }
 0x2f8   : > { %v1897_v49 = vpack.c.bf16 %v1866_v57, %v1865_v52  ;;  %v9299_v51 = vsel %vm2412_vm5, %v3149_v12, %v3158_v60  ;;  %v4386_v12 = vrot.slane %v4384_v46, 5  ;;  %v8418_v52 = vld [vmem:[%s10653_s3 + $0x40] sm:$0xff]  }
 0x2f9   : > { %v1802_v42 = vpop.f32.mrb[116].mxu0  ;;  %v9296_v35 = vld [vmem:[#allocation2 + $0xd8] sm:$0xff] }
 0x2fa   : > { %1928 = vst.msk [vmem:[#allocation2 + $0xe0] sm:$0xff] %vm1899_vm1, %v1897_v49  ;;  %v8057_v31 = vadd.f32 %v9211_v28, %v1802_v42  ;;  %v1804_v5 = vpop.f32.mrb[117].mxu0  ;;  %v3161_v26 = vshrl.u32 %v9296_v35, 16  ;;  %v3164_v63 = vshll.u32 %v9296_v35, 16  ;;  %v4390_v25 = vor.u32 %v4389_v22, %v4386_v12 }
 0x2fb   : > { %v1805_v17 = vpop.f32.mrb[118].mxu0 }
 0x2fc   : > { %v8058_v16 = vadd.f32 %v9211_v28, %v1805_v17  ;;  %v1807_v20 = vpop.f32.mrb[119].mxu0  ;;  %v3163_v29 = vrot.slane %v3161_v26, 4  ;;  %v3166_v62 = vrot.slane %v3164_v63, 5  ;;  %v1867_v32 = vmax.f32 %v8057_v31, 0.0 }
 0x2fd   : > { %7320 = vmatmul.mubr.msk.bf16.gmra.mrb[76].mxu1 %vm1899_vm1, %v2268_v23  ;;  %7700 = vmatmul.mubr.msk.bf16.gmra.mrb[188].mxu0 %vm1899_vm1, %v4382_v15  ;;  %v4391_v40 = vsel %vm3647_vm2, %v4381_v53, %v4390_v25  ;;  %v2406_v23 = vld [vmem:[#allocation2 + $0x68] sm:$0x7f] }
 0x2fe   : > { %v1868_v33 = vmax.f32 %v8058_v16, 0.0  ;;  %7323 = vmatprep.mubr.msk.bf16.mxu1 %vm8513_vm0, %v10658_v59  ;;  %7703 = vmatprep.mubr.msk.bf16.mxu0 %vm8513_vm0, %v10658_v59  ;;  %v9315_v36 = vor.u32 %v3166_v62, %v3163_v29  ;;  %v2467_v16 = vshrl.u32 %v2406_v23, 16  ;;  %v2470_v20 = vshll.u32 %v2406_v23, 16 }
 0x300   : > { %v1898_v28 = vpack.c.bf16 %v1868_v33, %v1867_v32  ;;  %v9319_v39 = vsel %vm2412_vm5, %v3158_v60, %v9315_v36  ;;  %v8419_v60 = vld [vmem:[%s10653_s3 + $0x48] sm:$0xff]   ;;  %v2469_v22 = vrot.slane %v2467_v16, 4  ;;  %v2472_v29 = vrot.slane %v2470_v20, 5 }
 0x302   : > { %1929 = vst.msk [vmem:[#allocation2 + $0xe8] sm:$0xff] %vm1899_vm1, %v1898_v28  ;;  %v2473_v33 = vor.u32 %v2472_v29, %v2469_v22 }
 0x304   : > { %v9322_v45 = vpop.f32.mrb[120].mxu0  ;;  %v2474_v28 = vsel %vm2412_vm5, %v9001_v4, %v2473_v33  ;;  %v8420_v4 = vld [vmem:[%s10653_s3 + $0x50] sm:$0xff]  }
 0x305   : > { %7324 = vmatmul.mubr.msk.bf16.gmra.mrb[80].mxu1 %vm1899_vm1, %v2271_v58  ;;  %v7557_v56 = vpop.f32.mrb[121].mxu0  ;;  %7704 = vmatmul.mubr.msk.bf16.gmra.mrb[192].mxu0 %vm1899_vm1, %v4391_v40 }
 0x306   : > { %v9327_v50 = vpop.f32.mrb[122].mxu0  ;;  %7331 = vmatprep.mubr.msk.bf16.mxu1 %vm8513_vm0, %v10658_v59  ;;  %7707 = vmatprep.mubr.msk.bf16.mxu0 %vm8513_vm0, %v10658_v59 }
 0x307   : > { %v7558_v0 = vpop.f32.mrb[123].mxu0 }
 0x30c   : > { %v9336_v57 = vpop.f32.mrb[124].mxu0 }
 0x30d   : > { %7332 = vmatmul.mubr.msk.bf16.vlgmr.msra.gmra.mrb[84].mxu1 %vm1899_vm1, %v8961_v43  ;;  %v7561_v44 = vpop.f32.mrb[125].mxu0  ;;  %7708 = vmatmul.mubr.msk.bf16.gmra.mrb[196].mxu0 %vm1899_vm1, %v4390_v25 }
 0x30e   : > { %7360 = vmatpush3.bf16.msra.mxu1 %v8418_v52  ;;  %v9341_v53 = vpop.f32.mrb[126].mxu0  ;;  %7335 = vmatprep.mubr.msk.bf16.mxu1 %vm8513_vm0, %v10658_v59  ;;  %v9395_v44 = vld [vmem:[#allocation2 + $0x78] sm:$0xff] }
 0x30f   : > { %v7562_v49 = vpop.f32.mrb[127].mxu0  ;;  %7361 = vmatprep.subr.bf16.mxu1 %v10658_v59  ;;  %7751 = vmatprep.mubr.msk.bf16.mxu0 %vm8513_vm0, %v10658_v59 }
 0x312   : > { %7362 = vmatpush3.bf16.msra.mxu1 %v8419_v60  ;;  %v8421_v60 = vld [vmem:[%s10653_s3 + $0x58] sm:$0xff]  }
 0x313   : > { %7391 = vmatprep.subr.bf16.mxu1 %v10658_v59 }
 0x314   : > { %v9352_v43 = vpop.f32.mrb[128].mxu0 }
 0x315   : > { %7336 = vmatmul.mubr.msk.bf16.gmra.mrb[88].mxu1 %vm1899_vm1, %v8972_v2  ;;  %v7565_v46 = vpop.f32.mrb[129].mxu0 }
 0x316   : > { %v9356_v61 = vpop.f32.mrb[130].mxu0  ;;  %7339 = vmatprep.mubr.msk.bf16.mxu1 %vm8513_vm0, %v10658_v59 }
 0x317   : > { %v7566_v42 = vpop.f32.mrb[131].mxu0 }
 0x31c   : > { %v9360_v31 = vpop.f32.mrb[132].mxu0 }
 0x31d   : > { %7340 = vmatmul.mubr.msk.bf16.gmra.mrb[92].mxu1 %vm1899_vm1, %v8982_v24  ;;  %v7569_v5 = vpop.f32.mrb[133].mxu0 }
 0x31e   : > { %v9364_v26 = vpop.f32.mrb[134].mxu0  ;;  %7343 = vmatprep.mubr.msk.bf16.mxu1 %vm8513_vm0, %v10658_v59 }
 0x31f   : > { %v7570_v63 = vpop.f32.mrb[135].mxu0 }
 0x324   : > { %v9368_v2 = vpop.f32.mrb[136].mxu0 }
 0x325   : > { %7344 = vmatmul.mubr.msk.bf16.gmra.mrb[96].mxu1 %vm1899_vm1, %v8992_v48  ;;  %v7573_v17 = vpop.f32.mrb[137].mxu0 }
 0x326   : > { %v9372_v15 = vpop.f32.mrb[138].mxu0  ;;  %7347 = vmatprep.mubr.msk.bf16.mxu1 %vm8513_vm0, %v10658_v59 }
 0x327   : > { %v7574_v24 = vpop.f32.mrb[139].mxu0 }
 0x32c   : > { %v9376_v12 = vpop.f32.mrb[140].mxu0 }
 0x32d   : > { %7348 = vmatmul.mubr.msk.bf16.gmra.mrb[100].mxu1 %vm1899_vm1, %v9005_v8  ;;  %v7577_v62 = vpop.f32.mrb[141].mxu0 }
 0x32e   : > { %v9380_v32 = vpop.f32.mrb[142].mxu0  ;;  %7351 = vmatprep.mubr.msk.bf16.mxu1 %vm8513_vm0, %v10658_v59 }
 0x32f   : > { %v7578_v48 = vpop.f32.mrb[143].mxu0 }
 0x335   : > { %7352 = vmatmul.mubr.msk.bf16.gmra.mrb[104].mxu1 %vm1899_vm1, %v2474_v28 }
 0x336   : > { %7355 = vmatprep.mubr.msk.bf16.mxu1 %vm8513_vm0, %v10658_v59 }
 0x338   : > { %v2041_v25 = vpop.f32.mrb[0].mxu1 }
 0x339   : > { %v7237_v21 = vpop.f32.mrb[1].mxu1 }
 0x33a   : > { %v2044_v58 = vpop.f32.mrb[2].mxu1 }
 0x33b   : > { %v7238_v8 = vpop.f32.mrb[3].mxu1 }
 0x33d   : > { %7356 = vmatmul.mubr.msk.bf16.gmra.mrb[108].mxu1 %vm1899_vm1, %v2473_v33 }
 0x33e   : > { %7363 = vmatprep.mubr.msk.bf16.mxu1 %vm8513_vm0, %v10658_v59 }
 0x340   : > { %v2049_v40 = vpop.f32.mrb[4].mxu1 }
 0x341   : > { %v7241_v56 = vpop.f32.mrb[5].mxu1 }
 0x342   : > { %v2052_v0 = vpop.f32.mrb[6].mxu1 }
 0x343   : > { %v7242_v52 = vpop.f32.mrb[7].mxu1 }
 0x345   : > { %7364 = vmatmul.mubr.msk.bf16.vlgmr.msra.gmra.mrb[112].mxu1 %vm1899_vm1, %v9395_v44 }
 0x346   : > { %7392 = vmatpush3.bf16.msra.mxu1 %v8420_v4  ;;  %7367 = vmatprep.mubr.msk.bf16.mxu1 %vm8513_vm0, %v10658_v59 }
 0x347   : > { %7393 = vmatprep.subr.bf16.mxu1 %v10658_v59 }
 0x348   : > { %v9405_v49 = vpop.f32.mrb[8].mxu1 }
 0x349   : > { %v7245_v46 = vpop.f32.mrb[9].mxu1 }
 0x34a   : > { %v9407_v42 = vpop.f32.mrb[10].mxu1  ;;  %7394 = vmatpush3.bf16.msra.mxu1 %v8421_v60  ;;  %v2615_v46 = vld [vmem:[#allocation2 + $0xa8] sm:$0x3] }
 0x34b   : > { %v7246_v5 = vpop.f32.mrb[11].mxu1  ;;  %7423 = vmatprep.subr.bf16.mxu1 %v10658_v59 }
 0x34d   : > { %7368 = vmatmul.mubr.msk.bf16.gmra.mrb[116].mxu1 %vm1899_vm1, %v9038_v55 }
 0x34e   : > { %7371 = vmatprep.mubr.msk.bf16.mxu1 %vm8513_vm0, %v10658_v59 }
 0x350   : > { %v9414_v63 = vpop.f32.mrb[12].mxu1 }
 0x351   : > { %v7249_v17 = vpop.f32.mrb[13].mxu1 }
 0x352   : > { %v9416_v23 = vpop.f32.mrb[14].mxu1 }
 0x353   : > { %v7250_v24 = vpop.f32.mrb[15].mxu1 }
 0x355   : > { %7372 = vmatmul.mubr.msk.bf16.gmra.mrb[120].mxu1 %vm1899_vm1, %v9070_v18 }
 0x356   : > { %7375 = vmatprep.mubr.msk.bf16.mxu1 %vm8513_vm0, %v10658_v59 }
 0x358   : > { %v9422_v16 = vpop.f32.mrb[16].mxu1 }
 0x359   : > { %v7253_v20 = vpop.f32.mrb[17].mxu1 }
 0x35a   : > { %v9424_v22 = vpop.f32.mrb[18].mxu1 }
 0x35b   : > { %v7254_v55 = vpop.f32.mrb[19].mxu1 }
 0x35d   : > { %7376 = vmatmul.mubr.msk.bf16.gmra.mrb[124].mxu1 %vm1899_vm1, %v9094_v41 }
 0x35e   : > { %7379 = vmatprep.mubr.msk.bf16.mxu1 %vm8513_vm0, %v10658_v59 }
 0x360   : > { %v9430_v29 = vpop.f32.mrb[20].mxu1 }
 0x361   : > { %v7257_v62 = vpop.f32.mrb[21].mxu1 }
 0x362   : > { %v9432_v48 = vpop.f32.mrb[22].mxu1 }
 0x363   : > { %v7258_v18 = vpop.f32.mrb[23].mxu1 }
 0x364   : > { %v8422_v18 = vld [vmem:[%s10653_s3 + $0x60] sm:$0xff]  }
 0x365   : > { %7380 = vmatmul.mubr.msk.bf16.gmra.mrb[128].mxu1 %vm1899_vm1, %v9117_v7 }
 0x366   : > { %7383 = vmatprep.mubr.msk.bf16.mxu1 %vm8513_vm0, %v10658_v59 }
 0x368   : > { %v2089_v33 = vpop.f32.mrb[24].mxu1 }
 0x369   : > { %v7261_v28 = vpop.f32.mrb[25].mxu1 }
 0x36a   : > { %v2092_v21 = vpop.f32.mrb[26].mxu1 }
 0x36b   : > { %v7262_v8 = vpop.f32.mrb[27].mxu1 }
 0x36d   : > { %7384 = vmatmul.mubr.msk.bf16.gmra.mrb[132].mxu1 %vm1899_vm1, %v9140_v34  ;;  %v2775_v34 = vrot.slane %v9205_v27, 4 }
 0x36e   : > { %7387 = vmatprep.mubr.msk.bf16.mxu1 %vm8513_vm0, %v10658_v59 }
 0x370   : > { %v2162_v41 = vpop.f32.mrb[28].mxu1 }
 0x371   : > { %v9442_v56 = vadd.f32 %v2162_v41, %v2041_v25  ;;  %v7269_v4 = vpop.f32.mrb[29].mxu1 }
 0x372   : > { %v2165_v52 = vpop.f32.mrb[30].mxu1 }
 0x373   : > { %v9444_v60 = vadd.f32 %v2165_v52, %v2044_v58  ;;  %v7270_v7 = vpop.f32.mrb[31].mxu1  ;;  %v2774_v58 = vrot.slane %v9191_v6, 4  ;;  %v8423_v6 = vld [vmem:[%s10653_s3 + $0x68] sm:$0xff]  }
 0x375   : > { %7388 = vmatmul.mubr.msk.bf16.gmra.mrb[136].mxu1 %vm1899_vm1, %v2615_v46  ;;  %v2776_v8 = vsel %vm1960_vm4, %v2774_v58, %v2775_v34  ;;  %v2779_v58 = vrot.slane %v9252_v11, 4 }
 0x376   : > { %7395 = vmatprep.mubr.msk.bf16.mxu1 %vm8513_vm0, %v10658_v59 }
 0x378   : > { %v2170_v5 = vpop.f32.mrb[32].mxu1  ;;  %v9449_v17 = vpop.f32.mrb[144].mxu0 }
 0x379   : > { %v9452_v24 = vadd.f32 %v2170_v5, %v2049_v40  ;;  %v7273_v25 = vpop.f32.mrb[33].mxu1  ;;  %v7621_v20 = vpop.f32.mrb[145].mxu0 }
 0x37a   : > { %v2173_v55 = vpop.f32.mrb[34].mxu1  ;;  %v9454_v62 = vpop.f32.mrb[146].mxu0 }
 0x37b   : > { %v9460_v33 = vadd.f32 %v2173_v55, %v2052_v0  ;;  %v7274_v28 = vpop.f32.mrb[35].mxu1  ;;  %v7622_v21 = vpop.f32.mrb[147].mxu0  ;;  %v2777_v0 = vrot.slane %v9230_v13, 4 }
 0x37d   : > { %7396 = vmatmul.mubr.msk.bf16.vlgmr.msra.gmra.mrb[140].mxu1 %vm1899_vm1, %v2776_v8  ;;  %v2778_v55 = vsel %vm1960_vm4, %v2775_v34, %v2777_v0 }
 0x37e   : > { %7424 = vmatpush3.bf16.msra.mxu1 %v8422_v18  ;;  %7399 = vmatprep.mubr.msk.bf16.mxu1 %vm8513_vm0, %v10658_v59 }
 0x37f   : > { %7425 = vmatprep.subr.bf16.mxu1 %v10658_v59 }
 0x380   : > { %v2178_v27 = vpop.f32.mrb[36].mxu1  ;;  %v9470_v40 = vpop.f32.mrb[148].mxu0 }
 0x381   : > { %v9474_v41 = vadd.f32 %v2178_v27, %v9405_v49  ;;  %v7277_v4 = vpop.f32.mrb[37].mxu1  ;;  %v7625_v52 = vpop.f32.mrb[149].mxu0 }
 0x382   : > { %v2181_v7 = vpop.f32.mrb[38].mxu1  ;;  %v9476_v46 = vpop.f32.mrb[150].mxu0  ;;  %7426 = vmatpush3.bf16.msra.mxu1 %v8423_v6  ;;  %v2780_v4 = vsel %vm1960_vm4, %v2777_v0, %v2779_v58  ;;  %v2781_v52 = vrot.slane %v9274_v9, 4 }
 0x383   : > { %v9479_v5 = vadd.f32 %v2181_v7, %v9407_v42  ;;  %v7278_v25 = vpop.f32.mrb[39].mxu1  ;;  %v7626_v20 = vpop.f32.mrb[151].mxu0  ;;  %7455 = vmatprep.subr.bf16.mxu1 %v10658_v59 }
 0x385   : > { %7400 = vmatmul.mubr.msk.bf16.gmra.mrb[144].mxu1 %vm1899_vm1, %v2778_v55 }
 0x386   : > { %7403 = vmatprep.mubr.msk.bf16.mxu1 %vm8513_vm0, %v10658_v59 }
 0x388   : > { %v2186_v13 = vpop.f32.mrb[40].mxu1  ;;  %v9486_v49 = vpop.f32.mrb[152].mxu0 }
 0x389   : > { %v9490_v18 = vadd.f32 %v2186_v13, %v9414_v63  ;;  %v7281_v42 = vpop.f32.mrb[41].mxu1  ;;  %v7629_v28 = vpop.f32.mrb[153].mxu0 }
 0x38a   : > { %v2189_v21 = vpop.f32.mrb[42].mxu1  ;;  %v9492_v8 = vpop.f32.mrb[154].mxu0  ;;  %v2782_v28 = vsel %vm1960_vm4, %v2779_v58, %v2781_v52 }
 0x38b   : > { %v9495_v34 = vadd.f32 %v2189_v21, %v9416_v23  ;;  %v7282_v6 = vpop.f32.mrb[43].mxu1  ;;  %v7630_v27 = vpop.f32.mrb[155].mxu0  ;;  %v2783_v21 = vrot.slane %v9296_v35, 4 }
 0x38d   : > { %7404 = vmatmul.mubr.msk.bf16.gmra.mrb[148].mxu1 %vm1899_vm1, %v2780_v4 }
 0x38e   : > { %7407 = vmatprep.mubr.msk.bf16.mxu1 %vm8513_vm0, %v10658_v59 }
 0x390   : > { %v2194_v11 = vpop.f32.mrb[44].mxu1  ;;  %v9501_v63 = vpop.f32.mrb[156].mxu0 }
 0x391   : > { %v9505_v7 = vadd.f32 %v2194_v11, %v9422_v16  ;;  %v7285_v25 = vpop.f32.mrb[45].mxu1  ;;  %v7633_v23 = vpop.f32.mrb[157].mxu0 }
 0x392   : > { %v2197_v20 = vpop.f32.mrb[46].mxu1  ;;  %v9507_v55 = vpop.f32.mrb[158].mxu0 }
 0x393   : > { %v9510_v0 = vadd.f32 %v2197_v20, %v9424_v22  ;;  %v7286_v13 = vpop.f32.mrb[47].mxu1  ;;  %v7634_v42 = vpop.f32.mrb[159].mxu0  ;;  %v2784_v20 = vsel %vm1960_vm4, %v2781_v52, %v2783_v21 }
 0x394   : > { %v2761_v13 = vld [vmem:[#allocation2 + $0xe0] sm:$0x3f] }
 0x395   : > { %7408 = vmatmul.mubr.msk.bf16.gmra.mrb[152].mxu1 %vm1899_vm1, %v2782_v28  ;;  %v2785_v42 = vrot.slane %v2761_v13, 4 }
 0x396   : > { %7411 = vmatprep.mubr.msk.bf16.mxu1 %vm8513_vm0, %v10658_v59 }
 0x398   : > { %v2202_v9 = vpop.f32.mrb[48].mxu1  ;;  %v9516_v16 = vpop.f32.mrb[160].mxu0 }
 0x399   : > { %v9520_v6 = vadd.f32 %v2202_v9, %v9430_v29  ;;  %v7289_v27 = vpop.f32.mrb[49].mxu1  ;;  %v7637_v22 = vpop.f32.mrb[161].mxu0 }
 0x39a   : > { %v2205_v4 = vpop.f32.mrb[50].mxu1  ;;  %v9522_v11 = vpop.f32.mrb[162].mxu0 }
 0x39b   : > { %v9525_v58 = vadd.f32 %v2205_v4, %v9432_v48  ;;  %v7290_v25 = vpop.f32.mrb[51].mxu1  ;;  %v7638_v23 = vpop.f32.mrb[163].mxu0 }
 0x39c   : > { %v2786_v25 = vsel %vm1960_vm4, %v2783_v21, %v2785_v42 }
 0x39d   : > { %7412 = vmatmul.mubr.msk.bf16.gmra.mrb[156].mxu1 %vm1899_vm1, %v2784_v20 }
 0x39e   : > { %7415 = vmatprep.mubr.msk.bf16.mxu1 %vm8513_vm0, %v10658_v59 }
 0x3a0   : > { %v2210_v35 = vpop.f32.mrb[52].mxu1  ;;  %v9531_v29 = vpop.f32.mrb[164].mxu0 }
 0x3a1   : > { %v7293_v28 = vpop.f32.mrb[53].mxu1  ;;  %v7641_v9 = vpop.f32.mrb[165].mxu0 }
 0x3a2   : > { %v2213_v27 = vpop.f32.mrb[54].mxu1  ;;  %v9533_v22 = vpop.f32.mrb[166].mxu0  ;;  %v2929_v28 = vshll.u32 %v9395_v44, 16 }
 0x3a3   : > { %v7294_v48 = vpop.f32.mrb[55].mxu1  ;;  %v7642_v4 = vpop.f32.mrb[167].mxu0 }
 0x3a5   : > { %7416 = vmatmul.mubr.msk.bf16.gmra.mrb[160].mxu1 %vm1899_vm1, %v2786_v25  ;;  %v2931_v25 = vrot.slane %v2929_v28, 1 }
 0x3a6   : > { %7419 = vmatprep.mubr.msk.bf16.mxu1 %vm8513_vm0, %v10658_v59 }
 0x3a8   : > { %v2339_v52 = vpop.f32.mrb[56].mxu1  ;;  %v4164_v23 = vpop.f32.mrb[168].mxu0 }
 0x3a9   : > { %v9540_v20 = vadd.f32 %v2339_v52, %v9442_v56  ;;  %v7301_v13 = vpop.f32.mrb[57].mxu1  ;;  %v7645_v35 = vpop.f32.mrb[169].mxu0  ;;  %v2927_v56 = vshrl.u32 %v9395_v44, 16 }
 0x3aa   : > { %v2342_v9 = vpop.f32.mrb[58].mxu1  ;;  %v4167_v27 = vpop.f32.mrb[170].mxu0 }
 0x3ab   : > { %v9544_v48 = vadd.f32 %v2342_v9, %v9444_v60  ;;  %v7302_v21 = vpop.f32.mrb[59].mxu1  ;;  %v7646_v4 = vpop.f32.mrb[171].mxu0  ;;  %v2932_v60 = vor.u32 %v2931_v25, %v2927_v56  ;;  %v8425_v25 = vld [vmem:[%s10653_s3 + $0x78] sm:$0xff]  }
 0x3ad   : > { %7420 = vmatmul.mubr.msk.bf16.gmra.mrb[164].mxu1 %vm1899_vm1, %v2785_v42  ;;  %v8424_v42 = vld [vmem:[%s10653_s3 + $0x70] sm:$0xff]  }
 0x3ae   : > { %7427 = vmatprep.mubr.msk.bf16.mxu1 %vm8513_vm0, %v10658_v59  ;;  %v2936_v59 = vsel %vm2222_vm3, %v2932_v60, %v9057_v10 }
 0x3b0   : > { %v2347_v52 = vpop.f32.mrb[60].mxu1  ;;  %v9550_v23 = vpop.f32.mrb[172].mxu0 }
 0x3b1   : > { %v9553_v13 = vadd.f32 %v2347_v52, %v9452_v24  ;;  %v7305_v35 = vpop.f32.mrb[61].mxu1  ;;  %v7685_v27 = vpop.f32.mrb[173].mxu0  ;;  %v10660_v24 = vmov 0.0  }
 0x3b2   : > { %v2350_v9 = vpop.f32.mrb[62].mxu1  ;;  %v9555_v21 = vpop.f32.mrb[174].mxu0 }
 0x3b3   : > { %v9561_v28 = vadd.f32 %v2350_v9, %v9460_v33  ;;  %v7306_v44 = vpop.f32.mrb[63].mxu1  ;;  %v7686_v4 = vpop.f32.mrb[175].mxu0 }
 0x3b5   : > { %7428 = vmatmul.mubr.msk.bf16.vlgmr.msra.gmra.mrb[168].mxu1 %vm1899_vm1, %v2936_v59 }
 0x3b6   : > { %7456 = vmatpush3.bf16.msra.mxu1 %v8424_v42  ;;  %7431 = vmatprep.mubr.msk.bf16.mxu1 %vm8513_vm0, %v10660_v24 }
 0x3b7   : > { %7457 = vmatprep.subr.bf16.mxu1 %v10660_v24 }
 0x3b8   : > { %v2355_v56 = vpop.f32.mrb[64].mxu1  ;;  %v9572_v33 = vpop.f32.mrb[176].mxu0 }
 0x3b9   : > { %v9575_v52 = vadd.f32 %v2355_v56, %v9474_v41  ;;  %v7309_v35 = vpop.f32.mrb[65].mxu1  ;;  %v7689_v10 = vpop.f32.mrb[177].mxu0 }
 0x3ba   : > { %v2358_v27 = vpop.f32.mrb[66].mxu1  ;;  %v9577_v59 = vpop.f32.mrb[178].mxu0  ;;  %7458 = vmatpush3.bf16.msra.mxu1 %v8425_v25 }
 0x3bb   : > { %v9580_v60 = vadd.f32 %v2358_v27, %v9479_v5  ;;  %v7310_v9 = vpop.f32.mrb[67].mxu1  ;;  %v7690_v42 = vpop.f32.mrb[179].mxu0  ;;  %7487 = vmatprep.subr.bf16.mxu1 %v10660_v24 }
 0x3bd   : > { %7432 = vmatmul.mubr.msk.bf16.gmra.mrb[172].mxu1 %vm1899_vm1, %v9090_v38 }
 0x3be   : > { %7435 = vmatprep.mubr.msk.bf16.mxu1 %vm8513_vm0, %v10660_v24 }
 0x3c0   : > { %v2363_v41 = vpop.f32.mrb[68].mxu1  ;;  %v9587_v44 = vpop.f32.mrb[180].mxu0 }
 0x3c1   : > { %v9590_v4 = vadd.f32 %v2363_v41, %v9490_v18  ;;  %v7313_v25 = vpop.f32.mrb[69].mxu1  ;;  %v7693_v56 = vpop.f32.mrb[181].mxu0 }
 0x3c2   : > { %v2366_v5 = vpop.f32.mrb[70].mxu1  ;;  %v9592_v35 = vpop.f32.mrb[182].mxu0 }
 0x3c3   : > { %10661 = vst [vmem:[#allocation4_spill] sm:$0xff] %v9592_v35  ;;  %v9595_v10 = vadd.f32 %v2366_v5, %v9495_v34  ;;  %v7314_v27 = vpop.f32.mrb[71].mxu1  ;;  %v7694_v9 = vpop.f32.mrb[183].mxu0 }
 0x3c5   : > { %7436 = vmatmul.mubr.msk.bf16.gmra.mrb[176].mxu1 %vm1899_vm1, %v9113_v3 }
 0x3c6   : > { %7439 = vmatprep.mubr.msk.bf16.mxu1 %vm8513_vm0, %v10660_v24 }
 0x3c8   : > { %v2371_v38 = vpop.f32.mrb[72].mxu1  ;;  %v9601_v42 = vpop.f32.mrb[184].mxu0 }
 0x3c9   : > { %10662 = vst [vmem:[#allocation5_spill] sm:$0xff] %v9601_v42  ;;  %v9604_v18 = vadd.f32 %v2371_v38, %v9505_v7  ;;  %v7317_v41 = vpop.f32.mrb[73].mxu1  ;;  %v7697_v25 = vpop.f32.mrb[185].mxu0 }
 0x3ca   : > { %v2374_v56 = vpop.f32.mrb[74].mxu1  ;;  %v9606_v35 = vpop.f32.mrb[186].mxu0  ;;  %v2921_v25 = vld [vmem:[#allocation2 + $0xa8] sm:$0x7] }
 0x3cb   : > { %10663 = vst [vmem:[#allocation6_spill] sm:$0xff] %v9606_v35  ;;  %v9609_v34 = vadd.f32 %v2374_v56, %v9510_v0  ;;  %v7318_v5 = vpop.f32.mrb[75].mxu1  ;;  %v7698_v27 = vpop.f32.mrb[187].mxu0 }
 0x3cc   : > { %v2969_v27 = vshll.u32 %v2921_v25, 16 }
 0x3cd   : > { %7440 = vmatmul.mubr.msk.bf16.gmra.mrb[180].mxu1 %vm1899_vm1, %v9136_v30 }
 0x3ce   : > { %7443 = vmatprep.mubr.msk.bf16.mxu1 %vm8513_vm0, %v10660_v24 }
 0x3d0   : > { %v2379_v3 = vpop.f32.mrb[76].mxu1  ;;  %v9615_v9 = vpop.f32.mrb[188].mxu0 }
 0x3d1   : > { %10664 = vst [vmem:[#allocation7_spill] sm:$0xff] %v9615_v9  ;;  %v9618_v7 = vadd.f32 %v2379_v3, %v9520_v6  ;;  %v7321_v38 = vpop.f32.mrb[77].mxu1  ;;  %v7701_v41 = vpop.f32.mrb[189].mxu0 }
 0x3d2   : > { %v2382_v35 = vpop.f32.mrb[78].mxu1  ;;  %v9620_v0 = vpop.f32.mrb[190].mxu0  ;;  %v2971_v38 = vrot.slane %v2969_v27, 1 }
 0x3d3   : > { %10665 = vst [vmem:[#allocation8_spill] sm:$0xff] %v9620_v0  ;;  %v9623_v56 = vadd.f32 %v2382_v35, %v9525_v58  ;;  %v7322_v5 = vpop.f32.mrb[79].mxu1  ;;  %v7702_v30 = vpop.f32.mrb[191].mxu0 }
 0x3d4   : > { %v2972_v5 = vsel %vm2222_vm3, %v9163_v19, %v2971_v38 }
 0x3d5   : > { %7444 = vmatmul.mubr.msk.bf16.gmra.mrb[184].mxu1 %vm1899_vm1, %v9159_v1 }
 0x3d6   : > { %7447 = vmatprep.mubr.msk.bf16.mxu1 %vm8513_vm0, %v10660_v24 }
 0x3d8   : > { %v2387_v6 = vpop.f32.mrb[80].mxu1  ;;  %v9629_v3 = vpop.f32.mrb[192].mxu0 }
 0x3d9   : > { %10666 = vst [vmem:[#allocation9_spill] sm:$0xff] %v9629_v3  ;;  %v7325_v41 = vpop.f32.mrb[81].mxu1  ;;  %v7705_v9 = vpop.f32.mrb[193].mxu0 }
 0x3da   : > { %v2390_v42 = vpop.f32.mrb[82].mxu1  ;;  %v9631_v0 = vpop.f32.mrb[194].mxu0 }
 0x3db   : > { %10667 = vst [vmem:[#allocation10_spill] sm:$0xff] %v9631_v0  ;;  %v7326_v58 = vpop.f32.mrb[83].mxu1  ;;  %v7706_v35 = vpop.f32.mrb[195].mxu0  ;;  %v2973_v42 = vshrl.u32 %v2921_v25, 16  ;;  %v8426_v25 = vld [vmem:[%s10653_s3 + $0x80] sm:$0xff]  }
 0x3dd   : > { %7448 = vmatmul.mubr.msk.bf16.gmra.mrb[188].mxu1 %vm1899_vm1, %v2972_v5  ;;  %v2975_v3 = vor.u32 %v2973_v42, %v2971_v38 }
 0x3de   : > { %7451 = vmatprep.mubr.msk.bf16.mxu1 %vm8513_vm0, %v10660_v24 }
 0x3e0   : > { %v2542_v1 = vpop.f32.mrb[84].mxu1  ;;  %v4507_v30 = vpop.f32.mrb[196].mxu0 }
 0x3e1   : > { %v9639_v6 = vadd.f32 %v2542_v1, %v9540_v20  ;;  %v7333_v27 = vpop.f32.mrb[85].mxu1  ;;  %v7709_v9 = vpop.f32.mrb[197].mxu0 }
 0x3e2   : > { %v2545_v41 = vpop.f32.mrb[86].mxu1  ;;  %v4510_v0 = vpop.f32.mrb[198].mxu0 }
 0x3e3   : > { %v9642_v58 = vadd.f32 %v2545_v41, %v9544_v48  ;;  %v7334_v35 = vpop.f32.mrb[87].mxu1  ;;  %v7710_v19 = vpop.f32.mrb[199].mxu0 }
 0x3e5   : > { %7452 = vmatmul.mubr.msk.bf16.gmra.mrb[192].mxu1 %vm1899_vm1, %v2975_v3 }
 0x3e6   : > { %7459 = vmatprep.mubr.msk.bf16.mxu1 %vm8513_vm0, %v10660_v24 }
 0x3e8   : > { %v2550_v5 = vpop.f32.mrb[88].mxu1 }
 0x3e9   : > { %v9648_v20 = vadd.f32 %v2550_v5, %v9553_v13  ;;  %v7337_v1 = vpop.f32.mrb[89].mxu1  ;;  %v8427_v13 = vld [vmem:[%s10653_s3 + $0x88] sm:$0xff]  }
 0x3ea   : > { %v2553_v30 = vpop.f32.mrb[90].mxu1 }
 0x3eb   : > { %v9654_v48 = vadd.f32 %v2553_v30, %v9561_v28  ;;  %v7338_v0 = vpop.f32.mrb[91].mxu1 }
 0x3ed   : > { %7460 = vmatmul.mubr.msk.bf16.vlgmr.msra.gmra.mrb[196].mxu1 %vm1899_vm1, %v9233_v37 }
 0x3ee   : > { %7488 = vmatpush3.bf16.msra.mxu1 %v8426_v25  ;;  %7463 = vmatprep.mubr.msk.bf16.mxu1 %vm8513_vm0, %v10660_v24 }
 0x3ef   : > { %7489 = vmatprep.subr.bf16.mxu1 %v10660_v24 }
 0x3f0   : > { %v2558_v3 = vpop.f32.mrb[92].mxu1 }
 0x3f1   : > { %v9665_v38 = vadd.f32 %v2558_v3, %v9575_v52  ;;  %v7341_v28 = vpop.f32.mrb[93].mxu1 }
 0x3f2   : > { %v2561_v27 = vpop.f32.mrb[94].mxu1  ;;  %7490 = vmatpush3.bf16.msra.mxu1 %v8427_v13 }
 0x3f3   : > { %v9668_v9 = vadd.f32 %v2561_v27, %v9580_v60  ;;  %v7342_v37 = vpop.f32.mrb[95].mxu1  ;;  %7519 = vmatprep.subr.bf16.mxu1 %v10660_v24 }
 0x3f5   : > { %7464 = vmatmul.mubr.msk.bf16.gmra.mrb[200].mxu1 %vm1899_vm1, %v9255_v47 }
 0x3f6   : > { %7467 = vmatprep.mubr.msk.bf16.mxu1 %vm8513_vm0, %v10660_v24 }
 0x3f8   : > { %v2566_v42 = vpop.f32.mrb[96].mxu1 }
 0x3f9   : > { %v9676_v41 = vadd.f32 %v2566_v42, %v9590_v4  ;;  %v7345_v52 = vpop.f32.mrb[97].mxu1 }
 0x3fa   : > { %v2569_v35 = vpop.f32.mrb[98].mxu1 }
 0x3fb   : > { %v9679_v19 = vadd.f32 %v2569_v35, %v9595_v10  ;;  %v7346_v60 = vpop.f32.mrb[99].mxu1  ;;  %v3110_v10 = vld [vmem:[#allocation2 + $0xe0] sm:$0x7f] }
 0x3fc   : > { %v3170_v0 = vshrl.u32 %v3110_v10, 16  ;;  %v3173_v13 = vshll.u32 %v3110_v10, 16 }
 0x3fd   : > { %7468 = vmatmul.mubr.msk.bf16.gmra.mrb[204].mxu1 %vm1899_vm1, %v9277_v14 }
 0x3fe   : > { %7471 = vmatprep.mubr.msk.bf16.mxu1 %vm8513_vm0, %v10660_v24  ;;  %v3172_v37 = vrot.slane %v3170_v0, 4  ;;  %v3175_v42 = vrot.slane %v3173_v13, 5 }
 0x400   : > { %v2574_v47 = vpop.f32.mrb[100].mxu1  ;;  %v3176_v52 = vor.u32 %v3175_v42, %v3172_v37 }
 0x401   : > { %v9686_v5 = vadd.f32 %v2574_v47, %v9604_v18  ;;  %v7349_v1 = vpop.f32.mrb[101].mxu1 }
 0x402   : > { %v2577_v30 = vpop.f32.mrb[102].mxu1  ;;  %v3177_v47 = vsel %vm2412_vm5, %v9315_v36, %v3176_v52 }
 0x403   : > { %v9689_v4 = vadd.f32 %v2577_v30, %v9609_v34  ;;  %v7350_v25 = vpop.f32.mrb[103].mxu1 }
 0x405   : > { %7472 = vmatmul.mubr.msk.bf16.gmra.mrb[208].mxu1 %vm1899_vm1, %v9299_v51 }
 0x406   : > { %7475 = vmatprep.mubr.msk.bf16.mxu1 %vm8513_vm0, %v10660_v24 }
 0x408   : > { %v2582_v14 = vpop.f32.mrb[104].mxu1 }
 0x409   : > { %v9696_v3 = vadd.f32 %v2582_v14, %v9618_v7  ;;  %v7353_v18 = vpop.f32.mrb[105].mxu1  ;;  %v8495_v14 = vld [vmem:[#allocation2 + $0x8] sm:$0xff] }
 0x40a   : > { %v2585_v28 = vpop.f32.mrb[106].mxu1  ;;  %v3328_v0 = vrot.slane %v8495_v14, 5 }
 0x40b   : > { %v9699_v27 = vadd.f32 %v2585_v28, %v9623_v56  ;;  %v7354_v34 = vpop.f32.mrb[107].mxu1  ;;  %v8496_v28 = vld [vmem:[#allocation2] sm:$0xe0] }
 0x40c   : > { %v3327_v34 = vrot.slane %v8496_v28, 5 }
 0x40d   : > { %7476 = vmatmul.mubr.msk.bf16.gmra.mrb[212].mxu1 %vm1899_vm1, %v9319_v39 }
 0x40e   : > { %7479 = vmatprep.mubr.msk.bf16.mxu1 %vm8513_vm0, %v10660_v24 }
 0x410   : > { %v2590_v51 = vpop.f32.mrb[108].mxu1 }
 0x411   : > { %v7357_v35 = vpop.f32.mrb[109].mxu1  ;;  %v3329_v51 = vsel %vm3326_vm6, %v3327_v34, %v3328_v0 }
 0x412   : > { %v2593_v60 = vpop.f32.mrb[110].mxu1  ;;  %v8497_v35 = vld [vmem:[#allocation2 + $0x10] sm:$0xff] }
 0x413   : > { %v7358_v7 = vpop.f32.mrb[111].mxu1  ;;  %v3330_v60 = vrot.slane %v8497_v35, 5 }
 0x415   : > { %7480 = vmatmul.mubr.msk.bf16.gmra.mrb[216].mxu1 %vm1899_vm1, %v3177_v47 }
 0x416   : > { %7483 = vmatprep.mubr.msk.bf16.mxu1 %vm8513_vm0, %v10660_v24 }
 0x418   : > { %v2688_v56 = vpop.f32.mrb[112].mxu1 }
 0x419   : > { %v9711_v1 = vadd.f32 %v2688_v56, %v9639_v6  ;;  %v7365_v39 = vpop.f32.mrb[113].mxu1 }
 0x41a   : > { %v2691_v30 = vpop.f32.mrb[114].mxu1 }
 0x41b   : > { %v9714_v25 = vadd.f32 %v2691_v30, %v9642_v58  ;;  %v7366_v10 = vpop.f32.mrb[115].mxu1  ;;  %v8428_v58 = vld [vmem:[%s10653_s3 + $0x90] sm:$0xff]   ;;  %v3331_v30 = vsel %vm3326_vm6, %v3328_v0, %v3330_v60 }
 0x41d   : > { %7484 = vmatmul.mubr.msk.bf16.gmra.mrb[220].mxu1 %vm1899_vm1, %v3176_v52 }
 0x41e   : > { %7491 = vmatprep.mubr.msk.bf16.mxu1 %vm8513_vm0, %v10660_v24 }
 0x420   : > { %v2696_v36 = vpop.f32.mrb[116].mxu1 }
 0x421   : > { %v9720_v13 = vadd.f32 %v2696_v36, %v9648_v20  ;;  %v7369_v18 = vpop.f32.mrb[117].mxu1  ;;  %v8429_v20 = vld [vmem:[%s10653_s3 + $0x98] sm:$0xff]  }
 0x422   : > { %v2699_v6 = vpop.f32.mrb[118].mxu1  ;;  %v8498_v36 = vld [vmem:[#allocation2 + $0x18] sm:$0xff] }
 0x423   : > { %v9726_v37 = vadd.f32 %v2699_v6, %v9654_v48  ;;  %v7370_v42 = vpop.f32.mrb[119].mxu1 }
 0x425   : > { %7492 = vmatmul.mubr.msk.bf16.vlgmr.msra.gmra.mrb[224].mxu1 %vm1899_vm1, %v3329_v51 }
 0x426   : > { %7520 = vmatpush3.bf16.msra.mxu1 %v8428_v58  ;;  %7495 = vmatprep.mubr.msk.bf16.mxu1 %vm8513_vm0, %v10660_v24  ;;  %v8499_v58 = vld [vmem:[#allocation2 + $0x20] sm:$0xff] }
 0x427   : > { %7521 = vmatprep.subr.bf16.mxu1 %v10660_v24  ;;  %v3334_v42 = vrot.slane %v8499_v58, 5 }
 0x428   : > { %v2704_v52 = vpop.f32.mrb[120].mxu1 }
 0x429   : > { %v9737_v48 = vadd.f32 %v2704_v52, %v9665_v38  ;;  %v7373_v7 = vpop.f32.mrb[121].mxu1  ;;  %v3332_v38 = vrot.slane %v8498_v36, 5 }
 0x42a   : > { %v2707_v47 = vpop.f32.mrb[122].mxu1  ;;  %7522 = vmatpush3.bf16.msra.mxu1 %v8429_v20  ;;  %v8500_v7 = vld [vmem:[#allocation2 + $0x28] sm:$0xff] }
 0x42b   : > { %v9740_v56 = vadd.f32 %v2707_v47, %v9668_v9  ;;  %v7374_v39 = vpop.f32.mrb[123].mxu1  ;;  %7995 = vmatprep.subr.bf16.mxu1 %v10660_v24  ;;  %v3333_v34 = vsel %vm3326_vm6, %v3330_v60, %v3332_v38  ;;  %v3335_v35 = vsel %vm3326_vm6, %v3332_v38, %v3334_v42  ;;  %v3336_v47 = vrot.slane %v8500_v7, 5  ;;  %v3313_v38 = vld [vmem:[#allocation2 + $0x30] sm:$0x7f] }
 0x42d   : > { %7496 = vmatmul.mubr.msk.bf16.gmra.mrb[228].mxu1 %vm1899_vm1, %v3331_v30  ;;  %v3337_v36 = vsel %vm3326_vm6, %v3334_v42, %v3336_v47 }
 0x42e   : > { %7499 = vmatprep.mubr.msk.bf16.mxu1 %vm8513_vm0, %v10660_v24 }
 0x430   : > { %v2712_v10 = vpop.f32.mrb[124].mxu1 }
 0x431   : > { %v9748_v14 = vadd.f32 %v2712_v10, %v9676_v41  ;;  %v7377_v18 = vpop.f32.mrb[125].mxu1 }
 0x432   : > { %v2715_v6 = vpop.f32.mrb[126].mxu1 }
 0x433   : > { %v9751_v9 = vadd.f32 %v2715_v6, %v9679_v19  ;;  %v7378_v28 = vpop.f32.mrb[127].mxu1  ;;  %v3338_v6 = vrot.slane %v3313_v38, 5 }
 0x435   : > { %7500 = vmatmul.mubr.msk.bf16.gmra.mrb[232].mxu1 %vm1899_vm1, %v3333_v34 }
 0x436   : > { %7503 = vmatprep.mubr.msk.bf16.mxu1 %vm8513_vm0, %v10660_v24 }
 0x438   : > { %v2720_v0 = vpop.f32.mrb[128].mxu1 }
 0x439   : > { %v9758_v51 = vadd.f32 %v2720_v0, %v9686_v5  ;;  %v7381_v41 = vpop.f32.mrb[129].mxu1  ;;  %v3339_v0 = vsel %vm3326_vm6, %v3336_v47, %v3338_v6 }
 0x43a   : > { %v2723_v20 = vpop.f32.mrb[130].mxu1 }
 0x43b   : > { %v9761_v52 = vadd.f32 %v2723_v20, %v9689_v4  ;;  %v7382_v19 = vpop.f32.mrb[131].mxu1 }
 0x43d   : > { %7504 = vmatmul.mubr.msk.bf16.gmra.mrb[236].mxu1 %vm1899_vm1, %v3335_v35  ;;  %v9788_v35 = vld [vmem:[#allocation2 + $0x48] sm:$0xff] }
 0x43e   : > { %7507 = vmatprep.mubr.msk.bf16.mxu1 %vm8513_vm0, %v10660_v24  ;;  %v3495_v47 = vrot.slane %v9788_v35, 1 }
 0x440   : > { %v2728_v60 = vpop.f32.mrb[132].mxu1 }
 0x441   : > { %v9768_v39 = vadd.f32 %v2728_v60, %v9696_v3  ;;  %v7385_v5 = vpop.f32.mrb[133].mxu1  ;;  %v9792_v60 = vld [vmem:[#allocation2 + $0x40] sm:$0xfe] }
 0x442   : > { %v2731_v30 = vpop.f32.mrb[134].mxu1 }
 0x443   : > { %v9771_v10 = vadd.f32 %v2731_v30, %v9699_v27  ;;  %v7386_v4 = vpop.f32.mrb[135].mxu1  ;;  %v3494_v30 = vrot.slane %v9792_v60, 1 }
 0x445   : > { %7508 = vmatmul.mubr.msk.bf16.gmra.mrb[240].mxu1 %vm1899_vm1, %v3337_v36  ;;  %v3496_v38 = vsel %vm3493_vm7, %v3494_v30, %v3495_v47 }
 0x446   : > { %7511 = vmatprep.mubr.msk.bf16.mxu1 %vm8513_vm0, %v10660_v24 }
 0x448   : > { %v2736_v18 = vpop.f32.mrb[136].mxu1 }
 0x449   : > { %v7389_v28 = vpop.f32.mrb[137].mxu1  ;;  %v9804_v18 = vld [vmem:[#allocation2 + $0x50] sm:$0xff] }
 0x44a   : > { %v2739_v34 = vpop.f32.mrb[138].mxu1 }
 0x44b   : > { %v7390_v3 = vpop.f32.mrb[139].mxu1 }
 0x44d   : > { %7512 = vmatmul.mubr.msk.bf16.gmra.mrb[244].mxu1 %vm1899_vm1, %v3339_v0  ;;  %v8502_v0 = vld [vmem:[%s10653_s3 + $0xa8] sm:$0xff]  }
 0x44e   : > { %7515 = vmatprep.mubr.msk.bf16.mxu1 %vm8513_vm0, %v10660_v24 }
 0x450   : > { %v2854_v27 = vpop.f32.mrb[140].mxu1 }
 0x451   : > { %v9782_v58 = vadd.f32 %v2854_v27, %v9711_v1  ;;  %v7397_v42 = vpop.f32.mrb[141].mxu1 }
 0x452   : > { %v2857_v41 = vpop.f32.mrb[142].mxu1 }
 0x453   : > { %v9785_v20 = vadd.f32 %v2857_v41, %v9714_v25  ;;  %v7398_v19 = vpop.f32.mrb[143].mxu1 }
 0x454   : > { %v9825_v19 = vld [vmem:[#allocation2 + $0x58] sm:$0xff] }
 0x455   : > { %7516 = vmatmul.mubr.msk.bf16.gmra.mrb[248].mxu1 %vm1899_vm1, %v3338_v6 }
 0x456   : > { %7523 = vmatprep.mubr.msk.bf16.mxu1 %vm8513_vm0, %v10660_v24 }
 0x458   : > { %v2862_v7 = vpop.f32.mrb[144].mxu1 }
 0x459   : > { %v9796_v1 = vadd.f32 %v2862_v7, %v9720_v13  ;;  %v7401_v5 = vpop.f32.mrb[145].mxu1  ;;  %v8501_v13 = vld [vmem:[%s10653_s3 + $0xa0] sm:$0xff]   ;;  %v3499_v7 = vrot.slane %v9825_v19, 1 }
 0x45a   : > { %v2865_v25 = vpop.f32.mrb[146].mxu1 }
 0x45b   : > { %v9800_v4 = vadd.f32 %v2865_v25, %v9726_v37  ;;  %v7402_v36 = vpop.f32.mrb[147].mxu1  ;;  %v3497_v37 = vrot.slane %v9804_v18, 1 }
 0x45d   : > { %7524 = vmatmul.mubr.msk.bf16.vlgmr.msra.gmra.mrb[252].mxu1 %vm1899_vm1, %v3496_v38  ;;  %v3498_v41 = vsel %vm3493_vm7, %v3495_v47, %v3497_v37  ;;  %v3500_v47 = vsel %vm3493_vm7, %v3497_v37, %v3499_v7  ;;  %v9838_v38 = vld [vmem:[#allocation2 + $0x60] sm:$0xff] }
 0x45e   : > { %7997 = vmatpush3.bf16.msra.mxu1 %v8501_v13  ;;  %7527 = vmatprep.mubr.msk.bf16.mxu1 %vm8513_vm0, %v10660_v24 }
 0x45f   : > { %7996 = vmatprep.subr.bf16.mxu1 %v10660_v24 }
 0x460   : > { %v2870_v6 = vpop.f32.mrb[148].mxu1 }
 0x461   : > { %v9814_v28 = vadd.f32 %v2870_v6, %v9737_v48  ;;  %v7405_v34 = vpop.f32.mrb[149].mxu1  ;;  %v3501_v6 = vrot.slane %v9838_v38, 1 }
 0x462   : > { %v2873_v3 = vpop.f32.mrb[150].mxu1  ;;  %7998 = vmatpush3.bf16.msra.mxu1 %v8502_v0 }
 0x463   : > { %v9820_v27 = vadd.f32 %v2873_v3, %v9740_v56  ;;  %v7406_v42 = vpop.f32.mrb[151].mxu1  ;;  %7583 = vmatprep.subr.bf16.mxu1 %v10660_v24  ;;  %v3502_v37 = vsel %vm3493_vm7, %v3499_v7, %v3501_v6 }
 0x464   : > { %v9851_v42 = vld [vmem:[#allocation2 + $0x68] sm:$0xff] }
 0x465   : > { %7528 = vmatmul.mubr.msk.bf16.gmra.mrb[0].mxu1 %vm1899_vm1, %v3498_v41 }
 0x466   : > { %7531 = vmatprep.mubr.msk.bf16.mxu1 %vm8513_vm0, %v10660_v24 }
 0x468   : > { %v2878_v48 = vpop.f32.mrb[152].mxu1 }
 0x469   : > { %v9831_v5 = vadd.f32 %v2878_v48, %v9748_v14  ;;  %v7409_v56 = vpop.f32.mrb[153].mxu1  ;;  %v3503_v48 = vrot.slane %v9851_v42, 1 }
 0x46a   : > { %v2881_v25 = vpop.f32.mrb[154].mxu1 }
 0x46b   : > { %v9834_v30 = vadd.f32 %v2881_v25, %v9751_v9  ;;  %v7410_v36 = vpop.f32.mrb[155].mxu1  ;;  %v3504_v7 = vsel %vm3493_vm7, %v3501_v6, %v3503_v48 }
 0x46d   : > { %7532 = vmatmul.mubr.msk.bf16.gmra.mrb[4].mxu1 %vm1899_vm1, %v3500_v47  ;;  %v3480_v47 = vld [vmem:[#allocation2 + $0x70] sm:$0x7] }
 0x46e   : > { %7535 = vmatprep.mubr.msk.bf16.mxu1 %vm8513_vm0, %v10660_v24 }
 0x470   : > { %v2886_v13 = vpop.f32.mrb[156].mxu1 }
 0x471   : > { %v9844_v14 = vadd.f32 %v2886_v13, %v9758_v51  ;;  %v7413_v34 = vpop.f32.mrb[157].mxu1 }
 0x472   : > { %v2889_v3 = vpop.f32.mrb[158].mxu1  ;;  %v3505_v34 = vrot.slane %v3480_v47, 1 }
 0x473   : > { %v9847_v9 = vadd.f32 %v2889_v3, %v9761_v52  ;;  %v7414_v0 = vpop.f32.mrb[159].mxu1 }
 0x475   : > { %7536 = vmatmul.mubr.msk.bf16.gmra.mrb[8].mxu1 %vm1899_vm1, %v3502_v37  ;;  %v3506_v37 = vsel %vm3493_vm7, %v3503_v48, %v3505_v34  ;;  %v3835_v48 = vshrl.u32 %v9788_v35, 16 }
 0x476   : > { %7539 = vmatprep.mubr.msk.bf16.mxu1 %vm8513_vm0, %v10660_v24 }
 0x478   : > { %v2894_v41 = vpop.f32.mrb[160].mxu1 }
 0x479   : > { %v9857_v51 = vadd.f32 %v2894_v41, %v9768_v39  ;;  %v7417_v56 = vpop.f32.mrb[161].mxu1 }
 0x47a   : > { %v2897_v25 = vpop.f32.mrb[162].mxu1 }
 0x47b   : > { %v9860_v52 = vadd.f32 %v2897_v25, %v9771_v10  ;;  %v7418_v36 = vpop.f32.mrb[163].mxu1 }
 0x47d   : > { %7540 = vmatmul.mubr.msk.bf16.gmra.mrb[12].mxu1 %vm1899_vm1, %v3504_v7  ;;  %v3838_v7 = vshll.u32 %v9788_v35, 16 }
 0x47e   : > { %7543 = vmatprep.mubr.msk.bf16.mxu1 %vm8513_vm0, %v10660_v24 }
 0x47f   : > { %v3840_v35 = vrot.slane %v3838_v7, 2 }
 0x480   : > { %v2902_v13 = vpop.f32.mrb[164].mxu1 }
 0x481   : > { %v7421_v3 = vpop.f32.mrb[165].mxu1 }
 0x482   : > { %v2905_v0 = vpop.f32.mrb[166].mxu1 }
 0x483   : > { %v7422_v39 = vpop.f32.mrb[167].mxu1  ;;  %v3830_v0 = vshll.u32 %v9792_v60, 16 }
 0x485   : > { %7544 = vmatmul.mubr.msk.bf16.gmra.mrb[16].mxu1 %vm1899_vm1, %v3506_v37 }
 0x486   : > { %7547 = vmatprep.mubr.msk.bf16.mxu1 %vm8513_vm0, %v10660_v24 }
 0x488   : > { %v3043_v10 = vpop.f32.mrb[168].mxu1 }
 0x489   : > { %v7429_v6 = vpop.f32.mrb[169].mxu1  ;;  %v9871_v41 = vadd.f32 %v3043_v10, %v9782_v58  ;;  %v3827_v58 = vshrl.u32 %v9792_v60, 16  ;;  %v3837_v10 = vrot.slane %v3835_v48, 1  ;;  %v8431_v60 = vld [vmem:[%s10653_s3 + $0xb8] sm:$0xff]   ;;  %v3847_v48 = vshll.u32 %v9804_v18, 16 }
 0x48a   : > { %v3046_v56 = vpop.f32.mrb[170].mxu1  ;;  %v3832_v6 = vrot.slane %v3830_v0, 2 }
 0x48b   : > { %v7430_v25 = vpop.f32.mrb[171].mxu1  ;;  %v9874_v36 = vadd.f32 %v3046_v56, %v9785_v20  ;;  %v3841_v56 = vor.u32 %v3840_v35, %v3837_v10 }
 0x48c   : > { %v3844_v25 = vshrl.u32 %v9804_v18, 16 }
 0x48d   : > { %7548 = vmatmul.mubr.msk.bf16.gmra.mrb[20].mxu1 %vm1899_vm1, %v3505_v34  ;;  %v8430_v34 = vld [vmem:[%s10653_s3 + $0xb0] sm:$0xff]  }
 0x48e   : > { %7579 = vmatprep.mubr.msk.bf16.mxu1 %vm8513_vm0, %v10660_v24 }
 0x490   : > { %v3051_v47 = vpop.f32.mrb[172].mxu1 }
 0x491   : > { %v7433_v13 = vpop.f32.mrb[173].mxu1  ;;  %v9882_v3 = vadd.f32 %v3051_v47, %v9796_v1  ;;  %v3829_v1 = vrot.slane %v3827_v58, 1  ;;  %v8432_v58 = vld [vmem:[%s10653_s3 + $0xd0] sm:$0xff]  }
 0x492   : > { %v3054_v20 = vpop.f32.mrb[174].mxu1 }
 0x493   : > { %v7434_v39 = vpop.f32.mrb[175].mxu1  ;;  %v9890_v37 = vadd.f32 %v3054_v20, %v9800_v4  ;;  %v3833_v47 = vor.u32 %v3832_v6, %v3829_v1  ;;  %v3856_v1 = vshll.u32 %v9825_v19, 16 }
 0x494   : > { %v3849_v39 = vrot.slane %v3847_v48, 2 }
 0x495   : > { %7580 = vmatmul.mubr.msk.bf16.vlgmr.msra.gmra.mrb[24].mxu1 %vm1899_vm1, %v8936_v54  ;;  %v3842_v18 = vsel %vm3825_vm8, %v3833_v47, %v3841_v56 }
 0x496   : > { %7584 = vmatpush3.bf16.msra.mxu1 %v8430_v34  ;;  %7587 = vmatprep.mubr.msk.bf16.mxu1 %vm8513_vm0, %v10660_v24  ;;  %v3846_v34 = vrot.slane %v3844_v25, 1 }
 0x497   : > { %7585 = vmatprep.subr.bf16.mxu1 %v10660_v24 }
 0x498   : > { %v3059_v4 = vpop.f32.mrb[176].mxu1  ;;  %v3850_v35 = vor.u32 %v3849_v39, %v3846_v34 }
 0x499   : > { %v7437_v7 = vpop.f32.mrb[177].mxu1  ;;  %v9903_v54 = vadd.f32 %v3059_v4, %v9814_v28  ;;  %v8433_v28 = vld [vmem:[%s10653_s3 + $0xd8] sm:$0xff]  }
 0x49a   : > { %v3062_v13 = vpop.f32.mrb[178].mxu1  ;;  %7586 = vmatpush3.bf16.msra.mxu1 %v8431_v60  ;;  %v3851_v7 = vsel %vm3825_vm8, %v3841_v56, %v3850_v35 }
 0x49b   : > { %v7438_v0 = vpop.f32.mrb[179].mxu1  ;;  %7647 = vmatprep.subr.bf16.mxu1 %v10660_v24  ;;  %v9910_v20 = vadd.f32 %v3062_v13, %v9820_v27  ;;  %v3853_v27 = vshrl.u32 %v9825_v19, 16  ;;  %v3858_v13 = vrot.slane %v3856_v1, 2 }
 0x49c   : > { %v3865_v0 = vshll.u32 %v9838_v38, 16 }
 0x49d   : > { %7588 = vmatmul.mubr.msk.bf16.vlgmr.msra.gmra.mrb[28].mxu1 %vm1899_vm1, %v3842_v18  ;;  %v3855_v47 = vrot.slane %v3853_v27, 1 }
 0x49e   : > { %7648 = vmatpush3.bf16.msra.mxu1 %v8432_v58  ;;  %7591 = vmatprep.mubr.msk.bf16.mxu1 %vm8513_vm0, %v10660_v24  ;;  %v3862_v58 = vshrl.u32 %v9838_v38, 16  ;;  %v3867_v27 = vrot.slane %v3865_v0, 2 }
 0x49f   : > { %7649 = vmatprep.subr.bf16.mxu1 %v10660_v24 }
 0x4a0   : > { %v3067_v10 = vpop.f32.mrb[180].mxu1 }
 0x4a1   : > { %v7441_v6 = vpop.f32.mrb[181].mxu1  ;;  %v9923_v60 = vadd.f32 %v3067_v10, %v9831_v5  ;;  %v3859_v5 = vor.u32 %v3858_v13, %v3855_v47  ;;  %v3864_v10 = vrot.slane %v3862_v58, 1  ;;  %v3819_v58 = vld [vmem:[#allocation2 + $0x70] sm:$0xf] }
 0x4a2   : > { %v3070_v4 = vpop.f32.mrb[182].mxu1  ;;  %7650 = vmatpush3.bf16.msra.mxu1 %v8433_v28  ;;  %v3871_v6 = vshrl.u32 %v9851_v42, 16 }
 0x4a3   : > { %v7442_v25 = vpop.f32.mrb[183].mxu1  ;;  %7711 = vmatprep.subr.bf16.mxu1 %v10660_v24  ;;  %v9927_v48 = vadd.f32 %v3070_v4, %v9834_v30  ;;  %v3860_v28 = vsel %vm3825_vm8, %v3850_v35, %v3859_v5  ;;  %v3868_v38 = vor.u32 %v3867_v27, %v3864_v10 }
 0x4a4   : > { %v3873_v13 = vrot.slane %v3871_v6, 1 }
 0x4a5   : > { %7592 = vmatmul.mubr.msk.bf16.gmra.mrb[32].mxu1 %vm1899_vm1, %v3851_v7  ;;  %v3869_v47 = vsel %vm3825_vm8, %v3859_v5, %v3868_v38 }
 0x4a6   : > { %7595 = vmatprep.mubr.msk.bf16.mxu1 %vm8513_vm0, %v10660_v24 }
 0x4a8   : > { %v3075_v19 = vpop.f32.mrb[184].mxu1 }
 0x4a9   : > { %v7445_v18 = vpop.f32.mrb[185].mxu1  ;;  %v9936_v34 = vadd.f32 %v3075_v19, %v9844_v14  ;;  %v3874_v14 = vshll.u32 %v9851_v42, 16 }
 0x4aa   : > { %v3078_v30 = vpop.f32.mrb[186].mxu1  ;;  %v3880_v18 = vshrl.u32 %v3819_v58, 16 }
 0x4ab   : > { %v7446_v39 = vpop.f32.mrb[187].mxu1  ;;  %v9939_v56 = vadd.f32 %v3078_v30, %v9847_v9  ;;  %v3876_v19 = vrot.slane %v3874_v14, 2 }
 0x4ac   : > { %v3882_v10 = vrot.slane %v3880_v18, 1 }
 0x4ad   : > { %7596 = vmatmul.mubr.msk.bf16.gmra.mrb[36].mxu1 %vm1899_vm1, %v3860_v28  ;;  %v3877_v0 = vor.u32 %v3876_v19, %v3873_v13 }
 0x4ae   : > { %7599 = vmatprep.mubr.msk.bf16.mxu1 %vm8513_vm0, %v10660_v24 }
 0x4b0   : > { %v3083_v1 = vpop.f32.mrb[188].mxu1 }
 0x4b1   : > { %v7449_v4 = vpop.f32.mrb[189].mxu1  ;;  %v9948_v25 = vadd.f32 %v3083_v1, %v9857_v51  ;;  %v3883_v51 = vshll.u32 %v3819_v58, 16 }
 0x4b2   : > { %v3086_v9 = vpop.f32.mrb[190].mxu1 }
 0x4b3   : > { %v7450_v7 = vpop.f32.mrb[191].mxu1  ;;  %v9951_v35 = vadd.f32 %v3086_v9, %v9860_v52  ;;  %v3878_v52 = vsel %vm3825_vm8, %v3868_v38, %v3877_v0  ;;  %v3885_v27 = vrot.slane %v3883_v51, 2 }
 0x4b5   : > { %7600 = vmatmul.mubr.msk.bf16.gmra.mrb[40].mxu1 %vm1899_vm1, %v3869_v47  ;;  %v3886_v1 = vor.u32 %v3885_v27, %v3882_v10 }
 0x4b6   : > { %7603 = vmatprep.mubr.msk.bf16.mxu1 %vm8513_vm0, %v10660_v24 }
 0x4b7   : > { %v3887_v38 = vsel %vm3825_vm8, %v3877_v0, %v3886_v1  ;;  %v9982_v0 = vld [vmem:[#allocation2 + $0xb8] sm:$0xfe] }
 0x4b8   : > { %v3091_v42 = vpop.f32.mrb[192].mxu1 }
 0x4b9   : > { %v7453_v30 = vpop.f32.mrb[193].mxu1 }
 0x4ba   : > { %v3094_v39 = vpop.f32.mrb[194].mxu1 }
 0x4bb   : > { %v7454_v28 = vpop.f32.mrb[195].mxu1 }
 0x4bc   : > { %v8434_v28 = vld [vmem:[%s10653_s3 + $0xf0] sm:$0xff]  }
 0x4bd   : > { %7604 = vmatmul.mubr.msk.bf16.gmra.mrb[44].mxu1 %vm1899_vm1, %v3878_v52 }
 0x4be   : > { %7607 = vmatprep.mubr.msk.bf16.mxu1 %vm8513_vm0, %v10660_v24 }
 0x4c0   : > { %v3245_v5 = vpop.f32.mrb[196].mxu1 }
 0x4c1   : > { %v9962_v6 = vadd.f32 %v3245_v5, %v9871_v41  ;;  %v7461_v14 = vpop.f32.mrb[197].mxu1  ;;  %v9997_v5 = vld [vmem:[#allocation2 + $0xc8] sm:$0xff] }
 0x4c2   : > { %v3248_v4 = vpop.f32.mrb[198].mxu1 }
 0x4c3   : > { %v9965_v9 = vadd.f32 %v3248_v4, %v9874_v36  ;;  %v7462_v7 = vpop.f32.mrb[199].mxu1  ;;  %v9978_v36 = vld [vmem:[#allocation2 + $0xc0] sm:$0xff] }
 0x4c4   : > { %v4203_v51 = vrot.slane %v9978_v36, 1 }
 0x4c5   : > { %7608 = vmatmul.mubr.msk.bf16.gmra.mrb[48].mxu1 %vm1899_vm1, %v3887_v38 }
 0x4c6   : > { %7611 = vmatprep.mubr.msk.bf16.mxu1 %vm8513_vm0, %v10660_v24 }
 0x4c8   : > { %v3253_v47 = vpop.f32.mrb[200].mxu1 }
 0x4c9   : > { %v9972_v13 = vadd.f32 %v3253_v47, %v9882_v3  ;;  %v7465_v19 = vpop.f32.mrb[201].mxu1 }
 0x4ca   : > { %v3256_v41 = vpop.f32.mrb[202].mxu1 }
 0x4cb   : > { %v9975_v58 = vadd.f32 %v3256_v41, %v9890_v37  ;;  %v7466_v42 = vpop.f32.mrb[203].mxu1  ;;  %v4202_v37 = vrot.slane %v9982_v0, 1  ;;  %v10015_v41 = vld [vmem:[#allocation2 + $0xd0] sm:$0xff] }
 0x4cc   : > { %v4207_v42 = vrot.slane %v10015_v41, 1 }
 0x4cd   : > { %7612 = vmatmul.mubr.msk.bf16.gmra.mrb[52].mxu1 %vm1899_vm1, %v3886_v1  ;;  %v4204_v27 = vsel %vm3493_vm7, %v4202_v37, %v4203_v51 }
 0x4ce   : > { %7651 = vmatprep.mubr.msk.bf16.mxu1 %vm8513_vm0, %v10660_v24 }
 0x4d0   : > { %v3261_v18 = vpop.f32.mrb[204].mxu1 }
 0x4d1   : > { %v9986_v3 = vadd.f32 %v3261_v18, %v9903_v54  ;;  %v7469_v30 = vpop.f32.mrb[205].mxu1  ;;  %v8435_v54 = vld [vmem:[%s10653_s3 + $0xf8] sm:$0xff]  }
 0x4d2   : > { %v3264_v39 = vpop.f32.mrb[206].mxu1 }
 0x4d3   : > { %v9993_v52 = vadd.f32 %v3264_v39, %v9910_v20  ;;  %v7470_v10 = vpop.f32.mrb[207].mxu1  ;;  %v4205_v20 = vrot.slane %v9997_v5, 1 }
 0x4d5   : > { %7652 = vmatmul.mubr.msk.bf16.vlgmr.msra.gmra.mrb[56].mxu1 %vm1899_vm1, %v4204_v27  ;;  %v4206_v19 = vsel %vm3493_vm7, %v4203_v51, %v4205_v20  ;;  %v4208_v51 = vsel %vm3493_vm7, %v4205_v20, %v4207_v42 }
 0x4d6   : > { %7712 = vmatpush3.bf16.msra.mxu1 %v8434_v28  ;;  %7655 = vmatprep.mubr.msk.bf16.mxu1 %vm8513_vm0, %v10660_v24  ;;  %v10028_v28 = vld [vmem:[#allocation2 + $0xd8] sm:$0xff] }
 0x4d7   : > { %7713 = vmatprep.subr.bf16.mxu1 %v10660_v24  ;;  %v4209_v27 = vrot.slane %v10028_v28, 1 }
 0x4d8   : > { %v3269_v1 = vpop.f32.mrb[208].mxu1 }
 0x4d9   : > { %v10007_v14 = vadd.f32 %v3269_v1, %v9923_v60  ;;  %v7473_v4 = vpop.f32.mrb[209].mxu1  ;;  %v4210_v20 = vsel %vm3493_vm7, %v4207_v42, %v4209_v27 }
 0x4da   : > { %v3272_v7 = vpop.f32.mrb[210].mxu1  ;;  %7714 = vmatpush3.bf16.msra.mxu1 %v8435_v54 }
 0x4db   : > { %v10010_v38 = vadd.f32 %v3272_v7, %v9927_v48  ;;  %v7474_v47 = vpop.f32.mrb[211].mxu1  ;;  %7771 = vmatprep.subr.bf16.mxu1 %v10660_v24  ;;  %v10041_v7 = vld [vmem:[#allocation2 + $0xe0] sm:$0xff] }
 0x4dd   : > { %7656 = vmatmul.mubr.msk.bf16.gmra.mrb[60].mxu1 %vm1899_vm1, %v4206_v19  ;;  %v4211_v19 = vrot.slane %v10041_v7, 1 }
 0x4de   : > { %7659 = vmatprep.mubr.msk.bf16.mxu1 %vm8513_vm0, %v10660_v24 }
 0x4e0   : > { %v3277_v60 = vpop.f32.mrb[212].mxu1 }
 0x4e1   : > { %v10021_v18 = vadd.f32 %v3277_v60, %v9936_v34  ;;  %v7477_v48 = vpop.f32.mrb[213].mxu1 }
 0x4e2   : > { %v3280_v30 = vpop.f32.mrb[214].mxu1 }
 0x4e3   : > { %v10024_v39 = vadd.f32 %v3280_v30, %v9939_v56  ;;  %v7478_v37 = vpop.f32.mrb[215].mxu1  ;;  %v4212_v30 = vsel %vm3493_vm7, %v4209_v27, %v4211_v19 }
 0x4e5   : > { %7660 = vmatmul.mubr.msk.bf16.gmra.mrb[64].mxu1 %vm1899_vm1, %v4208_v51 }
 0x4e6   : > { %7663 = vmatprep.mubr.msk.bf16.mxu1 %vm8513_vm0, %v10660_v24 }
 0x4e8   : > { %v3285_v10 = vpop.f32.mrb[216].mxu1 }
 0x4e9   : > { %v10034_v34 = vadd.f32 %v3285_v10, %v9948_v25  ;;  %v7481_v54 = vpop.f32.mrb[217].mxu1 }
 0x4ea   : > { %v3288_v1 = vpop.f32.mrb[218].mxu1 }
 0x4eb   : > { %v10037_v56 = vadd.f32 %v3288_v1, %v9951_v35  ;;  %v7482_v4 = vpop.f32.mrb[219].mxu1  ;;  %v4189_v35 = vld [vmem:[#allocation2 + $0xe8] sm:$0x7] }
 0x4ec   : > { %v4213_v37 = vrot.slane %v4189_v35, 1 }
 0x4ed   : > { %7664 = vmatmul.mubr.msk.bf16.gmra.mrb[68].mxu1 %vm1899_vm1, %v4210_v20 }
 0x4ee   : > { %7667 = vmatprep.mubr.msk.bf16.mxu1 %vm8513_vm0, %v10660_v24  ;;  %v4214_v20 = vsel %vm3493_vm7, %v4211_v19, %v4213_v37 }
 0x4f0   : > { %v3293_v47 = vpop.f32.mrb[220].mxu1 }
 0x4f1   : > { %v7485_v25 = vpop.f32.mrb[221].mxu1  ;;  %v4541_v47 = vshrl.u32 %v9978_v36, 16 }
 0x4f2   : > { %v3296_v60 = vpop.f32.mrb[222].mxu1  ;;  %v4544_v25 = vshll.u32 %v9978_v36, 16 }
 0x4f3   : > { %v7486_v48 = vpop.f32.mrb[223].mxu1 }
 0x4f5   : > { %7668 = vmatmul.mubr.msk.bf16.gmra.mrb[72].mxu1 %vm1899_vm1, %v4212_v30  ;;  %v4536_v30 = vshll.u32 %v9982_v0, 16 }
 0x4f6   : > { %7671 = vmatprep.mubr.msk.bf16.mxu1 %vm8513_vm0, %v10660_v24 }
 0x4f8   : > { %v3407_v42 = vpop.f32.mrb[224].mxu1 }
 0x4f9   : > { %v10051_v51 = vadd.f32 %v3407_v42, %v9962_v6  ;;  %v7493_v10 = vpop.f32.mrb[225].mxu1  ;;  %v4543_v42 = vrot.slane %v4541_v47, 1 }
 0x4fa   : > { %v3410_v54 = vpop.f32.mrb[226].mxu1  ;;  %v4546_v10 = vrot.slane %v4544_v25, 2 }
 0x4fb   : > { %v10054_v1 = vadd.f32 %v3410_v54, %v9965_v9  ;;  %v7494_v4 = vpop.f32.mrb[227].mxu1  ;;  %v4533_v9 = vshrl.u32 %v9982_v0, 16 }
 0x4fc   : > { %v4547_v4 = vor.u32 %v4546_v10, %v4543_v42  ;;  %v4562_v42 = vshll.u32 %v10015_v41, 16 }
 0x4fd   : > { %7672 = vmatmul.mubr.msk.bf16.gmra.mrb[76].mxu1 %vm1899_vm1, %v4214_v20  ;;  %v4535_v36 = vrot.slane %v4533_v9, 1  ;;  %v4550_v20 = vshrl.u32 %v9997_v5, 16 }
 0x4fe   : > { %7675 = vmatprep.mubr.msk.bf16.mxu1 %vm8513_vm0, %v10660_v24 }
 0x4ff   : > { %v4552_v9 = vrot.slane %v4550_v20, 1 }
 0x500   : > { %v3415_v27 = vpop.f32.mrb[228].mxu1 }
 0x501   : > { %v10063_v6 = vadd.f32 %v3415_v27, %v9972_v13  ;;  %v7497_v60 = vpop.f32.mrb[229].mxu1  ;;  %v4538_v13 = vrot.slane %v4536_v30, 2  ;;  %v4553_v27 = vshll.u32 %v9997_v5, 16 }
 0x502   : > { %v3418_v48 = vpop.f32.mrb[230].mxu1 }
 0x503   : > { %v10068_v19 = vadd.f32 %v3418_v48, %v9975_v58  ;;  %v7498_v35 = vpop.f32.mrb[231].mxu1  ;;  %v4539_v47 = vor.u32 %v4538_v13, %v4535_v36  ;;  %v4555_v30 = vrot.slane %v4553_v27, 2 }
 0x505   : > { %7676 = vmatmul.mubr.msk.bf16.gmra.mrb[80].mxu1 %vm1899_vm1, %v4213_v37  ;;  %v4548_v48 = vsel %vm3825_vm8, %v4539_v47, %v4547_v4  ;;  %v4556_v35 = vor.u32 %v4555_v30, %v4552_v9  ;;  %v4571_v47 = vshll.u32 %v10028_v28, 16 }
 0x506   : > { %7715 = vmatprep.mubr.msk.bf16.mxu1 %vm8513_vm0, %v10660_v24 }
 0x507   : > { %v4557_v20 = vsel %vm3825_vm8, %v4547_v4, %v4556_v35 }
 0x508   : > { %v3423_v54 = vpop.f32.mrb[232].mxu1 }
 0x509   : > { %v10076_v0 = vadd.f32 %v3423_v54, %v9986_v3  ;;  %v7501_v58 = vpop.f32.mrb[233].mxu1  ;;  %v4559_v3 = vshrl.u32 %v10015_v41, 16 }
 0x50a   : > { %v3426_v60 = vpop.f32.mrb[234].mxu1  ;;  %v4564_v58 = vrot.slane %v4562_v42, 2 }
 0x50b   : > { %v10079_v25 = vadd.f32 %v3426_v60, %v9993_v52  ;;  %v7502_v37 = vpop.f32.mrb[235].mxu1  ;;  %v4561_v27 = vrot.slane %v4559_v3, 1  ;;  %v4573_v3 = vrot.slane %v4571_v47, 2 }
 0x50d   : > { %7716 = vmatmul.mubr.msk.bf16.vlgmr.msra.gmra.mrb[84].mxu1 %vm1899_vm1, %v4548_v48  ;;  %v4565_v41 = vor.u32 %v4564_v58, %v4561_v27 }
 0x50e   : > { %7719 = vmatprep.mubr.msk.bf16.mxu1 %vm8513_vm0, %v10660_v24 }
 0x50f   : > { %v4566_v30 = vsel %vm3825_vm8, %v4556_v35, %v4565_v41 }
 0x510   : > { %v3431_v5 = vpop.f32.mrb[236].mxu1 }
 0x511   : > { %v10088_v10 = vadd.f32 %v3431_v5, %v10007_v14  ;;  %v7505_v52 = vpop.f32.mrb[237].mxu1  ;;  %v4568_v14 = vshrl.u32 %v10028_v28, 16 }
 0x512   : > { %v3434_v36 = vpop.f32.mrb[238].mxu1  ;;  %v4580_v52 = vshll.u32 %v10041_v7, 16 }
 0x513   : > { %v10091_v13 = vadd.f32 %v3434_v36, %v10010_v38  ;;  %v7506_v54 = vpop.f32.mrb[239].mxu1  ;;  %v4570_v5 = vrot.slane %v4568_v14, 1  ;;  %v4526_v14 = vld [vmem:[#allocation2 + $0xe8] sm:$0xf] }
 0x515   : > { %7720 = vmatmul.mubr.msk.bf16.gmra.mrb[88].mxu1 %vm1899_vm1, %v4557_v20  ;;  %v4574_v28 = vor.u32 %v4573_v3, %v4570_v5 }
 0x516   : > { %7723 = vmatprep.mubr.msk.bf16.mxu1 %vm8513_vm0, %v10660_v24 }
 0x517   : > { %v4575_v27 = vsel %vm3825_vm8, %v4565_v41, %v4574_v28 }
 0x518   : > { %v3439_v60 = vpop.f32.mrb[240].mxu1 }
 0x519   : > { %v10100_v37 = vadd.f32 %v3439_v60, %v10021_v18  ;;  %v7509_v38 = vpop.f32.mrb[241].mxu1  ;;  %v4577_v18 = vshrl.u32 %v10041_v7, 16  ;;  %v4582_v60 = vrot.slane %v4580_v52, 2 }
 0x51a   : > { %v3442_v48 = vpop.f32.mrb[242].mxu1  ;;  %v4589_v38 = vshll.u32 %v4526_v14, 16 }
 0x51b   : > { %v10103_v4 = vadd.f32 %v3442_v48, %v10024_v39  ;;  %v7510_v9 = vpop.f32.mrb[243].mxu1  ;;  %v4579_v58 = vrot.slane %v4577_v18, 1 }
 0x51c   : > { %v4591_v3 = vrot.slane %v4589_v38, 2 }
 0x51d   : > { %7724 = vmatmul.mubr.msk.bf16.gmra.mrb[92].mxu1 %vm1899_vm1, %v4566_v30  ;;  %v4583_v47 = vor.u32 %v4582_v60, %v4579_v58 }
 0x51e   : > { %7727 = vmatprep.mubr.msk.bf16.mxu1 %vm8513_vm0, %v10660_v24 }
 0x520   : > { %v3447_v42 = vpop.f32.mrb[244].mxu1 }
 0x521   : > { %v10112_v36 = vadd.f32 %v3447_v42, %v10034_v34  ;;  %v7513_v39 = vpop.f32.mrb[245].mxu1  ;;  %v4586_v34 = vshrl.u32 %v4526_v14, 16 }
 0x522   : > { %v3450_v54 = vpop.f32.mrb[246].mxu1 }
 0x523   : > { %v10115_v35 = vadd.f32 %v3450_v54, %v10037_v56  ;;  %v7514_v20 = vpop.f32.mrb[247].mxu1  ;;  %v4584_v56 = vsel %vm3825_vm8, %v4574_v28, %v4583_v47  ;;  %v4588_v5 = vrot.slane %v4586_v34, 1 }
 0x525   : > { %7728 = vmatmul.mubr.msk.bf16.gmra.mrb[96].mxu1 %vm1899_vm1, %v4575_v27  ;;  %v4592_v42 = vor.u32 %v4591_v3, %v4588_v5 }
 0x526   : > { %7731 = vmatprep.mubr.msk.bf16.mxu1 %vm8513_vm0, %v10660_v24 }
 0x527   : > { %v4593_v28 = vsel %vm3825_vm8, %v4583_v47, %v4592_v42 }
 0x528   : > { %v3455_v7 = vpop.f32.mrb[248].mxu1 }
 0x529   : > { %v7517_v48 = vpop.f32.mrb[249].mxu1 }
 0x52a   : > { %v3458_v9 = vpop.f32.mrb[250].mxu1 }
 0x52b   : > { %v7518_v30 = vpop.f32.mrb[251].mxu1 }
 0x52d   : > { %7732 = vmatmul.mubr.msk.bf16.gmra.mrb[100].mxu1 %vm1899_vm1, %v4584_v56 }
 0x52e   : > { %7735 = vmatprep.mubr.msk.bf16.mxu1 %vm8513_vm0, %v10660_v24 }
 0x530   : > { %v3574_v41 = vpop.f32.mrb[252].mxu1 }
 0x531   : > { %v3628_v18 = vadd.f32 %v3574_v41, %v10051_v51  ;;  %v7525_v52 = vpop.f32.mrb[253].mxu1 }
 0x532   : > { %v3577_v39 = vpop.f32.mrb[254].mxu1 }
 0x533   : > { %v3629_v54 = vadd.f32 %v3577_v39, %v10054_v1  ;;  %v7526_v20 = vpop.f32.mrb[255].mxu1  ;;  %v10128_v27 = vadd.f32 %v9322_v45, %v3628_v18 }
 0x535   : > { %7736 = vmatmul.mubr.msk.bf16.gmra.mrb[104].mxu1 %vm1899_vm1, %v4593_v28  ;;  %v10133_v58 = vadd.f32 %v9327_v50, %v3629_v54 }
 0x536   : > { %7739 = vmatprep.mubr.msk.bf16.mxu1 %vm8513_vm0, %v10660_v24 }
 0x538   : > { %v3582_v60 = vpop.f32.mrb[0].mxu1 }
 0x539   : > { %v3630_v51 = vadd.f32 %v3582_v60, %v10063_v6  ;;  %v7529_v14 = vpop.f32.mrb[1].mxu1  ;;  %v8437_v60 = vld [vmem:[%s10655_s5 + $0x28] sm:$0xff]  }
 0x53a   : > { %v3585_v7 = vpop.f32.mrb[2].mxu1 }
 0x53b   : > { %v3631_v1 = vadd.f32 %v3585_v7, %v10068_v19  ;;  %v7530_v34 = vpop.f32.mrb[3].mxu1  ;;  %v10140_v45 = vadd.f32 %v9336_v57, %v3630_v51 }
 0x53c   : > { %v8438_v34 = vld [vmem:[%s10655_s5] sm:$0xff]  }
 0x53d   : > { %7740 = vmatmul.mubr.msk.bf16.gmra.mrb[108].mxu1 %vm1899_vm1, %v4592_v42  ;;  %v10144_v47 = vadd.f32 %v9341_v53, %v3631_v1 }
 0x53e   : > { %7779 = vmatprep.mubr.msk.bf16.mxu1 %vm8513_vm0, %v10660_v24  ;;  %7772 = vmatpush3.bf16.msra.mxu1 %v8438_v34 }
 0x53f   : > { %7773 = vmatprep.subr.bf16.mxu1 %v10660_v24 }
 0x540   : > { %v3590_v50 = vpop.f32.mrb[4].mxu1 }
 0x541   : > { %v3632_v38 = vadd.f32 %v3590_v50, %v10076_v0  ;;  %v7533_v6 = vpop.f32.mrb[5].mxu1  ;;  %v8440_v50 = vld [vmem:[%s10655_s5 + $0x8] sm:$0xff]  }
 0x542   : > { %v3593_v48 = vpop.f32.mrb[6].mxu1  ;;  %7774 = vmatpush3.bf16.msra.mxu1 %v8440_v50  ;;  %v8441_v6 = vld [vmem:[%s10655_s5 + $0x10] sm:$0xff]  }
 0x543   : > { %v3633_v9 = vadd.f32 %v3593_v48, %v10079_v25  ;;  %v7534_v19 = vpop.f32.mrb[7].mxu1  ;;  %v10151_v30 = vadd.f32 %v9352_v43, %v3632_v38  ;;  %v8436_v25 = vld [vmem:[%s10655_s5 + $0x20] sm:$0xff]   ;;  %7775 = vmatprep.subr.bf16.mxu1 %v10660_v24 }
 0x544   : > { %7744 = vmatpush3.bf16.msra.mxu0 %v8436_v25 }
 0x545   : > { %v10154_v57 = vadd.f32 %v9356_v61, %v3633_v9  ;;  %7745 = vmatprep.subr.bf16.mxu0 %v10660_v24 }
 0x546   : > { %7776 = vmatpush3.bf16.msra.mxu1 %v8441_v6 }
 0x547   : > { %7777 = vmatprep.subr.bf16.mxu1 %v10660_v24 }
 0x548   : > { %v3598_v56 = vpop.f32.mrb[8].mxu1  ;;  %7746 = vmatpush3.bf16.msra.mxu0 %v8437_v60 }
 0x549   : > { %v3634_v53 = vadd.f32 %v3598_v56, %v10088_v10  ;;  %v7537_v5 = vpop.f32.mrb[9].mxu1  ;;  %7747 = vmatprep.subr.bf16.mxu0 %v10660_v24  ;;  %v8442_v56 = vld [vmem:[%s10655_s5 + $0x18] sm:$0xff]  }
 0x54a   : > { %v3601_v3 = vpop.f32.mrb[10].mxu1  ;;  %7778 = vmatpush3.bf16.msra.mxu1 %v8442_v56 }
 0x54b   : > { %v3635_v41 = vadd.f32 %v3601_v3, %v10091_v13  ;;  %v7538_v42 = vpop.f32.mrb[11].mxu1  ;;  %v10159_v0 = vadd.f32 %v9360_v31, %v3634_v53  ;;  %7827 = vmatprep.subr.bf16.mxu1 %v10660_v24 }
 0x54c   : > { %v8439_v42 = vld [vmem:[%s10655_s5 + $0x30] sm:$0xff]  }
 0x54d   : > { %v10165_v43 = vadd.f32 %v9364_v26, %v3635_v41  ;;  %7748 = vmatpush3.bf16.msra.mxu0 %v8439_v42 }
 0x54e   : > { %7749 = vmatprep.subr.bf16.mxu0 %v10660_v24 }
 0x550   : > { %v3606_v61 = vpop.f32.mrb[12].mxu1 }
 0x551   : > { %v3636_v10 = vadd.f32 %v3606_v61, %v10100_v37  ;;  %v7541_v18 = vpop.f32.mrb[13].mxu1 }
 0x552   : > { %v3609_v52 = vpop.f32.mrb[14].mxu1 }
 0x553   : > { %v3637_v13 = vadd.f32 %v3609_v52, %v10103_v4  ;;  %v7542_v39 = vpop.f32.mrb[15].mxu1  ;;  %v10171_v31 = vadd.f32 %v9368_v2, %v3636_v10 }
 0x554   : > { %v8443_v39 = vld [vmem:[%s10655_s5 + $0x38] sm:$0xff]  }
 0x555   : > { %v10174_v54 = vadd.f32 %v9372_v15, %v3637_v13  ;;  %7750 = vmatpush3.bf16.msra.mxu0 %v8443_v39 }
 0x556   : > { %7799 = vmatprep.subr.bf16.mxu0 %v10660_v24 }
 0x558   : > { %v3614_v20 = vpop.f32.mrb[16].mxu1 }
 0x559   : > { %v3638_v26 = vadd.f32 %v3614_v20, %v10112_v36  ;;  %v7545_v28 = vpop.f32.mrb[17].mxu1 }
 0x55a   : > { %v3617_v37 = vpop.f32.mrb[18].mxu1 }
 0x55b   : > { %v3639_v51 = vadd.f32 %v3617_v37, %v10115_v35  ;;  %v7546_v14 = vpop.f32.mrb[19].mxu1  ;;  %v10182_v4 = vadd.f32 %v9376_v12, %v3638_v26 }
 0x55d   : > { %v10186_v2 = vadd.f32 %v9380_v32, %v3639_v51 }
 0x560   : > { %v3622_v15 = vpop.f32.mrb[20].mxu1 }
 0x561   : > { %v7549_v36 = vpop.f32.mrb[21].mxu1 }
 0x562   : > { %v3625_v7 = vpop.f32.mrb[22].mxu1 }
 0x563   : > { %v7550_v1 = vpop.f32.mrb[23].mxu1 }
 0x568   : > { %v3800_v35 = vpop.f32.mrb[24].mxu1 }
 0x569   : > { %v7581_v12 = vpop.f32.mrb[25].mxu1 }
 0x56a   : > { %v3803_v38 = vpop.f32.mrb[26].mxu1 }
 0x56b   : > { %v7582_v32 = vpop.f32.mrb[27].mxu1 }
 0x570   : > { %v3955_v48 = vpop.f32.mrb[28].mxu1 }
 0x571   : > { %v4009_v9 = vadd.f32 %v3955_v48, %v10128_v27  ;;  %v7589_v19 = vpop.f32.mrb[29].mxu1 }
 0x572   : > { %v3958_v53 = vpop.f32.mrb[30].mxu1 }
 0x573   : > { %v4010_v5 = vadd.f32 %v3958_v53, %v10133_v58  ;;  %v7590_v3 = vpop.f32.mrb[31].mxu1  ;;  %v4170_v41 = vadd.f32 %v9449_v17, %v4009_v9 }
 0x575   : > { %v4171_v27 = vadd.f32 %v9454_v62, %v4010_v5 }
 0x578   : > { %v3963_v25 = vpop.f32.mrb[32].mxu1 }
 0x579   : > { %v4011_v61 = vadd.f32 %v3963_v25, %v10140_v45  ;;  %v7593_v10 = vpop.f32.mrb[33].mxu1 }
 0x57a   : > { %v3966_v58 = vpop.f32.mrb[34].mxu1 }
 0x57b   : > { %v4012_v18 = vadd.f32 %v3966_v58, %v10144_v47  ;;  %v7594_v17 = vpop.f32.mrb[35].mxu1  ;;  %v4172_v52 = vadd.f32 %v9470_v40, %v4011_v61 }
 0x57d   : > { %v4173_v13 = vadd.f32 %v9476_v46, %v4012_v18 }
 0x580   : > { %v3971_v62 = vpop.f32.mrb[36].mxu1 }
 0x581   : > { %v4013_v20 = vadd.f32 %v3971_v62, %v10151_v30  ;;  %v7597_v45 = vpop.f32.mrb[37].mxu1 }
 0x582   : > { %v3974_v26 = vpop.f32.mrb[38].mxu1  ;;  %v10668_v45 = vld [vmem:[#allocation4_spill] sm:$0xff] }
 0x583   : > { %v4014_v28 = vadd.f32 %v3974_v26, %v10154_v57  ;;  %v7598_v47 = vpop.f32.mrb[39].mxu1  ;;  %v4174_v60 = vadd.f32 %v9486_v49, %v4013_v20 }
 0x585   : > { %v4175_v40 = vadd.f32 %v9492_v8, %v4014_v28 }
 0x588   : > { %v3979_v46 = vpop.f32.mrb[40].mxu1 }
 0x589   : > { %v4015_v37 = vadd.f32 %v3979_v46, %v10159_v0  ;;  %v7601_v51 = vpop.f32.mrb[41].mxu1 }
 0x58a   : > { %v3982_v14 = vpop.f32.mrb[42].mxu1 }
 0x58b   : > { %v4016_v15 = vadd.f32 %v3982_v14, %v10165_v43  ;;  %v7602_v36 = vpop.f32.mrb[43].mxu1  ;;  %v4176_v7 = vadd.f32 %v9501_v63, %v4015_v37 }
 0x58d   : > { %v4177_v30 = vadd.f32 %v9507_v55, %v4016_v15 }
 0x590   : > { %v3987_v1 = vpop.f32.mrb[44].mxu1 }
 0x591   : > { %v4017_v57 = vadd.f32 %v3987_v1, %v10171_v31  ;;  %v7605_v34 = vpop.f32.mrb[45].mxu1  ;;  %v10671_v1 = vld [vmem:[#allocation7_spill] sm:$0xff] }
 0x592   : > { %v3990_v35 = vpop.f32.mrb[46].mxu1 }
 0x593   : > { %v4018_v49 = vadd.f32 %v3990_v35, %v10174_v54  ;;  %v7606_v8 = vpop.f32.mrb[47].mxu1  ;;  %v4178_v12 = vadd.f32 %v9516_v16, %v4017_v57 }
 0x595   : > { %v4179_v0 = vadd.f32 %v9522_v11, %v4018_v49 }
 0x598   : > { %v3995_v50 = vpop.f32.mrb[48].mxu1 }
 0x599   : > { %v4019_v43 = vadd.f32 %v3995_v50, %v10182_v4  ;;  %v7609_v38 = vpop.f32.mrb[49].mxu1 }
 0x59a   : > { %v3998_v32 = vpop.f32.mrb[50].mxu1  ;;  %v10673_v38 = vld [vmem:[#allocation9_spill] sm:$0xff] }
 0x59b   : > { %v4020_v63 = vadd.f32 %v3998_v32, %v10186_v2  ;;  %v7610_v55 = vpop.f32.mrb[51].mxu1  ;;  %v4180_v6 = vadd.f32 %v9531_v29, %v4019_v43 }
 0x59d   : > { %v4181_v31 = vadd.f32 %v9533_v22, %v4020_v63 }
 0x5a0   : > { %v4003_v48 = vpop.f32.mrb[52].mxu1 }
 0x5a1   : > { %v7613_v9 = vpop.f32.mrb[53].mxu1 }
 0x5a2   : > { %v4006_v54 = vpop.f32.mrb[54].mxu1 }
 0x5a3   : > { %v7614_v19 = vpop.f32.mrb[55].mxu1 }
 0x5a4   : > { %v10265_v19 = vld [vmem:[%s10654_s4] ss:$0 sm:$0xff] }
 0x5a8   : > { %v4282_v56 = vpop.f32.mrb[56].mxu1 }
 0x5a9   : > { %v4336_v16 = vadd.f32 %v4282_v56, %v4170_v41  ;;  %v7653_v53 = vpop.f32.mrb[57].mxu1 }
 0x5aa   : > { %v4285_v11 = vpop.f32.mrb[58].mxu1 }
 0x5ab   : > { %v4337_v5 = vadd.f32 %v4285_v11, %v4171_v27  ;;  %v7654_v3 = vpop.f32.mrb[59].mxu1  ;;  %v4513_v4 = vadd.f32 %v9550_v23, %v4336_v16 }
 0x5ad   : > { %v4514_v42 = vadd.f32 %v9555_v21, %v4337_v5 }
 0x5b0   : > { %v4290_v2 = vpop.f32.mrb[60].mxu1 }
 0x5b1   : > { %v4338_v25 = vadd.f32 %v4290_v2, %v4172_v52  ;;  %v7657_v61 = vpop.f32.mrb[61].mxu1 }
 0x5b2   : > { %v4293_v29 = vpop.f32.mrb[62].mxu1 }
 0x5b3   : > { %v4339_v10 = vadd.f32 %v4293_v29, %v4173_v13  ;;  %v7658_v22 = vpop.f32.mrb[63].mxu1  ;;  %v4515_v58 = vadd.f32 %v9572_v33, %v4338_v25  ;;  %v10669_v33 = vld [vmem:[#allocation5_spill] sm:$0xff] }
 0x5b5   : > { %v4516_v18 = vadd.f32 %v9577_v59, %v4339_v10  ;;  %v10670_v59 = vld [vmem:[#allocation6_spill] sm:$0xff] }
 0x5b8   : > { %v4298_v17 = vpop.f32.mrb[64].mxu1 }
 0x5b9   : > { %v4340_v41 = vadd.f32 %v4298_v17, %v4174_v60  ;;  %v7661_v39 = vpop.f32.mrb[65].mxu1 }
 0x5ba   : > { %v4301_v62 = vpop.f32.mrb[66].mxu1 }
 0x5bb   : > { %v4341_v27 = vadd.f32 %v4301_v62, %v4175_v40  ;;  %v7662_v20 = vpop.f32.mrb[67].mxu1  ;;  %v4517_v23 = vadd.f32 %v9587_v44, %v4340_v41 }
 0x5bd   : > { %v10242_v21 = vadd.f32 %v10668_v45, %v4341_v27 }
 0x5c0   : > { %v4306_v52 = vpop.f32.mrb[68].mxu1 }
 0x5c1   : > { %v4342_v26 = vadd.f32 %v4306_v52, %v4176_v7  ;;  %v7665_v28 = vpop.f32.mrb[69].mxu1  ;;  %v10672_v7 = vld [vmem:[#allocation8_spill] sm:$0xff] }
 0x5c2   : > { %v4309_v13 = vpop.f32.mrb[70].mxu1 }
 0x5c3   : > { %v4343_v47 = vadd.f32 %v4309_v13, %v4177_v30  ;;  %v7666_v46 = vpop.f32.mrb[71].mxu1  ;;  %v10245_v37 = vadd.f32 %v10669_v33, %v4342_v26 }
 0x5c5   : > { %v10248_v60 = vadd.f32 %v10670_v59, %v4343_v47 }
 0x5c8   : > { %v4314_v51 = vpop.f32.mrb[72].mxu1 }
 0x5c9   : > { %v4344_v40 = vadd.f32 %v4314_v51, %v4178_v12  ;;  %v7669_v14 = vpop.f32.mrb[73].mxu1  ;;  %v10674_v12 = vld [vmem:[#allocation10_spill] sm:$0xff] }
 0x5ca   : > { %v4317_v15 = vpop.f32.mrb[74].mxu1 }
 0x5cb   : > { %v4345_v44 = vadd.f32 %v4317_v15, %v4179_v0  ;;  %v7670_v36 = vpop.f32.mrb[75].mxu1  ;;  %v10251_v57 = vadd.f32 %v10671_v1, %v4344_v40  ;;  %v8450_v15 = vld [vmem:[%s10655_s5 + $0x68] sm:$0xff]  }
 0x5cd   : > { %v10254_v34 = vadd.f32 %v10672_v7, %v4345_v44 }
 0x5d0   : > { %v4322_v30 = vpop.f32.mrb[76].mxu1 }
 0x5d1   : > { %v4346_v35 = vadd.f32 %v4322_v30, %v4180_v6  ;;  %v7673_v49 = vpop.f32.mrb[77].mxu1 }
 0x5d2   : > { %v4325_v8 = vpop.f32.mrb[78].mxu1  ;;  %v8452_v49 = vld [vmem:[%s10655_s5 + $0x70] sm:$0xff]  }
 0x5d3   : > { %v4347_v50 = vadd.f32 %v4325_v8, %v4181_v31  ;;  %v7674_v43 = vpop.f32.mrb[79].mxu1  ;;  %v10257_v32 = vadd.f32 %v10673_v38, %v4346_v35 }
 0x5d5   : > { %v10260_v63 = vadd.f32 %v10674_v12, %v4347_v50 }
 0x5d8   : > { %v4330_v0 = vpop.f32.mrb[80].mxu1 }
 0x5d9   : > { %v7677_v55 = vpop.f32.mrb[81].mxu1 }
 0x5da   : > { %v4333_v48 = vpop.f32.mrb[82].mxu1 }
 0x5db   : > { %v7678_v9 = vpop.f32.mrb[83].mxu1 }
 0x5e0   : > { %v4661_v54 = vpop.f32.mrb[84].mxu1 }
 0x5e1   : > { %v4715_v6 = vadd.f32 %v4661_v54, %v4513_v4  ;;  %v7717_v56 = vpop.f32.mrb[85].mxu1 }
 0x5e2   : > { %v4664_v31 = vpop.f32.mrb[86].mxu1 }
 0x5e3   : > { %v4735_v16 = vadd.f32 %v10265_v19, %v4715_v6  ;;  %v4716_v53 = vadd.f32 %v4664_v31, %v4514_v42  ;;  %v7718_v11 = vpop.f32.mrb[87].mxu1  ;;  %v8445_v6 = vld [vmem:[%s10655_s5 + $0x40] sm:$0xff]   ;;  %v8455_v31 = vld [vmem:[%s10655_s5 + $0x78] sm:$0xff]  }
 0x5e5   : > { %v4748_v5 = vmax.f32 %v4735_v16, 0.0  ;;  %v4736_v3 = vadd.f32 %v10265_v19, %v4716_v53 }
 0x5e7   : > { %v6984_v2 = vpack.c.bf16 %v4748_v5, %v4748_v5  ;;  %v4749_v25 = vmax.f32 %v4736_v3, 0.0 }
 0x5e8   : > { %v4669_v61 = vpop.f32.mrb[88].mxu1 }
 0x5e9   : > { %4815 = vst.msk [vmem:[#allocation3] sm:$0xf] %vm4814_vm9, %v6984_v2  ;;  %v6985_v29 = vpack.c.bf16 %v4749_v25, %v4749_v25  ;;  %v4717_v10 = vadd.f32 %v4669_v61, %v4515_v58  ;;  %v7721_v22 = vpop.f32.mrb[89].mxu1  ;;  %v8448_v61 = vld [vmem:[%s10655_s5 + $0x48] sm:$0xff]  }
 0x5ea   : > { %v4672_v17 = vpop.f32.mrb[90].mxu1 }
 0x5eb   : > { %4816 = vst.msk [vmem:[#allocation3 + $0x4] sm:$0xf] %vm4814_vm9, %v6985_v29  ;;  %v4737_v4 = vadd.f32 %v10265_v19, %v4717_v10  ;;  %v4718_v41 = vadd.f32 %v4672_v17, %v4516_v18  ;;  %v7722_v42 = vpop.f32.mrb[91].mxu1  ;;  %v8449_v18 = vld [vmem:[%s10655_s5 + $0x60] sm:$0xff]  }
 0x5ed   : > { %v4750_v39 = vmax.f32 %v4737_v4, 0.0  ;;  %v4738_v62 = vadd.f32 %v10265_v19, %v4718_v41 }
 0x5ef   : > { %v6986_v27 = vpack.c.bf16 %v4750_v39, %v4750_v39  ;;  %v4751_v20 = vmax.f32 %v4738_v62, 0.0 }
 0x5f0   : > { %v4677_v45 = vpop.f32.mrb[92].mxu1  ;;  %v4829_v52 = vld [vmem:[#allocation3] sm:$0xf] }
 0x5f1   : > { %4817 = vst.msk [vmem:[#allocation3 + $0x8] sm:$0xf] %vm4814_vm9, %v6986_v27  ;;  %v6987_v26 = vpack.c.bf16 %v4751_v20, %v4751_v20  ;;  %v4719_v28 = vadd.f32 %v4677_v45, %v4517_v23  ;;  %v7725_v58 = vpop.f32.mrb[93].mxu1 }
 0x5f2   : > { %v10274_v13 = vld [vmem:[#allocation3 + $0x4] sm:$0xf]  ;;  %v4680_v47 = vpop.f32.mrb[94].mxu1 }
 0x5f3   : > { %v6810_v46 = vcombine.low %v4829_v52, %v10274_v13  ;;  %4818 = vst.msk [vmem:[#allocation3 + $0xc] sm:$0xf] %vm4814_vm9, %v6987_v26  ;;  %v4739_v33 = vadd.f32 %v10265_v19, %v4719_v28  ;;  %v4720_v59 = vadd.f32 %v4680_v47, %v10242_v21  ;;  %v7726_v51 = vpop.f32.mrb[95].mxu1 }
 0x5f5   : > { %v4752_v40 = vmax.f32 %v4739_v33, 0.0  ;;  %v4740_v23 = vadd.f32 %v10265_v19, %v4720_v59  ;;  %7780 = vmatmul.mubr.msk.bf16.vlgmr.msra.gmra.mrb[112].mxu1 %vm4942_vm10, %v6810_v46  ;;  %v4882_v14 = vshll.u32 %v6810_v46, 16 }
 0x5f6   : > { %7783 = vmatprep.mubr.msk.bf16.mxu1 %vm8513_vm0, %v10660_v24  ;;  %7828 = vmatpush3.bf16.msra.mxu1 %v8449_v18  ;;  %v8458_v18 = vld [vmem:[%s10655_s5 + $0x58] sm:$0xff]  }
 0x5f7   : > { %v6988_v44 = vpack.c.bf16 %v4752_v40, %v4752_v40  ;;  %v4753_v36 = vmax.f32 %v4740_v23, 0.0  ;;  %7829 = vmatprep.subr.bf16.mxu1 %v10660_v24  ;;  %v4884_v35 = vrot.slane %v4882_v14, 1 }
 0x5f8   : > { %v4685_v21 = vpop.f32.mrb[96].mxu1 }
 0x5f9   : > { %4819 = vst.msk [vmem:[#allocation3 + $0x10] sm:$0xf] %vm4814_vm9, %v6988_v44  ;;  %v6989_v1 = vpack.c.bf16 %v4753_v36, %v4753_v36  ;;  %v4721_v7 = vadd.f32 %v4685_v21, %v10245_v37  ;;  %v7729_v30 = vpop.f32.mrb[97].mxu1  ;;  %v4880_v37 = vshrl.u32 %v6810_v46, 16 }
 0x5fa   : > { %v4688_v8 = vpop.f32.mrb[98].mxu1  ;;  %v10296_v50 = vld [vmem:[#allocation3 + $0x8] sm:$0xff]   ;;  %7830 = vmatpush3.bf16.msra.mxu1 %v8450_v15 }
 0x5fb   : > { %4820 = vst.msk [vmem:[#allocation3 + $0x14] sm:$0xf] %vm4814_vm9, %v6989_v1  ;;  %v4741_v43 = vadd.f32 %v10265_v19, %v4721_v7  ;;  %v4722_v38 = vadd.f32 %v4688_v8, %v10248_v60  ;;  %v7730_v12 = vpop.f32.mrb[99].mxu1  ;;  %7831 = vmatprep.subr.bf16.mxu1 %v10660_v24  ;;  %v4887_v0 = vshll.u32 %v10296_v50, 16  ;;  %v4885_v9 = vor.u32 %v4884_v35, %v4880_v37 }
 0x5fc   : > { %v4891_v22 = vshrl.u32 %v10296_v50, 16 }
 0x5fd   : > { %v4754_v55 = vmax.f32 %v4741_v43, 0.0  ;;  %v4742_v48 = vadd.f32 %v10265_v19, %v4722_v38  ;;  %7784 = vmatmul.mubr.msk.bf16.gmra.mrb[116].mxu1 %vm4942_vm10, %v10296_v50  ;;  %v4889_v54 = vrot.slane %v4887_v0, 1  ;;  %v8456_v0 = vld [vmem:[#allocation3 + $0x4] sm:$0xfe]  }
 0x5fe   : > { %7787 = vmatprep.mubr.msk.bf16.mxu1 %vm8513_vm0, %v10660_v24  ;;  %7832 = vmatpush3.bf16.msra.mxu1 %v8452_v49 }
 0x5ff   : > { %v6990_v60 = vpack.c.bf16 %v4754_v55, %v4754_v55  ;;  %v4755_v56 = vmax.f32 %v4742_v48, 0.0  ;;  %7833 = vmatprep.subr.bf16.mxu1 %v10660_v24  ;;  %v4890_v53 = vsel %vm2222_vm3, %v4885_v9, %v4889_v54  ;;  %v4893_v42 = vor.u32 %v4891_v22, %v4889_v54  ;;  %v8464_v54 = vld [vmem:[%s10655_s5 + $0xa0] sm:$0xff]  }
 0x600   : > { %v4693_v16 = vpop.f32.mrb[100].mxu1  ;;  %7752 = vmatmul.mubr.msk.bf16.vlgmr.msra.gmra.mrb[200].mxu0 %vm4942_vm10, %v4890_v53  ;;  %v8457_v38 = vld [vmem:[#allocation3 + $0xc] sm:$0xff]   ;;  %v5323_v9 = vrot.slane %v8456_v0, 1 }
 0x601   : > { %4821 = vst.msk [vmem:[#allocation3 + $0x18] sm:$0xf] %vm4814_vm9, %v6990_v60  ;;  %v6991_v11 = vpack.c.bf16 %v4755_v56, %v4755_v56  ;;  %v4723_v5 = vadd.f32 %v4693_v16, %v10251_v57  ;;  %v7733_v3 = vpop.f32.mrb[101].mxu1  ;;  %7800 = vmatpush3.bf16.msra.mxu0 %v8445_v6  ;;  %7755 = vmatprep.mubr.msk.bf16.mxu0 %vm8513_vm0, %v10660_v24  ;;  %v5324_v48 = vrot.slane %v8457_v38, 1  ;;  %v8474_v0 = vld [vmem:[%s10655_s5 + $0xc0] sm:$0xff]  }
 0x602   : > { %v4696_v2 = vpop.f32.mrb[102].mxu1  ;;  %v10319_v25 = vld [vmem:[#allocation3 + $0x10] sm:$0xff]   ;;  %7801 = vmatprep.subr.bf16.mxu0 %v10660_v24  ;;  %7834 = vmatpush3.bf16.msra.mxu1 %v8455_v31  ;;  %v8465_v31 = vld [vmem:[%s10655_s5 + $0xa8] sm:$0xff]   ;;  %v8466_v3 = vld [vmem:[%s10655_s5 + $0xb0] sm:$0xff]  }
 0x603   : > { %4822 = vst.msk [vmem:[#allocation3 + $0x1c] sm:$0xf] %vm4814_vm9, %v6991_v11  ;;  %v4743_v29 = vadd.f32 %v10265_v19, %v4723_v5  ;;  %v4724_v57 = vadd.f32 %v4696_v2, %v10254_v34  ;;  %v7734_v10 = vpop.f32.mrb[103].mxu1  ;;  %v4895_v17 = vshll.u32 %v10319_v25, 16  ;;  %7883 = vmatprep.subr.bf16.mxu1 %v10660_v24  ;;  %v8453_v34 = vld [vmem:[%s10655_s5 + $0x50] sm:$0xff]   ;;  %v4899_v59 = vshrl.u32 %v10319_v25, 16 }
 0x604   : > { %v5325_v6 = vsel %vm3493_vm7, %v5323_v9, %v5324_v48  ;;  %v5140_v11 = vld [vmem:[#allocation3] sm:$0xe]  ;;  %v8460_v10 = vld [vmem:[%s10655_s5 + $0x80] sm:$0xff]  }
 0x605   : > { %v4756_v4 = vmax.f32 %v4743_v29, 0.0  ;;  %v4744_v41 = vadd.f32 %v10265_v19, %v4724_v57  ;;  %7788 = vmatmul.mubr.msk.bf16.gmra.mrb[120].mxu1 %vm4942_vm10, %v10319_v25  ;;  %v4897_v39 = vrot.slane %v4895_v17, 1  ;;  %7802 = vmatpush3.bf16.msra.mxu0 %v8448_v61  ;;  %v6842_v5 = vcombine.low %v5140_v11, %v10274_v13  ;;  %v8468_v13 = vld [vmem:[%s10655_s5 + $0xb8] sm:$0xff]   ;;  %v8463_v17 = vld [vmem:[%s10655_s5 + $0x88] sm:$0xff]  }
 0x606   : > { %7791 = vmatprep.mubr.msk.bf16.mxu1 %vm8513_vm0, %v10660_v24  ;;  %7803 = vmatprep.subr.bf16.mxu0 %v10660_v24  ;;  %v5154_v61 = vrot.slane %v10296_v50, 1 }
 0x607   : > { %v6992_v62 = vpack.c.bf16 %v4756_v4, %v4756_v4  ;;  %v4757_v27 = vmax.f32 %v4744_v41, 0.0  ;;  %v4898_v45 = vsel %vm2222_vm3, %v4893_v42, %v4897_v39  ;;  %v4901_v14 = vor.u32 %v4899_v59, %v4897_v39  ;;  %v8467_v39 = vld [vmem:[%s10655_s5 + $0x90] sm:$0xff]  }
 0x608   : > { %v4701_v20 = vpop.f32.mrb[104].mxu1  ;;  %7756 = vmatmul.mubr.msk.bf16.gmra.mrb[204].mxu0 %vm4942_vm10, %v4898_v45  ;;  %v8459_v60 = vld [vmem:[#allocation3 + $0x14] sm:$0xff]   ;;  %v5153_v57 = vrot.slane %v6842_v5, 1  ;;  %v5156_v41 = vrot.slane %v10319_v25, 1  ;;  %v8471_v25 = vld [vmem:[%s10655_s5 + $0x98] sm:$0xff]   ;;  %v8481_v5 = vld [vmem:[%s10655_s5 + $0xd0] sm:$0xff]  }
 0x609   : > { %4823 = vst.msk [vmem:[#allocation3 + $0x20] sm:$0xf] %vm4814_vm9, %v6992_v62  ;;  %v6993_v52 = vpack.c.bf16 %v4757_v27, %v4757_v27  ;;  %v4725_v26 = vadd.f32 %v4701_v20, %v10257_v32  ;;  %v7737_v28 = vpop.f32.mrb[105].mxu1  ;;  %7759 = vmatprep.mubr.msk.bf16.mxu0 %vm8513_vm0, %v10660_v24  ;;  %7804 = vmatpush3.bf16.msra.mxu0 %v8453_v34  ;;  %v5326_v53 = vrot.slane %v8459_v60, 1  ;;  %v8477_v60 = vld [vmem:[%s10655_s5 + $0xc8] sm:$0xff]  }
 0x60a   : > { %v4704_v58 = vpop.f32.mrb[106].mxu1  ;;  %v10346_v47 = vld [vmem:[#allocation3 + $0x18] sm:$0xff]   ;;  %7805 = vmatprep.subr.bf16.mxu0 %v10660_v24  ;;  %v5155_v50 = vsel %vm3493_vm7, %v5153_v57, %v5154_v61  ;;  %v5157_v34 = vsel %vm3493_vm7, %v5154_v61, %v5156_v41  ;;  %v8469_v28 = vld [vmem:[#allocation3 + $0xc] sm:$0xff]  }
 0x60b   : > { %4824 = vst.msk [vmem:[#allocation3 + $0x24] sm:$0xf] %vm4814_vm9, %v6993_v52  ;;  %v4745_v46 = vadd.f32 %v10265_v19, %v4725_v26  ;;  %v4726_v32 = vadd.f32 %v4704_v58, %v10260_v63  ;;  %v7738_v33 = vpop.f32.mrb[107].mxu1  ;;  %v4903_v51 = vshll.u32 %v10346_v47, 16  ;;  %v4907_v43 = vshrl.u32 %v10346_v47, 16 }
 0x60c   : > { %v5327_v2 = vsel %vm3493_vm7, %v5324_v48, %v5326_v53  ;;  %v5158_v20 = vrot.slane %v10346_v47, 1  ;;  %v5453_v52 = vld [vmem:[#allocation3 + $0x8] sm:$0xf]  ;;  %v5660_v58 = vld [vmem:[#allocation3 + $0x4] sm:$0xc] }
 0x60d   : > { %v4758_v40 = vmax.f32 %v4745_v46, 0.0  ;;  %v4746_v23 = vadd.f32 %v10265_v19, %v4726_v32  ;;  %7792 = vmatmul.mubr.msk.bf16.gmra.mrb[124].mxu1 %vm4942_vm10, %v10346_v47  ;;  %v4905_v15 = vrot.slane %v4903_v51, 1  ;;  %7806 = vmatpush3.bf16.msra.mxu0 %v8458_v18  ;;  %v6904_v47 = vcombine.low %v5660_v58, %v5453_v52  ;;  %v5452_v32 = vld [vmem:[#allocation3 + $0x4] sm:$0xe]  ;;  %v8478_v51 = vld [vmem:[%s10655_s5 + $0xe0] sm:$0xff]  }
 0x60e   : > { %7795 = vmatprep.mubr.msk.bf16.mxu1 %vm8513_vm0, %v10660_v24  ;;  %7855 = vmatprep.subr.bf16.mxu0 %v10660_v24  ;;  %v5159_v45 = vsel %vm3493_vm7, %v5156_v41, %v5158_v20  ;;  %v5675_v46 = vrot.slane %v8469_v28, 2  ;;  %v6882_v59 = vcombine.low %v5452_v32, %v5453_v52 }
 0x60f   : > { %v6994_v63 = vpack.c.bf16 %v4758_v40, %v4758_v40  ;;  %v4759_v44 = vmax.f32 %v4746_v23, 0.0  ;;  %v4906_v21 = vsel %vm2222_vm3, %v4901_v14, %v4905_v15  ;;  %v4909_v37 = vor.u32 %v4907_v43, %v4905_v15  ;;  %v8472_v23 = vld [vmem:[#allocation3 + $0x14] sm:$0xff]  }
 0x610   : > { %v4709_v36 = vpop.f32.mrb[108].mxu1  ;;  %7760 = vmatmul.mubr.msk.bf16.gmra.mrb[208].mxu0 %vm4942_vm10, %v4906_v21  ;;  %v10368_v7 = vld [vmem:[#allocation3 + $0x20] ss:$0 sps:$4 sm:$0xff]   ;;  %v5674_v33 = vrot.slane %v6904_v47, 2  ;;  %v5505_v14 = vshrl.u32 %v8469_v28, 16  ;;  %v5508_v15 = vshll.u32 %v8469_v28, 16 }
 0x611   : > { %4825 = vst.msk [vmem:[#allocation3 + $0x28] sm:$0xf] %vm4814_vm9, %v6994_v63  ;;  %v6995_v1 = vpack.c.bf16 %v4759_v44, %v4759_v44  ;;  %v7741_v19 = vpop.f32.mrb[109].mxu1  ;;  %7763 = vmatprep.mubr.msk.bf16.mxu0 %vm8513_vm0, %v10660_v24  ;;  %v8451_v49 = vld [vmem:[#allocation3 + $0x20] ss:$0 sps:$4 sm:$0x77]  }
 0x612   : > { %v4712_v30 = vpop.f32.mrb[110].mxu1  ;;  %v4911_v8 = vshll.u32 %v10368_v7, 16  ;;  %v4915_v56 = vshrl.u32 %v10368_v7, 16  ;;  %v8461_v29 = vld [vmem:[#allocation3 + $0x1c] sm:$0xff]   ;;  %v8462_v42 = vld [vmem:[#allocation3 + $0x24] ss:$0 sps:$4 sm:$0xff]   ;;  %v5676_v40 = vsel %vm5673_vm11, %v5674_v33, %v5675_v46 }
 0x613   : > { %4826 = vst.msk [vmem:[#allocation3 + $0x2c] sm:$0xf] %vm4814_vm9, %v6995_v1  ;;  %v7742_v35 = vpop.f32.mrb[111].mxu1  ;;  %v5328_v22 = vrot.slane %v8461_v29, 1  ;;  %v5330_v62 = vrot.slane %v8462_v42, 1  ;;  %v5160_v26 = vrot.slane %v10368_v7, 1 }
 0x614   : > { %v4913_v12 = vrot.slane %v4911_v8, 1  ;;  %v5497_v63 = vshrl.u32 %v6882_v59, 16  ;;  %v5500_v44 = vshll.u32 %v6882_v59, 16  ;;  %v8479_v36 = vld [vmem:[%s10655_s5 + $0xe8] sm:$0xff]   ;;  %v5677_v21 = vrot.slane %v8472_v23, 2  ;;  %v8480_v35 = vld [vmem:[%s10655_s5 + $0xf0] sm:$0xff]  }
 0x615   : > { %7796 = vmatmul.mubr.msk.bf16.gmra.mrb[128].mxu1 %vm4942_vm10, %v8451_v49  ;;  %v5329_v4 = vsel %vm3493_vm7, %v5326_v53, %v5328_v22  ;;  %v5331_v27 = vsel %vm3493_vm7, %v5328_v22, %v5330_v62  ;;  %v5161_v18 = vsel %vm3493_vm7, %v5158_v20, %v5160_v26  ;;  %v5507_v1 = vrot.slane %v5505_v14, 1  ;;  %v8475_v43 = vld [vmem:[#allocation3 + $0x1c] sm:$0xff]   ;;  %v10512_v22 = vld [vmem:[#allocation3 + $0xc] sm:$0xf] }
 0x616   : > { %7835 = vmatprep.mubr.msk.bf16.mxu1 %vm8513_vm0, %v10660_v24  ;;  %v4914_v55 = vsel %vm2222_vm3, %v4909_v37, %v4913_v12  ;;  %v4917_v16 = vor.u32 %v4915_v56, %v4913_v12  ;;  %v5510_v19 = vrot.slane %v5508_v15, 2  ;;  %v5499_v7 = vrot.slane %v5497_v63, 1 }
 0x617   : > { %v5502_v30 = vrot.slane %v5500_v44, 2  ;;  %v5678_v49 = vsel %vm5673_vm11, %v5675_v46, %v5677_v21  ;;  %v5514_v38 = vshrl.u32 %v8472_v23, 16  ;;  %v5517_v12 = vshll.u32 %v8472_v23, 16  ;;  %v10539_v44 = vld [vmem:[#allocation3 + $0x20] sm:$0xff]  }
 0x618   : > { %7764 = vmatmul.mubr.msk.bf16.gmra.mrb[212].mxu0 %vm4942_vm10, %v4914_v55  ;;  %v5511_v8 = vor.u32 %v5510_v19, %v5507_v1  ;;  %v8482_v55 = vld [vmem:[%s10655_s5 + $0xf8] sm:$0xff]   ;;  %v5679_v9 = vrot.slane %v8475_v43, 2  ;;  %v5523_v53 = vshrl.u32 %v8475_v43, 16  ;;  %v5526_v11 = vshll.u32 %v8475_v43, 16 }
 0x619   : > { %7767 = vmatprep.mubr.msk.bf16.mxu0 %vm8513_vm0, %v10660_v24  ;;  %v5503_v37 = vor.u32 %v5502_v30, %v5499_v7  ;;  %v6020_v1 = vshll.u32 %v10539_v44, 16  ;;  %v5811_v30 = vld [vmem:[#allocation3 + $0x28] sm:$0xf] }
 0x61a   : > { %v5680_v56 = vsel %vm5673_vm11, %v5677_v21, %v5679_v9  ;;  %v5525_v29 = vrot.slane %v5523_v53, 1  ;;  %v5528_v57 = vrot.slane %v5526_v11, 2  ;;  %v6017_v21 = vshrl.u32 %v10539_v44, 16  ;;  %v5976_v19 = vld [vmem:[#allocation3 + $0x2c] sm:$0x3] }
 0x61b   : > { %v5512_v48 = vsel %vm3825_vm8, %v5503_v37, %v5511_v8  ;;  %v10551_v43 = vcombine.low %v5811_v30, %v5976_v19  ;;  %v8492_v11 = vld [vmem:[%s10655_s5 + $0x118] sm:$0xff]  }
 0x61d   : > { %7836 = vmatmul.mubr.msk.bf16.vlgmr.msra.gmra.mrb[132].mxu1 %vm4942_vm10, %v5325_v6  ;;  %v5519_v6 = vrot.slane %v5517_v12, 2  ;;  %v8486_v12 = vld [vmem:[%s10655_s5 + $0x100] sm:$0xff]  }
 0x61e   : > { %7839 = vmatprep.mubr.msk.bf16.mxu1 %vm8513_vm0, %v10660_v24  ;;  %7884 = vmatpush3.bf16.msra.mxu1 %v8464_v54  ;;  %v5516_v54 = vrot.slane %v5514_v38, 1 }
 0x61f   : > { %7885 = vmatprep.subr.bf16.mxu1 %v10660_v24 }
 0x620   : > { %7768 = vmatmul.mubr.msk.bf16.gmra.mrb[216].mxu0 %vm4942_vm10, %v4917_v16  ;;  %v8476_v16 = vld [vmem:[#allocation3 + $0x24] sm:$0x1f]  }
 0x621   : > { %7807 = vmatprep.mubr.msk.bf16.mxu0 %vm8513_vm0, %v10660_v24  ;;  %v5681_v61 = vrot.slane %v8476_v16, 2  ;;  %v5532_v41 = vshrl.u32 %v8476_v16, 16  ;;  %v5535_v42 = vshll.u32 %v8476_v16, 16 }
 0x622   : > { %7886 = vmatpush3.bf16.msra.mxu1 %v8465_v31  ;;  %v5520_v31 = vor.u32 %v5519_v6, %v5516_v54 }
 0x623   : > { %7887 = vmatprep.subr.bf16.mxu1 %v10660_v24  ;;  %v5537_v20 = vrot.slane %v5535_v42, 2 }
 0x625   : > { %7840 = vmatmul.mubr.msk.bf16.gmra.mrb[136].mxu1 %vm4942_vm10, %v5327_v2  ;;  %v5521_v2 = vsel %vm3825_vm8, %v5511_v8, %v5520_v31  ;;  %v6022_v8 = vrot.slane %v6020_v1, 3 }
 0x626   : > { %7843 = vmatprep.mubr.msk.bf16.mxu1 %vm8513_vm0, %v10660_v24  ;;  %7888 = vmatpush3.bf16.msra.mxu1 %v8466_v3  ;;  %v5806_v3 = vld [vmem:[#allocation3 + $0x14] sm:$0xf] }
 0x627   : > { %7889 = vmatprep.subr.bf16.mxu1 %v10660_v24 }
 0x628   : > { %7808 = vmatmul.mubr.msk.bf16.vlgmr.msra.gmra.mrb[220].mxu0 %vm4942_vm10, %v5155_v50 }
 0x629   : > { %7856 = vmatpush3.bf16.msra.mxu0 %v8460_v10  ;;  %7811 = vmatprep.mubr.msk.bf16.mxu0 %vm8513_vm0, %v10660_v24  ;;  %v5805_v10 = vld [vmem:[#allocation3 + $0x10] sm:$0xf] }
 0x62a   : > { %7857 = vmatprep.subr.bf16.mxu0 %v10660_v24  ;;  %7890 = vmatpush3.bf16.msra.mxu1 %v8468_v13  ;;  %v8484_v13 = vld [vmem:[%s10655_s5 + $0xd8] sm:$0xff]   ;;  %v10510_v50 = vcombine.low %v5805_v10, %v5806_v3  ;;  %v5852_v3 = vrot.slane %v10539_v44, 2 }
 0x62b   : > { %7939 = vmatprep.subr.bf16.mxu1 %v10660_v24 }
 0x62c   : > { %v5848_v7 = vrot.slane %v10510_v50, 2 }
 0x62d   : > { %7844 = vmatmul.mubr.msk.bf16.gmra.mrb[140].mxu1 %vm4942_vm10, %v5329_v4  ;;  %7858 = vmatpush3.bf16.msra.mxu0 %v8463_v17  ;;  %v5682_v17 = vsel %vm5673_vm11, %v5679_v9, %v5681_v61  ;;  %v5529_v4 = vor.u32 %v5528_v57, %v5525_v29  ;;  %v8489_v9 = vld [vmem:[%s10655_s5 + $0x108] sm:$0xff]  }
 0x62e   : > { %7847 = vmatprep.mubr.msk.bf16.mxu1 %vm8513_vm0, %v10660_v24  ;;  %7859 = vmatprep.subr.bf16.mxu0 %v10660_v24 }
 0x630   : > { %7812 = vmatmul.mubr.msk.bf16.gmra.mrb[224].mxu0 %vm4942_vm10, %v5157_v34 }
 0x631   : > { %7815 = vmatprep.mubr.msk.bf16.mxu0 %vm8513_vm0, %v10660_v24  ;;  %7860 = vmatpush3.bf16.msra.mxu0 %v8467_v39  ;;  %v5803_v39 = vld [vmem:[#allocation3 + $0x8] sm:$0xc] }
 0x632   : > { %7861 = vmatprep.subr.bf16.mxu0 %v10660_v24  ;;  %v6922_v34 = vcombine.low %v5803_v39, %v10512_v22 }
 0x634   : > { %v5991_v52 = vshrl.u32 %v6922_v34, 16  ;;  %v5847_v38 = vrot.slane %v6922_v34, 2 }
 0x635   : > { %7848 = vmatmul.mubr.msk.bf16.gmra.mrb[144].mxu1 %vm4942_vm10, %v5331_v27  ;;  %7862 = vmatpush3.bf16.msra.mxu0 %v8471_v25  ;;  %v5530_v25 = vsel %vm3825_vm8, %v5520_v31, %v5529_v4  ;;  %v5534_v27 = vrot.slane %v5532_v41, 1  ;;  %v8490_v31 = vld [vmem:[%s10655_s5 + $0x110] sm:$0xff]  }
 0x636   : > { %7851 = vmatprep.mubr.msk.bf16.mxu1 %vm8513_vm0, %v10660_v24  ;;  %7911 = vmatprep.subr.bf16.mxu0 %v10660_v24  ;;  %v5993_v46 = vrot.slane %v5991_v52, 2  ;;  %v5849_v37 = vsel %vm5673_vm11, %v5847_v38, %v5848_v7 }
 0x637   : > { %v5538_v28 = vor.u32 %v5537_v20, %v5534_v27 }
 0x638   : > { %7816 = vmatmul.mubr.msk.bf16.gmra.mrb[228].mxu0 %vm4942_vm10, %v5159_v45  ;;  %v6002_v45 = vshll.u32 %v10510_v50, 16 }
 0x639   : > { %7819 = vmatprep.mubr.msk.bf16.mxu0 %vm8513_vm0, %v10660_v24  ;;  %v5539_v33 = vsel %vm3825_vm8, %v5529_v4, %v5538_v28  ;;  %v6169_v4 = vrot.slane %v10510_v50, 3 }
 0x63a   : > { %v6004_v47 = vrot.slane %v6002_v45, 3 }
 0x63d   : > { %7852 = vmatmul.mubr.msk.bf16.gmra.mrb[148].mxu1 %vm4942_vm10, %v5330_v62  ;;  %v5999_v62 = vshrl.u32 %v10510_v50, 16  ;;  %v6175_v50 = vrot.slane %v10551_v43, 3 }
 0x63e   : > { %7891 = vmatprep.mubr.msk.bf16.mxu1 %vm8513_vm0, %v10660_v24 }
 0x63f   : > { %v6001_v58 = vrot.slane %v5999_v62, 2 }
 0x640   : > { %7820 = vmatmul.mubr.msk.bf16.gmra.mrb[232].mxu0 %vm4942_vm10, %v5161_v18  ;;  %v10527_v18 = vld [vmem:[#allocation3 + $0x18] sm:$0xff]  }
 0x641   : > { %7823 = vmatprep.mubr.msk.bf16.mxu0 %vm8513_vm0, %v10660_v24  ;;  %v6005_v59 = vor.u32 %v6004_v47, %v6001_v58  ;;  %v5850_v6 = vrot.slane %v10527_v18, 2  ;;  %v6171_v39 = vrot.slane %v10527_v18, 3 }
 0x643   : > { %v5851_v16 = vsel %vm5673_vm11, %v5848_v7, %v5850_v6 }
 0x645   : > { %7892 = vmatmul.mubr.msk.bf16.vlgmr.msra.gmra.mrb[152].mxu1 %vm4942_vm10, %v5676_v40  ;;  %v6011_v40 = vshll.u32 %v10527_v18, 16 }
 0x646   : > { %7895 = vmatprep.mubr.msk.bf16.mxu1 %vm8513_vm0, %v10660_v24  ;;  %7940 = vmatpush3.bf16.msra.mxu1 %v8478_v51  ;;  %v6008_v51 = vshrl.u32 %v10527_v18, 16 }
 0x647   : > { %7941 = vmatprep.subr.bf16.mxu1 %v10660_v24  ;;  %v6013_v63 = vrot.slane %v6011_v40, 3 }
 0x648   : > { %7824 = vmatmul.mubr.msk.bf16.gmra.mrb[236].mxu0 %vm4942_vm10, %v5160_v26  ;;  %v5994_v26 = vshll.u32 %v6922_v34, 16  ;;  %v6010_v15 = vrot.slane %v6008_v51, 2  ;;  %v6172_v34 = vsel %vm6167_vm13, %v6169_v4, %v6171_v39 }
 0x649   : > { %7863 = vmatprep.mubr.msk.bf16.mxu0 %vm8513_vm0, %v10660_v24 }
 0x64a   : > { %7942 = vmatpush3.bf16.msra.mxu1 %v8479_v36  ;;  %v5996_v32 = vrot.slane %v5994_v26, 3  ;;  %v6014_v36 = vor.u32 %v6013_v63, %v6010_v15 }
 0x64b   : > { %7943 = vmatprep.subr.bf16.mxu1 %v10660_v24 }
 0x64c   : > { %v5997_v23 = vor.u32 %v5996_v32, %v5993_v46 }
 0x64d   : > { %7896 = vmatmul.mubr.msk.bf16.gmra.mrb[156].mxu1 %vm4942_vm10, %v5678_v49  ;;  %v6019_v49 = vrot.slane %v6017_v21, 2 }
 0x64e   : > { %7899 = vmatprep.mubr.msk.bf16.mxu1 %vm8513_vm0, %v10660_v24  ;;  %7944 = vmatpush3.bf16.msra.mxu1 %v8480_v35  ;;  %v6006_v14 = vsel %vm5989_vm12, %v5997_v23, %v6005_v59  ;;  %v6015_v35 = vsel %vm5989_vm12, %v6005_v59, %v6014_v36 }
 0x64f   : > { %7945 = vmatprep.subr.bf16.mxu1 %v10660_v24 }
 0x650   : > { %7864 = vmatmul.mubr.msk.bf16.vlgmr.msra.gmra.mrb[240].mxu0 %vm4942_vm10, %v5512_v48  ;;  %v6029_v48 = vshll.u32 %v10551_v43, 16 }
 0x651   : > { %7912 = vmatpush3.bf16.msra.mxu0 %v8474_v0  ;;  %7867 = vmatprep.mubr.msk.bf16.mxu0 %vm8513_vm0, %v10660_v24  ;;  %v6023_v0 = vor.u32 %v6022_v8, %v6019_v49 }
 0x652   : > { %7913 = vmatprep.subr.bf16.mxu0 %v10660_v24  ;;  %7946 = vmatpush3.bf16.msra.mxu1 %v8482_v55  ;;  %v6026_v55 = vshrl.u32 %v10551_v43, 16 }
 0x653   : > { %v6024_v54 = vsel %vm5989_vm12, %v6014_v36, %v6023_v0 }
 0x655   : > { %7900 = vmatmul.mubr.msk.bf16.gmra.mrb[160].mxu1 %vm4942_vm10, %v5680_v56  ;;  %7914 = vmatpush3.bf16.msra.mxu0 %v8477_v60  ;;  %v6028_v60 = vrot.slane %v6026_v55, 2  ;;  %v6031_v56 = vrot.slane %v6029_v48, 3 }
 0x656   : > { %7903 = vmatprep.mubr.msk.bf16.mxu1 %vm8513_vm0, %v10660_v24  ;;  %7915 = vmatprep.subr.bf16.mxu0 %v10660_v24 }
 0x657   : > { %v6032_v53 = vor.u32 %v6031_v56, %v6028_v60 }
 0x658   : > { %7868 = vmatmul.mubr.msk.bf16.gmra.mrb[244].mxu0 %vm4942_vm10, %v5521_v2  ;;  %v5812_v2 = vld [vmem:[#allocation3 + $0x2c] sm:$0x1] }
 0x659   : > { %7871 = vmatprep.mubr.msk.bf16.mxu0 %vm8513_vm0, %v10660_v24  ;;  %7916 = vmatpush3.bf16.msra.mxu0 %v8481_v5  ;;  %v6033_v5 = vsel %vm5989_vm12, %v6023_v0, %v6032_v53  ;;  %v6926_v29 = vcombine.low %v5811_v30, %v5812_v2 }
 0x65a   : > { %7917 = vmatprep.subr.bf16.mxu0 %v10660_v24 }
 0x65b   : > { %v5854_v57 = vrot.slane %v6926_v29, 2 }
 0x65d   : > { %7904 = vmatmul.mubr.msk.bf16.gmra.mrb[164].mxu1 %vm4942_vm10, %v5682_v17  ;;  %7918 = vmatpush3.bf16.msra.mxu0 %v8484_v13  ;;  %v5855_v10 = vsel %vm5673_vm11, %v5852_v3, %v5854_v57  ;;  %v6154_v13 = vld [vmem:[#allocation3 + $0x8] sm:$0x8] }
 0x65e   : > { %7907 = vmatprep.mubr.msk.bf16.mxu1 %vm8513_vm0, %v10660_v24  ;;  %7967 = vmatprep.subr.bf16.mxu0 %v10660_v24  ;;  %v6962_v17 = vcombine.low %v6154_v13, %v10512_v22  ;;  %v6173_v22 = vrot.slane %v10539_v44, 3 }
 0x660   : > { %7872 = vmatmul.mubr.msk.bf16.gmra.mrb[248].mxu0 %vm4942_vm10, %v5530_v25  ;;  %v6168_v41 = vrot.slane %v6962_v17, 3  ;;  %v6174_v62 = vsel %vm6167_vm13, %v6171_v39, %v6173_v22  ;;  %v6176_v25 = vsel %vm6167_vm13, %v6173_v22, %v6175_v50 }
 0x661   : > { %7875 = vmatprep.mubr.msk.bf16.mxu0 %vm8513_vm0, %v10660_v24 }
 0x662   : > { %v6170_v42 = vsel %vm6167_vm13, %v6168_v41, %v6169_v4 }
 0x665   : > { %7908 = vmatmul.mubr.msk.bf16.gmra.mrb[168].mxu1 %vm4942_vm10, %v5681_v61  ;;  %v5853_v61 = vsel %vm5673_vm11, %v5850_v6, %v5852_v3 }
 0x666   : > { %7947 = vmatprep.mubr.msk.bf16.mxu1 %vm8513_vm0, %v10660_v24 }
 0x668   : > { %7876 = vmatmul.mubr.msk.bf16.gmra.mrb[252].mxu0 %vm4942_vm10, %v5539_v33 }
 0x669   : > { %7879 = vmatprep.mubr.msk.bf16.mxu0 %vm8513_vm0, %v10660_v24 }
 0x66d   : > { %7948 = vmatmul.mubr.msk.bf16.vlgmr.msra.gmra.mrb[172].mxu1 %vm4942_vm10, %v6006_v14 }
 0x66e   : > { %7951 = vmatprep.mubr.msk.bf16.mxu1 %vm8513_vm0, %v10660_v24 }
 0x670   : > { %7880 = vmatmul.mubr.msk.bf16.gmra.mrb[0].mxu0 %vm4942_vm10, %v5538_v28 }
 0x671   : > { %7919 = vmatprep.mubr.msk.bf16.mxu0 %vm8513_vm0, %v10660_v24 }
 0x675   : > { %7952 = vmatmul.mubr.msk.bf16.gmra.mrb[176].mxu1 %vm4942_vm10, %v6015_v35 }
 0x676   : > { %7955 = vmatprep.mubr.msk.bf16.mxu1 %vm8513_vm0, %v10660_v24 }
 0x678   : > { %7920 = vmatmul.mubr.msk.bf16.vlgmr.msra.gmra.mrb[4].mxu0 %vm4942_vm10, %v5849_v37 }
 0x679   : > { %7968 = vmatpush3.bf16.msra.mxu0 %v8486_v12  ;;  %7923 = vmatprep.mubr.msk.bf16.mxu0 %vm8513_vm0, %v10660_v24 }
 0x67a   : > { %7969 = vmatprep.subr.bf16.mxu0 %v10660_v24 }
 0x67d   : > { %7956 = vmatmul.mubr.msk.bf16.gmra.mrb[180].mxu1 %vm4942_vm10, %v6024_v54  ;;  %7970 = vmatpush3.bf16.msra.mxu0 %v8489_v9 }
 0x67e   : > { %7959 = vmatprep.mubr.msk.bf16.mxu1 %vm8513_vm0, %v10660_v24  ;;  %7971 = vmatprep.subr.bf16.mxu0 %v10660_v24 }
 0x680   : > { %7924 = vmatmul.mubr.msk.bf16.gmra.mrb[8].mxu0 %vm4942_vm10, %v5851_v16 }
 0x681   : > { %7927 = vmatprep.mubr.msk.bf16.mxu0 %vm8513_vm0, %v10660_v24  ;;  %7972 = vmatpush3.bf16.msra.mxu0 %v8490_v31 }
 0x682   : > { %7973 = vmatprep.subr.bf16.mxu0 %v10660_v24 }
 0x685   : > { %7960 = vmatmul.mubr.msk.bf16.gmra.mrb[184].mxu1 %vm4942_vm10, %v6033_v5  ;;  %7974 = vmatpush3.bf16.msra.mxu0 %v8492_v11 }
 0x686   : > { %7963 = vmatprep.mubr.msk.bf16.mxu1 %vm8513_vm0, %v10660_v24 }
 0x688   : > { %7928 = vmatmul.mubr.msk.bf16.gmra.mrb[12].mxu0 %vm4942_vm10, %v5853_v61 }
 0x689   : > { %7931 = vmatprep.mubr.msk.bf16.mxu0 %vm8513_vm0, %v10660_v24 }
 0x68d   : > { %7964 = vmatmul.mubr.msk.bf16.gmra.mrb[188].mxu1 %vm4942_vm10, %v6032_v53 }
 0x690   : > { %7932 = vmatmul.mubr.msk.bf16.gmra.mrb[16].mxu0 %vm4942_vm10, %v5855_v10 }
 0x691   : > { %7935 = vmatprep.mubr.msk.bf16.mxu0 %vm8513_vm0, %v10660_v24 }
 0x698   : > { %7936 = vmatmul.mubr.msk.bf16.gmra.mrb[20].mxu0 %vm4942_vm10, %v5854_v57 }
 0x699   : > { %7975 = vmatprep.mubr.msk.bf16.mxu0 %vm8513_vm0, %v10660_v24 }
 0x6a0   : > { %7976 = vmatmul.mubr.msk.bf16.vlgmr.msra.gmra.mrb[24].mxu0 %vm4942_vm10, %v6170_v42 }
 0x6a1   : > { %7979 = vmatprep.mubr.msk.bf16.mxu0 %vm8513_vm0, %v10660_v24 }
 0x6a8   : > { %7980 = vmatmul.mubr.msk.bf16.gmra.mrb[28].mxu0 %vm4942_vm10, %v6172_v34 }
 0x6a9   : > { %7983 = vmatprep.mubr.msk.bf16.mxu0 %vm8513_vm0, %v10660_v24 }
 0x6b0   : > { %7984 = vmatmul.mubr.msk.bf16.gmra.mrb[32].mxu0 %vm4942_vm10, %v6174_v62 }
 0x6b1   : > { %7987 = vmatprep.mubr.msk.bf16.mxu0 %vm8513_vm0, %v10660_v24 }
 0x6b8   : > { %7988 = vmatmul.mubr.msk.bf16.gmra.mrb[36].mxu0 %vm4942_vm10, %v6176_v25 }
 0x6b9   : > { %7991 = vmatprep.mubr.msk.bf16.mxu0 %vm8513_vm0, %v10660_v24 }
 0x6c0   : > { %7992 = vmatmul.mubr.msk.bf16.gmra.mrb[40].mxu0 %vm4942_vm10, %v6175_v50 }
 0x6c8   : > { %v5102_v27 = vpop.f32.mrb[112].mxu1 }
 0x6c9   : > { %v7781_v20 = vpop.f32.mrb[113].mxu1 }
 0x6ca   : > { %v5105_v45 = vpop.f32.mrb[114].mxu1 }
 0x6cb   : > { %v7782_v52 = vpop.f32.mrb[115].mxu1 }
 0x6d0   : > { %v5110_v26 = vpop.f32.mrb[116].mxu1 }
 0x6d1   : > { %v7785_v28 = vpop.f32.mrb[117].mxu1 }
 0x6d2   : > { %v5113_v58 = vpop.f32.mrb[118].mxu1 }
 0x6d3   : > { %v7786_v47 = vpop.f32.mrb[119].mxu1  ;;  %v4992_v18 = vpop.f32.mrb[200].mxu0 }
 0x6d4   : > { %v5103_v46 = vadd.f32 %v5102_v27, %v4992_v18  ;;  %v7753_v32 = vpop.f32.mrb[201].mxu0 }
 0x6d5   : > { %v4995_v33 = vpop.f32.mrb[202].mxu0 }
 0x6d6   : > { %v5106_v59 = vadd.f32 %v5105_v45, %v4995_v33  ;;  %v7754_v51 = vpop.f32.mrb[203].mxu0 }
 0x6d8   : > { %v5118_v40 = vpop.f32.mrb[120].mxu1 }
 0x6d9   : > { %v7789_v23 = vpop.f32.mrb[121].mxu1 }
 0x6da   : > { %v5121_v14 = vpop.f32.mrb[122].mxu1 }
 0x6db   : > { %v7790_v24 = vpop.f32.mrb[123].mxu1  ;;  %v5000_v15 = vpop.f32.mrb[204].mxu0 }
 0x6dc   : > { %v5111_v63 = vadd.f32 %v5110_v26, %v5000_v15  ;;  %v7757_v44 = vpop.f32.mrb[205].mxu0 }
 0x6dd   : > { %v5003_v36 = vpop.f32.mrb[206].mxu0 }
 0x6de   : > { %v5114_v21 = vadd.f32 %v5113_v58, %v5003_v36  ;;  %v7758_v1 = vpop.f32.mrb[207].mxu0 }
 0x6e0   : > { %v5126_v19 = vpop.f32.mrb[124].mxu1 }
 0x6e1   : > { %v7793_v7 = vpop.f32.mrb[125].mxu1 }
 0x6e2   : > { %v5129_v30 = vpop.f32.mrb[126].mxu1 }
 0x6e3   : > { %v7794_v35 = vpop.f32.mrb[127].mxu1  ;;  %v5008_v49 = vpop.f32.mrb[208].mxu0 }
 0x6e4   : > { %v5119_v8 = vadd.f32 %v5118_v40, %v5008_v49  ;;  %v7761_v43 = vpop.f32.mrb[209].mxu0 }
 0x6e5   : > { %v5011_v38 = vpop.f32.mrb[210].mxu0 }
 0x6e6   : > { %v5122_v12 = vadd.f32 %v5121_v14, %v5011_v38  ;;  %v7762_v37 = vpop.f32.mrb[211].mxu0 }
 0x6e8   : > { %v5134_v0 = vpop.f32.mrb[128].mxu1 }
 0x6e9   : > { %v7797_v55 = vpop.f32.mrb[129].mxu1 }
 0x6ea   : > { %v5137_v48 = vpop.f32.mrb[130].mxu1 }
 0x6eb   : > { %v7798_v9 = vpop.f32.mrb[131].mxu1  ;;  %v5016_v54 = vpop.f32.mrb[212].mxu0 }
 0x6ec   : > { %v5127_v6 = vadd.f32 %v5126_v19, %v5016_v54  ;;  %v7765_v60 = vpop.f32.mrb[213].mxu0 }
 0x6ed   : > { %v5019_v56 = vpop.f32.mrb[214].mxu0 }
 0x6ee   : > { %v5130_v31 = vadd.f32 %v5129_v30, %v5019_v56  ;;  %v7766_v16 = vpop.f32.mrb[215].mxu0 }
 0x6f0   : > { %v5405_v53 = vpop.f32.mrb[132].mxu1 }
 0x6f1   : > { %v7837_v11 = vpop.f32.mrb[133].mxu1 }
 0x6f2   : > { %v5408_v5 = vpop.f32.mrb[134].mxu1 }
 0x6f3   : > { %v7838_v3 = vpop.f32.mrb[135].mxu1  ;;  %v5024_v2 = vpop.f32.mrb[216].mxu0 }
 0x6f4   : > { %v5135_v61 = vadd.f32 %v5134_v0, %v5024_v2  ;;  %v7769_v29 = vpop.f32.mrb[217].mxu0 }
 0x6f5   : > { %v5027_v57 = vpop.f32.mrb[218].mxu0 }
 0x6f6   : > { %v7770_v10 = vpop.f32.mrb[219].mxu0 }
 0x6f8   : > { %v5413_v13 = vpop.f32.mrb[136].mxu1 }
 0x6f9   : > { %v7841_v17 = vpop.f32.mrb[137].mxu1 }
 0x6fa   : > { %v5416_v4 = vpop.f32.mrb[138].mxu1 }
 0x6fb   : > { %v7842_v41 = vpop.f32.mrb[139].mxu1  ;;  %v5235_v42 = vpop.f32.mrb[220].mxu0 }
 0x6fc   : > { %v5273_v39 = vadd.f32 %v5235_v42, %v5103_v46  ;;  %v7809_v34 = vpop.f32.mrb[221].mxu0 }
 0x6fd   : > { %v5238_v22 = vpop.f32.mrb[222].mxu0 }
 0x6fe   : > { %v5274_v62 = vadd.f32 %v5238_v22, %v5106_v59  ;;  %v7810_v50 = vpop.f32.mrb[223].mxu0  ;;  %v5443_v25 = vadd.f32 %v5405_v53, %v5273_v39 }
 0x700   : > { %v5421_v27 = vpop.f32.mrb[140].mxu1  ;;  %v5444_v45 = vadd.f32 %v5408_v5, %v5274_v62 }
 0x701   : > { %v7845_v20 = vpop.f32.mrb[141].mxu1 }
 0x702   : > { %v5424_v52 = vpop.f32.mrb[142].mxu1 }
 0x703   : > { %v7846_v26 = vpop.f32.mrb[143].mxu1  ;;  %v5243_v28 = vpop.f32.mrb[224].mxu0 }
 0x704   : > { %v5275_v58 = vadd.f32 %v5243_v28, %v5111_v63  ;;  %v7813_v47 = vpop.f32.mrb[225].mxu0 }
 0x705   : > { %v5246_v18 = vpop.f32.mrb[226].mxu0 }
 0x706   : > { %v5276_v32 = vadd.f32 %v5246_v18, %v5114_v21  ;;  %v7814_v33 = vpop.f32.mrb[227].mxu0  ;;  %v5445_v51 = vadd.f32 %v5413_v13, %v5275_v58 }
 0x708   : > { %v5429_v40 = vpop.f32.mrb[144].mxu1  ;;  %v5446_v46 = vadd.f32 %v5416_v4, %v5276_v32 }
 0x709   : > { %v7849_v23 = vpop.f32.mrb[145].mxu1 }
 0x70a   : > { %v5432_v14 = vpop.f32.mrb[146].mxu1 }
 0x70b   : > { %v7850_v24 = vpop.f32.mrb[147].mxu1  ;;  %v5251_v59 = vpop.f32.mrb[228].mxu0 }
 0x70c   : > { %v5277_v15 = vadd.f32 %v5251_v59, %v5119_v8  ;;  %v7817_v44 = vpop.f32.mrb[229].mxu0 }
 0x70d   : > { %v5254_v36 = vpop.f32.mrb[230].mxu0 }
 0x70e   : > { %v5278_v1 = vadd.f32 %v5254_v36, %v5122_v12  ;;  %v7818_v19 = vpop.f32.mrb[231].mxu0  ;;  %v5447_v7 = vadd.f32 %v5421_v27, %v5277_v15 }
 0x710   : > { %v5437_v30 = vpop.f32.mrb[148].mxu1  ;;  %v5448_v63 = vadd.f32 %v5424_v52, %v5278_v1 }
 0x711   : > { %v7853_v35 = vpop.f32.mrb[149].mxu1 }
 0x712   : > { %v5440_v49 = vpop.f32.mrb[150].mxu1 }
 0x713   : > { %v7854_v43 = vpop.f32.mrb[151].mxu1  ;;  %v5259_v21 = vpop.f32.mrb[232].mxu0 }
 0x714   : > { %v5279_v38 = vadd.f32 %v5259_v21, %v5127_v6  ;;  %v7821_v37 = vpop.f32.mrb[233].mxu0 }
 0x715   : > { %v5262_v0 = vpop.f32.mrb[234].mxu0 }
 0x716   : > { %v5280_v55 = vadd.f32 %v5262_v0, %v5130_v31  ;;  %v7822_v48 = vpop.f32.mrb[235].mxu0  ;;  %v5449_v9 = vadd.f32 %v5429_v40, %v5279_v38 }
 0x718   : > { %v5756_v54 = vpop.f32.mrb[152].mxu1  ;;  %v5450_v8 = vadd.f32 %v5432_v14, %v5280_v55 }
 0x719   : > { %v7893_v60 = vpop.f32.mrb[153].mxu1 }
 0x71a   : > { %v5759_v56 = vpop.f32.mrb[154].mxu1 }
 0x71b   : > { %v7894_v16 = vpop.f32.mrb[155].mxu1  ;;  %v5267_v12 = vpop.f32.mrb[236].mxu0 }
 0x71c   : > { %v5281_v53 = vadd.f32 %v5267_v12, %v5135_v61  ;;  %v7825_v11 = vpop.f32.mrb[237].mxu0 }
 0x71d   : > { %v5270_v5 = vpop.f32.mrb[238].mxu0 }
 0x71e   : > { %v7826_v3 = vpop.f32.mrb[239].mxu0  ;;  %v5451_v2 = vadd.f32 %v5437_v30, %v5281_v53 }
 0x720   : > { %v5764_v29 = vpop.f32.mrb[156].mxu1 }
 0x721   : > { %v7897_v57 = vpop.f32.mrb[157].mxu1 }
 0x722   : > { %v5767_v10 = vpop.f32.mrb[158].mxu1 }
 0x723   : > { %v7898_v6 = vpop.f32.mrb[159].mxu1  ;;  %v5613_v13 = vpop.f32.mrb[240].mxu0 }
 0x724   : > { %v5651_v17 = vadd.f32 %v5613_v13, %v5443_v25  ;;  %v7865_v31 = vpop.f32.mrb[241].mxu0 }
 0x725   : > { %v5616_v4 = vpop.f32.mrb[242].mxu0 }
 0x726   : > { %v5652_v41 = vadd.f32 %v5616_v4, %v5444_v45  ;;  %v7866_v42 = vpop.f32.mrb[243].mxu0  ;;  %v5794_v39 = vadd.f32 %v5756_v54, %v5651_v17 }
 0x728   : > { %v5772_v34 = vpop.f32.mrb[160].mxu1  ;;  %v5795_v62 = vadd.f32 %v5759_v56, %v5652_v41 }
 0x729   : > { %v7901_v22 = vpop.f32.mrb[161].mxu1 }
 0x72a   : > { %v5775_v50 = vpop.f32.mrb[162].mxu1 }
 0x72b   : > { %v7902_v61 = vpop.f32.mrb[163].mxu1  ;;  %v5621_v27 = vpop.f32.mrb[244].mxu0 }
 0x72c   : > { %v5653_v20 = vadd.f32 %v5621_v27, %v5445_v51  ;;  %v7869_v52 = vpop.f32.mrb[245].mxu0 }
 0x72d   : > { %v5624_v26 = vpop.f32.mrb[246].mxu0 }
 0x72e   : > { %v5654_v28 = vadd.f32 %v5624_v26, %v5446_v46  ;;  %v7870_v58 = vpop.f32.mrb[247].mxu0  ;;  %v5796_v47 = vadd.f32 %v5764_v29, %v5653_v20 }
 0x730   : > { %v5780_v18 = vpop.f32.mrb[164].mxu1  ;;  %v5797_v25 = vadd.f32 %v5767_v10, %v5654_v28 }
 0x731   : > { %v7905_v32 = vpop.f32.mrb[165].mxu1 }
 0x732   : > { %v5783_v33 = vpop.f32.mrb[166].mxu1 }
 0x733   : > { %v7906_v40 = vpop.f32.mrb[167].mxu1  ;;  %v5629_v45 = vpop.f32.mrb[248].mxu0 }
 0x734   : > { %v5655_v23 = vadd.f32 %v5629_v45, %v5447_v7  ;;  %v7873_v14 = vpop.f32.mrb[249].mxu0 }
 0x735   : > { %v5632_v24 = vpop.f32.mrb[250].mxu0 }
 0x736   : > { %v5656_v59 = vadd.f32 %v5632_v24, %v5448_v63  ;;  %v7874_v15 = vpop.f32.mrb[251].mxu0  ;;  %v5798_v44 = vadd.f32 %v5772_v34, %v5655_v23 }
 0x738   : > { %v5788_v36 = vpop.f32.mrb[168].mxu1  ;;  %v5799_v51 = vadd.f32 %v5775_v50, %v5656_v59 }
 0x739   : > { %v7909_v1 = vpop.f32.mrb[169].mxu1 }
 0x73a   : > { %v5791_v19 = vpop.f32.mrb[170].mxu1 }
 0x73b   : > { %v7910_v30 = vpop.f32.mrb[171].mxu1  ;;  %v5637_v46 = vpop.f32.mrb[252].mxu0 }
 0x73c   : > { %v5657_v35 = vadd.f32 %v5637_v46, %v5449_v9  ;;  %v7877_v49 = vpop.f32.mrb[253].mxu0 }
 0x73d   : > { %v5640_v43 = vpop.f32.mrb[254].mxu0 }
 0x73e   : > { %v5658_v21 = vadd.f32 %v5640_v43, %v5450_v8  ;;  %v7878_v38 = vpop.f32.mrb[255].mxu0  ;;  %v5800_v37 = vadd.f32 %v5780_v18, %v5657_v35 }
 0x740   : > { %v6107_v0 = vpop.f32.mrb[172].mxu1  ;;  %v5801_v7 = vadd.f32 %v5783_v33, %v5658_v21 }
 0x741   : > { %v7949_v55 = vpop.f32.mrb[173].mxu1 }
 0x742   : > { %v6110_v48 = vpop.f32.mrb[174].mxu1 }
 0x743   : > { %v7950_v54 = vpop.f32.mrb[175].mxu1  ;;  %v5645_v63 = vpop.f32.mrb[0].mxu0 }
 0x744   : > { %v5659_v60 = vadd.f32 %v5645_v63, %v5451_v2  ;;  %v7881_v56 = vpop.f32.mrb[1].mxu0  ;;  %v6972_v54 = vld [vmem:[%s10656_s6] ss:$0 sm:$0xff] }
 0x745   : > { %v5648_v16 = vpop.f32.mrb[2].mxu0 }
 0x746   : > { %v7882_v12 = vpop.f32.mrb[3].mxu0  ;;  %v5802_v53 = vadd.f32 %v5788_v36, %v5659_v60 }
 0x748   : > { %v6115_v11 = vpop.f32.mrb[176].mxu1 }
 0x749   : > { %v7953_v5 = vpop.f32.mrb[177].mxu1 }
 0x74a   : > { %v6118_v3 = vpop.f32.mrb[178].mxu1 }
 0x74b   : > { %v7954_v9 = vpop.f32.mrb[179].mxu1  ;;  %v5929_v29 = vpop.f32.mrb[4].mxu0 }
 0x74c   : > { %v5967_v57 = vadd.f32 %v5929_v29, %v5794_v39  ;;  %v7921_v8 = vpop.f32.mrb[5].mxu0 }
 0x74d   : > { %v5932_v10 = vpop.f32.mrb[6].mxu0 }
 0x74e   : > { %v5968_v6 = vadd.f32 %v5932_v10, %v5795_v62  ;;  %v7922_v13 = vpop.f32.mrb[7].mxu0  ;;  %v6145_v17 = vadd.f32 %v6107_v0, %v5967_v57 }
 0x750   : > { %v6123_v31 = vpop.f32.mrb[180].mxu1  ;;  %v6146_v41 = vadd.f32 %v6110_v48, %v5968_v6 }
 0x751   : > { %v7957_v4 = vpop.f32.mrb[181].mxu1 }
 0x752   : > { %v6126_v42 = vpop.f32.mrb[182].mxu1 }
 0x753   : > { %v7958_v2 = vpop.f32.mrb[183].mxu1  ;;  %v5937_v34 = vpop.f32.mrb[8].mxu0 }
 0x754   : > { %v5969_v22 = vadd.f32 %v5937_v34, %v5796_v47  ;;  %v7925_v50 = vpop.f32.mrb[9].mxu0 }
 0x755   : > { %v5940_v61 = vpop.f32.mrb[10].mxu0 }
 0x756   : > { %v5970_v27 = vadd.f32 %v5940_v61, %v5797_v25  ;;  %v7926_v20 = vpop.f32.mrb[11].mxu0  ;;  %v6147_v52 = vadd.f32 %v6115_v11, %v5969_v22 }
 0x758   : > { %v6131_v26 = vpop.f32.mrb[184].mxu1  ;;  %v6148_v39 = vadd.f32 %v6118_v3, %v5970_v27 }
 0x759   : > { %v7961_v28 = vpop.f32.mrb[185].mxu1 }
 0x75a   : > { %v6134_v58 = vpop.f32.mrb[186].mxu1 }
 0x75b   : > { %v7962_v18 = vpop.f32.mrb[187].mxu1  ;;  %v5945_v62 = vpop.f32.mrb[12].mxu0 }
 0x75c   : > { %v5971_v32 = vadd.f32 %v5945_v62, %v5798_v44  ;;  %v7929_v33 = vpop.f32.mrb[13].mxu0 }
 0x75d   : > { %v5948_v40 = vpop.f32.mrb[14].mxu0 }
 0x75e   : > { %v5972_v45 = vadd.f32 %v5948_v40, %v5799_v51  ;;  %v7930_v23 = vpop.f32.mrb[15].mxu0  ;;  %v6149_v14 = vadd.f32 %v6123_v31, %v5971_v32 }
 0x760   : > { %v6139_v24 = vpop.f32.mrb[188].mxu1  ;;  %v6150_v47 = vadd.f32 %v6126_v42, %v5972_v45 }
 0x761   : > { %v7965_v59 = vpop.f32.mrb[189].mxu1 }
 0x762   : > { %v6142_v15 = vpop.f32.mrb[190].mxu1 }
 0x763   : > { %v7966_v36 = vpop.f32.mrb[191].mxu1  ;;  %v5953_v25 = vpop.f32.mrb[16].mxu0 }
 0x764   : > { %v5973_v1 = vadd.f32 %v5953_v25, %v5800_v37  ;;  %v7933_v19 = vpop.f32.mrb[17].mxu0 }
 0x765   : > { %v5956_v30 = vpop.f32.mrb[18].mxu0 }
 0x766   : > { %v5974_v46 = vadd.f32 %v5956_v30, %v5801_v7  ;;  %v7934_v35 = vpop.f32.mrb[19].mxu0  ;;  %v6151_v49 = vadd.f32 %v6131_v26, %v5973_v1 }
 0x768   : > { %v6152_v43 = vadd.f32 %v6134_v58, %v5974_v46 }
 0x76b   : > { %v5961_v44 = vpop.f32.mrb[20].mxu0 }
 0x76c   : > { %v5975_v21 = vadd.f32 %v5961_v44, %v5802_v53  ;;  %v7937_v38 = vpop.f32.mrb[21].mxu0 }
 0x76d   : > { %v5964_v51 = vpop.f32.mrb[22].mxu0 }
 0x76e   : > { %v7938_v0 = vpop.f32.mrb[23].mxu0  ;;  %v6153_v55 = vadd.f32 %v6139_v24, %v5975_v21 }
 0x773   : > { %v6250_v48 = vpop.f32.mrb[24].mxu0 }
 0x774   : > { %v6288_v63 = vadd.f32 %v6250_v48, %v6145_v17  ;;  %v7977_v37 = vpop.f32.mrb[25].mxu0 }
 0x775   : > { %v6253_v60 = vpop.f32.mrb[26].mxu0 }
 0x776   : > { %v6304_v56 = vadd.f32 %v6972_v54, %v6288_v63  ;;  %v6289_v7 = vadd.f32 %v6253_v60, %v6146_v41  ;;  %v7978_v16 = vpop.f32.mrb[27].mxu0 }
 0x778   : > { %v6313_v12 = vmax.f32 %v6304_v56, 0.0  ;;  %v6305_v11 = vadd.f32 %v6972_v54, %v6289_v7 }
 0x77a   : > { %v6997_v53 = vpack.c.bf16 %v6313_v12, %v6313_v12  ;;  %v6314_v5 = vmax.f32 %v6305_v11, 0.0 }
 0x77b   : > { %v6258_v3 = vpop.f32.mrb[28].mxu0 }
 0x77c   : > { %6359 = vst.msk [vmem:[%s10628_s14] sm:$0xf] %vm4814_vm9, %v6997_v53  ;;  %v6998_v9 = vpack.c.bf16 %v6314_v5, %v6314_v5  ;;  %v6290_v29 = vadd.f32 %v6258_v3, %v6147_v52  ;;  %v7981_v57 = vpop.f32.mrb[29].mxu0 }
 0x77d   : > { %v6261_v8 = vpop.f32.mrb[30].mxu0 }
 0x77e   : > { %6360 = vst.msk [vmem:[%s10628_s14 + $0x4] sm:$0xf] %vm4814_vm9, %v6998_v9  ;;  %v6306_v10 = vadd.f32 %v6972_v54, %v6290_v29  ;;  %v6291_v6 = vadd.f32 %v6261_v8, %v6148_v39  ;;  %v7982_v13 = vpop.f32.mrb[31].mxu0 }
 0x780   : > { %v6315_v17 = vmax.f32 %v6306_v10, 0.0  ;;  %v6307_v31 = vadd.f32 %v6972_v54, %v6291_v6 }
 0x782   : > { %v6999_v4 = vpack.c.bf16 %v6315_v17, %v6315_v17  ;;  %v6316_v41 = vmax.f32 %v6307_v31, 0.0 }
 0x783   : > { %v6266_v42 = vpop.f32.mrb[32].mxu0 }
 0x784   : > { %6361 = vst.msk [vmem:[%s10628_s14 + $0x8] sm:$0xf] %vm4814_vm9, %v6999_v4  ;;  %v7000_v2 = vpack.c.bf16 %v6316_v41, %v6316_v41  ;;  %v6292_v34 = vadd.f32 %v6266_v42, %v6149_v14  ;;  %v7985_v22 = vpop.f32.mrb[33].mxu0 }
 0x785   : > { %v6269_v50 = vpop.f32.mrb[34].mxu0 }
 0x786   : > { %6362 = vst.msk [vmem:[%s10628_s14 + $0xc] sm:$0xf] %vm4814_vm9, %v7000_v2  ;;  %v6308_v61 = vadd.f32 %v6972_v54, %v6292_v34  ;;  %v6293_v27 = vadd.f32 %v6269_v50, %v6150_v47  ;;  %v7986_v20 = vpop.f32.mrb[35].mxu0 }
 0x788   : > { %v6317_v52 = vmax.f32 %v6308_v61, 0.0  ;;  %v6309_v26 = vadd.f32 %v6972_v54, %v6293_v27 }
 0x78a   : > { %v7001_v28 = vpack.c.bf16 %v6317_v52, %v6317_v52  ;;  %v6318_v39 = vmax.f32 %v6309_v26, 0.0 }
 0x78b   : > { %v6274_v58 = vpop.f32.mrb[36].mxu0 }
 0x78c   : > { %6363 = vst.msk [vmem:[%s10628_s14 + $0x10] sm:$0xf] %vm4814_vm9, %v7001_v28  ;;  %v7002_v18 = vpack.c.bf16 %v6318_v39, %v6318_v39  ;;  %v6294_v62 = vadd.f32 %v6274_v58, %v6151_v49  ;;  %v7989_v32 = vpop.f32.mrb[37].mxu0 }
 0x78d   : > { %v6277_v33 = vpop.f32.mrb[38].mxu0 }
 0x78e   : > { %6364 = vst.msk [vmem:[%s10628_s14 + $0x14] sm:$0xf] %vm4814_vm9, %v7002_v18  ;;  %v6310_v40 = vadd.f32 %v6972_v54, %v6294_v62  ;;  %v6295_v45 = vadd.f32 %v6277_v33, %v6152_v43  ;;  %v7990_v23 = vpop.f32.mrb[39].mxu0 }
 0x790   : > { %v6319_v14 = vmax.f32 %v6310_v40, 0.0  ;;  %v6311_v24 = vadd.f32 %v6972_v54, %v6295_v45 }
 0x792   : > { %v7003_v59 = vpack.c.bf16 %v6319_v14, %v6319_v14  ;;  %v6320_v47 = vmax.f32 %v6311_v24, 0.0 }
 0x793   : > { %v6282_v15 = vpop.f32.mrb[40].mxu0 }
 0x794   : > { %6365 = vst.msk [vmem:[%s10628_s14 + $0x18] sm:$0xf] %vm4814_vm9, %v7003_v59  ;;  %v7004_v36 = vpack.c.bf16 %v6320_v47, %v6320_v47  ;;  %v6296_v25 = vadd.f32 %v6282_v15, %v6153_v55  ;;  %v7993_v1 = vpop.f32.mrb[41].mxu0 }
 0x795   : > { %v6285_v19 = vpop.f32.mrb[42].mxu0 }
 0x796   : > { %6366 = vst.msk [vmem:[%s10628_s14 + $0x1c] sm:$0xf] %vm4814_vm9, %v7004_v36  ;;  %v6312_v30 = vadd.f32 %v6972_v54, %v6296_v25  ;;  %v7994_v46 = vpop.f32.mrb[43].mxu0 }
 0x798   : > { %v6321_v35 = vmax.f32 %v6312_v30, 0.0 }
 0x79a   : > { %v7005_v49 = vpack.c.bf16 %v6321_v35, %v6321_v35 }
 0x79c   : > { %6368 = vst.msk [vmem:[%s10628_s14 + $0x20] sm:$0x7] %vm6367_vm14, %v7005_v49 }
 0x79d PF: > { %s17_s24 = sadd.s32 1, %s8509_s24  }
 0x79e   : > { %p14_p4 = scmp.ge.s32.totalorder %s17_s24, 4  }
 0x7a0   :  { %16 = sbr.rel (!%p14_p4) target bundleno = 1 (0x1), region = 101 }

</bundles_post_ra>
